<compile_context>
chip_gen: v5e
topology: v5e:2x2
jax: 0.10.0
libtpu: 0.0.40
codegen_flags: <defaults>
</compile_context>

<pallas_src>
import functools

import numpy as np
import jax
import jax.numpy as jnp
from jax.experimental import pallas as pl
from jax.experimental.pallas import tpu as pltpu

_BN_EPS = 1e-5


# ---------------------------------------------------------------------------
# In-kernel building blocks (flattened per-image (H*W, C) f32 activations)
# ---------------------------------------------------------------------------
def _conv3x3(x, w_ref, mask_ref, W):
    """3x3 'same' conv of a flattened (M, Cin) activation as ONE matmul.

    Tap (kh, kw) reads the input at spatial offset (kh-1, kw-1), i.e. a row
    shift by (kh-1)*W + (kw-1) in flattened row space: a cyclic pltpu.roll
    (XLU) plus a host-precomputed boundary mask (VPU).  The 9 shifted+masked
    copies are concatenated along the lane/channel axis into (M, 9*Cin) and
    contracted against the (9*Cin, Cout) weight in a single MXU matmul."""
    M = x.shape[0]
    masks = mask_ref[...]                               # (M, 9) constants
    cols = []
    for kh in range(3):
        for kw in range(3):
            dh, dw = kh - 1, kw - 1
            if dh == 0 and dw == 0:
                cols.append(x)
            else:
                off = dh * W + dw
                xs = pltpu.roll(x, shift=(-off) % M, axis=0)
                k = kh * 3 + kw
                cols.append(xs * masks[:, k:k + 1])
    stacked = jnp.concatenate(cols, axis=-1)            # (M, 9*Cin)
    return jnp.dot(stacked, w_ref[...], preferred_element_type=jnp.float32)


def _maxpool2x2(y, sel_ref, W):
    """2x2/2 max pool of a flattened (M, C) activation: two shifted maxes put
    the 2x2-window max at the (even i, even j) rows, then one small per-image
    0/1 selection matmul gathers those rows in pooled row order."""
    M = y.shape[0]
    z = jnp.maximum(y, pltpu.roll(y, shift=M - 1, axis=0))   # pair-max along j
    z = jnp.maximum(z, pltpu.roll(z, shift=M - W, axis=0))   # pair-max along i
    return jnp.dot(sel_ref[...], z, preferred_element_type=jnp.float32)


# ---------------------------------------------------------------------------
# The single fused kernel (one grid step == one image)
# ---------------------------------------------------------------------------
def _cnn_kernel(x_ref,
                w1_ref, s1_ref, b1_ref,
                w2_ref, s2_ref, b2_ref,
                w3_ref, s3_ref, b3_ref,
                w4_ref, s4_ref, b4_ref,
                w5_ref, s5_ref, b5_ref,
                mk0_ref, mk1_ref, mk2_ref,
                sel1_ref, sel2_ref, up1_ref, up2_ref,
                o_ref, *, H, W):
    del H  # only the row stride (W) is needed for the flattened shifts
    W1 = W // 2
    W2 = W // 4

    x0 = x_ref[0]                                       # (H*W, 9)

    # conv1 -> BN -> ReLU -> maxpool                     (H1*W1, 16)
    y = _conv3x3(x0, w1_ref, mk0_ref, W)
    y = jnp.maximum(y * s1_ref[...] + b1_ref[...], 0.0)
    x1 = _maxpool2x2(y, sel1_ref, W)

    # conv2 -> BN -> ReLU -> maxpool                     (H2*W2, 32)
    y = _conv3x3(x1, w2_ref, mk1_ref, W1)
    y = jnp.maximum(y * s2_ref[...] + b2_ref[...], 0.0)
    x2 = _maxpool2x2(y, sel2_ref, W1)

    # conv3 (ConvTranspose folded into a conv) -> BN -> ReLU   (H2*W2, 16)
    y = _conv3x3(x2, w3_ref, mk2_ref, W2)
    x3 = jnp.maximum(y * s3_ref[...] + b3_ref[...], 0.0)

    # bilinear x2, align_corners=True                    (H1*W1, 16)
    x3u = jnp.dot(up1_ref[...], x3, preferred_element_type=jnp.float32)

    # conv4 on cat([x3u, x1], ch) with the UNSPLIT weight (in-kernel concat)
    xc = jnp.concatenate([x3u, x1], axis=-1)             # (H1*W1, 32)
    y = _conv3x3(xc, w4_ref, mk1_ref, W1)
    x4 = jnp.maximum(y * s4_ref[...] + b4_ref[...], 0.0)  # (H1*W1, 9)

    # bilinear x2                                        (H*W, 9)
    x4u = jnp.dot(up2_ref[...], x4, preferred_element_type=jnp.float32)

    # conv5 on cat([x4u, x], ch); BN, no ReLU
    xc = jnp.concatenate([x4u, x0], axis=-1)              # (H*W, 18)
    y = _conv3x3(xc, w5_ref, mk0_ref, W)
    o_ref[0] = y * s5_ref[...] + b5_ref[...]              # (H*W, 3)


# ---------------------------------------------------------------------------
# Host-side constants (computed once at trace time; per image, tiny)
# ---------------------------------------------------------------------------
def _bilinear_matrix(out_size, in_size):
    A = np.zeros((out_size, in_size), np.float32)
    if out_size == 1:
        A[0, 0] = 1.0
        return A
    for i in range(out_size):
        src = i * (in_size - 1) / (out_size - 1)      # align_corners=True
        i0 = min(int(np.floor(src)), in_size - 1)
        i1 = min(i0 + 1, in_size - 1)
        f = src - i0
        A[i, i0] += 1.0 - f
        A[i, i1] += f
    return A


def _upsample2_matrix(H, W):
    """Per-image (4*H*W, H*W) bilinear-x2 interpolation matrix (flattened)."""
    return np.kron(_bilinear_matrix(2 * H, H),
                   _bilinear_matrix(2 * W, W)).astype(np.float32)


def _pool_select_matrix(H, W):
    """Per-image (H/2*W/2, H*W) 0/1 matrix picking the (even i, even j) rows."""
    ph = np.zeros((H // 2, H), np.float32)
    ph[np.arange(H // 2), 2 * np.arange(H // 2)] = 1.0
    pw = np.zeros((W // 2, W), np.float32)
    pw[np.arange(W // 2), 2 * np.arange(W // 2)] = 1.0
    return np.kron(ph, pw).astype(np.float32)


def _np_boundary_masks(H, W):
    """(H*W, 9) f32: column kh*3+kw is 1.0 where pixel (i+kh-1, j+kw-1) lies
    inside the image (the centre column is all ones and is never used)."""
    ii, jj = np.meshgrid(np.arange(H), np.arange(W), indexing="ij")
    ii = ii.reshape(-1)
    jj = jj.reshape(-1)
    m = np.zeros((H * W, 9), np.float32)
    for kh in range(3):
        for kw in range(3):
            dh, dw = kh - 1, kw - 1
            ok = ((ii + dh >= 0) & (ii + dh < H) &
                  (jj + dw >= 0) & (jj + dw < W))
            m[:, kh * 3 + kw] = ok.astype(np.float32)
    return m


# ---------------------------------------------------------------------------
# Parameters (deterministic, synthetic); BN folded, ConvT rewritten as conv
# ---------------------------------------------------------------------------
def _conv_w_to_taps(w):
    # Conv2d weight (Cout, Cin, 3, 3) -> (9, Cin, Cout), tap index = kh*3+kw
    cout, cin = w.shape[0], w.shape[1]
    return jnp.transpose(w, (2, 3, 1, 0)).reshape(9, cin, cout)


def _convT_w_to_taps(w):
    # ConvTranspose2d(stride=1, pad=1) == conv with flipped, axis-swapped kernel.
    cin, cout = w.shape[0], w.shape[1]
    return jnp.transpose(w[:, :, ::-1, ::-1], (2, 3, 0, 1)).reshape(9, cin, cout)


def _fold_bn(conv_bias, gamma, beta, running_mean, running_var):
    scale = gamma / jnp.sqrt(running_var + _BN_EPS)
    bias = (conv_bias - running_mean) * scale + beta
    return scale, bias


def init_params(key):
    # TODO(synk): BatchNorm is eval-mode only (running stats folded into scale/bias);
    # training-mode batch statistics are not computed.
    def layer(k, w_shape, cout, transposed):
        kw, kb, kg, kbeta = jax.random.split(k, 4)
        w = jax.random.normal(kw, w_shape, jnp.float32) * 0.1
        b = jax.random.normal(kb, (cout,), jnp.float32) * 0.1
        gamma = 1.0 + 0.1 * jax.random.normal(kg, (cout,), jnp.float32)
        beta = 0.1 * jax.random.normal(kbeta, (cout,), jnp.float32)
        rm = jnp.zeros((cout,), jnp.float32)
        rv = jnp.ones((cout,), jnp.float32)
        taps = _convT_w_to_taps(w) if transposed else _conv_w_to_taps(w)
        scale, bias = _fold_bn(b, gamma, beta, rm, rv)
        return dict(taps=taps, scale=scale, bias=bias)

    keys = jax.random.split(key, 5)
    return dict(
        conv1=layer(keys[0], (16, 9, 3, 3), 16, False),   # Conv2d(9 -> 16)
        conv2=layer(keys[1], (32, 16, 3, 3), 32, False),  # Conv2d(16 -> 32)
        conv3=layer(keys[2], (32, 16, 3, 3), 16, True),   # ConvT(32 -> 16)
        conv4=layer(keys[3], (32, 9, 3, 3), 9, True),     # ConvT(32 -> 9)
        conv5=layer(keys[4], (18, 3, 3, 3), 3, True),     # ConvT(18 -> 3)
    )


# ---------------------------------------------------------------------------
# Forward pass (one pallas_call, gridded over the batch)
# ---------------------------------------------------------------------------
def cnn_net_forward(params, x_nchw):
    p = params
    N, Cin, H, W = x_nchw.shape
    assert H % 4 == 0 and W % 4 == 0, "two 2x2 maxpools need H, W divisible by 4"

    H1, W1, H2, W2 = H // 2, W // 2, H // 4, W // 4
    M0, M1, M2 = H * W, H1 * W1, H2 * W2
    cout = p["conv5"]["taps"].shape[-1]

    x3d = jnp.transpose(x_nchw, (0, 2, 3, 1)).reshape(N, M0, Cin)

    row = lambda v: v.reshape(1, -1)
    stack_w = lambda t: t.reshape(-1, t.shape[-1])        # (9,Cin,Cout)->(9*Cin,Cout)

    # Host-precomputed, per-image constants.
    mk0 = jnp.asarray(_np_boundary_masks(H, W))
    mk1 = jnp.asarray(_np_boundary_masks(H1, W1))
    mk2 = jnp.asarray(_np_boundary_masks(H2, W2))
    sel1 = jnp.asarray(_pool_select_matrix(H, W))         # (M1, M0)
    sel2 = jnp.asarray(_pool_select_matrix(H1, W1))       # (M2, M1)
    up1 = jnp.asarray(_upsample2_matrix(H2, W2))          # (M1, M2)
    up2 = jnp.asarray(_upsample2_matrix(H1, W1))          # (M0, M1)

    args = (
        x3d,
        stack_w(p["conv1"]["taps"]), row(p["conv1"]["scale"]), row(p["conv1"]["bias"]),
        stack_w(p["conv2"]["taps"]), row(p["conv2"]["scale"]), row(p["conv2"]["bias"]),
        stack_w(p["conv3"]["taps"]), row(p["conv3"]["scale"]), row(p["conv3"]["bias"]),
        stack_w(p["conv4"]["taps"]), row(p["conv4"]["scale"]), row(p["conv4"]["bias"]),
        stack_w(p["conv5"]["taps"]), row(p["conv5"]["scale"]), row(p["conv5"]["bias"]),
        mk0, mk1, mk2, sel1, sel2, up1, up2,
    )

    def const_spec(a):
        return pl.BlockSpec(a.shape, lambda n: (0,) * a.ndim)

    in_specs = [pl.BlockSpec((1, M0, Cin), lambda n: (n, 0, 0))]
    in_specs += [const_spec(a) for a in args[1:]]
    out_specs = pl.BlockSpec((1, M0, cout), lambda n: (n, 0, 0))
    out_shape = jax.ShapeDtypeStruct((N, M0, cout), jnp.float32)

    # Advisory cost estimate for the scheduler.
    flops = 0
    for m, t in ((M0, p["conv1"]["taps"]), (M1, p["conv2"]["taps"]),
                 (M2, p["conv3"]["taps"]), (M1, p["conv4"]["taps"]),
                 (M0, p["conv5"]["taps"])):
        flops += 2 * m * t.shape[0] * t.shape[1] * t.shape[2]
    flops += 2 * M1 * M0 * 16 + 2 * M2 * M1 * 32          # maxpool row selections
    flops += 2 * M1 * M2 * 16 + 2 * M0 * M1 * 9           # bilinear upsamples
    flops *= N
    bytes_accessed = sum(int(np.prod(a.shape)) * 4 for a in args) + N * M0 * cout * 4

    out3d = pl.pallas_call(
        functools.partial(_cnn_kernel, H=H, W=W),
        grid=(N,),
        in_specs=in_specs,
        out_specs=out_specs,
        out_shape=out_shape,
        compiler_params=pltpu.CompilerParams(
            dimension_semantics=("parallel",),
            vmem_limit_bytes=48 * 1024 * 1024),
        cost_estimate=pl.CostEstimate(
            flops=int(flops), transcendentals=0,
            bytes_accessed=int(bytes_accessed)),
    )(*args)

    return jnp.transpose(out3d.reshape(N, H, W, cout), (0, 3, 1, 2))


# ---------------------------------------------------------------------------
# Pure-JAX reference (independent of the flattened/roll/kron machinery)
# ---------------------------------------------------------------------------
def _reference_forward(params, x_nchw):
    p = params
    x = jnp.transpose(x_nchw, (0, 2, 3, 1)).astype(jnp.float32)

    def conv_bn(inp, layer, relu):
        taps, scale, bias = layer["taps"], layer["scale"], layer["bias"]
        _, H, W, _ = inp.shape
        xp = jnp.pad(inp, ((0, 0), (1, 1), (1, 1), (0, 0)))
        out = 0.0
        for kh in range(3):
            for kw in range(3):
                out = out + jnp.einsum("nhwc,cd->nhwd",
                                       xp[:, kh:kh + H, kw:kw + W, :],
                                       taps[kh * 3 + kw])
        out = out * scale + bias
        return jnp.maximum(out, 0.0) if relu else out

    def pool(t):
        return jax.lax.reduce_window(t, -jnp.inf, jax.lax.max,
                                     (1, 2, 2, 1), (1, 2, 2, 1), "VALID")

    def up(t):
        _, H, W, _ = t.shape
        ah = jnp.asarray(_bilinear_matrix(2 * H, H))
        aw = jnp.asarray(_bilinear_matrix(2 * W, W))
        return jnp.einsum("oi,nijc,pj->nopc", ah, t, aw)

    x1 = pool(conv_bn(x, p["conv1"], True))
    x2 = pool(conv_bn(x1, p["conv2"], True))
    x3 = conv_bn(x2, p["conv3"], True)
    x4 = conv_bn(jnp.concatenate([up(x3), x1], axis=-1), p["conv4"], True)
    out = conv_bn(jnp.concatenate([up(x4), x], axis=-1), p["conv5"], False)
    return jnp.transpose(out, (0, 3, 1, 2))


if __name__ == "__main__":
    key = jax.random.PRNGKey(0)
    pkey, xkey = jax.random.split(key)
    params = init_params(pkey)
    x = jax.random.normal(xkey, (2, 9, 16, 16), jnp.float32)   # NCHW, like PyTorch

    out = jax.jit(cnn_net_forward)(params, x)
    jax.block_until_ready(out)
    assert out.shape == (2, 3, 16, 16) and out.dtype == jnp.float32

    ref = jax.jit(_reference_forward)(params, x)
    max_err = float(jnp.max(jnp.abs(out - ref)))
    assert max_err < 5e-4, f"kernel/reference mismatch: max abs err = {max_err}"

    print("KERNEL_OK")
</pallas_src>

<mosaic_0001>
module attributes {stable_mosaic.version = 11 : i64} {
  func.func @_cnn_kernel(%arg0: i32, %arg1: memref<1x256x9xf32, #tpu.memory_space<vmem>>, %arg2: memref<81x16xf32, #tpu.memory_space<vmem>>, %arg3: memref<1x16xf32, #tpu.memory_space<vmem>>, %arg4: memref<1x16xf32, #tpu.memory_space<vmem>>, %arg5: memref<144x32xf32, #tpu.memory_space<vmem>>, %arg6: memref<1x32xf32, #tpu.memory_space<vmem>>, %arg7: memref<1x32xf32, #tpu.memory_space<vmem>>, %arg8: memref<288x16xf32, #tpu.memory_space<vmem>>, %arg9: memref<1x16xf32, #tpu.memory_space<vmem>>, %arg10: memref<1x16xf32, #tpu.memory_space<vmem>>, %arg11: memref<288x9xf32, #tpu.memory_space<vmem>>, %arg12: memref<1x9xf32, #tpu.memory_space<vmem>>, %arg13: memref<1x9xf32, #tpu.memory_space<vmem>>, %arg14: memref<162x3xf32, #tpu.memory_space<vmem>>, %arg15: memref<1x3xf32, #tpu.memory_space<vmem>>, %arg16: memref<1x3xf32, #tpu.memory_space<vmem>>, %arg17: memref<256x9xf32, #tpu.memory_space<vmem>>, %arg18: memref<64x9xf32, #tpu.memory_space<vmem>>, %arg19: memref<16x9xf32, #tpu.memory_space<vmem>>, %arg20: memref<64x256xf32, #tpu.memory_space<vmem>>, %arg21: memref<16x64xf32, #tpu.memory_space<vmem>>, %arg22: memref<64x16xf32, #tpu.memory_space<vmem>>, %arg23: memref<256x64xf32, #tpu.memory_space<vmem>>, %arg24: memref<1x256x3xf32, #tpu.memory_space<vmem>>) attributes {dimension_semantics = [#tpu.dimension_semantics<parallel>], iteration_bounds = array<i64: 2>, scalar_prefetch = 0 : i64, scratch_operands = 0 : i64, tpu.core_type = #tpu.core_type<tc>, window_params = [{transform_indices = @transform_0, window_bounds = array<i64: 1, 256, 9>}, {pipeline_mode = #tpu.pipeline_mode<synchronous>, transform_indices = @transform_1, window_bounds = array<i64: 81, 16>}, {pipeline_mode = #tpu.pipeline_mode<synchronous>, transform_indices = @transform_2, window_bounds = array<i64: 1, 16>}, {pipeline_mode = #tpu.pipeline_mode<synchronous>, transform_indices = @transform_3, window_bounds = array<i64: 1, 16>}, {pipeline_mode = #tpu.pipeline_mode<synchronous>, transform_indices = @transform_4, window_bounds = array<i64: 144, 32>}, {pipeline_mode = #tpu.pipeline_mode<synchronous>, transform_indices = @transform_5, window_bounds = array<i64: 1, 32>}, {pipeline_mode = #tpu.pipeline_mode<synchronous>, transform_indices = @transform_6, window_bounds = array<i64: 1, 32>}, {pipeline_mode = #tpu.pipeline_mode<synchronous>, transform_indices = @transform_7, window_bounds = array<i64: 288, 16>}, {pipeline_mode = #tpu.pipeline_mode<synchronous>, transform_indices = @transform_8, window_bounds = array<i64: 1, 16>}, {pipeline_mode = #tpu.pipeline_mode<synchronous>, transform_indices = @transform_9, window_bounds = array<i64: 1, 16>}, {pipeline_mode = #tpu.pipeline_mode<synchronous>, transform_indices = @transform_10, window_bounds = array<i64: 288, 9>}, {pipeline_mode = #tpu.pipeline_mode<synchronous>, transform_indices = @transform_11, window_bounds = array<i64: 1, 9>}, {pipeline_mode = #tpu.pipeline_mode<synchronous>, transform_indices = @transform_12, window_bounds = array<i64: 1, 9>}, {pipeline_mode = #tpu.pipeline_mode<synchronous>, transform_indices = @transform_13, window_bounds = array<i64: 162, 3>}, {pipeline_mode = #tpu.pipeline_mode<synchronous>, transform_indices = @transform_14, window_bounds = array<i64: 1, 3>}, {pipeline_mode = #tpu.pipeline_mode<synchronous>, transform_indices = @transform_15, window_bounds = array<i64: 1, 3>}, {pipeline_mode = #tpu.pipeline_mode<synchronous>, transform_indices = @transform_16, window_bounds = array<i64: 256, 9>}, {pipeline_mode = #tpu.pipeline_mode<synchronous>, transform_indices = @transform_17, window_bounds = array<i64: 64, 9>}, {pipeline_mode = #tpu.pipeline_mode<synchronous>, transform_indices = @transform_18, window_bounds = array<i64: 16, 9>}, {pipeline_mode = #tpu.pipeline_mode<synchronous>, transform_indices = @transform_19, window_bounds = array<i64: 64, 256>}, {pipeline_mode = #tpu.pipeline_mode<synchronous>, transform_indices = @transform_20, window_bounds = array<i64: 16, 64>}, {pipeline_mode = #tpu.pipeline_mode<synchronous>, transform_indices = @transform_21, window_bounds = array<i64: 64, 16>}, {pipeline_mode = #tpu.pipeline_mode<synchronous>, transform_indices = @transform_22, window_bounds = array<i64: 256, 64>}, {transform_indices = @transform_23, window_bounds = array<i64: 1, 256, 3>}]} {
    %c0 = arith.constant 0 : index
    %c0_0 = arith.constant 0 : index
    %c0_1 = arith.constant 0 : index
    %0 = vector.load %arg1[%c0, %c0_0, %c0_1] : memref<1x256x9xf32, #tpu.memory_space<vmem>>, vector<1x256x9xf32>
    %1 = vector.shape_cast %0 : vector<1x256x9xf32> to vector<256x9xf32>
    %c0_2 = arith.constant 0 : index
    %c0_3 = arith.constant 0 : index
    %2 = vector.load %arg17[%c0_2, %c0_3] : memref<256x9xf32, #tpu.memory_space<vmem>>, vector<256x9xf32>
    %c17_i32 = arith.constant 17 : i32
    %3 = tpu.dynamic_rotate %1 by %c17_i32 dim 0 : vector<256x9xf32>, i32 -> vector<256x9xf32>
    %4 = vector.extract_strided_slice %2 {offsets = [0, 0], sizes = [256, 1], strides = [1, 1]} : vector<256x9xf32> to vector<256x1xf32>
    %5 = vector.broadcast %4 : vector<256x1xf32> to vector<256x9xf32>
    %6 = arith.mulf %3, %5 : vector<256x9xf32>
    %c16_i32 = arith.constant 16 : i32
    %7 = tpu.dynamic_rotate %1 by %c16_i32 dim 0 : vector<256x9xf32>, i32 -> vector<256x9xf32>
    %8 = vector.extract_strided_slice %2 {offsets = [0, 1], sizes = [256, 1], strides = [1, 1]} : vector<256x9xf32> to vector<256x1xf32>
    %9 = vector.broadcast %8 : vector<256x1xf32> to vector<256x9xf32>
    %10 = arith.mulf %7, %9 : vector<256x9xf32>
    %c15_i32 = arith.constant 15 : i32
    %11 = tpu.dynamic_rotate %1 by %c15_i32 dim 0 : vector<256x9xf32>, i32 -> vector<256x9xf32>
    %12 = vector.extract_strided_slice %2 {offsets = [0, 2], sizes = [256, 1], strides = [1, 1]} : vector<256x9xf32> to vector<256x1xf32>
    %13 = vector.broadcast %12 : vector<256x1xf32> to vector<256x9xf32>
    %14 = arith.mulf %11, %13 : vector<256x9xf32>
    %c1_i32 = arith.constant 1 : i32
    %15 = tpu.dynamic_rotate %1 by %c1_i32 dim 0 : vector<256x9xf32>, i32 -> vector<256x9xf32>
    %16 = vector.extract_strided_slice %2 {offsets = [0, 3], sizes = [256, 1], strides = [1, 1]} : vector<256x9xf32> to vector<256x1xf32>
    %17 = vector.broadcast %16 : vector<256x1xf32> to vector<256x9xf32>
    %18 = arith.mulf %15, %17 : vector<256x9xf32>
    %c255_i32 = arith.constant 255 : i32
    %19 = tpu.dynamic_rotate %1 by %c255_i32 dim 0 : vector<256x9xf32>, i32 -> vector<256x9xf32>
    %20 = vector.extract_strided_slice %2 {offsets = [0, 5], sizes = [256, 1], strides = [1, 1]} : vector<256x9xf32> to vector<256x1xf32>
    %21 = vector.broadcast %20 : vector<256x1xf32> to vector<256x9xf32>
    %22 = arith.mulf %19, %21 : vector<256x9xf32>
    %c241_i32 = arith.constant 241 : i32
    %23 = tpu.dynamic_rotate %1 by %c241_i32 dim 0 : vector<256x9xf32>, i32 -> vector<256x9xf32>
    %24 = vector.extract_strided_slice %2 {offsets = [0, 6], sizes = [256, 1], strides = [1, 1]} : vector<256x9xf32> to vector<256x1xf32>
    %25 = vector.broadcast %24 : vector<256x1xf32> to vector<256x9xf32>
    %26 = arith.mulf %23, %25 : vector<256x9xf32>
    %c240_i32 = arith.constant 240 : i32
    %27 = tpu.dynamic_rotate %1 by %c240_i32 dim 0 : vector<256x9xf32>, i32 -> vector<256x9xf32>
    %28 = vector.extract_strided_slice %2 {offsets = [0, 7], sizes = [256, 1], strides = [1, 1]} : vector<256x9xf32> to vector<256x1xf32>
    %29 = vector.broadcast %28 : vector<256x1xf32> to vector<256x9xf32>
    %30 = arith.mulf %27, %29 : vector<256x9xf32>
    %c239_i32 = arith.constant 239 : i32
    %31 = tpu.dynamic_rotate %1 by %c239_i32 dim 0 : vector<256x9xf32>, i32 -> vector<256x9xf32>
    %32 = vector.extract_strided_slice %2 {offsets = [0, 8], sizes = [256, 1], strides = [1, 1]} : vector<256x9xf32> to vector<256x1xf32>
    %33 = vector.broadcast %32 : vector<256x1xf32> to vector<256x9xf32>
    %34 = arith.mulf %31, %33 : vector<256x9xf32>
    %35 = tpu.concatenate %6, %10, %14, %18, %1, %22, %26, %30, %34 in 1 : vector<256x9xf32>, vector<256x9xf32>, vector<256x9xf32>, vector<256x9xf32>, vector<256x9xf32>, vector<256x9xf32>, vector<256x9xf32>, vector<256x9xf32>, vector<256x9xf32> -> vector<256x81xf32>
    %c0_4 = arith.constant 0 : index
    %c0_5 = arith.constant 0 : index
    %36 = vector.load %arg2[%c0_4, %c0_5] : memref<81x16xf32, #tpu.memory_space<vmem>>, vector<81x16xf32>
    %cst = arith.constant dense<0.000000e+00> : vector<256x16xf32>
    %37 = tpu.matmul %35, %36, %cst {dimension_numbers = #tpu.dot_dimension_numbers<[1], [0], [0], [1], [0, 0, 1, 1], [], []>} : vector<256x81xf32>, vector<81x16xf32>, vector<256x16xf32> -> vector<256x16xf32>
    %c0_6 = arith.constant 0 : index
    %c0_7 = arith.constant 0 : index
    %38 = vector.load %arg3[%c0_6, %c0_7] : memref<1x16xf32, #tpu.memory_space<vmem>>, vector<1x16xf32>
    %39 = vector.broadcast %38 : vector<1x16xf32> to vector<256x16xf32>
    %40 = arith.mulf %37, %39 : vector<256x16xf32>
    %c0_8 = arith.constant 0 : index
    %c0_9 = arith.constant 0 : index
    %41 = vector.load %arg4[%c0_8, %c0_9] : memref<1x16xf32, #tpu.memory_space<vmem>>, vector<1x16xf32>
    %42 = vector.broadcast %41 : vector<1x16xf32> to vector<256x16xf32>
    %43 = arith.addf %40, %42 : vector<256x16xf32>
    %cst_10 = arith.constant 0.000000e+00 : f32
    %44 = vector.broadcast %cst_10 : f32 to vector<256x16xf32>
    %45 = arith.maximumf %43, %44 : vector<256x16xf32>
    %c255_i32_11 = arith.constant 255 : i32
    %46 = tpu.dynamic_rotate %45 by %c255_i32_11 dim 0 : vector<256x16xf32>, i32 -> vector<256x16xf32>
    %47 = arith.maximumf %45, %46 : vector<256x16xf32>
    %c240_i32_12 = arith.constant 240 : i32
    %48 = tpu.dynamic_rotate %47 by %c240_i32_12 dim 0 : vector<256x16xf32>, i32 -> vector<256x16xf32>
    %49 = arith.maximumf %47, %48 : vector<256x16xf32>
    %c0_13 = arith.constant 0 : index
    %c0_14 = arith.constant 0 : index
    %50 = vector.load %arg20[%c0_13, %c0_14] : memref<64x256xf32, #tpu.memory_space<vmem>>, vector<64x256xf32>
    %cst_15 = arith.constant dense<0.000000e+00> : vector<64x16xf32>
    %51 = tpu.matmul %50, %49, %cst_15 {dimension_numbers = #tpu.dot_dimension_numbers<[1], [0], [0], [1], [0, 0, 1, 1], [], []>} : vector<64x256xf32>, vector<256x16xf32>, vector<64x16xf32> -> vector<64x16xf32>
    %c0_16 = arith.constant 0 : index
    %c0_17 = arith.constant 0 : index
    %52 = vector.load %arg18[%c0_16, %c0_17] : memref<64x9xf32, #tpu.memory_space<vmem>>, vector<64x9xf32>
    %c9_i32 = arith.constant 9 : i32
    %53 = tpu.dynamic_rotate %51 by %c9_i32 dim 0 : vector<64x16xf32>, i32 -> vector<64x16xf32>
    %54 = vector.extract_strided_slice %52 {offsets = [0, 0], sizes = [64, 1], strides = [1, 1]} : vector<64x9xf32> to vector<64x1xf32>
    %55 = vector.broadcast %54 : vector<64x1xf32> to vector<64x16xf32>
    %56 = arith.mulf %53, %55 : vector<64x16xf32>
    %c8_i32 = arith.constant 8 : i32
    %57 = tpu.dynamic_rotate %51 by %c8_i32 dim 0 : vector<64x16xf32>, i32 -> vector<64x16xf32>
    %58 = vector.extract_strided_slice %52 {offsets = [0, 1], sizes = [64, 1], strides = [1, 1]} : vector<64x9xf32> to vector<64x1xf32>
    %59 = vector.broadcast %58 : vector<64x1xf32> to vector<64x16xf32>
    %60 = arith.mulf %57, %59 : vector<64x16xf32>
    %c7_i32 = arith.constant 7 : i32
    %61 = tpu.dynamic_rotate %51 by %c7_i32 dim 0 : vector<64x16xf32>, i32 -> vector<64x16xf32>
    %62 = vector.extract_strided_slice %52 {offsets = [0, 2], sizes = [64, 1], strides = [1, 1]} : vector<64x9xf32> to vector<64x1xf32>
    %63 = vector.broadcast %62 : vector<64x1xf32> to vector<64x16xf32>
    %64 = arith.mulf %61, %63 : vector<64x16xf32>
    %c1_i32_18 = arith.constant 1 : i32
    %65 = tpu.dynamic_rotate %51 by %c1_i32_18 dim 0 : vector<64x16xf32>, i32 -> vector<64x16xf32>
    %66 = vector.extract_strided_slice %52 {offsets = [0, 3], sizes = [64, 1], strides = [1, 1]} : vector<64x9xf32> to vector<64x1xf32>
    %67 = vector.broadcast %66 : vector<64x1xf32> to vector<64x16xf32>
    %68 = arith.mulf %65, %67 : vector<64x16xf32>
    %c63_i32 = arith.constant 63 : i32
    %69 = tpu.dynamic_rotate %51 by %c63_i32 dim 0 : vector<64x16xf32>, i32 -> vector<64x16xf32>
    %70 = vector.extract_strided_slice %52 {offsets = [0, 5], sizes = [64, 1], strides = [1, 1]} : vector<64x9xf32> to vector<64x1xf32>
    %71 = vector.broadcast %70 : vector<64x1xf32> to vector<64x16xf32>
    %72 = arith.mulf %69, %71 : vector<64x16xf32>
    %c57_i32 = arith.constant 57 : i32
    %73 = tpu.dynamic_rotate %51 by %c57_i32 dim 0 : vector<64x16xf32>, i32 -> vector<64x16xf32>
    %74 = vector.extract_strided_slice %52 {offsets = [0, 6], sizes = [64, 1], strides = [1, 1]} : vector<64x9xf32> to vector<64x1xf32>
    %75 = vector.broadcast %74 : vector<64x1xf32> to vector<64x16xf32>
    %76 = arith.mulf %73, %75 : vector<64x16xf32>
    %c56_i32 = arith.constant 56 : i32
    %77 = tpu.dynamic_rotate %51 by %c56_i32 dim 0 : vector<64x16xf32>, i32 -> vector<64x16xf32>
    %78 = vector.extract_strided_slice %52 {offsets = [0, 7], sizes = [64, 1], strides = [1, 1]} : vector<64x9xf32> to vector<64x1xf32>
    %79 = vector.broadcast %78 : vector<64x1xf32> to vector<64x16xf32>
    %80 = arith.mulf %77, %79 : vector<64x16xf32>
    %c55_i32 = arith.constant 55 : i32
    %81 = tpu.dynamic_rotate %51 by %c55_i32 dim 0 : vector<64x16xf32>, i32 -> vector<64x16xf32>
    %82 = vector.extract_strided_slice %52 {offsets = [0, 8], sizes = [64, 1], strides = [1, 1]} : vector<64x9xf32> to vector<64x1xf32>
    %83 = vector.broadcast %82 : vector<64x1xf32> to vector<64x16xf32>
    %84 = arith.mulf %81, %83 : vector<64x16xf32>
    %85 = tpu.concatenate %56, %60, %64, %68, %51, %72, %76, %80, %84 in 1 : vector<64x16xf32>, vector<64x16xf32>, vector<64x16xf32>, vector<64x16xf32>, vector<64x16xf32>, vector<64x16xf32>, vector<64x16xf32>, vector<64x16xf32>, vector<64x16xf32> -> vector<64x144xf32>
    %c0_19 = arith.constant 0 : index
    %c0_20 = arith.constant 0 : index
    %86 = vector.load %arg5[%c0_19, %c0_20] : memref<144x32xf32, #tpu.memory_space<vmem>>, vector<144x32xf32>
    %cst_21 = arith.constant dense<0.000000e+00> : vector<64x32xf32>
    %87 = tpu.matmul %85, %86, %cst_21 {dimension_numbers = #tpu.dot_dimension_numbers<[1], [0], [0], [1], [0, 0, 1, 1], [], []>} : vector<64x144xf32>, vector<144x32xf32>, vector<64x32xf32> -> vector<64x32xf32>
    %c0_22 = arith.constant 0 : index
    %c0_23 = arith.constant 0 : index
    %88 = vector.load %arg6[%c0_22, %c0_23] : memref<1x32xf32, #tpu.memory_space<vmem>>, vector<1x32xf32>
    %89 = vector.broadcast %88 : vector<1x32xf32> to vector<64x32xf32>
    %90 = arith.mulf %87, %89 : vector<64x32xf32>
    %c0_24 = arith.constant 0 : index
    %c0_25 = arith.constant 0 : index
    %91 = vector.load %arg7[%c0_24, %c0_25] : memref<1x32xf32, #tpu.memory_space<vmem>>, vector<1x32xf32>
    %92 = vector.broadcast %91 : vector<1x32xf32> to vector<64x32xf32>
    %93 = arith.addf %90, %92 : vector<64x32xf32>
    %cst_26 = arith.constant 0.000000e+00 : f32
    %94 = vector.broadcast %cst_26 : f32 to vector<64x32xf32>
    %95 = arith.maximumf %93, %94 : vector<64x32xf32>
    %c63_i32_27 = arith.constant 63 : i32
    %96 = tpu.dynamic_rotate %95 by %c63_i32_27 dim 0 : vector<64x32xf32>, i32 -> vector<64x32xf32>
    %97 = arith.maximumf %95, %96 : vector<64x32xf32>
    %c56_i32_28 = arith.constant 56 : i32
    %98 = tpu.dynamic_rotate %97 by %c56_i32_28 dim 0 : vector<64x32xf32>, i32 -> vector<64x32xf32>
    %99 = arith.maximumf %97, %98 : vector<64x32xf32>
    %c0_29 = arith.constant 0 : index
    %c0_30 = arith.constant 0 : index
    %100 = vector.load %arg21[%c0_29, %c0_30] : memref<16x64xf32, #tpu.memory_space<vmem>>, vector<16x64xf32>
    %cst_31 = arith.constant dense<0.000000e+00> : vector<16x32xf32>
    %101 = tpu.matmul %100, %99, %cst_31 {dimension_numbers = #tpu.dot_dimension_numbers<[1], [0], [0], [1], [0, 0, 1, 1], [], []>} : vector<16x64xf32>, vector<64x32xf32>, vector<16x32xf32> -> vector<16x32xf32>
    %c0_32 = arith.constant 0 : index
    %c0_33 = arith.constant 0 : index
    %102 = vector.load %arg19[%c0_32, %c0_33] : memref<16x9xf32, #tpu.memory_space<vmem>>, vector<16x9xf32>
    %c5_i32 = arith.constant 5 : i32
    %103 = tpu.dynamic_rotate %101 by %c5_i32 dim 0 : vector<16x32xf32>, i32 -> vector<16x32xf32>
    %104 = vector.extract_strided_slice %102 {offsets = [0, 0], sizes = [16, 1], strides = [1, 1]} : vector<16x9xf32> to vector<16x1xf32>
    %105 = vector.broadcast %104 : vector<16x1xf32> to vector<16x32xf32>
    %106 = arith.mulf %103, %105 : vector<16x32xf32>
    %c4_i32 = arith.constant 4 : i32
    %107 = tpu.dynamic_rotate %101 by %c4_i32 dim 0 : vector<16x32xf32>, i32 -> vector<16x32xf32>
    %108 = vector.extract_strided_slice %102 {offsets = [0, 1], sizes = [16, 1], strides = [1, 1]} : vector<16x9xf32> to vector<16x1xf32>
    %109 = vector.broadcast %108 : vector<16x1xf32> to vector<16x32xf32>
    %110 = arith.mulf %107, %109 : vector<16x32xf32>
    %c3_i32 = arith.constant 3 : i32
    %111 = tpu.dynamic_rotate %101 by %c3_i32 dim 0 : vector<16x32xf32>, i32 -> vector<16x32xf32>
    %112 = vector.extract_strided_slice %102 {offsets = [0, 2], sizes = [16, 1], strides = [1, 1]} : vector<16x9xf32> to vector<16x1xf32>
    %113 = vector.broadcast %112 : vector<16x1xf32> to vector<16x32xf32>
    %114 = arith.mulf %111, %113 : vector<16x32xf32>
    %c1_i32_34 = arith.constant 1 : i32
    %115 = tpu.dynamic_rotate %101 by %c1_i32_34 dim 0 : vector<16x32xf32>, i32 -> vector<16x32xf32>
    %116 = vector.extract_strided_slice %102 {offsets = [0, 3], sizes = [16, 1], strides = [1, 1]} : vector<16x9xf32> to vector<16x1xf32>
    %117 = vector.broadcast %116 : vector<16x1xf32> to vector<16x32xf32>
    %118 = arith.mulf %115, %117 : vector<16x32xf32>
    %c15_i32_35 = arith.constant 15 : i32
    %119 = tpu.dynamic_rotate %101 by %c15_i32_35 dim 0 : vector<16x32xf32>, i32 -> vector<16x32xf32>
    %120 = vector.extract_strided_slice %102 {offsets = [0, 5], sizes = [16, 1], strides = [1, 1]} : vector<16x9xf32> to vector<16x1xf32>
    %121 = vector.broadcast %120 : vector<16x1xf32> to vector<16x32xf32>
    %122 = arith.mulf %119, %121 : vector<16x32xf32>
    %c13_i32 = arith.constant 13 : i32
    %123 = tpu.dynamic_rotate %101 by %c13_i32 dim 0 : vector<16x32xf32>, i32 -> vector<16x32xf32>
    %124 = vector.extract_strided_slice %102 {offsets = [0, 6], sizes = [16, 1], strides = [1, 1]} : vector<16x9xf32> to vector<16x1xf32>
    %125 = vector.broadcast %124 : vector<16x1xf32> to vector<16x32xf32>
    %126 = arith.mulf %123, %125 : vector<16x32xf32>
    %c12_i32 = arith.constant 12 : i32
    %127 = tpu.dynamic_rotate %101 by %c12_i32 dim 0 : vector<16x32xf32>, i32 -> vector<16x32xf32>
    %128 = vector.extract_strided_slice %102 {offsets = [0, 7], sizes = [16, 1], strides = [1, 1]} : vector<16x9xf32> to vector<16x1xf32>
    %129 = vector.broadcast %128 : vector<16x1xf32> to vector<16x32xf32>
    %130 = arith.mulf %127, %129 : vector<16x32xf32>
    %c11_i32 = arith.constant 11 : i32
    %131 = tpu.dynamic_rotate %101 by %c11_i32 dim 0 : vector<16x32xf32>, i32 -> vector<16x32xf32>
    %132 = vector.extract_strided_slice %102 {offsets = [0, 8], sizes = [16, 1], strides = [1, 1]} : vector<16x9xf32> to vector<16x1xf32>
    %133 = vector.broadcast %132 : vector<16x1xf32> to vector<16x32xf32>
    %134 = arith.mulf %131, %133 : vector<16x32xf32>
    %135 = tpu.concatenate %106, %110, %114, %118, %101, %122, %126, %130, %134 in 1 : vector<16x32xf32>, vector<16x32xf32>, vector<16x32xf32>, vector<16x32xf32>, vector<16x32xf32>, vector<16x32xf32>, vector<16x32xf32>, vector<16x32xf32>, vector<16x32xf32> -> vector<16x288xf32>
    %c0_36 = arith.constant 0 : index
    %c0_37 = arith.constant 0 : index
    %136 = vector.load %arg8[%c0_36, %c0_37] : memref<288x16xf32, #tpu.memory_space<vmem>>, vector<288x16xf32>
    %cst_38 = arith.constant dense<0.000000e+00> : vector<16x16xf32>
    %137 = tpu.matmul %135, %136, %cst_38 {dimension_numbers = #tpu.dot_dimension_numbers<[1], [0], [0], [1], [0, 0, 1, 1], [], []>} : vector<16x288xf32>, vector<288x16xf32>, vector<16x16xf32> -> vector<16x16xf32>
    %c0_39 = arith.constant 0 : index
    %c0_40 = arith.constant 0 : index
    %138 = vector.load %arg9[%c0_39, %c0_40] : memref<1x16xf32, #tpu.memory_space<vmem>>, vector<1x16xf32>
    %139 = vector.broadcast %138 : vector<1x16xf32> to vector<16x16xf32>
    %140 = arith.mulf %137, %139 : vector<16x16xf32>
    %c0_41 = arith.constant 0 : index
    %c0_42 = arith.constant 0 : index
    %141 = vector.load %arg10[%c0_41, %c0_42] : memref<1x16xf32, #tpu.memory_space<vmem>>, vector<1x16xf32>
    %142 = vector.broadcast %141 : vector<1x16xf32> to vector<16x16xf32>
    %143 = arith.addf %140, %142 : vector<16x16xf32>
    %cst_43 = arith.constant 0.000000e+00 : f32
    %144 = vector.broadcast %cst_43 : f32 to vector<16x16xf32>
    %145 = arith.maximumf %143, %144 : vector<16x16xf32>
    %c0_44 = arith.constant 0 : index
    %c0_45 = arith.constant 0 : index
    %146 = vector.load %arg22[%c0_44, %c0_45] : memref<64x16xf32, #tpu.memory_space<vmem>>, vector<64x16xf32>
    %cst_46 = arith.constant dense<0.000000e+00> : vector<64x16xf32>
    %147 = tpu.matmul %146, %145, %cst_46 {dimension_numbers = #tpu.dot_dimension_numbers<[1], [0], [0], [1], [0, 0, 1, 1], [], []>} : vector<64x16xf32>, vector<16x16xf32>, vector<64x16xf32> -> vector<64x16xf32>
    %148 = tpu.concatenate %147, %51 in 1 : vector<64x16xf32>, vector<64x16xf32> -> vector<64x32xf32>
    %c0_47 = arith.constant 0 : index
    %c0_48 = arith.constant 0 : index
    %149 = vector.load %arg18[%c0_47, %c0_48] : memref<64x9xf32, #tpu.memory_space<vmem>>, vector<64x9xf32>
    %c9_i32_49 = arith.constant 9 : i32
    %150 = tpu.dynamic_rotate %148 by %c9_i32_49 dim 0 : vector<64x32xf32>, i32 -> vector<64x32xf32>
    %151 = vector.extract_strided_slice %149 {offsets = [0, 0], sizes = [64, 1], strides = [1, 1]} : vector<64x9xf32> to vector<64x1xf32>
    %152 = vector.broadcast %151 : vector<64x1xf32> to vector<64x32xf32>
    %153 = arith.mulf %150, %152 : vector<64x32xf32>
    %c8_i32_50 = arith.constant 8 : i32
    %154 = tpu.dynamic_rotate %148 by %c8_i32_50 dim 0 : vector<64x32xf32>, i32 -> vector<64x32xf32>
    %155 = vector.extract_strided_slice %149 {offsets = [0, 1], sizes = [64, 1], strides = [1, 1]} : vector<64x9xf32> to vector<64x1xf32>
    %156 = vector.broadcast %155 : vector<64x1xf32> to vector<64x32xf32>
    %157 = arith.mulf %154, %156 : vector<64x32xf32>
    %c7_i32_51 = arith.constant 7 : i32
    %158 = tpu.dynamic_rotate %148 by %c7_i32_51 dim 0 : vector<64x32xf32>, i32 -> vector<64x32xf32>
    %159 = vector.extract_strided_slice %149 {offsets = [0, 2], sizes = [64, 1], strides = [1, 1]} : vector<64x9xf32> to vector<64x1xf32>
    %160 = vector.broadcast %159 : vector<64x1xf32> to vector<64x32xf32>
    %161 = arith.mulf %158, %160 : vector<64x32xf32>
    %c1_i32_52 = arith.constant 1 : i32
    %162 = tpu.dynamic_rotate %148 by %c1_i32_52 dim 0 : vector<64x32xf32>, i32 -> vector<64x32xf32>
    %163 = vector.extract_strided_slice %149 {offsets = [0, 3], sizes = [64, 1], strides = [1, 1]} : vector<64x9xf32> to vector<64x1xf32>
    %164 = vector.broadcast %163 : vector<64x1xf32> to vector<64x32xf32>
    %165 = arith.mulf %162, %164 : vector<64x32xf32>
    %c63_i32_53 = arith.constant 63 : i32
    %166 = tpu.dynamic_rotate %148 by %c63_i32_53 dim 0 : vector<64x32xf32>, i32 -> vector<64x32xf32>
    %167 = vector.extract_strided_slice %149 {offsets = [0, 5], sizes = [64, 1], strides = [1, 1]} : vector<64x9xf32> to vector<64x1xf32>
    %168 = vector.broadcast %167 : vector<64x1xf32> to vector<64x32xf32>
    %169 = arith.mulf %166, %168 : vector<64x32xf32>
    %c57_i32_54 = arith.constant 57 : i32
    %170 = tpu.dynamic_rotate %148 by %c57_i32_54 dim 0 : vector<64x32xf32>, i32 -> vector<64x32xf32>
    %171 = vector.extract_strided_slice %149 {offsets = [0, 6], sizes = [64, 1], strides = [1, 1]} : vector<64x9xf32> to vector<64x1xf32>
    %172 = vector.broadcast %171 : vector<64x1xf32> to vector<64x32xf32>
    %173 = arith.mulf %170, %172 : vector<64x32xf32>
    %c56_i32_55 = arith.constant 56 : i32
    %174 = tpu.dynamic_rotate %148 by %c56_i32_55 dim 0 : vector<64x32xf32>, i32 -> vector<64x32xf32>
    %175 = vector.extract_strided_slice %149 {offsets = [0, 7], sizes = [64, 1], strides = [1, 1]} : vector<64x9xf32> to vector<64x1xf32>
    %176 = vector.broadcast %175 : vector<64x1xf32> to vector<64x32xf32>
    %177 = arith.mulf %174, %176 : vector<64x32xf32>
    %c55_i32_56 = arith.constant 55 : i32
    %178 = tpu.dynamic_rotate %148 by %c55_i32_56 dim 0 : vector<64x32xf32>, i32 -> vector<64x32xf32>
    %179 = vector.extract_strided_slice %149 {offsets = [0, 8], sizes = [64, 1], strides = [1, 1]} : vector<64x9xf32> to vector<64x1xf32>
    %180 = vector.broadcast %179 : vector<64x1xf32> to vector<64x32xf32>
    %181 = arith.mulf %178, %180 : vector<64x32xf32>
    %182 = tpu.concatenate %153, %157, %161, %165, %148, %169, %173, %177, %181 in 1 : vector<64x32xf32>, vector<64x32xf32>, vector<64x32xf32>, vector<64x32xf32>, vector<64x32xf32>, vector<64x32xf32>, vector<64x32xf32>, vector<64x32xf32>, vector<64x32xf32> -> vector<64x288xf32>
    %c0_57 = arith.constant 0 : index
    %c0_58 = arith.constant 0 : index
    %183 = vector.load %arg11[%c0_57, %c0_58] : memref<288x9xf32, #tpu.memory_space<vmem>>, vector<288x9xf32>
    %cst_59 = arith.constant dense<0.000000e+00> : vector<64x9xf32>
    %184 = tpu.matmul %182, %183, %cst_59 {dimension_numbers = #tpu.dot_dimension_numbers<[1], [0], [0], [1], [0, 0, 1, 1], [], []>} : vector<64x288xf32>, vector<288x9xf32>, vector<64x9xf32> -> vector<64x9xf32>
    %c0_60 = arith.constant 0 : index
    %c0_61 = arith.constant 0 : index
    %185 = vector.load %arg12[%c0_60, %c0_61] : memref<1x9xf32, #tpu.memory_space<vmem>>, vector<1x9xf32>
    %186 = vector.broadcast %185 : vector<1x9xf32> to vector<64x9xf32>
    %187 = arith.mulf %184, %186 : vector<64x9xf32>
    %c0_62 = arith.constant 0 : index
    %c0_63 = arith.constant 0 : index
    %188 = vector.load %arg13[%c0_62, %c0_63] : memref<1x9xf32, #tpu.memory_space<vmem>>, vector<1x9xf32>
    %189 = vector.broadcast %188 : vector<1x9xf32> to vector<64x9xf32>
    %190 = arith.addf %187, %189 : vector<64x9xf32>
    %cst_64 = arith.constant 0.000000e+00 : f32
    %191 = vector.broadcast %cst_64 : f32 to vector<64x9xf32>
    %192 = arith.maximumf %190, %191 : vector<64x9xf32>
    %c0_65 = arith.constant 0 : index
    %c0_66 = arith.constant 0 : index
    %193 = vector.load %arg23[%c0_65, %c0_66] : memref<256x64xf32, #tpu.memory_space<vmem>>, vector<256x64xf32>
    %cst_67 = arith.constant dense<0.000000e+00> : vector<256x9xf32>
    %194 = tpu.matmul %193, %192, %cst_67 {dimension_numbers = #tpu.dot_dimension_numbers<[1], [0], [0], [1], [0, 0, 1, 1], [], []>} : vector<256x64xf32>, vector<64x9xf32>, vector<256x9xf32> -> vector<256x9xf32>
    %195 = tpu.concatenate %194, %1 in 1 : vector<256x9xf32>, vector<256x9xf32> -> vector<256x18xf32>
    %c0_68 = arith.constant 0 : index
    %c0_69 = arith.constant 0 : index
    %196 = vector.load %arg17[%c0_68, %c0_69] : memref<256x9xf32, #tpu.memory_space<vmem>>, vector<256x9xf32>
    %c17_i32_70 = arith.constant 17 : i32
    %197 = tpu.dynamic_rotate %195 by %c17_i32_70 dim 0 : vector<256x18xf32>, i32 -> vector<256x18xf32>
    %198 = vector.extract_strided_slice %196 {offsets = [0, 0], sizes = [256, 1], strides = [1, 1]} : vector<256x9xf32> to vector<256x1xf32>
    %199 = vector.broadcast %198 : vector<256x1xf32> to vector<256x18xf32>
    %200 = arith.mulf %197, %199 : vector<256x18xf32>
    %c16_i32_71 = arith.constant 16 : i32
    %201 = tpu.dynamic_rotate %195 by %c16_i32_71 dim 0 : vector<256x18xf32>, i32 -> vector<256x18xf32>
    %202 = vector.extract_strided_slice %196 {offsets = [0, 1], sizes = [256, 1], strides = [1, 1]} : vector<256x9xf32> to vector<256x1xf32>
    %203 = vector.broadcast %202 : vector<256x1xf32> to vector<256x18xf32>
    %204 = arith.mulf %201, %203 : vector<256x18xf32>
    %c15_i32_72 = arith.constant 15 : i32
    %205 = tpu.dynamic_rotate %195 by %c15_i32_72 dim 0 : vector<256x18xf32>, i32 -> vector<256x18xf32>
    %206 = vector.extract_strided_slice %196 {offsets = [0, 2], sizes = [256, 1], strides = [1, 1]} : vector<256x9xf32> to vector<256x1xf32>
    %207 = vector.broadcast %206 : vector<256x1xf32> to vector<256x18xf32>
    %208 = arith.mulf %205, %207 : vector<256x18xf32>
    %c1_i32_73 = arith.constant 1 : i32
    %209 = tpu.dynamic_rotate %195 by %c1_i32_73 dim 0 : vector<256x18xf32>, i32 -> vector<256x18xf32>
    %210 = vector.extract_strided_slice %196 {offsets = [0, 3], sizes = [256, 1], strides = [1, 1]} : vector<256x9xf32> to vector<256x1xf32>
    %211 = vector.broadcast %210 : vector<256x1xf32> to vector<256x18xf32>
    %212 = arith.mulf %209, %211 : vector<256x18xf32>
    %c255_i32_74 = arith.constant 255 : i32
    %213 = tpu.dynamic_rotate %195 by %c255_i32_74 dim 0 : vector<256x18xf32>, i32 -> vector<256x18xf32>
    %214 = vector.extract_strided_slice %196 {offsets = [0, 5], sizes = [256, 1], strides = [1, 1]} : vector<256x9xf32> to vector<256x1xf32>
    %215 = vector.broadcast %214 : vector<256x1xf32> to vector<256x18xf32>
    %216 = arith.mulf %213, %215 : vector<256x18xf32>
    %c241_i32_75 = arith.constant 241 : i32
    %217 = tpu.dynamic_rotate %195 by %c241_i32_75 dim 0 : vector<256x18xf32>, i32 -> vector<256x18xf32>
    %218 = vector.extract_strided_slice %196 {offsets = [0, 6], sizes = [256, 1], strides = [1, 1]} : vector<256x9xf32> to vector<256x1xf32>
    %219 = vector.broadcast %218 : vector<256x1xf32> to vector<256x18xf32>
    %220 = arith.mulf %217, %219 : vector<256x18xf32>
    %c240_i32_76 = arith.constant 240 : i32
    %221 = tpu.dynamic_rotate %195 by %c240_i32_76 dim 0 : vector<256x18xf32>, i32 -> vector<256x18xf32>
    %222 = vector.extract_strided_slice %196 {offsets = [0, 7], sizes = [256, 1], strides = [1, 1]} : vector<256x9xf32> to vector<256x1xf32>
    %223 = vector.broadcast %222 : vector<256x1xf32> to vector<256x18xf32>
    %224 = arith.mulf %221, %223 : vector<256x18xf32>
    %c239_i32_77 = arith.constant 239 : i32
    %225 = tpu.dynamic_rotate %195 by %c239_i32_77 dim 0 : vector<256x18xf32>, i32 -> vector<256x18xf32>
    %226 = vector.extract_strided_slice %196 {offsets = [0, 8], sizes = [256, 1], strides = [1, 1]} : vector<256x9xf32> to vector<256x1xf32>
    %227 = vector.broadcast %226 : vector<256x1xf32> to vector<256x18xf32>
    %228 = arith.mulf %225, %227 : vector<256x18xf32>
    %229 = tpu.concatenate %200, %204, %208, %212, %195, %216, %220, %224, %228 in 1 : vector<256x18xf32>, vector<256x18xf32>, vector<256x18xf32>, vector<256x18xf32>, vector<256x18xf32>, vector<256x18xf32>, vector<256x18xf32>, vector<256x18xf32>, vector<256x18xf32> -> vector<256x162xf32>
    %c0_78 = arith.constant 0 : index
    %c0_79 = arith.constant 0 : index
    %230 = vector.load %arg14[%c0_78, %c0_79] : memref<162x3xf32, #tpu.memory_space<vmem>>, vector<162x3xf32>
    %cst_80 = arith.constant dense<0.000000e+00> : vector<256x3xf32>
    %231 = tpu.matmul %229, %230, %cst_80 {dimension_numbers = #tpu.dot_dimension_numbers<[1], [0], [0], [1], [0, 0, 1, 1], [], []>} : vector<256x162xf32>, vector<162x3xf32>, vector<256x3xf32> -> vector<256x3xf32>
    %c0_81 = arith.constant 0 : index
    %c0_82 = arith.constant 0 : index
    %232 = vector.load %arg15[%c0_81, %c0_82] : memref<1x3xf32, #tpu.memory_space<vmem>>, vector<1x3xf32>
    %233 = vector.broadcast %232 : vector<1x3xf32> to vector<256x3xf32>
    %234 = arith.mulf %231, %233 : vector<256x3xf32>
    %c0_83 = arith.constant 0 : index
    %c0_84 = arith.constant 0 : index
    %235 = vector.load %arg16[%c0_83, %c0_84] : memref<1x3xf32, #tpu.memory_space<vmem>>, vector<1x3xf32>
    %236 = vector.broadcast %235 : vector<1x3xf32> to vector<256x3xf32>
    %237 = arith.addf %234, %236 : vector<256x3xf32>
    %c0_85 = arith.constant 0 : index
    %c0_86 = arith.constant 0 : index
    %c0_87 = arith.constant 0 : index
    %238 = vector.load %arg24[%c0_85, %c0_86, %c0_87] : memref<1x256x3xf32, #tpu.memory_space<vmem>>, vector<1x256x3xf32>
    %239 = vector.shape_cast %238 : vector<1x256x3xf32> to vector<256x3xf32>
    %240 = vector.shape_cast %237 : vector<256x3xf32> to vector<1x256x3xf32>
    tpu.vector_store %arg24[%c0_85, %c0_86, %c0_87], %240 {strides = array<i32>} : memref<1x256x3xf32, #tpu.memory_space<vmem>>, vector<1x256x3xf32>,
    return
  }
  func.func @transform_0(%arg0: i32) -> (i32, i32, i32) {
    %c0_i32 = arith.constant 0 : i32
    %c0_i32_0 = arith.constant 0 : i32
    %c0_i32_1 = arith.constant 0 : i32
    return %arg0, %c0_i32, %c0_i32_0 : i32, i32, i32
  }
  func.func @transform_1(%arg0: i32) -> (i32, i32) {
    %c0_i32 = arith.constant 0 : i32
    %c0_i32_0 = arith.constant 0 : i32
    %c0_i32_1 = arith.constant 0 : i32
    return %c0_i32, %c0_i32_0 : i32, i32
  }
  func.func @transform_2(%arg0: i32) -> (i32, i32) {
    %c0_i32 = arith.constant 0 : i32
    %c0_i32_0 = arith.constant 0 : i32
    %c0_i32_1 = arith.constant 0 : i32
    return %c0_i32, %c0_i32_0 : i32, i32
  }
  func.func @transform_3(%arg0: i32) -> (i32, i32) {
    %c0_i32 = arith.constant 0 : i32
    %c0_i32_0 = arith.constant 0 : i32
    %c0_i32_1 = arith.constant 0 : i32
    return %c0_i32, %c0_i32_0 : i32, i32
  }
  func.func @transform_4(%arg0: i32) -> (i32, i32) {
    %c0_i32 = arith.constant 0 : i32
    %c0_i32_0 = arith.constant 0 : i32
    %c0_i32_1 = arith.constant 0 : i32
    return %c0_i32, %c0_i32_0 : i32, i32
  }
  func.func @transform_5(%arg0: i32) -> (i32, i32) {
    %c0_i32 = arith.constant 0 : i32
    %c0_i32_0 = arith.constant 0 : i32
    %c0_i32_1 = arith.constant 0 : i32
    return %c0_i32, %c0_i32_0 : i32, i32
  }
  func.func @transform_6(%arg0: i32) -> (i32, i32) {
    %c0_i32 = arith.constant 0 : i32
    %c0_i32_0 = arith.constant 0 : i32
    %c0_i32_1 = arith.constant 0 : i32
    return %c0_i32, %c0_i32_0 : i32, i32
  }
  func.func @transform_7(%arg0: i32) -> (i32, i32) {
    %c0_i32 = arith.constant 0 : i32
    %c0_i32_0 = arith.constant 0 : i32
    %c0_i32_1 = arith.constant 0 : i32
    return %c0_i32, %c0_i32_0 : i32, i32
  }
  func.func @transform_8(%arg0: i32) -> (i32, i32) {
    %c0_i32 = arith.constant 0 : i32
    %c0_i32_0 = arith.constant 0 : i32
    %c0_i32_1 = arith.constant 0 : i32
    return %c0_i32, %c0_i32_0 : i32, i32
  }
  func.func @transform_9(%arg0: i32) -> (i32, i32) {
    %c0_i32 = arith.constant 0 : i32
    %c0_i32_0 = arith.constant 0 : i32
    %c0_i32_1 = arith.constant 0 : i32
    return %c0_i32, %c0_i32_0 : i32, i32
  }
  func.func @transform_10(%arg0: i32) -> (i32, i32) {
    %c0_i32 = arith.constant 0 : i32
    %c0_i32_0 = arith.constant 0 : i32
    %c0_i32_1 = arith.constant 0 : i32
    return %c0_i32, %c0_i32_0 : i32, i32
  }
  func.func @transform_11(%arg0: i32) -> (i32, i32) {
    %c0_i32 = arith.constant 0 : i32
    %c0_i32_0 = arith.constant 0 : i32
    %c0_i32_1 = arith.constant 0 : i32
    return %c0_i32, %c0_i32_0 : i32, i32
  }
  func.func @transform_12(%arg0: i32) -> (i32, i32) {
    %c0_i32 = arith.constant 0 : i32
    %c0_i32_0 = arith.constant 0 : i32
    %c0_i32_1 = arith.constant 0 : i32
    return %c0_i32, %c0_i32_0 : i32, i32
  }
  func.func @transform_13(%arg0: i32) -> (i32, i32) {
    %c0_i32 = arith.constant 0 : i32
    %c0_i32_0 = arith.constant 0 : i32
    %c0_i32_1 = arith.constant 0 : i32
    return %c0_i32, %c0_i32_0 : i32, i32
  }
  func.func @transform_14(%arg0: i32) -> (i32, i32) {
    %c0_i32 = arith.constant 0 : i32
    %c0_i32_0 = arith.constant 0 : i32
    %c0_i32_1 = arith.constant 0 : i32
    return %c0_i32, %c0_i32_0 : i32, i32
  }
  func.func @transform_15(%arg0: i32) -> (i32, i32) {
    %c0_i32 = arith.constant 0 : i32
    %c0_i32_0 = arith.constant 0 : i32
    %c0_i32_1 = arith.constant 0 : i32
    return %c0_i32, %c0_i32_0 : i32, i32
  }
  func.func @transform_16(%arg0: i32) -> (i32, i32) {
    %c0_i32 = arith.constant 0 : i32
    %c0_i32_0 = arith.constant 0 : i32
    %c0_i32_1 = arith.constant 0 : i32
    return %c0_i32, %c0_i32_0 : i32, i32
  }
  func.func @transform_17(%arg0: i32) -> (i32, i32) {
    %c0_i32 = arith.constant 0 : i32
    %c0_i32_0 = arith.constant 0 : i32
    %c0_i32_1 = arith.constant 0 : i32
    return %c0_i32, %c0_i32_0 : i32, i32
  }
  func.func @transform_18(%arg0: i32) -> (i32, i32) {
    %c0_i32 = arith.constant 0 : i32
    %c0_i32_0 = arith.constant 0 : i32
    %c0_i32_1 = arith.constant 0 : i32
    return %c0_i32, %c0_i32_0 : i32, i32
  }
  func.func @transform_19(%arg0: i32) -> (i32, i32) {
    %c0_i32 = arith.constant 0 : i32
    %c0_i32_0 = arith.constant 0 : i32
    %c0_i32_1 = arith.constant 0 : i32
    return %c0_i32, %c0_i32_0 : i32, i32
  }
  func.func @transform_20(%arg0: i32) -> (i32, i32) {
    %c0_i32 = arith.constant 0 : i32
    %c0_i32_0 = arith.constant 0 : i32
    %c0_i32_1 = arith.constant 0 : i32
    return %c0_i32, %c0_i32_0 : i32, i32
  }
  func.func @transform_21(%arg0: i32) -> (i32, i32) {
    %c0_i32 = arith.constant 0 : i32
    %c0_i32_0 = arith.constant 0 : i32
    %c0_i32_1 = arith.constant 0 : i32
    return %c0_i32, %c0_i32_0 : i32, i32
  }
  func.func @transform_22(%arg0: i32) -> (i32, i32) {
    %c0_i32 = arith.constant 0 : i32
    %c0_i32_0 = arith.constant 0 : i32
    %c0_i32_1 = arith.constant 0 : i32
    return %c0_i32, %c0_i32_0 : i32, i32
  }
  func.func @transform_23(%arg0: i32) -> (i32, i32, i32) {
    %c0_i32 = arith.constant 0 : i32
    %c0_i32_0 = arith.constant 0 : i32
    %c0_i32_1 = arith.constant 0 : i32
    return %arg0, %c0_i32, %c0_i32_0 : i32, i32, i32
  }
}

</mosaic_0001>

<bundles_post_ra>
// kernel: cnn_net_forward.1
= control target key start
LH: loop header
LB: loop body
LE: loop exit
PB: predicated region body
PF: predicated region fallthrough
CT: control target
= control target key end

     0   :  { %s16822_s0 = inlined_call_operand.vmem [shape: f32[2,256,9], index: 0, kind: input, shape index: {}]   ;;  %s16823_s1 = inlined_call_operand.vmem [shape: f32[81,16], index: 1, kind: input, shape index: {}]   ;;  %s16824_s2 = inlined_call_operand.vmem [shape: f32[1,16], index: 2, kind: input, shape index: {}]   ;;  %s16825_s3 = inlined_call_operand.vmem [shape: f32[1,16], index: 3, kind: input, shape index: {}]   ;;  %s16826_s4 = inlined_call_operand.vmem [shape: f32[144,32], index: 4, kind: input, shape index: {}]   ;;  %s16827_s5 = inlined_call_operand.vmem [shape: f32[1,32], index: 5, kind: input, shape index: {}]   ;;  %s16828_s6 = inlined_call_operand.vmem [shape: f32[1,32], index: 6, kind: input, shape index: {}]   ;;  %s16829_s7 = inlined_call_operand.vmem [shape: f32[288,16], index: 7, kind: input, shape index: {}]   ;;  %s16830_s8 = inlined_call_operand.vmem [shape: f32[1,16], index: 8, kind: input, shape index: {}]   ;;  %s16831_s9 = inlined_call_operand.vmem [shape: f32[1,16], index: 9, kind: input, shape index: {}]   ;;  %s16832_s10 = inlined_call_operand.vmem [shape: f32[288,9], index: 10, kind: input, shape index: {}]   ;;  %s16833_s11 = inlined_call_operand.vmem [shape: f32[1,9], index: 11, kind: input, shape index: {}]   ;;  %s16834_s12 = inlined_call_operand.vmem [shape: f32[1,9], index: 12, kind: input, shape index: {}]   ;;  %s16835_s13 = inlined_call_operand.vmem [shape: f32[162,3], index: 13, kind: input, shape index: {}]   ;;  %s16836_s14 = inlined_call_operand.vmem [shape: f32[1,3], index: 14, kind: input, shape index: {}]   ;;  %s16837_s15 = inlined_call_operand.vmem [shape: f32[1,3], index: 15, kind: input, shape index: {}]   ;;  %s16838_s16 = inlined_call_operand.vmem [shape: f32[256,9], index: 16, kind: input, shape index: {}]   ;;  %s16839_s17 = inlined_call_operand.vmem [shape: f32[64,9], index: 17, kind: input, shape index: {}]   ;;  %s16840_s18 = inlined_call_operand.vmem [shape: f32[16,9], index: 18, kind: input, shape index: {}]   ;;  %s16841_s19 = inlined_call_operand.vmem [shape: f32[64,256], index: 19, kind: input, shape index: {}]   ;;  %s16842_s20 = inlined_call_operand.vmem [shape: f32[16,64], index: 20, kind: input, shape index: {}]   ;;  %s16843_s21 = inlined_call_operand.vmem [shape: f32[64,16], index: 21, kind: input, shape index: {}]   ;;  %s16844_s22 = inlined_call_operand.vmem [shape: f32[256,64], index: 22, kind: input, shape index: {}]   ;;  %s16845_s23 = inlined_call_operand.vmem [shape: f32[2,256,3], index: 23, kind: output, shape index: {}]  }
   0x1   :  { %17315 = sst [smem:[#allocation323_spill]] %s16822_s0 }
   0x2   :  { %17316 = sst [smem:[#allocation324_spill]] %s16823_s1 }
   0x3   :  { %17317 = sst [smem:[#allocation325_spill]] %s16824_s2 }
   0x4   :  { %17318 = sst [smem:[#allocation326_spill]] %s16825_s3 }
   0x5   :  { %17319 = sst [smem:[#allocation327_spill]] %s16826_s4  ;;  %s9678_s4 = smov 0  }
   0x6   :  { %17320 = sst [smem:[#allocation328_spill]] %s16827_s5 }
   0x7   :  { %17321 = sst [smem:[#allocation329_spill]] %s16828_s6 }
   0x8   :  { %17322 = sst [smem:[#allocation330_spill]] %s16829_s7 }
   0x9   :  { %17323 = sst [smem:[#allocation331_spill]] %s16838_s16 }
   0xa   :  { %17324 = sst [smem:[#allocation332_spill]] %s16839_s17 }
   0xb   :  { %17325 = sst [smem:[#allocation333_spill]] %s16840_s18 }
   0xc   :  { %17326 = sst [smem:[#allocation334_spill]] %s16841_s19 }
   0xd   :  { %17327 = sst [smem:[#allocation335_spill]] %s16842_s20 }
   0xe LB: > { %17328 = sst [smem:[#allocation2_spill]] %s9530_s4  ;;  %s8428_s30 = sadd.s32 4294967295, %s9530_s4   ;;  %s9530_s4 = sphi %s9678_s4, %s33_s4  }
   0xf   : > { %p8432_p0 = scmp.ge.s32.totalorder %s9530_s4, 1  ;;  %p637_p1 = scmp.lt.s32.totalorder %s9530_s4, 3 }
  0x11   : > { %p638_p2 = pnand %p8432_p0, %p637_p1 }
  0x13   : > { %641 = sbr.rel (%p638_p2) target bundleno = 4192 (0x1060), region = 112 }
  0x18   : > { %s17329_s16 = sld [smem:[#allocation331_spill]]  ;;  %v16849_v3 = vmov 1   ;;  %v16851_v4 = vmov 0   ;;  %v16856_v34 = vmov 2   ;;  %v16853_v56 = vmov 3   ;;  %p701_p3 = scmp.lt.s32.totalorder %s8428_s30, 1 }
  0x19   : > { %8625 = vset.pattern.permute.xlu0 %v16849_v3  ;;  %8623 = vset.pattern.permute.xlu2 %v16851_v4  ;;  %s17539_s5 = sld [smem:[#allocation323_spill]]  ;;  %s17175_s26 = smov 9   ;;  %vm3615_vm2 = vcmask 1040384   ;;  %vm3243_vm3 = vcmask 72704   ;;  %vm3309_vm4 = vcmask 220160   ;;  %vm3276_vm5 = vcmask 146432  }
  0x1a   : > { %8622 = vset.pattern.permute.xlu1 %v16851_v4  ;;  %s18461_s30 = smov (!%p701_p3, %s8428_s30), 1  ;;  %s17177_s2 = smov 18   ;;  %vm3342_vm6 = vcmask 293888   ;;  %vm3375_vm7 = vcmask 367616   ;;  %vm3408_vm8 = vcmask 441344   ;;  %vm3441_vm9 = vcmask 515072  }
  0x1b   : > { %s17174_s0 = sshll.u32 %s18461_s30, 8  ;;  %s9542_s6 = smov 45   ;;  %vm3474_vm10 = vcmask 588800   ;;  %vm3518_vm11 = vcmask 662528   ;;  %vm4654_vm12 = vcmask 130048   ;;  %vm4663_vm13 = vcmask 261120  }
  0x1c   : > { %s17183_s27 = smov 72   ;;  %s9544_s7 = smov 27   ;;  %vm4672_vm14 = vcmask 392192   ;;  %vm4681_vm15 = vcmask 523264  }
  0x1d   : > { %s17196_s28 = smov 36   ;;  %s17179_s29 = smov 54  }
  0x1e   : > { %v9689_v0 = vld [vmem:[%s17329_s16 + $0x20] sm:$0xff]  ;;  %v9694_v1 = vld [vmem:[%s17329_s16 + $0x10] sm:$0xff]  ;;  %v9699_v2 = vld [vmem:[%s17329_s16 + $0x8] sm:$0xff]  ;;  %s9547_s3 = smov 63   ;;  %s17927_s17 = sld [smem:[#allocation332_spill]] }
  0x1f   : > { %864 = vperm.xlu2 %8623, %v9689_v0   ;;  %854 = vperm.xlu1 %8622, %v9694_v1   ;;  %v9710_v5 = vld [vmem:[%s17329_s16 + $0x28] sm:$0xff]  ;;  %v9715_v6 = vld [vmem:[%s17329_s16 + $0x18] sm:$0xff]  ;;  %v9720_v7 = vld [vmem:[%s17329_s16 + $0x30] sm:$0xff]  ;;  %s10531_s1 = scalar_lea.vmem %s17539_s5, %s17174_s0  ;;  %s17725_s5 = sld [smem:[#allocation324_spill]] }
  0x20   : > { %1039 = vperm.xlu0 %8625, %v9699_v2   ;;  %v9728_v8 = vld [vmem:[%s17329_s16 + $0x40] sm:$0xff]  ;;  %v9733_v9 = vld [vmem:[%s17329_s16 + $0x38] sm:$0xff]  ;;  %v9738_v10 = vld [vmem:[%s17329_s16 + $0x48] sm:$0xff]  ;;  %s17961_s25 = sld [smem:[#allocation326_spill]]  ;;  %s17205_s24 = smov 96  }
  0x21   : > { %v9746_v11 = vld [vmem:[%s17329_s16 + $0x58] sm:$0xff]  ;;  %v9751_v12 = vld [vmem:[%s17329_s16 + $0x50] sm:$0xff]  ;;  %v9756_v13 = vld [vmem:[%s17329_s16 + $0x60] sm:$0xff]  ;;  %s17980_s19 = sld [smem:[#allocation334_spill]]  ;;  %s17225_s0 = smov 64  }
  0x22   : > { %v9764_v14 = vld [vmem:[%s17329_s16 + $0x70] sm:$0xff]  ;;  %v9769_v15 = vld [vmem:[%s17329_s16 + $0x68] sm:$0xff]  ;;  %v9774_v16 = vld [vmem:[%s17329_s16 + $0x78] sm:$0xff]  ;;  %s18032_s4 = smov 96   ;;  %s18049_s18 = sld [smem:[#allocation333_spill]] }
  0x23   : > { %v9782_v17 = vld [vmem:[%s17329_s16 + $0x88] sm:$0xff]  ;;  %v9787_v18 = vld [vmem:[%s17329_s16 + $0x80] sm:$0xff]  ;;  %v9792_v19 = vld [vmem:[%s17329_s16 + $0x90] sm:$0xff]  ;;  %s18052_s20 = sld [smem:[#allocation335_spill]] }
  0x24   : > { %v9800_v20 = vld [vmem:[%s17329_s16 + $0xa0] sm:$0xff]  ;;  %v9805_v21 = vld [vmem:[%s17329_s16 + $0x98] sm:$0xff]  ;;  %v9810_v22 = vld [vmem:[%s17329_s16 + $0xa8] sm:$0xff] }
  0x25   : > { %v9818_v23 = vld [vmem:[%s17329_s16 + $0xb8] sm:$0xff]  ;;  %v9823_v24 = vld [vmem:[%s17329_s16 + $0xb0] sm:$0xff]  ;;  %v9828_v25 = vld [vmem:[%s17329_s16 + $0xc0] sm:$0xff] }
  0x26   : > { %v9836_v26 = vld [vmem:[%s17329_s16 + $0xd0] sm:$0xff]  ;;  %v9841_v27 = vld [vmem:[%s17329_s16 + $0xc8] sm:$0xff]  ;;  %v9846_v28 = vld [vmem:[%s17329_s16 + $0xd8] sm:$0xff] }
  0x27   : > { %869 = vperm.xlu2 %8623, %v9710_v5   ;;  %859 = vperm.xlu1 %8622, %v9715_v6   ;;  %v9854_v29 = vld [vmem:[%s17329_s16 + $0xe8] sm:$0xff]  ;;  %v9859_v30 = vld [vmem:[%s17329_s16 + $0xe0] sm:$0xff]  ;;  %v9864_v31 = vld [vmem:[%s17329_s16 + $0xf0] sm:$0xff] }
  0x28   : > { %1059 = vperm.xlu0 %8625, %v9720_v7   ;;  %v9872_v32 = vld [vmem:[%s17329_s16 + $0xf8] sm:$0xff]  ;;  %v9877_v33 = vld [vmem:[%s17329_s16] sm:$0xff]  ;;  %s18023_s16 = smov 64  }
  0x2f   : > { %884 = vperm.xlu2 %8623, %v9728_v8   ;;  %879 = vperm.xlu1 %8622, %v9733_v9  }
  0x30   : > { %1071 = vperm.xlu0 %8625, %v9738_v10  }
  0x37   : > { %899 = vperm.xlu2 %8623, %v9746_v11   ;;  %894 = vperm.xlu1 %8622, %v9751_v12  }
  0x38   : > { %1083 = vperm.xlu0 %8625, %v9756_v13  }
  0x3f   : > { %914 = vperm.xlu2 %8623, %v9764_v14   ;;  %909 = vperm.xlu1 %8622, %v9769_v15  }
  0x40   : > { %1095 = vperm.xlu0 %8625, %v9774_v16  }
  0x47   : > { %929 = vperm.xlu2 %8623, %v9782_v17   ;;  %924 = vperm.xlu1 %8622, %v9787_v18  }
  0x48   : > { %1107 = vperm.xlu0 %8625, %v9792_v19  }
  0x4f   : > { %944 = vperm.xlu2 %8623, %v9800_v20   ;;  %939 = vperm.xlu1 %8622, %v9805_v21  }
  0x50   : > { %1119 = vperm.xlu0 %8625, %v9810_v22  }
  0x57   : > { %959 = vperm.xlu2 %8623, %v9818_v23   ;;  %954 = vperm.xlu1 %8622, %v9823_v24  }
  0x58   : > { %1131 = vperm.xlu0 %8625, %v9828_v25  }
  0x5f   : > { %974 = vperm.xlu2 %8623, %v9836_v26   ;;  %969 = vperm.xlu1 %8622, %v9841_v27  }
  0x60   : > { %1143 = vperm.xlu0 %8625, %v9846_v28  }
  0x67   : > { %989 = vperm.xlu2 %8623, %v9854_v29   ;;  %984 = vperm.xlu1 %8622, %v9859_v30  }
  0x68   : > { %1155 = vperm.xlu0 %8625, %v9864_v31  }
  0x6f   : > { %8624 = vset.pattern.permute.xlu2 %v16849_v3  ;;  %999 = vperm.xlu1 %8622, %v9872_v32  }
  0x70   : > { %8628 = vset.pattern.permute.xlu0 %v16856_v34  ;;  %1035 = vperm.xlu2 %8624, %v9877_v33  }
  0x71   : > { %1264 = vperm.xlu0 %8628, %v9699_v2  }
  0x77   : > { %8626 = vset.pattern.permute.xlu1 %v16849_v3 }
  0x78   : > { %1043 = vperm.xlu1 %8626, %v9694_v1   ;;  %1047 = vperm.xlu2 %8624, %v9715_v6  }
  0x79   : > { %1284 = vperm.xlu0 %8628, %v9720_v7   ;;  %v9887_v35 = vpop.permute.xlu2 %864 }
  0x7a   : > { %17330 = vst [vmem:[#allocation3_spill] sm:$0xff] %v9887_v35 }
  0x80   : > { %1051 = vperm.xlu1 %8626, %v9689_v0   ;;  %1055 = vperm.xlu2 %8624, %v9710_v5  }
  0x81   : > { %1296 = vperm.xlu0 %8628, %v9738_v10   ;;  %v9892_v36 = vpop.permute.xlu2 %869 }
  0x82   : > { %17331 = vst [vmem:[#allocation4_spill] sm:$0xff] %v9892_v36 }
  0x88   : > { %1063 = vperm.xlu1 %8626, %v9733_v9   ;;  %1067 = vperm.xlu2 %8624, %v9728_v8  }
  0x89   : > { %1308 = vperm.xlu0 %8628, %v9756_v13   ;;  %v9897_v37 = vpop.permute.xlu2 %884 }
  0x8a   : > { %17332 = vst [vmem:[#allocation5_spill] sm:$0xff] %v9897_v37 }
  0x90   : > { %1075 = vperm.xlu1 %8626, %v9751_v12   ;;  %1079 = vperm.xlu2 %8624, %v9746_v11  }
  0x91   : > { %1320 = vperm.xlu0 %8628, %v9774_v16   ;;  %v9902_v38 = vpop.permute.xlu2 %899  ;;  %v9905_v39 = vpop.permute.xlu1 %854 }
  0x92   : > { %17333 = vst [vmem:[#allocation6_spill] sm:$0xff] %v9902_v38  ;;  %v9907_v40 = vpop.permute.xlu0 %1039 }
  0x93   : > { %17334 = vst [vmem:[#allocation7_spill] sm:$0xff] %v9905_v39 }
  0x94   : > { %17335 = vst [vmem:[#allocation8_spill] sm:$0xff] %v9907_v40 }
  0x98   : > { %1087 = vperm.xlu1 %8626, %v9769_v15   ;;  %1091 = vperm.xlu2 %8624, %v9764_v14  }
  0x99   : > { %1332 = vperm.xlu0 %8628, %v9792_v19   ;;  %v9911_v41 = vpop.permute.xlu2 %914  ;;  %v9914_v42 = vpop.permute.xlu1 %859 }
  0x9a   : > { %17336 = vst [vmem:[#allocation9_spill] sm:$0xff] %v9911_v41  ;;  %v9916_v43 = vpop.permute.xlu0 %1059 }
  0x9b   : > { %17337 = vst [vmem:[#allocation10_spill] sm:$0xff] %v9914_v42  ;;  %v16882_v42 = vmov 5  }
  0x9c   : > { %17338 = vst [vmem:[#allocation11_spill] sm:$0xff] %v9916_v43 }
  0xa0   : > { %1099 = vperm.xlu1 %8626, %v9787_v18   ;;  %1103 = vperm.xlu2 %8624, %v9782_v17  }
  0xa1   : > { %1344 = vperm.xlu0 %8628, %v9810_v22   ;;  %v9920_v44 = vpop.permute.xlu2 %929  ;;  %v9923_v45 = vpop.permute.xlu1 %879 }
  0xa2   : > { %17339 = vst [vmem:[#allocation12_spill] sm:$0xff] %v9920_v44  ;;  %v9925_v46 = vpop.permute.xlu0 %1071 }
  0xa3   : > { %17340 = vst [vmem:[#allocation13_spill] sm:$0xff] %v9923_v45 }
  0xa4   : > { %17341 = vst [vmem:[#allocation14_spill] sm:$0xff] %v9925_v46 }
  0xa8   : > { %1111 = vperm.xlu1 %8626, %v9805_v21   ;;  %1115 = vperm.xlu2 %8624, %v9800_v20  }
  0xa9   : > { %1356 = vperm.xlu0 %8628, %v9828_v25   ;;  %v9929_v47 = vpop.permute.xlu2 %944  ;;  %v9932_v48 = vpop.permute.xlu1 %894 }
  0xaa   : > { %17342 = vst [vmem:[#allocation15_spill] sm:$0xff] %v9929_v47  ;;  %v9934_v49 = vpop.permute.xlu0 %1083 }
  0xab   : > { %17343 = vst [vmem:[#allocation16_spill] sm:$0xff] %v9932_v48 }
  0xac   : > { %17344 = vst [vmem:[#allocation17_spill] sm:$0xff] %v9934_v49 }
  0xb0   : > { %1123 = vperm.xlu1 %8626, %v9823_v24   ;;  %1127 = vperm.xlu2 %8624, %v9818_v23  }
  0xb1   : > { %1368 = vperm.xlu0 %8628, %v9846_v28   ;;  %v9938_v50 = vpop.permute.xlu2 %959  ;;  %v9941_v51 = vpop.permute.xlu1 %909 }
  0xb2   : > { %17345 = vst [vmem:[#allocation18_spill] sm:$0xff] %v9938_v50  ;;  %v9943_v52 = vpop.permute.xlu0 %1095 }
  0xb3   : > { %17346 = vst [vmem:[#allocation19_spill] sm:$0xff] %v9941_v51 }
  0xb4   : > { %17347 = vst [vmem:[#allocation20_spill] sm:$0xff] %v9943_v52 }
  0xb8   : > { %1135 = vperm.xlu1 %8626, %v9841_v27   ;;  %1139 = vperm.xlu2 %8624, %v9836_v26  }
  0xb9   : > { %1380 = vperm.xlu0 %8628, %v9864_v31   ;;  %v9947_v53 = vpop.permute.xlu2 %974  ;;  %v9950_v54 = vpop.permute.xlu1 %924 }
  0xba   : > { %17348 = vst [vmem:[#allocation21_spill] sm:$0xff] %v9947_v53  ;;  %v9952_v55 = vpop.permute.xlu0 %1107 }
  0xbb   : > { %17349 = vst [vmem:[#allocation22_spill] sm:$0xff] %v9950_v54 }
  0xbc   : > { %17350 = vst [vmem:[#allocation23_spill] sm:$0xff] %v9952_v55  ;;  %v16915_v55 = vmov 6  }
  0xc0   : > { %1147 = vperm.xlu1 %8626, %v9859_v30   ;;  %1151 = vperm.xlu2 %8624, %v9854_v29  }
  0xc1   : > { %8631 = vset.pattern.permute.xlu0 %v16853_v56  ;;  %v9956_v57 = vpop.permute.xlu2 %989  ;;  %v9959_v58 = vpop.permute.xlu1 %939 }
  0xc2   : > { %17351 = vst [vmem:[#allocation24_spill] sm:$0xff] %v9956_v57  ;;  %1424 = vperm.xlu0 %8631, %v9699_v2   ;;  %v9962_v59 = vpop.permute.xlu0 %1119 }
  0xc3   : > { %17352 = vst [vmem:[#allocation25_spill] sm:$0xff] %v9959_v58 }
  0xc4   : > { %17353 = vst [vmem:[#allocation26_spill] sm:$0xff] %v9962_v59 }
  0xc8   : > { %1159 = vperm.xlu1 %8626, %v9872_v32   ;;  %8627 = vset.pattern.permute.xlu2 %v16856_v34 }
  0xc9   : > { %v9966_v60 = vpop.permute.xlu1 %954  ;;  %1260 = vperm.xlu2 %8627, %v9877_v33  }
  0xca   : > { %17354 = vst [vmem:[#allocation27_spill] sm:$0xff] %v9966_v60  ;;  %1444 = vperm.xlu0 %8631, %v9720_v7   ;;  %v9969_v61 = vpop.permute.xlu0 %1131  ;;  %v9972_v62 = vpop.permute.xlu2 %1035 }
  0xcb   : > { %17355 = vst [vmem:[#allocation28_spill] sm:$0xff] %v9969_v61 }
  0xcc   : > { %17356 = vst [vmem:[#allocation29_spill] sm:$0xff] %v9972_v62 }
  0xd0   : > { %8629 = vset.pattern.permute.xlu1 %v16856_v34 }
  0xd1   : > { %1268 = vperm.xlu1 %8629, %v9694_v1   ;;  %v9976_v63 = vpop.permute.xlu1 %969  ;;  %1272 = vperm.xlu2 %8627, %v9715_v6  }
  0xd2   : > { %17357 = vst [vmem:[#allocation30_spill] sm:$0xff] %v9976_v63  ;;  %1456 = vperm.xlu0 %8631, %v9738_v10   ;;  %v9979_v3 = vpop.permute.xlu0 %1143  ;;  %v9982_v4 = vpop.permute.xlu2 %1047 }
  0xd3   : > { %17358 = vst [vmem:[#allocation31_spill] sm:$0xff] %v9979_v3 }
  0xd4   : > { %17359 = vst [vmem:[#allocation32_spill] sm:$0xff] %v9982_v4 }
  0xd9   : > { %1276 = vperm.xlu1 %8629, %v9689_v0   ;;  %v9985_v56 = vpop.permute.xlu1 %984  ;;  %1280 = vperm.xlu2 %8627, %v9710_v5  }
  0xda   : > { %17360 = vst [vmem:[#allocation33_spill] sm:$0xff] %v9985_v56  ;;  %1468 = vperm.xlu0 %8631, %v9756_v13   ;;  %v9988_v57 = vpop.permute.xlu0 %1155  ;;  %v9991_v34 = vpop.permute.xlu2 %1055 }
  0xdb   : > { %17361 = vst [vmem:[#allocation34_spill] sm:$0xff] %v9988_v57 }
  0xdc   : > { %17362 = vst [vmem:[#allocation35_spill] sm:$0xff] %v9991_v34 }
  0xe1   : > { %1288 = vperm.xlu1 %8629, %v9733_v9   ;;  %v9994_v53 = vpop.permute.xlu1 %999  ;;  %1292 = vperm.xlu2 %8627, %v9728_v8  }
  0xe2   : > { %17363 = vst [vmem:[#allocation36_spill] sm:$0xff] %v9994_v53  ;;  %1480 = vperm.xlu0 %8631, %v9774_v16   ;;  %v10000_v50 = vpop.permute.xlu2 %1067 }
  0xe3   : > { %v9998_v63 = vpop.permute.xlu0 %1264  ;;  %17365 = vst [vmem:[#allocation38_spill] sm:$0xff] %v10000_v50 }
  0xe4   : > { %17364 = vst [vmem:[#allocation37_spill] sm:$0xff] %v9998_v63 }
  0xe9   : > { %1300 = vperm.xlu1 %8629, %v9751_v12   ;;  %1304 = vperm.xlu2 %8627, %v9746_v11  }
  0xea   : > { %1492 = vperm.xlu0 %8631, %v9792_v19   ;;  %v10005_v56 = vpop.permute.xlu1 %1043  ;;  %v10009_v47 = vpop.permute.xlu2 %1079 }
  0xeb   : > { %17366 = vst [vmem:[#allocation39_spill] sm:$0xff] %v10005_v56  ;;  %v10007_v60 = vpop.permute.xlu0 %1284 }
  0xec   : > { %17367 = vst [vmem:[#allocation40_spill] sm:$0xff] %v10007_v60  ;;  %v17387_v60 = vmov 3  }
  0xed   : > { %17368 = vst [vmem:[#allocation41_spill] sm:$0xff] %v10009_v47 }
  0xf1   : > { %1312 = vperm.xlu1 %8629, %v9769_v15   ;;  %1316 = vperm.xlu2 %8627, %v9764_v14  }
  0xf2   : > { %1504 = vperm.xlu0 %8631, %v9810_v22   ;;  %v10014_v53 = vpop.permute.xlu1 %1051  ;;  %v10018_v44 = vpop.permute.xlu2 %1091 }
  0xf3   : > { %17369 = vst [vmem:[#allocation42_spill] sm:$0xff] %v10014_v53  ;;  %v10016_v58 = vpop.permute.xlu0 %1296 }
  0xf4   : > { %17370 = vst [vmem:[#allocation43_spill] sm:$0xff] %v10016_v58 }
  0xf5   : > { %17371 = vst [vmem:[#allocation44_spill] sm:$0xff] %v10018_v44 }
  0xf9   : > { %1324 = vperm.xlu1 %8629, %v9787_v18   ;;  %1328 = vperm.xlu2 %8627, %v9782_v17  }
  0xfa   : > { %1516 = vperm.xlu0 %8631, %v9828_v25   ;;  %v10023_v54 = vpop.permute.xlu1 %1063  ;;  %v10027_v51 = vpop.permute.xlu2 %1103 }
  0xfb   : > { %17372 = vst [vmem:[#allocation45_spill] sm:$0xff] %v10023_v54  ;;  %v10025_v41 = vpop.permute.xlu0 %1308 }
  0xfc   : > { %17373 = vst [vmem:[#allocation46_spill] sm:$0xff] %v10025_v41 }
  0xfd   : > { %17374 = vst [vmem:[#allocation47_spill] sm:$0xff] %v10027_v51 }
 0x101   : > { %1336 = vperm.xlu1 %8629, %v9805_v21   ;;  %1340 = vperm.xlu2 %8627, %v9800_v20  }
 0x102   : > { %1528 = vperm.xlu0 %8631, %v9846_v28   ;;  %v10032_v38 = vpop.permute.xlu1 %1075  ;;  %v10036_v37 = vpop.permute.xlu2 %1115 }
 0x103   : > { %17375 = vst [vmem:[#allocation48_spill] sm:$0xff] %v10032_v38  ;;  %v10034_v48 = vpop.permute.xlu0 %1320 }
 0x104   : > { %17376 = vst [vmem:[#allocation49_spill] sm:$0xff] %v10034_v48 }
 0x105   : > { %17377 = vst [vmem:[#allocation50_spill] sm:$0xff] %v10036_v37 }
 0x109   : > { %1348 = vperm.xlu1 %8629, %v9823_v24   ;;  %1352 = vperm.xlu2 %8627, %v9818_v23  }
 0x10a   : > { %1540 = vperm.xlu0 %8631, %v9864_v31   ;;  %v10041_v45 = vpop.permute.xlu1 %1087  ;;  %v10045_v35 = vpop.permute.xlu2 %1127 }
 0x10b   : > { %17378 = vst [vmem:[#allocation51_spill] sm:$0xff] %v10041_v45  ;;  %v10043_v36 = vpop.permute.xlu0 %1332 }
 0x10c   : > { %17379 = vst [vmem:[#allocation52_spill] sm:$0xff] %v10043_v36 }
 0x10d   : > { %17380 = vst [vmem:[#allocation53_spill] sm:$0xff] %v10045_v35 }
 0x111   : > { %1360 = vperm.xlu1 %8629, %v9841_v27   ;;  %1364 = vperm.xlu2 %8627, %v9836_v26  }
 0x112   : > { %8634 = vset.pattern.permute.xlu0 %v16882_v42  ;;  %v10050_v39 = vpop.permute.xlu1 %1099  ;;  %v10055_v41 = vpop.permute.xlu2 %1139 }
 0x113   : > { %17381 = vst [vmem:[#allocation54_spill] sm:$0xff] %v10050_v39  ;;  %1584 = vperm.xlu0 %8634, %v9699_v2   ;;  %v10053_v48 = vpop.permute.xlu0 %1344 }
 0x114   : > { %17382 = vst [vmem:[#allocation55_spill] sm:$0xff] %v10053_v48 }
 0x115   : > { %17383 = vst [vmem:[#allocation56_spill] sm:$0xff] %v10055_v41 }
 0x119   : > { %1372 = vperm.xlu1 %8629, %v9859_v30   ;;  %1376 = vperm.xlu2 %8627, %v9854_v29  }
 0x11a   : > { %v10059_v36 = vpop.permute.xlu1 %1111  ;;  %v10064_v42 = vpop.permute.xlu2 %1151 }
 0x11b   : > { %17384 = vst [vmem:[#allocation57_spill] sm:$0xff] %v10059_v36  ;;  %1604 = vperm.xlu0 %8634, %v9720_v7   ;;  %v10062_v58 = vpop.permute.xlu0 %1356 }
 0x11c   : > { %17385 = vst [vmem:[#allocation58_spill] sm:$0xff] %v10062_v58 }
 0x11d   : > { %17386 = vst [vmem:[#allocation59_spill] sm:$0xff] %v10064_v42 }
 0x121   : > { %1384 = vperm.xlu1 %8629, %v9872_v32   ;;  %8630 = vset.pattern.permute.xlu2 %v17387_v60 }
 0x122   : > { %v10068_v63 = vpop.permute.xlu1 %1123  ;;  %1420 = vperm.xlu2 %8630, %v9877_v33  }
 0x123   : > { %17388 = vst [vmem:[#allocation60_spill] sm:$0xff] %v10068_v63  ;;  %1616 = vperm.xlu0 %8634, %v9738_v10   ;;  %v10071_v48 = vpop.permute.xlu0 %1368  ;;  %v10074_v57 = vpop.permute.xlu2 %1260 }
 0x124   : > { %17389 = vst [vmem:[#allocation61_spill] sm:$0xff] %v10071_v48 }
 0x125   : > { %17390 = vst [vmem:[#allocation62_spill] sm:$0xff] %v10074_v57 }
 0x129   : > { %8632 = vset.pattern.permute.xlu1 %v17387_v60 }
 0x12a   : > { %1428 = vperm.xlu1 %8632, %v9694_v1   ;;  %v10078_v58 = vpop.permute.xlu1 %1135  ;;  %1432 = vperm.xlu2 %8630, %v9715_v6  }
 0x12b   : > { %17391 = vst [vmem:[#allocation63_spill] sm:$0xff] %v10078_v58  ;;  %1628 = vperm.xlu0 %8634, %v9756_v13   ;;  %v10081_v42 = vpop.permute.xlu0 %1380  ;;  %v10084_v3 = vpop.permute.xlu2 %1272 }
 0x12c   : > { %17392 = vst [vmem:[#allocation64_spill] sm:$0xff] %v10081_v42 }
 0x12d   : > { %17393 = vst [vmem:[#allocation65_spill] sm:$0xff] %v10084_v3 }
 0x132   : > { %1436 = vperm.xlu1 %8632, %v9689_v0   ;;  %v10087_v48 = vpop.permute.xlu1 %1147  ;;  %1440 = vperm.xlu2 %8630, %v9710_v5  }
 0x133   : > { %17394 = vst [vmem:[#allocation66_spill] sm:$0xff] %v10087_v48  ;;  %1640 = vperm.xlu0 %8634, %v9774_v16   ;;  %v10093_v57 = vpop.permute.xlu2 %1280 }
 0x134   : > { %v10091_v60 = vpop.permute.xlu0 %1424  ;;  %17396 = vst [vmem:[#allocation68_spill] sm:$0xff] %v10093_v57 }
 0x135   : > { %17395 = vst [vmem:[#allocation67_spill] sm:$0xff] %v10091_v60 }
 0x13a   : > { %1448 = vperm.xlu1 %8632, %v9733_v9   ;;  %v10096_v41 = vpop.permute.xlu1 %1159  ;;  %1452 = vperm.xlu2 %8630, %v9728_v8  }
 0x13b   : > { %17397 = vst [vmem:[#allocation69_spill] sm:$0xff] %v10096_v41  ;;  %1652 = vperm.xlu0 %8634, %v9792_v19   ;;  %v10102_v3 = vpop.permute.xlu2 %1292 }
 0x13c   : > { %v10100_v42 = vpop.permute.xlu0 %1444  ;;  %17399 = vst [vmem:[#allocation71_spill] sm:$0xff] %v10102_v3 }
 0x13d   : > { %17398 = vst [vmem:[#allocation70_spill] sm:$0xff] %v10100_v42 }
 0x142   : > { %1460 = vperm.xlu1 %8632, %v9751_v12   ;;  %1464 = vperm.xlu2 %8630, %v9746_v11  }
 0x143   : > { %1664 = vperm.xlu0 %8634, %v9810_v22   ;;  %v10107_v60 = vpop.permute.xlu1 %1268  ;;  %v10111_v35 = vpop.permute.xlu2 %1304 }
 0x144   : > { %17400 = vst [vmem:[#allocation72_spill] sm:$0xff] %v10107_v60  ;;  %v10109_v61 = vpop.permute.xlu0 %1456 }
 0x145   : > { %17401 = vst [vmem:[#allocation73_spill] sm:$0xff] %v10109_v61 }
 0x146   : > { %17402 = vst [vmem:[#allocation74_spill] sm:$0xff] %v10111_v35 }
 0x14a   : > { %1472 = vperm.xlu1 %8632, %v9769_v15   ;;  %1476 = vperm.xlu2 %8630, %v9764_v14  }
 0x14b   : > { %1676 = vperm.xlu0 %8634, %v9828_v25   ;;  %v10116_v42 = vpop.permute.xlu1 %1276  ;;  %v10120_v3 = vpop.permute.xlu2 %1316 }
 0x14c   : > { %17403 = vst [vmem:[#allocation75_spill] sm:$0xff] %v10116_v42  ;;  %v10118_v59 = vpop.permute.xlu0 %1468 }
 0x14d   : > { %17404 = vst [vmem:[#allocation76_spill] sm:$0xff] %v10118_v59 }
 0x14e   : > { %17405 = vst [vmem:[#allocation77_spill] sm:$0xff] %v10120_v3 }
 0x152   : > { %1484 = vperm.xlu1 %8632, %v9787_v18   ;;  %1488 = vperm.xlu2 %8630, %v9782_v17  }
 0x153   : > { %1688 = vperm.xlu0 %8634, %v9846_v28   ;;  %v10125_v61 = vpop.permute.xlu1 %1288  ;;  %v10129_v37 = vpop.permute.xlu2 %1328 }
 0x154   : > { %17406 = vst [vmem:[#allocation78_spill] sm:$0xff] %v10125_v61  ;;  %v10127_v35 = vpop.permute.xlu0 %1480 }
 0x155   : > { %17407 = vst [vmem:[#allocation79_spill] sm:$0xff] %v10127_v35 }
 0x156   : > { %17408 = vst [vmem:[#allocation80_spill] sm:$0xff] %v10129_v37 }
 0x15a   : > { %1496 = vperm.xlu1 %8632, %v9805_v21   ;;  %1500 = vperm.xlu2 %8630, %v9800_v20  }
 0x15b   : > { %1700 = vperm.xlu0 %8634, %v9864_v31   ;;  %v10134_v59 = vpop.permute.xlu1 %1300  ;;  %v10138_v3 = vpop.permute.xlu2 %1340 }
 0x15c   : > { %17409 = vst [vmem:[#allocation81_spill] sm:$0xff] %v10134_v59  ;;  %v10136_v42 = vpop.permute.xlu0 %1492 }
 0x15d   : > { %17410 = vst [vmem:[#allocation82_spill] sm:$0xff] %v10136_v42 }
 0x15e   : > { %17411 = vst [vmem:[#allocation83_spill] sm:$0xff] %v10138_v3 }
 0x162   : > { %1508 = vperm.xlu1 %8632, %v9823_v24   ;;  %1512 = vperm.xlu2 %8630, %v9818_v23  }
 0x163   : > { %8637 = vset.pattern.permute.xlu0 %v16915_v55  ;;  %v10143_v35 = vpop.permute.xlu1 %1312  ;;  %v10148_v37 = vpop.permute.xlu2 %1352 }
 0x164   : > { %17412 = vst [vmem:[#allocation84_spill] sm:$0xff] %v10143_v35  ;;  %1744 = vperm.xlu0 %8637, %v9699_v2   ;;  %v10146_v61 = vpop.permute.xlu0 %1504 }
 0x165   : > { %17413 = vst [vmem:[#allocation85_spill] sm:$0xff] %v10146_v61 }
 0x166   : > { %17414 = vst [vmem:[#allocation86_spill] sm:$0xff] %v10148_v37 }
 0x16a   : > { %1520 = vperm.xlu1 %8632, %v9841_v27   ;;  %1524 = vperm.xlu2 %8630, %v9836_v26  }
 0x16b   : > { %v10152_v42 = vpop.permute.xlu1 %1324  ;;  %v10157_v55 = vpop.permute.xlu2 %1364 }
 0x16c   : > { %17415 = vst [vmem:[#allocation87_spill] sm:$0xff] %v10152_v42  ;;  %1764 = vperm.xlu0 %8637, %v9720_v7   ;;  %v10155_v59 = vpop.permute.xlu0 %1516  ;;  %v17421_v42 = vmov 5  }
 0x16d   : > { %17416 = vst [vmem:[#allocation88_spill] sm:$0xff] %v10155_v59 }
 0x16e   : > { %17417 = vst [vmem:[#allocation89_spill] sm:$0xff] %v10157_v55 }
 0x172   : > { %1532 = vperm.xlu1 %8632, %v9859_v30   ;;  %1536 = vperm.xlu2 %8630, %v9854_v29  }
 0x173   : > { %v10161_v35 = vpop.permute.xlu1 %1336  ;;  %v10166_v37 = vpop.permute.xlu2 %1376 }
 0x174   : > { %17418 = vst [vmem:[#allocation90_spill] sm:$0xff] %v10161_v35  ;;  %1776 = vperm.xlu0 %8637, %v9738_v10   ;;  %v10164_v61 = vpop.permute.xlu0 %1528 }
 0x175   : > { %17419 = vst [vmem:[#allocation91_spill] sm:$0xff] %v10164_v61 }
 0x176   : > { %17420 = vst [vmem:[#allocation92_spill] sm:$0xff] %v10166_v37  ;;  %v16948_v37 = vmov 7  }
 0x17a   : > { %1544 = vperm.xlu1 %8632, %v9872_v32   ;;  %8633 = vset.pattern.permute.xlu2 %v17421_v42 }
 0x17b   : > { %v10170_v3 = vpop.permute.xlu1 %1348  ;;  %1580 = vperm.xlu2 %8633, %v9877_v33  }
 0x17c   : > { %17422 = vst [vmem:[#allocation93_spill] sm:$0xff] %v10170_v3  ;;  %1788 = vperm.xlu0 %8637, %v9756_v13   ;;  %v10173_v59 = vpop.permute.xlu0 %1540  ;;  %v10176_v55 = vpop.permute.xlu2 %1420 }
 0x17d   : > { %17423 = vst [vmem:[#allocation94_spill] sm:$0xff] %v10173_v59 }
 0x17e   : > { %17424 = vst [vmem:[#allocation95_spill] sm:$0xff] %v10176_v55 }
 0x182   : > { %8635 = vset.pattern.permute.xlu1 %v17421_v42 }
 0x183   : > { %1588 = vperm.xlu1 %8635, %v9694_v1   ;;  %v10180_v61 = vpop.permute.xlu1 %1360  ;;  %1592 = vperm.xlu2 %8633, %v9715_v6  }
 0x184   : > { %17425 = vst [vmem:[#allocation96_spill] sm:$0xff] %v10180_v61  ;;  %1800 = vperm.xlu0 %8637, %v9774_v16   ;;  %v10186_v3 = vpop.permute.xlu2 %1432 }
 0x185   : > { %v10184_v35 = vpop.permute.xlu0 %1584  ;;  %17427 = vst [vmem:[#allocation98_spill] sm:$0xff] %v10186_v3 }
 0x186   : > { %17426 = vst [vmem:[#allocation97_spill] sm:$0xff] %v10184_v35 }
 0x18b   : > { %1596 = vperm.xlu1 %8635, %v9689_v0   ;;  %v10189_v59 = vpop.permute.xlu1 %1372  ;;  %1600 = vperm.xlu2 %8633, %v9710_v5  }
 0x18c   : > { %17428 = vst [vmem:[#allocation99_spill] sm:$0xff] %v10189_v59  ;;  %1812 = vperm.xlu0 %8637, %v9792_v19   ;;  %v10195_v55 = vpop.permute.xlu2 %1440 }
 0x18d   : > { %v10193_v42 = vpop.permute.xlu0 %1604  ;;  %17430 = vst [vmem:[#allocation101_spill] sm:$0xff] %v10195_v55 }
 0x18e   : > { %17429 = vst [vmem:[#allocation100_spill] sm:$0xff] %v10193_v42 }
 0x193   : > { %1608 = vperm.xlu1 %8635, %v9733_v9   ;;  %v10198_v61 = vpop.permute.xlu1 %1384  ;;  %1612 = vperm.xlu2 %8633, %v9728_v8  }
 0x194   : > { %17431 = vst [vmem:[#allocation102_spill] sm:$0xff] %v10198_v61  ;;  %1824 = vperm.xlu0 %8637, %v9810_v22   ;;  %v10204_v35 = vpop.permute.xlu2 %1452 }
 0x195   : > { %v10202_v3 = vpop.permute.xlu0 %1616  ;;  %17433 = vst [vmem:[#allocation104_spill] sm:$0xff] %v10204_v35 }
 0x196   : > { %17432 = vst [vmem:[#allocation103_spill] sm:$0xff] %v10202_v3 }
 0x19b   : > { %1620 = vperm.xlu1 %8635, %v9751_v12   ;;  %1624 = vperm.xlu2 %8633, %v9746_v11  }
 0x19c   : > { %1836 = vperm.xlu0 %8637, %v9828_v25   ;;  %v10209_v42 = vpop.permute.xlu1 %1428  ;;  %v10213_v59 = vpop.permute.xlu2 %1464 }
 0x19d   : > { %17434 = vst [vmem:[#allocation105_spill] sm:$0xff] %v10209_v42  ;;  %v10211_v55 = vpop.permute.xlu0 %1628 }
 0x19e   : > { %17435 = vst [vmem:[#allocation106_spill] sm:$0xff] %v10211_v55 }
 0x19f   : > { %17436 = vst [vmem:[#allocation107_spill] sm:$0xff] %v10213_v59 }
 0x1a3   : > { %1632 = vperm.xlu1 %8635, %v9769_v15   ;;  %1636 = vperm.xlu2 %8633, %v9764_v14  }
 0x1a4   : > { %1848 = vperm.xlu0 %8637, %v9846_v28   ;;  %v10218_v61 = vpop.permute.xlu1 %1436  ;;  %v10222_v3 = vpop.permute.xlu2 %1476 }
 0x1a5   : > { %17437 = vst [vmem:[#allocation108_spill] sm:$0xff] %v10218_v61  ;;  %v10220_v35 = vpop.permute.xlu0 %1640 }
 0x1a6   : > { %17438 = vst [vmem:[#allocation109_spill] sm:$0xff] %v10220_v35 }
 0x1a7   : > { %17439 = vst [vmem:[#allocation110_spill] sm:$0xff] %v10222_v3 }
 0x1ab   : > { %1644 = vperm.xlu1 %8635, %v9787_v18   ;;  %1648 = vperm.xlu2 %8633, %v9782_v17  }
 0x1ac   : > { %1860 = vperm.xlu0 %8637, %v9864_v31   ;;  %v10227_v55 = vpop.permute.xlu1 %1448  ;;  %v10231_v42 = vpop.permute.xlu2 %1488 }
 0x1ad   : > { %17440 = vst [vmem:[#allocation111_spill] sm:$0xff] %v10227_v55  ;;  %v10229_v59 = vpop.permute.xlu0 %1652 }
 0x1ae   : > { %17441 = vst [vmem:[#allocation112_spill] sm:$0xff] %v10229_v59 }
 0x1af   : > { %17442 = vst [vmem:[#allocation113_spill] sm:$0xff] %v10231_v42 }
 0x1b3   : > { %1656 = vperm.xlu1 %8635, %v9805_v21   ;;  %1660 = vperm.xlu2 %8633, %v9800_v20  }
 0x1b4   : > { %8640 = vset.pattern.permute.xlu0 %v16948_v37  ;;  %v10236_v3 = vpop.permute.xlu1 %1460  ;;  %v10241_v61 = vpop.permute.xlu2 %1500 }
 0x1b5   : > { %17443 = vst [vmem:[#allocation114_spill] sm:$0xff] %v10236_v3  ;;  %1904 = vperm.xlu0 %8640, %v9699_v2   ;;  %v10239_v35 = vpop.permute.xlu0 %1664 }
 0x1b6   : > { %17444 = vst [vmem:[#allocation115_spill] sm:$0xff] %v10239_v35 }
 0x1b7   : > { %17445 = vst [vmem:[#allocation116_spill] sm:$0xff] %v10241_v61 }
 0x1bb   : > { %1668 = vperm.xlu1 %8635, %v9823_v24   ;;  %1672 = vperm.xlu2 %8633, %v9818_v23  }
 0x1bc   : > { %v10245_v42 = vpop.permute.xlu1 %1472  ;;  %v10250_v37 = vpop.permute.xlu2 %1512 }
 0x1bd   : > { %17446 = vst [vmem:[#allocation117_spill] sm:$0xff] %v10245_v42  ;;  %1924 = vperm.xlu0 %8640, %v9720_v7   ;;  %v10248_v59 = vpop.permute.xlu0 %1676 }
 0x1be   : > { %17447 = vst [vmem:[#allocation118_spill] sm:$0xff] %v10248_v59 }
 0x1bf   : > { %17448 = vst [vmem:[#allocation119_spill] sm:$0xff] %v10250_v37 }
 0x1c3   : > { %1680 = vperm.xlu1 %8635, %v9841_v27   ;;  %1684 = vperm.xlu2 %8633, %v9836_v26  }
 0x1c4   : > { %v10254_v3 = vpop.permute.xlu1 %1484  ;;  %v10259_v35 = vpop.permute.xlu2 %1524 }
 0x1c5   : > { %17449 = vst [vmem:[#allocation120_spill] sm:$0xff] %v10254_v3  ;;  %1936 = vperm.xlu0 %8640, %v9738_v10   ;;  %v10257_v61 = vpop.permute.xlu0 %1688  ;;  %v17455_v3 = vmov 6  }
 0x1c6   : > { %17450 = vst [vmem:[#allocation121_spill] sm:$0xff] %v10257_v61 }
 0x1c7   : > { %17451 = vst [vmem:[#allocation122_spill] sm:$0xff] %v10259_v35 }
 0x1cb   : > { %1692 = vperm.xlu1 %8635, %v9859_v30   ;;  %1696 = vperm.xlu2 %8633, %v9854_v29  }
 0x1cc   : > { %v10263_v42 = vpop.permute.xlu1 %1496  ;;  %v10268_v59 = vpop.permute.xlu2 %1536 }
 0x1cd   : > { %17452 = vst [vmem:[#allocation123_spill] sm:$0xff] %v10263_v42  ;;  %1948 = vperm.xlu0 %8640, %v9756_v13   ;;  %v10266_v37 = vpop.permute.xlu0 %1700 }
 0x1ce   : > { %17453 = vst [vmem:[#allocation124_spill] sm:$0xff] %v10266_v37 }
 0x1cf   : > { %17454 = vst [vmem:[#allocation125_spill] sm:$0xff] %v10268_v59 }
 0x1d3   : > { %1704 = vperm.xlu1 %8635, %v9872_v32   ;;  %8636 = vset.pattern.permute.xlu2 %v17455_v3 }
 0x1d4   : > { %v10272_v55 = vpop.permute.xlu1 %1508  ;;  %1740 = vperm.xlu2 %8636, %v9877_v33  }
 0x1d5   : > { %17456 = vst [vmem:[#allocation126_spill] sm:$0xff] %v10272_v55  ;;  %1960 = vperm.xlu0 %8640, %v9774_v16   ;;  %v10278_v61 = vpop.permute.xlu2 %1580 }
 0x1d6   : > { %v10276_v35 = vpop.permute.xlu0 %1744  ;;  %17458 = vst [vmem:[#allocation128_spill] sm:$0xff] %v10278_v61  ;;  %v16981_v61 = vmov 8  }
 0x1d7   : > { %17457 = vst [vmem:[#allocation127_spill] sm:$0xff] %v10276_v35 }
 0x1db   : > { %8638 = vset.pattern.permute.xlu1 %v17455_v3 }
 0x1dc   : > { %1748 = vperm.xlu1 %8638, %v9694_v1   ;;  %v10282_v37 = vpop.permute.xlu1 %1520  ;;  %1752 = vperm.xlu2 %8636, %v9715_v6  }
 0x1dd   : > { %17459 = vst [vmem:[#allocation129_spill] sm:$0xff] %v10282_v37  ;;  %1972 = vperm.xlu0 %8640, %v9792_v19   ;;  %v10288_v55 = vpop.permute.xlu2 %1592 }
 0x1de   : > { %v10286_v59 = vpop.permute.xlu0 %1764  ;;  %17461 = vst [vmem:[#allocation131_spill] sm:$0xff] %v10288_v55 }
 0x1df   : > { %17460 = vst [vmem:[#allocation130_spill] sm:$0xff] %v10286_v59 }
 0x1e4   : > { %1756 = vperm.xlu1 %8638, %v9689_v0   ;;  %v10291_v42 = vpop.permute.xlu1 %1532  ;;  %1760 = vperm.xlu2 %8636, %v9710_v5  }
 0x1e5   : > { %17462 = vst [vmem:[#allocation132_spill] sm:$0xff] %v10291_v42  ;;  %1984 = vperm.xlu0 %8640, %v9810_v22   ;;  %v10297_v35 = vpop.permute.xlu2 %1600 }
 0x1e6   : > { %v10295_v3 = vpop.permute.xlu0 %1776  ;;  %17464 = vst [vmem:[#allocation134_spill] sm:$0xff] %v10297_v35 }
 0x1e7   : > { %17463 = vst [vmem:[#allocation133_spill] sm:$0xff] %v10295_v3 }
 0x1ec   : > { %1768 = vperm.xlu1 %8638, %v9733_v9   ;;  %v10300_v37 = vpop.permute.xlu1 %1544  ;;  %1772 = vperm.xlu2 %8636, %v9728_v8  }
 0x1ed   : > { %17465 = vst [vmem:[#allocation135_spill] sm:$0xff] %v10300_v37  ;;  %1996 = vperm.xlu0 %8640, %v9828_v25   ;;  %v10306_v55 = vpop.permute.xlu2 %1612 }
 0x1ee   : > { %v10304_v59 = vpop.permute.xlu0 %1788  ;;  %17467 = vst [vmem:[#allocation137_spill] sm:$0xff] %v10306_v55 }
 0x1ef   : > { %17466 = vst [vmem:[#allocation136_spill] sm:$0xff] %v10304_v59 }
 0x1f4   : > { %1780 = vperm.xlu1 %8638, %v9751_v12   ;;  %1784 = vperm.xlu2 %8636, %v9746_v11  }
 0x1f5   : > { %2008 = vperm.xlu0 %8640, %v9846_v28   ;;  %v10311_v42 = vpop.permute.xlu1 %1588  ;;  %v10315_v35 = vpop.permute.xlu2 %1624 }
 0x1f6   : > { %17468 = vst [vmem:[#allocation138_spill] sm:$0xff] %v10311_v42  ;;  %v10313_v3 = vpop.permute.xlu0 %1800 }
 0x1f7   : > { %17469 = vst [vmem:[#allocation139_spill] sm:$0xff] %v10313_v3 }
 0x1f8   : > { %17470 = vst [vmem:[#allocation140_spill] sm:$0xff] %v10315_v35 }
 0x1fc   : > { %1792 = vperm.xlu1 %8638, %v9769_v15   ;;  %1796 = vperm.xlu2 %8636, %v9764_v14  }
 0x1fd   : > { %2020 = vperm.xlu0 %8640, %v9864_v31   ;;  %v10320_v37 = vpop.permute.xlu1 %1596  ;;  %v10324_v55 = vpop.permute.xlu2 %1636 }
 0x1fe   : > { %17471 = vst [vmem:[#allocation141_spill] sm:$0xff] %v10320_v37  ;;  %v10322_v59 = vpop.permute.xlu0 %1812 }
 0x1ff   : > { %17472 = vst [vmem:[#allocation142_spill] sm:$0xff] %v10322_v59 }
 0x200   : > { %17473 = vst [vmem:[#allocation143_spill] sm:$0xff] %v10324_v55 }
 0x204   : > { %1804 = vperm.xlu1 %8638, %v9787_v18   ;;  %1808 = vperm.xlu2 %8636, %v9782_v17  }
 0x205   : > { %8643 = vset.pattern.permute.xlu0 %v16981_v61  ;;  %v10329_v3 = vpop.permute.xlu1 %1608  ;;  %v10334_v42 = vpop.permute.xlu2 %1648 }
 0x206   : > { %17474 = vst [vmem:[#allocation144_spill] sm:$0xff] %v10329_v3  ;;  %2064 = vperm.xlu0 %8643, %v9699_v2   ;;  %v10332_v35 = vpop.permute.xlu0 %1824 }
 0x207   : > { %17475 = vst [vmem:[#allocation145_spill] sm:$0xff] %v10332_v35 }
 0x208   : > { %17476 = vst [vmem:[#allocation146_spill] sm:$0xff] %v10334_v42 }
 0x20c   : > { %1816 = vperm.xlu1 %8638, %v9805_v21   ;;  %1820 = vperm.xlu2 %8636, %v9800_v20  }
 0x20d   : > { %v10338_v59 = vpop.permute.xlu1 %1620  ;;  %v10343_v61 = vpop.permute.xlu2 %1660 }
 0x20e   : > { %17477 = vst [vmem:[#allocation147_spill] sm:$0xff] %v10338_v59  ;;  %2084 = vperm.xlu0 %8643, %v9720_v7   ;;  %v10341_v55 = vpop.permute.xlu0 %1836 }
 0x20f   : > { %17478 = vst [vmem:[#allocation148_spill] sm:$0xff] %v10341_v55 }
 0x210   : > { %17479 = vst [vmem:[#allocation149_spill] sm:$0xff] %v10343_v61 }
 0x214   : > { %1828 = vperm.xlu1 %8638, %v9823_v24   ;;  %1832 = vperm.xlu2 %8636, %v9818_v23  }
 0x215   : > { %v10347_v3 = vpop.permute.xlu1 %1632  ;;  %v10352_v42 = vpop.permute.xlu2 %1672 }
 0x216   : > { %17480 = vst [vmem:[#allocation150_spill] sm:$0xff] %v10347_v3  ;;  %2096 = vperm.xlu0 %8643, %v9738_v10   ;;  %v10350_v35 = vpop.permute.xlu0 %1848 }
 0x217   : > { %17481 = vst [vmem:[#allocation151_spill] sm:$0xff] %v10350_v35 }
 0x218   : > { %17482 = vst [vmem:[#allocation152_spill] sm:$0xff] %v10352_v42 }
 0x21c   : > { %1840 = vperm.xlu1 %8638, %v9841_v27   ;;  %1844 = vperm.xlu2 %8636, %v9836_v26  }
 0x21d   : > { %v10356_v59 = vpop.permute.xlu1 %1644  ;;  %v10361_v61 = vpop.permute.xlu2 %1684 }
 0x21e   : > { %17483 = vst [vmem:[#allocation153_spill] sm:$0xff] %v10356_v59  ;;  %2108 = vperm.xlu0 %8643, %v9756_v13   ;;  %v10359_v55 = vpop.permute.xlu0 %1860  ;;  %v17489_v59 = vmov 7  }
 0x21f   : > { %17484 = vst [vmem:[#allocation154_spill] sm:$0xff] %v10359_v55 }
 0x220   : > { %17485 = vst [vmem:[#allocation155_spill] sm:$0xff] %v10361_v61 }
 0x224   : > { %1852 = vperm.xlu1 %8638, %v9859_v30   ;;  %1856 = vperm.xlu2 %8636, %v9854_v29  }
 0x225   : > { %v10365_v3 = vpop.permute.xlu1 %1656  ;;  %v10368_v35 = vpop.permute.xlu2 %1696 }
 0x226   : > { %17486 = vst [vmem:[#allocation156_spill] sm:$0xff] %v10365_v3  ;;  %2120 = vperm.xlu0 %8643, %v9774_v16  }
 0x227   : > { %17487 = vst [vmem:[#allocation157_spill] sm:$0xff] %v10368_v35  ;;  %v10370_v42 = vpop.permute.xlu0 %1904 }
 0x228   : > { %17488 = vst [vmem:[#allocation158_spill] sm:$0xff] %v10370_v42 }
 0x22c   : > { %1864 = vperm.xlu1 %8638, %v9872_v32   ;;  %8639 = vset.pattern.permute.xlu2 %v17489_v59 }
 0x22d   : > { %v10374_v37 = vpop.permute.xlu1 %1668  ;;  %1900 = vperm.xlu2 %8639, %v9877_v33  }
 0x22e   : > { %17490 = vst [vmem:[#allocation159_spill] sm:$0xff] %v10374_v37  ;;  %2132 = vperm.xlu0 %8643, %v9792_v19   ;;  %v10380_v61 = vpop.permute.xlu2 %1740 }
 0x22f   : > { %v10378_v55 = vpop.permute.xlu0 %1924  ;;  %17492 = vst [vmem:[#allocation161_spill] sm:$0xff] %v10380_v61 }
 0x230   : > { %17491 = vst [vmem:[#allocation160_spill] sm:$0xff] %v10378_v55 }
 0x234   : > { %8641 = vset.pattern.permute.xlu1 %v17489_v59 }
 0x235   : > { %1908 = vperm.xlu1 %8641, %v9694_v1   ;;  %v10384_v35 = vpop.permute.xlu1 %1680  ;;  %1912 = vperm.xlu2 %8639, %v9715_v6  }
 0x236   : > { %17493 = vst [vmem:[#allocation162_spill] sm:$0xff] %v10384_v35  ;;  %2144 = vperm.xlu0 %8643, %v9810_v22   ;;  %v10390_v37 = vpop.permute.xlu2 %1752 }
 0x237   : > { %v10388_v3 = vpop.permute.xlu0 %1936  ;;  %17495 = vst [vmem:[#allocation164_spill] sm:$0xff] %v10390_v37 }
 0x238   : > { %17494 = vst [vmem:[#allocation163_spill] sm:$0xff] %v10388_v3 }
 0x23d   : > { %1916 = vperm.xlu1 %8641, %v9689_v0   ;;  %v10393_v42 = vpop.permute.xlu1 %1692  ;;  %1920 = vperm.xlu2 %8639, %v9710_v5  }
 0x23e   : > { %17496 = vst [vmem:[#allocation165_spill] sm:$0xff] %v10393_v42  ;;  %2156 = vperm.xlu0 %8643, %v9828_v25   ;;  %v10399_v55 = vpop.permute.xlu2 %1760 }
 0x23f   : > { %v10397_v59 = vpop.permute.xlu0 %1948  ;;  %17498 = vst [vmem:[#allocation167_spill] sm:$0xff] %v10399_v55 }
 0x240   : > { %17497 = vst [vmem:[#allocation166_spill] sm:$0xff] %v10397_v59 }
 0x245   : > { %1928 = vperm.xlu1 %8641, %v9733_v9   ;;  %v10402_v35 = vpop.permute.xlu1 %1704  ;;  %1932 = vperm.xlu2 %8639, %v9728_v8  }
 0x246   : > { %17499 = vst [vmem:[#allocation168_spill] sm:$0xff] %v10402_v35  ;;  %2168 = vperm.xlu0 %8643, %v9846_v28   ;;  %v10408_v37 = vpop.permute.xlu2 %1772  ;;  %v17505_v35 = vmov 0  }
 0x247   : > { %v10406_v3 = vpop.permute.xlu0 %1960  ;;  %17501 = vst [vmem:[#allocation170_spill] sm:$0xff] %v10408_v37 }
 0x248   : > { %17500 = vst [vmem:[#allocation169_spill] sm:$0xff] %v10406_v3 }
 0x24d   : > { %1940 = vperm.xlu1 %8641, %v9751_v12   ;;  %1944 = vperm.xlu2 %8639, %v9746_v11  }
 0x24e   : > { %2180 = vperm.xlu0 %8643, %v9864_v31   ;;  %v10413_v42 = vpop.permute.xlu1 %1748  ;;  %v10417_v55 = vpop.permute.xlu2 %1784 }
 0x24f   : > { %17502 = vst [vmem:[#allocation171_spill] sm:$0xff] %v10413_v42  ;;  %v10415_v59 = vpop.permute.xlu0 %1972 }
 0x250   : > { %17503 = vst [vmem:[#allocation172_spill] sm:$0xff] %v10415_v59 }
 0x251   : > { %17504 = vst [vmem:[#allocation173_spill] sm:$0xff] %v10417_v55 }
 0x255   : > { %1952 = vperm.xlu1 %8641, %v9769_v15   ;;  %1956 = vperm.xlu2 %8639, %v9764_v14  }
 0x256   : > { %8645 = vset.pattern.permute.xlu0 %v17505_v35  ;;  %v10422_v3 = vpop.permute.xlu1 %1756  ;;  %v10427_v61 = vpop.permute.xlu2 %1796 }
 0x257   : > { %17506 = vst [vmem:[#allocation174_spill] sm:$0xff] %v10422_v3  ;;  %v10424_v37 = vpop.permute.xlu0 %1984  ;;  %844 = vperm.xlu0 %8645, %v9877_v33  }
 0x258   : > { %17507 = vst [vmem:[#allocation175_spill] sm:$0xff] %v10424_v37 }
 0x259   : > { %17508 = vst [vmem:[#allocation176_spill] sm:$0xff] %v10427_v61 }
 0x25d   : > { %1964 = vperm.xlu1 %8641, %v9787_v18   ;;  %1968 = vperm.xlu2 %8639, %v9782_v17  }
 0x25e   : > { %v10431_v59 = vpop.permute.xlu1 %1768  ;;  %v10436_v42 = vpop.permute.xlu2 %1808 }
 0x25f   : > { %17509 = vst [vmem:[#allocation177_spill] sm:$0xff] %v10431_v59  ;;  %v10433_v55 = vpop.permute.xlu0 %1996  ;;  %849 = vperm.xlu0 %8645, %v9699_v2  }
 0x260   : > { %17510 = vst [vmem:[#allocation178_spill] sm:$0xff] %v10433_v55 }
 0x261   : > { %17511 = vst [vmem:[#allocation179_spill] sm:$0xff] %v10436_v42 }
 0x265   : > { %1976 = vperm.xlu1 %8641, %v9805_v21   ;;  %1980 = vperm.xlu2 %8639, %v9800_v20  }
 0x266   : > { %v10440_v37 = vpop.permute.xlu1 %1780  ;;  %v10445_v61 = vpop.permute.xlu2 %1820 }
 0x267   : > { %17512 = vst [vmem:[#allocation180_spill] sm:$0xff] %v10440_v37  ;;  %v10442_v3 = vpop.permute.xlu0 %2008  ;;  %874 = vperm.xlu0 %8645, %v9720_v7   ;;  %v17593_v37 = vld [vmem:[#allocation28_spill] sm:$0xff] }
 0x268   : > { %17513 = vst [vmem:[#allocation181_spill] sm:$0xff] %v10442_v3 }
 0x269   : > { %17514 = vst [vmem:[#allocation182_spill] sm:$0xff] %v10445_v61 }
 0x26d   : > { %1988 = vperm.xlu1 %8641, %v9823_v24   ;;  %1992 = vperm.xlu2 %8639, %v9818_v23  }
 0x26e   : > { %v10449_v55 = vpop.permute.xlu1 %1792  ;;  %v10454_v42 = vpop.permute.xlu2 %1832 }
 0x26f   : > { %17515 = vst [vmem:[#allocation183_spill] sm:$0xff] %v10449_v55  ;;  %v10451_v2 = vpop.permute.xlu0 %2020  ;;  %889 = vperm.xlu0 %8645, %v9738_v10  }
 0x270   : > { %17516 = vst [vmem:[#allocation184_spill] sm:$0xff] %v10451_v2 }
 0x271   : > { %17517 = vst [vmem:[#allocation185_spill] sm:$0xff] %v10454_v42 }
 0x275   : > { %2000 = vperm.xlu1 %8641, %v9841_v27   ;;  %2004 = vperm.xlu2 %8639, %v9836_v26  }
 0x276   : > { %v10458_v3 = vpop.permute.xlu1 %1804  ;;  %v10461_v7 = vpop.permute.xlu2 %1844 }
 0x277   : > { %17518 = vst [vmem:[#allocation186_spill] sm:$0xff] %v10458_v3  ;;  %904 = vperm.xlu0 %8645, %v9756_v13   ;;  %v17524_v3 = vmov 8  }
 0x278   : > { %17519 = vst [vmem:[#allocation187_spill] sm:$0xff] %v10461_v7  ;;  %v10463_v61 = vpop.permute.xlu0 %2064 }
 0x279   : > { %17520 = vst [vmem:[#allocation188_spill] sm:$0xff] %v10463_v61 }
 0x27d   : > { %2012 = vperm.xlu1 %8641, %v9859_v30   ;;  %2016 = vperm.xlu2 %8639, %v9854_v29  }
 0x27e   : > { %v10467_v2 = vpop.permute.xlu1 %1816  ;;  %v10470_v10 = vpop.permute.xlu2 %1856 }
 0x27f   : > { %17521 = vst [vmem:[#allocation189_spill] sm:$0xff] %v10467_v2  ;;  %919 = vperm.xlu0 %8645, %v9774_v16  }
 0x280   : > { %17522 = vst [vmem:[#allocation190_spill] sm:$0xff] %v10470_v10  ;;  %v10472_v42 = vpop.permute.xlu0 %2084 }
 0x281   : > { %17523 = vst [vmem:[#allocation191_spill] sm:$0xff] %v10472_v42 }
 0x285   : > { %2024 = vperm.xlu1 %8641, %v9872_v32   ;;  %8642 = vset.pattern.permute.xlu2 %v17524_v3 }
 0x286   : > { %v10476_v13 = vpop.permute.xlu1 %1828  ;;  %2060 = vperm.xlu2 %8642, %v9877_v33  }
 0x287   : > { %17525 = vst [vmem:[#allocation192_spill] sm:$0xff] %v10476_v13  ;;  %934 = vperm.xlu0 %8645, %v9792_v19   ;;  %v10482_v2 = vpop.permute.xlu2 %1900 }
 0x288   : > { %v10480_v7 = vpop.permute.xlu0 %2096  ;;  %17527 = vst [vmem:[#allocation194_spill] sm:$0xff] %v10482_v2 }
 0x289   : > { %17526 = vst [vmem:[#allocation193_spill] sm:$0xff] %v10480_v7 }
 0x28d   : > { %8644 = vset.pattern.permute.xlu1 %v17524_v3 }
 0x28e   : > { %2068 = vperm.xlu1 %8644, %v9694_v1   ;;  %v10486_v16 = vpop.permute.xlu1 %1840  ;;  %2072 = vperm.xlu2 %8642, %v9715_v6  }
 0x28f   : > { %17528 = vst [vmem:[#allocation195_spill] sm:$0xff] %v10486_v16  ;;  %949 = vperm.xlu0 %8645, %v9810_v22   ;;  %v10492_v19 = vpop.permute.xlu2 %1912 }
 0x290   : > { %v10490_v10 = vpop.permute.xlu0 %2108  ;;  %17530 = vst [vmem:[#allocation197_spill] sm:$0xff] %v10492_v19 }
 0x291   : > { %17529 = vst [vmem:[#allocation196_spill] sm:$0xff] %v10490_v10 }
 0x296   : > { %2076 = vperm.xlu1 %8644, %v9689_v0   ;;  %v10495_v33 = vpop.permute.xlu1 %1852  ;;  %2080 = vperm.xlu2 %8642, %v9710_v5  }
 0x297   : > { %17531 = vst [vmem:[#allocation198_spill] sm:$0xff] %v10495_v33  ;;  %964 = vperm.xlu0 %8645, %v9828_v25   ;;  %v10501_v3 = vpop.permute.xlu2 %1920  ;;  %v10536_v25 = vld [vmem:[%s10531_s1 + $0xf8] sm:$0xff]  ;;  %v10564_v33 = vld [vmem:[%s10531_s1 + $0x28] sm:$0xff] }
 0x298   : > { %v10499_v1 = vpop.permute.xlu0 %2120  ;;  %17533 = vst [vmem:[#allocation200_spill] sm:$0xff] %v10501_v3  ;;  %v1169_v16 = vmul.f32 %v10023_v54, %v10564_v33  ;;  %v10592_v54 = vld [vmem:[%s10531_s1 + $0x58] sm:$0xff] }
 0x299   : > { %17532 = vst [vmem:[#allocation199_spill] sm:$0xff] %v10499_v1  ;;  %v17587_v1 = vld [vmem:[#allocation26_spill] sm:$0xff] }
 0x29a   : > { %v17637_v3 = vld [vmem:[#allocation78_spill] sm:$0xff] }
 0x29e   : > { %2088 = vperm.xlu1 %8644, %v9733_v9   ;;  %v10506_v6 = vpop.permute.xlu1 %1864  ;;  %2092 = vperm.xlu2 %8642, %v9728_v8  }
 0x29f   : > { %17534 = vst [vmem:[#allocation201_spill] sm:$0xff] %v10506_v6  ;;  %979 = vperm.xlu0 %8645, %v9846_v28   ;;  %v10512_v22 = vpop.permute.xlu2 %1932  ;;  %v10550_v6 = vld [vmem:[%s10531_s1 + $0x10] sm:$0xff] }
 0x2a0   : > { %v10510_v0 = vpop.permute.xlu0 %2132  ;;  %17536 = vst [vmem:[#allocation203_spill] sm:$0xff] %v10512_v22 }
 0x2a1   : > { %17535 = vst [vmem:[#allocation202_spill] sm:$0xff] %v10510_v0  ;;  %v17581_v0 = vld [vmem:[#allocation23_spill] sm:$0xff] }
 0x2a6   : > { %2100 = vperm.xlu1 %8644, %v9751_v12   ;;  %2104 = vperm.xlu2 %8642, %v9746_v11   ;;  %v1163_v12 = vmul.f32 %v9907_v40, %v10536_v25  ;;  %v1166_v40 = vmul.f32 %v10014_v53, %v10550_v6  ;;  %v10578_v53 = vld [vmem:[%s10531_s1 + $0x40] sm:$0xff] }
 0x2a7   : > { %994 = vperm.xlu0 %8645, %v9864_v31   ;;  %v10522_v5 = vpop.permute.xlu1 %1908  ;;  %v10533_v8 = vpop.permute.xlu2 %1944  ;;  %17550 = vst [vmem:[#allocation216_spill] sm:$0xff] %v10578_v53  ;;  %v1202_v7 = vrot.slane %v10578_v53, 1 }
 0x2a8   : > { %17537 = vst [vmem:[#allocation204_spill] sm:$0xff] %v10522_v5  ;;  %v10524_v9 = vpop.permute.xlu0 %2144 }
 0x2a9   : > { %17538 = vst [vmem:[#allocation205_spill] sm:$0xff] %v10524_v9  ;;  %v807_v9 = vlaneseq }
 0x2aa   : > { %17540 = vst [vmem:[#allocation206_spill] sm:$0xff] %v10533_v8 }
 0x2ae   : > { %2112 = vperm.xlu1 %8644, %v9769_v15   ;;  %2116 = vperm.xlu2 %8642, %v9764_v14  }
 0x2af   : > { %2253 = vrot.lane.b32.xlu0 %v1163_v12, %s17175_s26  ;;  %v10543_v11 = vpop.permute.xlu1 %1916  ;;  %v10547_v31 = vpop.permute.xlu2 %1956 }
 0x2b0   : > { %17541 = vst [vmem:[#allocation207_spill] sm:$0xff] %v10543_v11  ;;  %v10545_v28 = vpop.permute.xlu0 %2156 }
 0x2b1   : > { %17542 = vst [vmem:[#allocation208_spill] sm:$0xff] %v10545_v28 }
 0x2b2   : > { %17543 = vst [vmem:[#allocation209_spill] sm:$0xff] %v10547_v31 }
 0x2b6   : > { %2124 = vperm.xlu1 %8644, %v9787_v18   ;;  %2128 = vperm.xlu2 %8642, %v9782_v17  }
 0x2b7   : > { %2259 = vrot.lane.b32.xlu0 %v1166_v40, %s17175_s26  ;;  %v10557_v15 = vpop.permute.xlu1 %1928  ;;  %v10561_v12 = vpop.permute.xlu2 %1968 }
 0x2b8   : > { %17544 = vst [vmem:[#allocation210_spill] sm:$0xff] %v10557_v15  ;;  %v10559_v14 = vpop.permute.xlu0 %2168 }
 0x2b9   : > { %17545 = vst [vmem:[#allocation211_spill] sm:$0xff] %v10559_v14  ;;  %v1172_v14 = vmul.f32 %v10032_v38, %v10578_v53  ;;  %v10606_v38 = vld [vmem:[%s10531_s1 + $0x70] sm:$0xff] }
 0x2ba   : > { %17546 = vst [vmem:[#allocation212_spill] sm:$0xff] %v10561_v12  ;;  %v10716_v12 = vld [vmem:[%s10531_s1 + $0xe8] sm:$0xff]  ;;  %v17645_v53 = vld [vmem:[#allocation81_spill] sm:$0xff] }
 0x2bb   : > { %17573 = vst [vmem:[#allocation239_spill] sm:$0xff] %v10716_v12 }
 0x2be   : > { %2136 = vperm.xlu1 %8644, %v9805_v21   ;;  %2140 = vperm.xlu2 %8642, %v9800_v20  }
 0x2bf   : > { %2265 = vrot.lane.b32.xlu0 %v1169_v16, %s17175_s26  ;;  %v10571_v18 = vpop.permute.xlu1 %1940  ;;  %v10575_v40 = vpop.permute.xlu2 %1980 }
 0x2c0   : > { %17547 = vst [vmem:[#allocation213_spill] sm:$0xff] %v10571_v18  ;;  %v10573_v17 = vpop.permute.xlu0 %2180 }
 0x2c1   : > { %17548 = vst [vmem:[#allocation214_spill] sm:$0xff] %v10573_v17  ;;  %v1175_v17 = vmul.f32 %v10041_v45, %v10592_v54  ;;  %v10620_v45 = vld [vmem:[%s10531_s1 + $0xf0] sm:$0xff] }
 0x2c2   : > { %17549 = vst [vmem:[#allocation215_spill] sm:$0xff] %v10575_v40  ;;  %v17120_v59 = vrot.slane %v10620_v45, 1 }
 0x2c3   : > { %17560 = vst [vmem:[#allocation226_spill] sm:$0xff] %v10620_v45 }
 0x2c6   : > { %2148 = vperm.xlu1 %8644, %v9823_v24   ;;  %2152 = vperm.xlu2 %8642, %v9818_v23  }
 0x2c7   : > { %2271 = vrot.lane.b32.xlu0 %v1172_v14, %s17175_s26  ;;  %v10585_v21 = vpop.permute.xlu1 %1952  ;;  %v10587_v20 = vpop.permute.xlu2 %1992 }
 0x2c8   : > { %17551 = vst [vmem:[#allocation217_spill] sm:$0xff] %v10585_v21 }
 0x2c9   : > { %17552 = vst [vmem:[#allocation218_spill] sm:$0xff] %v10587_v20  ;;  %v10589_v16 = vpop.permute.xlu0 %844  ;;  %v1178_v20 = vmul.f32 %v10050_v39, %v10606_v38 }
 0x2ca   : > { %17553 = vst [vmem:[#allocation219_spill] sm:$0xff] %v10589_v16 }
 0x2ce   : > { %2160 = vperm.xlu1 %8644, %v9841_v27   ;;  %2164 = vperm.xlu2 %8642, %v9836_v26  }
 0x2cf   : > { %2277 = vrot.lane.b32.xlu0 %v1175_v17, %s17175_s26  ;;  %v10599_v23 = vpop.permute.xlu1 %1964  ;;  %v10601_v24 = vpop.permute.xlu2 %2004 }
 0x2d0   : > { %17554 = vst [vmem:[#allocation220_spill] sm:$0xff] %v10599_v23 }
 0x2d1   : > { %17555 = vst [vmem:[#allocation221_spill] sm:$0xff] %v10601_v24  ;;  %v10603_v14 = vpop.permute.xlu0 %849  ;;  %v10623_v24 = vld [vmem:[%s10531_s1 + $0x88] sm:$0xff] }
 0x2d2   : > { %17556 = vst [vmem:[#allocation222_spill] sm:$0xff] %v10603_v14 }
 0x2d6   : > { %2172 = vperm.xlu1 %8644, %v9859_v30   ;;  %2176 = vperm.xlu2 %8642, %v9854_v29   ;;  %v1181_v30 = vmul.f32 %v10059_v36, %v10623_v24  ;;  %v10640_v36 = vld [vmem:[%s10531_s1] sm:$0xff] }
 0x2d7   : > { %2283 = vrot.lane.b32.xlu0 %v1178_v20, %s17175_s26  ;;  %v10613_v26 = vpop.permute.xlu1 %1976  ;;  %v10615_v27 = vpop.permute.xlu2 %2016  ;;  %v1162_v20 = vmul.f32 %v9972_v62, %v10620_v45  ;;  %v10643_v62 = vld [vmem:[%s10531_s1 + $0xa0] sm:$0xff] }
 0x2d8   : > { %17557 = vst [vmem:[#allocation223_spill] sm:$0xff] %v10613_v26 }
 0x2d9   : > { %17558 = vst [vmem:[#allocation224_spill] sm:$0xff] %v10615_v27  ;;  %v10617_v17 = vpop.permute.xlu0 %874 }
 0x2da   : > { %17559 = vst [vmem:[#allocation225_spill] sm:$0xff] %v10617_v17 }
 0x2de   : > { %2184 = vperm.xlu1 %8644, %v9872_v32   ;;  %2251 = vrot.lane.b32.xlu2 %v1162_v20, %s17175_s26  ;;  %v10646_v32 = vld [vmem:[%s10531_s1 + $0x8] sm:$0xff]  ;;  %v1184_v20 = vmul.f32 %v10068_v63, %v10643_v62  ;;  %v10665_v63 = vld [vmem:[%s10531_s1 + $0x18] sm:$0xff] }
 0x2df   : > { %2289 = vrot.lane.b32.xlu0 %v1181_v30, %s17175_s26  ;;  %v10632_v29 = vpop.permute.xlu1 %1988  ;;  %8647 = vset.pattern.permute.xlu2 %v17505_v35  ;;  %v1164_v30 = vmul.f32 %v10005_v56, %v10640_v36 }
 0x2e0   : > { %17561 = vst [vmem:[#allocation227_spill] sm:$0xff] %v10632_v29  ;;  %v10637_v27 = vpop.permute.xlu2 %2060  ;;  %v1165_v29 = vmul.f32 %v9982_v4, %v10646_v32  ;;  %v10668_v4 = vld [vmem:[%s10531_s1 + $0xb8] sm:$0xff] }
 0x2e1   : > { %v10634_v39 = vpop.permute.xlu0 %889  ;;  %17563 = vst [vmem:[#allocation229_spill] sm:$0xff] %v10637_v27 }
 0x2e2   : > { %17562 = vst [vmem:[#allocation228_spill] sm:$0xff] %v10634_v39 }
 0x2e6   : > { %2255 = vrot.lane.b32.xlu1 %v1164_v30, %s17175_s26  ;;  %2257 = vrot.lane.b32.xlu2 %v1165_v29, %s17175_s26  ;;  %v1167_v29 = vmul.f32 %v9991_v34, %v10665_v63  ;;  %v1187_v30 = vmul.f32 %v10078_v58, %v10668_v4  ;;  %v10689_v34 = vld [vmem:[%s10531_s1 + $0x30] sm:$0xff] }
 0x2e7   : > { %2295 = vrot.lane.b32.xlu0 %v1184_v20, %s17175_s26  ;;  %v10657_v13 = vpop.permute.xlu1 %2000  ;;  %8646 = vset.pattern.permute.xlu1 %v17505_v35  ;;  %v10671_v20 = vld [vmem:[%s10531_s1 + $0x20] sm:$0xff]  ;;  %v10692_v58 = vld [vmem:[%s10531_s1 + $0xd0] sm:$0xff] }
 0x2e8   : > { %17564 = vst [vmem:[#allocation230_spill] sm:$0xff] %v10657_v13  ;;  %v10662_v56 = vpop.permute.xlu2 %2072  ;;  %v1168_v35 = vmul.f32 %v9916_v43, %v10671_v20  ;;  %v10695_v43 = vld [vmem:[%s10531_s1 + $0x38] sm:$0xff] }
 0x2e9   : > { %v10660_v28 = vpop.permute.xlu0 %904  ;;  %17566 = vst [vmem:[#allocation232_spill] sm:$0xff] %v10662_v56 }
 0x2ea   : > { %17565 = vst [vmem:[#allocation231_spill] sm:$0xff] %v10660_v28 }
 0x2ee   : > { %2261 = vrot.lane.b32.xlu1 %v1167_v29, %s17175_s26  ;;  %2263 = vrot.lane.b32.xlu2 %v1168_v35, %s17175_s26  ;;  %v1170_v29 = vmul.f32 %v10000_v50, %v10689_v34  ;;  %v1190_v35 = vmul.f32 %v10087_v48, %v10692_v58  ;;  %v10713_v50 = vld [vmem:[%s10531_s1 + $0x48] sm:$0xff]  ;;  %v10719_v48 = vld [vmem:[%s10531_s1 + $0x50] sm:$0xff] }
 0x2ef   : > { %2301 = vrot.lane.b32.xlu0 %v1187_v30, %s17175_s26  ;;  %v10682_v13 = vpop.permute.xlu1 %2012  ;;  %v1171_v30 = vmul.f32 %v9925_v46, %v10695_v43  ;;  %v10727_v46 = vshrl.u32 %v807_v9, 7 }
 0x2f0   : > { %17567 = vst [vmem:[#allocation233_spill] sm:$0xff] %v10682_v13  ;;  %v10686_v26 = vpop.permute.xlu2 %2080 }
 0x2f1   : > { %v10684_v40 = vpop.permute.xlu0 %919  ;;  %17569 = vst [vmem:[#allocation235_spill] sm:$0xff] %v10686_v26  ;;  %vm1226_vm0 = vcmp.lt.s32.totalorder %v10727_v46, 7  ;;  %vm809_vm1 = vcmp.lt.s32.totalorder %v10727_v46, 1 }
 0x2f2   : > { %17568 = vst [vmem:[#allocation234_spill] sm:$0xff] %v10684_v40 }
 0x2f6   : > { %2267 = vrot.lane.b32.xlu1 %v1170_v29, %s17175_s26  ;;  %2269 = vrot.lane.b32.xlu2 %v1171_v30, %s17175_s26  ;;  %v1173_v29 = vmul.f32 %v10009_v47, %v10713_v50  ;;  %v1174_v30 = vmul.f32 %v9934_v49, %v10719_v48 }
 0x2f7   : > { %2307 = vrot.lane.b32.xlu0 %v1190_v35, %s17175_s26  ;;  %v10706_v13 = vpop.permute.xlu1 %2024  ;;  %v1193_v35 = vmul.f32 %v10096_v41, %v10716_v12  ;;  %v17618_v12 = vld [vmem:[#allocation37_spill] sm:$0xff] }
 0x2f8   : > { %17570 = vst [vmem:[#allocation236_spill] sm:$0xff] %v10706_v13  ;;  %v10710_v28 = vpop.permute.xlu2 %2092  ;;  %v17074_v13 = vrot.slane %v10640_v36, 1 }
 0x2f9   : > { %v10708_v40 = vpop.permute.xlu0 %934  ;;  %17572 = vst [vmem:[#allocation238_spill] sm:$0xff] %v10710_v28 }
 0x2fa   : > { %17571 = vst [vmem:[#allocation237_spill] sm:$0xff] %v10708_v40  ;;  %v17073_v40 = vrot.slane %v10646_v32, 1 }
 0x2fc   : > { %v10745_v9 = vsel %vm1226_vm0, %v17074_v13, %v17073_v40  ;;  %v17083_v40 = vrot.slane %v10665_v63, 1  ;;  %v17082_v13 = vrot.slane %v10671_v20, 1 }
 0x2fd   : > { %17576 = vst [vmem:[#allocation242_spill] sm:$0xff] %v10745_v9 }
 0x2fe   : > { %2273 = vrot.lane.b32.xlu1 %v1173_v29, %s17175_s26  ;;  %2275 = vrot.lane.b32.xlu2 %v1174_v30, %s17175_s26  ;;  %v10753_v30 = vld [vmem:[%s10531_s1 + $0x68] sm:$0xff] }
 0x2ff   : > { %2313 = vrot.lane.b32.xlu0 %v1193_v35, %s17175_s26  ;;  %v10750_v35 = vld [vmem:[%s10531_s1 + $0x60] sm:$0xff]  ;;  %v1177_v23 = vmul.f32 %v9943_v52, %v10753_v30  ;;  %v10776_v52 = vsel %vm1226_vm0, %v17083_v40, %v17082_v13  ;;  %v17093_v13 = vrot.slane %v10689_v34, 1  ;;  %v17092_v40 = vrot.slane %v10695_v43, 1 }
 0x300   : > { %v10735_v47 = vpop.permute.xlu1 %2068  ;;  %v10747_v29 = vpop.permute.xlu2 %2104  ;;  %v1176_v49 = vmul.f32 %v10018_v44, %v10750_v35 }
 0x301   : > { %17574 = vst [vmem:[#allocation240_spill] sm:$0xff] %v10735_v47  ;;  %v10737_v41 = vpop.permute.xlu0 %949 }
 0x302   : > { %17575 = vst [vmem:[#allocation241_spill] sm:$0xff] %v10737_v41  ;;  %v1389_v41 = vmul.f32 %v10107_v60, %v10745_v9  ;;  %v10784_v60 = vld [vmem:[%s10531_s1 + $0x80] sm:$0xff] }
 0x303   : > { %17577 = vst [vmem:[#allocation243_spill] sm:$0xff] %v10747_v29  ;;  %v1180_v31 = vmul.f32 %v17581_v0, %v10784_v60  ;;  %v10807_v0 = vsel %vm1226_vm0, %v17093_v13, %v17092_v40  ;;  %v17101_v40 = vrot.slane %v10713_v50, 1  ;;  %v17100_v13 = vrot.slane %v10719_v48, 1 }
 0x306   : > { %2279 = vrot.lane.b32.xlu1 %v1176_v49, %s17175_s26  ;;  %2281 = vrot.lane.b32.xlu2 %v1177_v23, %s17175_s26  ;;  %v10781_v49 = vld [vmem:[%s10531_s1 + $0x78] sm:$0xff] }
 0x307   : > { %2383 = vrot.lane.b32.xlu0 %v1389_v41, %s17177_s2  ;;  %v1179_v23 = vmul.f32 %v10027_v51, %v10781_v49  ;;  %v10815_v51 = vld [vmem:[%s10531_s1 + $0x98] sm:$0xff] }
 0x308   : > { %v10766_v39 = vpop.permute.xlu1 %2076  ;;  %v10778_v41 = vpop.permute.xlu2 %2116  ;;  %v1183_v8 = vmul.f32 %v17587_v1, %v10815_v51  ;;  %v10846_v1 = vld [vmem:[%s10531_s1 + $0xa8] sm:$0xff] }
 0x309   : > { %17578 = vst [vmem:[#allocation244_spill] sm:$0xff] %v10766_v39  ;;  %v10768_v44 = vpop.permute.xlu0 %964 }
 0x30a   : > { %17579 = vst [vmem:[#allocation245_spill] sm:$0xff] %v10768_v44  ;;  %v1392_v44 = vmul.f32 %v10093_v57, %v10776_v52 }
 0x30b   : > { %17580 = vst [vmem:[#allocation246_spill] sm:$0xff] %v10778_v41 }
 0x30e   : > { %2285 = vrot.lane.b32.xlu1 %v1179_v23, %s17175_s26  ;;  %2287 = vrot.lane.b32.xlu2 %v1180_v31, %s17175_s26  ;;  %v10812_v23 = vld [vmem:[%s10531_s1 + $0x90] sm:$0xff]  ;;  %v17585_v31 = vld [vmem:[#allocation50_spill] sm:$0xff] }
 0x30f   : > { %2389 = vrot.lane.b32.xlu0 %v1392_v44, %s17177_s2  ;;  %v1182_v57 = vmul.f32 %v17585_v31, %v10812_v23  ;;  %v10838_v31 = vsel %vm1226_vm0, %v17101_v40, %v17100_v13  ;;  %v17108_v13 = vrot.slane %v10750_v35, 1  ;;  %v17107_v40 = vrot.slane %v10753_v30, 1 }
 0x310   : > { %v10797_v21 = vpop.permute.xlu1 %2088  ;;  %v10809_v44 = vpop.permute.xlu2 %2128 }
 0x311   : > { %17582 = vst [vmem:[#allocation247_spill] sm:$0xff] %v10797_v21  ;;  %v10799_v55 = vpop.permute.xlu0 %979 }
 0x312   : > { %17583 = vst [vmem:[#allocation248_spill] sm:$0xff] %v10799_v55  ;;  %v17586_v55 = vld [vmem:[#allocation71_spill] sm:$0xff] }
 0x313   : > { %17584 = vst [vmem:[#allocation249_spill] sm:$0xff] %v10809_v44  ;;  %v1395_v17 = vmul.f32 %v17586_v55, %v10807_v0 }
 0x316   : > { %2291 = vrot.lane.b32.xlu1 %v1182_v57, %s17175_s26  ;;  %2293 = vrot.lane.b32.xlu2 %v1183_v8, %s17175_s26  ;;  %v10843_v57 = vld [vmem:[%s10531_s1 + $0xb0] sm:$0xff] }
 0x317   : > { %2395 = vrot.lane.b32.xlu0 %v1395_v17, %s17177_s2  ;;  %v17591_v8 = vld [vmem:[#allocation53_spill] sm:$0xff]  ;;  %v1186_v10 = vmul.f32 %v17593_v37, %v10843_v57  ;;  %v10869_v37 = vsel %vm1226_vm0, %v17108_v13, %v17107_v40  ;;  %v17117_v40 = vrot.slane %v10781_v49, 1  ;;  %v17116_v13 = vrot.slane %v10784_v60, 1 }
 0x318   : > { %v10828_v44 = vpop.permute.xlu1 %2100  ;;  %v10840_v17 = vpop.permute.xlu2 %2140  ;;  %v1185_v55 = vmul.f32 %v17591_v8, %v10846_v1  ;;  %17596 = vst [vmem:[#allocation255_spill] sm:$0xff] %v10869_v37  ;;  %v10877_v8 = vld [vmem:[%s10531_s1 + $0xc0] sm:$0xff] }
 0x319   : > { %17588 = vst [vmem:[#allocation250_spill] sm:$0xff] %v10828_v44  ;;  %v10830_v41 = vpop.permute.xlu0 %994  ;;  %v17608_v44 = vld [vmem:[#allocation34_spill] sm:$0xff] }
 0x31a   : > { %17589 = vst [vmem:[#allocation251_spill] sm:$0xff] %v10830_v41  ;;  %v17592_v41 = vld [vmem:[#allocation74_spill] sm:$0xff] }
 0x31b   : > { %17590 = vst [vmem:[#allocation252_spill] sm:$0xff] %v10840_v17  ;;  %v1398_v18 = vmul.f32 %v17592_v41, %v10838_v31 }
 0x31e   : > { %2297 = vrot.lane.b32.xlu1 %v1185_v55, %s17175_s26  ;;  %2299 = vrot.lane.b32.xlu2 %v1186_v10, %s17175_s26  ;;  %v10874_v55 = vld [vmem:[%s10531_s1 + $0xc8] sm:$0xff] }
 0x31f   : > { %2401 = vrot.lane.b32.xlu0 %v1398_v18, %s17177_s2  ;;  %v17598_v10 = vld [vmem:[#allocation56_spill] sm:$0xff] }
 0x320   : > { %v10859_v17 = vpop.permute.xlu1 %2112  ;;  %v10871_v18 = vpop.permute.xlu2 %2152  ;;  %v1188_v41 = vmul.f32 %v17598_v10, %v10877_v8  ;;  %v10900_v10 = vsel %vm1226_vm0, %v17117_v40, %v17116_v13  ;;  %v17129_v13 = vrot.slane %v10812_v23, 1  ;;  %v1225_v40 = vrot.slane %v10536_v25, 1 }
 0x321   : > { %17594 = vst [vmem:[#allocation253_spill] sm:$0xff] %v10859_v17  ;;  %v10861_v22 = vpop.permute.xlu0 %2253  ;;  %v17599_v17 = vld [vmem:[#allocation77_spill] sm:$0xff] }
 0x322   : > { %17595 = vst [vmem:[#allocation254_spill] sm:$0xff] %v10861_v22  ;;  %v1401_v29 = vmul.f32 %v17599_v17, %v10869_v37  ;;  %v17600_v22 = vld [vmem:[#allocation31_spill] sm:$0xff] }
 0x323   : > { %17597 = vst [vmem:[#allocation256_spill] sm:$0xff] %v10871_v18  ;;  %v1189_v14 = vmul.f32 %v17600_v22, %v10874_v55 }
 0x324   : > { %17603 = vst [vmem:[#allocation259_spill] sm:$0xff] %v10900_v10 }
 0x326   : > { %2303 = vrot.lane.b32.xlu1 %v1188_v41, %s17175_s26  ;;  %2305 = vrot.lane.b32.xlu2 %v1189_v14, %s17175_s26  ;;  %v10908_v41 = vld [vmem:[%s10531_s1 + $0xd8] sm:$0xff]  ;;  %v17606_v14 = vld [vmem:[#allocation59_spill] sm:$0xff] }
 0x327   : > { %2407 = vrot.lane.b32.xlu0 %v1401_v29, %s17177_s2  ;;  %v10905_v29 = vld [vmem:[%s10531_s1 + $0xe0] sm:$0xff]  ;;  %v1191_v17 = vmul.f32 %v17606_v14, %v10908_v41 }
 0x328   : > { %v10890_v18 = vpop.permute.xlu1 %2124  ;;  %v10902_v22 = vpop.permute.xlu2 %2164  ;;  %17605 = vst [vmem:[#allocation261_spill] sm:$0xff] %v10905_v29  ;;  %v1192_v37 = vmul.f32 %v17608_v44, %v10905_v29  ;;  %v10931_v44 = vsel %vm1226_vm0, %v17120_v59, %v1225_v40 }
 0x329   : > { %17601 = vst [vmem:[#allocation257_spill] sm:$0xff] %v10890_v18  ;;  %v10892_v15 = vpop.permute.xlu0 %2259  ;;  %v17607_v18 = vld [vmem:[#allocation80_spill] sm:$0xff] }
 0x32a   : > { %17602 = vst [vmem:[#allocation258_spill] sm:$0xff] %v10892_v15  ;;  %v1404_v15 = vmul.f32 %v17607_v18, %v10900_v10  ;;  %v17617_v10 = vld [vmem:[#allocation83_spill] sm:$0xff] }
 0x32b   : > { %17604 = vst [vmem:[#allocation260_spill] sm:$0xff] %v10902_v22  ;;  %v17128_v22 = vrot.slane %v10815_v51, 1 }
 0x32c   : > { %17611 = vst [vmem:[#allocation264_spill] sm:$0xff] %v10931_v44 }
 0x32e   : > { %2309 = vrot.lane.b32.xlu1 %v1191_v17, %s17175_s26  ;;  %2311 = vrot.lane.b32.xlu2 %v1192_v37, %s17175_s26  ;;  %v17614_v37 = vrot.slane %v10640_v36, 1  ;;  %s17937_s26 = smov 18  }
 0x32f   : > { %2413 = vrot.lane.b32.xlu0 %v1404_v15, %s17177_s2  ;;  %v10939_v15 = vsel %vm1226_vm0, %v17129_v13, %v17128_v22  ;;  %v1196_v22 = vrot.slane %v10550_v6, 1  ;;  %v17139_v13 = vrot.slane %v10846_v1, 1 }
 0x330   : > { %v10923_v14 = vpop.permute.xlu1 %2136  ;;  %17612 = vst [vmem:[#allocation265_spill] sm:$0xff] %v10939_v15  ;;  %v10941_v17 = vpop.permute.xlu2 %2176  ;;  %v1407_v16 = vmul.f32 %v17617_v10, %v10939_v15  ;;  %v17621_v10 = vrot.slane %v10646_v32, 1  ;;  %v17628_v15 = vld [vmem:[#allocation75_spill] sm:$0xff] }
 0x331   : > { %17609 = vst [vmem:[#allocation262_spill] sm:$0xff] %v10923_v14  ;;  %v10925_v18 = vpop.permute.xlu0 %2265  ;;  %v10947_v14 = vsel %vm1226_vm0, %v1225_v40, %v17614_v37  ;;  %v17138_v40 = vrot.slane %v10843_v57, 1 }
 0x332   : > { %17610 = vst [vmem:[#allocation263_spill] sm:$0xff] %v10925_v18  ;;  %v17616_v18 = vld [vmem:[#allocation62_spill] sm:$0xff]  ;;  %v1388_v45 = vmul.f32 %v17618_v12, %v10947_v14  ;;  %v10969_v12 = vsel %vm1226_vm0, %v17621_v10, %v1196_v22 }
 0x333   : > { %17613 = vst [vmem:[#allocation266_spill] sm:$0xff] %v10941_v17  ;;  %v1387_v59 = vmul.f32 %v17616_v18, %v10931_v44  ;;  %v17627_v44 = vld [vmem:[#allocation86_spill] sm:$0xff] }
 0x334   : > { %17615 = vst [vmem:[#allocation267_spill] sm:$0xff] %v10947_v14  ;;  %v17626_v14 = vld [vmem:[#allocation65_spill] sm:$0xff] }
 0x335   : > { %17622 = vst [vmem:[#allocation270_spill] sm:$0xff] %v10969_v12  ;;  %v1390_v10 = vmul.f32 %v17626_v14, %v10969_v12 }
 0x336   : > { %2379 = vrot.lane.b32.xlu1 %v1387_v59, %s17177_s2  ;;  %2381 = vrot.lane.b32.xlu2 %v1388_v45, %s17177_s2  ;;  %v10977_v59 = vsel %vm1226_vm0, %v17139_v13, %v17138_v40  ;;  %v17625_v45 = vrot.slane %v10665_v63, 1  ;;  %v17146_v13 = vrot.slane %v10877_v8, 1 }
 0x337   : > { %2419 = vrot.lane.b32.xlu0 %v1407_v16, %s17177_s2  ;;  %17623 = vst [vmem:[#allocation271_spill] sm:$0xff] %v10977_v59 }
 0x338   : > { %v10961_v37 = vpop.permute.xlu1 %2148  ;;  %v10979_v16 = vpop.permute.xlu2 %2251  ;;  %v10985_v17 = vsel %vm1226_vm0, %v1196_v22, %v17625_v45  ;;  %v17145_v22 = vrot.slane %v10874_v55, 1 }
 0x339   : > { %17619 = vst [vmem:[#allocation268_spill] sm:$0xff] %v10961_v37  ;;  %v10963_v18 = vpop.permute.xlu0 %2271  ;;  %v1410_v37 = vmul.f32 %v17627_v44, %v10977_v59  ;;  %v1391_v40 = vmul.f32 %v17628_v15, %v10985_v17  ;;  %v17631_v44 = vrot.slane %v10671_v20, 1 }
 0x33a   : > { %17620 = vst [vmem:[#allocation269_spill] sm:$0xff] %v10963_v18  ;;  %v1199_v18 = vrot.slane %v10564_v33, 1 }
 0x33b   : > { %17624 = vst [vmem:[#allocation272_spill] sm:$0xff] %v10979_v16 }
 0x33c   : > { %v11007_v59 = vsel %vm1226_vm0, %v17631_v44, %v1199_v18 }
 0x33e   : > { %2385 = vrot.lane.b32.xlu1 %v1390_v10, %s17177_s2  ;;  %2387 = vrot.lane.b32.xlu2 %v1391_v40, %s17177_s2  ;;  %v17634_v40 = vrot.slane %v10689_v34, 1 }
 0x33f   : > { %2425 = vrot.lane.b32.xlu0 %v1410_v37, %s17177_s2  ;;  %v11015_v37 = vsel %vm1226_vm0, %v17146_v13, %v17145_v22  ;;  %v17154_v13 = vrot.slane %v10908_v41, 1 }
 0x340   : > { %v10999_v45 = vpop.permute.xlu1 %2160  ;;  %17632 = vst [vmem:[#allocation275_spill] sm:$0xff] %v11015_v37  ;;  %v11017_v10 = vpop.permute.xlu2 %2257  ;;  %v11023_v15 = vsel %vm1226_vm0, %v1199_v18, %v17634_v40  ;;  %v17153_v18 = vrot.slane %v10905_v29, 1 }
 0x341   : > { %17629 = vst [vmem:[#allocation273_spill] sm:$0xff] %v10999_v45  ;;  %v11001_v14 = vpop.permute.xlu0 %2277  ;;  %v17635_v45 = vld [vmem:[#allocation40_spill] sm:$0xff]  ;;  %v1394_v22 = vmul.f32 %v17637_v3, %v11023_v15 }
 0x342   : > { %17630 = vst [vmem:[#allocation274_spill] sm:$0xff] %v11001_v14  ;;  %v1393_v44 = vmul.f32 %v17635_v45, %v11007_v59  ;;  %v17636_v14 = vld [vmem:[#allocation89_spill] sm:$0xff] }
 0x343   : > { %17633 = vst [vmem:[#allocation276_spill] sm:$0xff] %v11017_v10  ;;  %v1413_v16 = vmul.f32 %v17636_v14, %v11015_v37  ;;  %v17640_v14 = vrot.slane %v10695_v43, 1  ;;  %v1205_v10 = vrot.slane %v10592_v54, 1 }
 0x345   : > { %v11045_v37 = vsel %vm1226_vm0, %v17640_v14, %v1202_v7 }
 0x346   : > { %2391 = vrot.lane.b32.xlu1 %v1393_v44, %s17177_s2  ;;  %2393 = vrot.lane.b32.xlu2 %v1394_v22, %s17177_s2  ;;  %v17642_v22 = vrot.slane %v10713_v50, 1 }
 0x347   : > { %2431 = vrot.lane.b32.xlu0 %v1413_v16, %s17177_s2  ;;  %v11053_v16 = vsel %vm1226_vm0, %v17154_v13, %v17153_v18 }
 0x348   : > { %v11037_v40 = vpop.permute.xlu1 %2172  ;;  %17641 = vst [vmem:[#allocation279_spill] sm:$0xff] %v11053_v16  ;;  %v11055_v44 = vpop.permute.xlu2 %2263  ;;  %v11061_v3 = vsel %vm1226_vm0, %v1202_v7, %v17642_v22  ;;  %v17648_v22 = vrot.slane %v10719_v48, 1 }
 0x349   : > { %17638 = vst [vmem:[#allocation277_spill] sm:$0xff] %v11037_v40  ;;  %v11039_v45 = vpop.permute.xlu0 %2283  ;;  %v17643_v40 = vld [vmem:[#allocation43_spill] sm:$0xff]  ;;  %v1397_v18 = vmul.f32 %v17645_v53, %v11061_v3  ;;  %v17649_v53 = vrot.slane %v10750_v35, 1 }
 0x34a   : > { %17639 = vst [vmem:[#allocation278_spill] sm:$0xff] %v11039_v45  ;;  %v1396_v14 = vmul.f32 %v17643_v40, %v11045_v37  ;;  %v17644_v45 = vld [vmem:[#allocation92_spill] sm:$0xff] }
 0x34b   : > { %v1416_v29 = vmul.f32 %v17644_v45, %v11053_v16  ;;  %v11081_v45 = vsel %vm1226_vm0, %v17648_v22, %v1205_v10  ;;  %v17651_v40 = vld [vmem:[#allocation128_spill] sm:$0xff] }
 0x34c   : > { %v17652_v16 = vld [vmem:[#allocation84_spill] sm:$0xff] }
 0x34e   : > { %2397 = vrot.lane.b32.xlu1 %v1396_v14, %s17177_s2  ;;  %2399 = vrot.lane.b32.xlu2 %v1397_v18, %s17177_s2  ;;  %v17650_v18 = vld [vmem:[#allocation46_spill] sm:$0xff] }
 0x34f   : > { %2437 = vrot.lane.b32.xlu0 %v1416_v29, %s17177_s2  ;;  %v11089_v29 = vsel %vm1226_vm0, %v1205_v10, %v17649_v53  ;;  %v1399_v14 = vmul.f32 %v17650_v18, %v11081_v45  ;;  %v17654_v18 = vrot.slane %v10753_v30, 1  ;;  %v1211_v30 = vrot.slane %v10623_v24, 1 }
 0x350   : > { %v11073_v13 = vpop.permute.xlu1 %2184  ;;  %v11083_v54 = vpop.permute.xlu2 %2269  ;;  %v1400_v22 = vmul.f32 %v17652_v16, %v11089_v29  ;;  %v17656_v16 = vrot.slane %v10781_v49, 1 }
 0x351   : > { %17646 = vst [vmem:[#allocation280_spill] sm:$0xff] %v11073_v13  ;;  %v11075_v7 = vpop.permute.xlu0 %2289  ;;  %v1707_v13 = vmul.f32 %v17651_v40, %v10745_v9  ;;  %v2187_v9 = vmul.f32 %v10637_v27, %v10985_v17  ;;  %v17664_v27 = vld [vmem:[#allocation97_spill] sm:$0xff] }
 0x352   : > { %17647 = vst [vmem:[#allocation281_spill] sm:$0xff] %v11075_v7  ;;  %v1208_v7 = vrot.slane %v10606_v38, 1 }
 0x354   : > { %v11109_v40 = vsel %vm1226_vm0, %v17654_v18, %v1208_v7 }
 0x356   : > { %2403 = vrot.lane.b32.xlu1 %v1399_v14, %s17177_s2  ;;  %2405 = vrot.lane.b32.xlu2 %v1400_v22, %s17177_s2  ;;  %v17657_v14 = vld [vmem:[#allocation49_spill] sm:$0xff] }
 0x357   : > { %2763 = vrot.lane.b32.xlu0 %v1707_v13, %s9542_s6  ;;  %v11117_v13 = vsel %vm1226_vm0, %v1208_v7, %v17656_v16  ;;  %v1402_v22 = vmul.f32 %v17657_v14, %v11109_v40  ;;  %v17660_v7 = vrot.slane %v10784_v60, 1  ;;  %v1214_v60 = vrot.slane %v10643_v62, 1 }
 0x358   : > { %v11103_v10 = vpop.permute.xlu1 %2255  ;;  %v11111_v38 = vpop.permute.xlu2 %2275 }
 0x359   : > { %v11101_v53 = vpop.permute.xlu0 %2295  ;;  %17655 = vst [vmem:[#allocation283_spill] sm:$0xff] %v11111_v38  ;;  %v11137_v14 = vsel %vm1226_vm0, %v17660_v7, %v1211_v30  ;;  %v17665_v38 = vld [vmem:[#allocation90_spill] sm:$0xff] }
 0x35a   : > { %17653 = vst [vmem:[#allocation282_spill] sm:$0xff] %v11101_v53  ;;  %v17658_v53 = vld [vmem:[#allocation87_spill] sm:$0xff] }
 0x35b   : > { %v1403_v18 = vmul.f32 %v17658_v53, %v11117_v13  ;;  %v17662_v53 = vrot.slane %v10812_v23, 1 }
 0x35e   : > { %2409 = vrot.lane.b32.xlu1 %v1402_v22, %s17177_s2  ;;  %2411 = vrot.lane.b32.xlu2 %v1403_v18, %s17177_s2  ;;  %v17663_v22 = vld [vmem:[#allocation52_spill] sm:$0xff] }
 0x35f   : > { %3147 = vrot.lane.b32.xlu0 %v2187_v9, %s17183_s27  ;;  %v11145_v9 = vsel %vm1226_vm0, %v1211_v30, %v17662_v53  ;;  %v1405_v18 = vmul.f32 %v17663_v22, %v11137_v14  ;;  %v17667_v30 = vrot.slane %v10815_v51, 1  ;;  %v1217_v51 = vrot.slane %v10668_v4, 1 }
 0x360   : > { %v11131_v16 = vpop.permute.xlu1 %2261  ;;  %v11139_v24 = vpop.permute.xlu2 %2281  ;;  %v1406_v7 = vmul.f32 %v17665_v38, %v11145_v9  ;;  %v17669_v38 = vrot.slane %v10846_v1, 1 }
 0x361   : > { %v11129_v49 = vpop.permute.xlu0 %2301  ;;  %17661 = vst [vmem:[#allocation285_spill] sm:$0xff] %v11139_v24  ;;  %v11165_v22 = vsel %vm1226_vm0, %v17667_v30, %v1214_v60 }
 0x362   : > { %17659 = vst [vmem:[#allocation284_spill] sm:$0xff] %v11129_v49  ;;  %v1708_v49 = vmul.f32 %v17664_v27, %v10969_v12  ;;  %v2188_v27 = vmul.f32 %v10463_v61, %v10776_v52  ;;  %v17680_v61 = vld [vmem:[#allocation138_spill] sm:$0xff]  ;;  %v17681_v12 = vld [vmem:[#allocation96_spill] sm:$0xff] }
 0x366   : > { %2415 = vrot.lane.b32.xlu1 %v1405_v18, %s17177_s2  ;;  %2417 = vrot.lane.b32.xlu2 %v1406_v7, %s17177_s2  ;;  %v17670_v18 = vld [vmem:[#allocation55_spill] sm:$0xff] }
 0x367   : > { %2765 = vrot.lane.b32.xlu0 %v1708_v49, %s9542_s6  ;;  %v11173_v49 = vsel %vm1226_vm0, %v1214_v60, %v17669_v38  ;;  %v1408_v7 = vmul.f32 %v17670_v18, %v11165_v22  ;;  %v17674_v60 = vrot.slane %v10843_v57, 1  ;;  %v1220_v57 = vrot.slane %v10692_v58, 1 }
 0x368   : > { %v11159_v53 = vpop.permute.xlu1 %2267  ;;  %v11167_v62 = vpop.permute.xlu2 %2287 }
 0x369   : > { %v11157_v23 = vpop.permute.xlu0 %2307  ;;  %17668 = vst [vmem:[#allocation287_spill] sm:$0xff] %v11167_v62  ;;  %v11193_v18 = vsel %vm1226_vm0, %v17674_v60, %v1217_v51  ;;  %v2027_v62 = vmul.f32 %v10482_v2, %v10550_v6 }
 0x36a   : > { %17666 = vst [vmem:[#allocation286_spill] sm:$0xff] %v11157_v23  ;;  %v17671_v23 = vld [vmem:[#allocation93_spill] sm:$0xff] }
 0x36b   : > { %v1409_v30 = vmul.f32 %v17671_v23, %v11173_v49  ;;  %17675 = vst [vmem:[#allocation290_spill] sm:$0xff] %v11193_v18  ;;  %v17677_v23 = vrot.slane %v10877_v8, 1 }
 0x36e   : > { %2421 = vrot.lane.b32.xlu1 %v1408_v7, %s17177_s2  ;;  %2423 = vrot.lane.b32.xlu2 %v1409_v30, %s17177_s2  ;;  %v17679_v7 = vld [vmem:[#allocation58_spill] sm:$0xff] }
 0x36f   : > { %3149 = vrot.lane.b32.xlu0 %v2188_v27, %s17183_s27  ;;  %v11201_v27 = vsel %vm1226_vm0, %v1217_v51, %v17677_v23  ;;  %v1411_v30 = vmul.f32 %v17679_v7, %v11193_v18  ;;  %v17683_v51 = vrot.slane %v10874_v55, 1  ;;  %v2189_v7 = vmul.f32 %v10735_v47, %v11007_v59  ;;  %v17689_v55 = vld [vmem:[#allocation99_spill] sm:$0xff] }
 0x370   : > { %v11187_v38 = vpop.permute.xlu1 %2273  ;;  %v11195_v4 = vpop.permute.xlu2 %2293  ;;  %17678 = vst [vmem:[#allocation292_spill] sm:$0xff] %v11201_v27  ;;  %v1412_v60 = vmul.f32 %v17681_v12, %v11201_v27  ;;  %v17693_v47 = vld [vmem:[#allocation131_spill] sm:$0xff] }
 0x371   : > { %v11185_v1 = vpop.permute.xlu0 %2313  ;;  %17673 = vst [vmem:[#allocation289_spill] sm:$0xff] %v11187_v38 }
 0x372   : > { %17672 = vst [vmem:[#allocation288_spill] sm:$0xff] %v11185_v1  ;;  %v1709_v1 = vmul.f32 %v17680_v61, %v10985_v17  ;;  %v11221_v17 = vsel %vm1226_vm0, %v17683_v51, %v1220_v57  ;;  %v17686_v61 = vrot.slane %v10908_v41, 1  ;;  %v775_v51 = vrot.slane %v10640_v36, 7 }
 0x373   : > { %17676 = vst [vmem:[#allocation291_spill] sm:$0xff] %v11195_v4  ;;  %v17163_v41 = vrot.slane %v10536_v25, 7 }
 0x374   : > { %17684 = vst [vmem:[#allocation294_spill] sm:$0xff] %v11221_v17 }
 0x376   : > { %2427 = vrot.lane.b32.xlu1 %v1411_v30, %s17177_s2  ;;  %2429 = vrot.lane.b32.xlu2 %v1412_v60, %s17177_s2  ;;  %v17688_v30 = vld [vmem:[#allocation61_spill] sm:$0xff] }
 0x377   : > { %2767 = vrot.lane.b32.xlu0 %v1709_v1, %s9542_s6  ;;  %v11229_v1 = vsel %vm1226_vm0, %v1220_v57, %v17686_v61  ;;  %v1414_v60 = vmul.f32 %v17688_v30, %v11221_v17 }
 0x378   : > { %v11215_v23 = vpop.permute.xlu1 %2279  ;;  %v11223_v58 = vpop.permute.xlu2 %2299  ;;  %17687 = vst [vmem:[#allocation296_spill] sm:$0xff] %v11229_v1  ;;  %v1415_v12 = vmul.f32 %v17689_v55, %v11229_v1 }
 0x379   : > { %v11213_v8 = vpop.permute.xlu0 %2383  ;;  %17682 = vst [vmem:[#allocation293_spill] sm:$0xff] %v11215_v23 }
 0x37a   : > { %17685 = vst [vmem:[#allocation295_spill] sm:$0xff] %v11223_v58  ;;  %v776_v58 = vrot.slane %v10646_v32, 7 }
 0x37e   : > { %2433 = vrot.lane.b32.xlu1 %v1414_v60, %s17177_s2  ;;  %2435 = vrot.lane.b32.xlu2 %v1415_v12, %s17177_s2  ;;  %v17692_v60 = vld [vmem:[#allocation95_spill] sm:$0xff]  ;;  %v1710_v12 = vmul.f32 %v17693_v47, %v10776_v52  ;;  %v2190_v47 = vmul.f32 %v10662_v56, %v11023_v15  ;;  %s17734_s2 = smov 54  }
 0x37f   : > { %3151 = vrot.lane.b32.xlu0 %v2189_v7, %s17183_s27  ;;  %v11253_v7 = vsel %vm809_vm1, %v17163_v41, %v775_v51  ;;  %v17699_v56 = vld [vmem:[#allocation67_spill] sm:$0xff] }
 0x380   : > { %v11245_v57 = vpop.permute.xlu1 %2285  ;;  %v11247_v30 = vpop.permute.xlu2 %2305  ;;  %v1547_v55 = vmul.f32 %v17692_v60, %v11253_v7 }
 0x381   : > { %v11243_v61 = vpop.permute.xlu0 %2389  ;;  %17690 = vst [vmem:[#allocation297_spill] sm:$0xff] %v11245_v57 }
 0x382   : > { %17691 = vst [vmem:[#allocation298_spill] sm:$0xff] %v11247_v30  ;;  %v777_v30 = vrot.slane %v10550_v6, 7 }
 0x384   : > { %v11273_v52 = vsel %vm809_vm1, %v776_v58, %v777_v30 }
 0x386   : > { %2507 = vrot.lane.b32.xlu1 %v1547_v55, %s9544_s7  ;;  %2635 = vrot.lane.b32.xlu2 %v10640_v36, %s17196_s28  ;;  %v17696_v55 = vld [vmem:[#allocation161_spill] sm:$0xff] }
 0x387   : > { %2769 = vrot.lane.b32.xlu0 %v1710_v12, %s9542_s6  ;;  %v1867_v12 = vmul.f32 %v17696_v55, %v11273_v52  ;;  %v11292_v55 = vsel %vm809_vm1, %v775_v51, %v776_v58 }
 0x388   : > { %v11267_v4 = vpop.permute.xlu1 %2291  ;;  %v11269_v60 = vpop.permute.xlu2 %2311  ;;  %v1548_v2 = vmul.f32 %v17699_v56, %v11292_v55 }
 0x389   : > { %v11265_v41 = vpop.permute.xlu0 %2395  ;;  %17694 = vst [vmem:[#allocation299_spill] sm:$0xff] %v11267_v4 }
 0x38a   : > { %17695 = vst [vmem:[#allocation300_spill] sm:$0xff] %v11269_v60 }
 0x38e   : > { %2891 = vrot.lane.b32.xlu1 %v1867_v12, %s17179_s29  ;;  %3019 = vrot.lane.b32.xlu2 %v2027_v62, %s9547_s3  ;;  %v778_v62 = vrot.slane %v10665_v63, 7 }
 0x38f   : > { %3153 = vrot.lane.b32.xlu0 %v2190_v47, %s17183_s27  ;;  %v17700_v47 = vld [vmem:[#allocation141_spill] sm:$0xff] }
 0x390   : > { %v11286_v60 = vpop.permute.xlu1 %2297  ;;  %v11288_v4 = vpop.permute.xlu2 %2381  ;;  %v1711_v57 = vmul.f32 %v17700_v47, %v11007_v59  ;;  %v11311_v51 = vsel %vm809_vm1, %v777_v30, %v778_v62  ;;  %v17703_v59 = vld [vmem:[#allocation127_spill] sm:$0xff]  ;;  %v17704_v47 = vld [vmem:[#allocation158_spill] sm:$0xff] }
 0x391   : > { %v11284_v36 = vpop.permute.xlu0 %2401  ;;  %17698 = vst [vmem:[#allocation302_spill] sm:$0xff] %v11286_v60  ;;  %v2028_v56 = vmul.f32 %v17704_v47, %v10665_v63 }
 0x392   : > { %17697 = vst [vmem:[#allocation301_spill] sm:$0xff] %v11284_v36  ;;  %v17755_v36 = vld [vmem:[#allocation210_spill] sm:$0xff] }
 0x393   : > { %v2034_v38 = vmul.f32 %v17755_v36, %v10713_v50 }
 0x396   : > { %2509 = vrot.lane.b32.xlu1 %v1548_v2, %s9544_s7  ;;  %2637 = vrot.lane.b32.xlu2 %v10646_v32, %s17196_s28  ;;  %v2191_v2 = vmul.f32 %v10766_v39, %v10807_v0  ;;  %v17708_v39 = vld [vmem:[#allocation134_spill] sm:$0xff] }
 0x397   : > { %2771 = vrot.lane.b32.xlu0 %v1711_v57, %s9542_s6  ;;  %v1868_v57 = vmul.f32 %v17703_v59, %v11311_v51  ;;  %v17707_v59 = vld [vmem:[#allocation105_spill] sm:$0xff]  ;;  %v1712_v1 = vmul.f32 %v17708_v39, %v11023_v15  ;;  %v17710_v15 = vld [vmem:[#allocation171_spill] sm:$0xff] }
 0x398   : > { %v11305_v60 = vpop.permute.xlu1 %2303  ;;  %v11307_v58 = vpop.permute.xlu2 %2387  ;;  %v1549_v24 = vmul.f32 %v17707_v59, %v11273_v52 }
 0x399   : > { %v11303_v12 = vpop.permute.xlu0 %2407  ;;  %17702 = vst [vmem:[#allocation304_spill] sm:$0xff] %v11305_v60 }
 0x39a   : > { %17701 = vst [vmem:[#allocation303_spill] sm:$0xff] %v11303_v12 }
 0x39e   : > { %2893 = vrot.lane.b32.xlu1 %v1868_v57, %s17179_s29  ;;  %3021 = vrot.lane.b32.xlu2 %v2028_v56, %s9547_s3 }
 0x39f   : > { %3155 = vrot.lane.b32.xlu0 %v2191_v2, %s17183_s27  ;;  %v779_v2 = vrot.slane %v10671_v20, 7 }
 0x3a0   : > { %v11324_v60 = vpop.permute.xlu1 %2309  ;;  %v11326_v30 = vpop.permute.xlu2 %2393 }
 0x3a1   : > { %v11322_v32 = vpop.permute.xlu0 %2413  ;;  %17706 = vst [vmem:[#allocation306_spill] sm:$0xff] %v11324_v60  ;;  %v11345_v59 = vsel %vm809_vm1, %v778_v62, %v779_v2 }
 0x3a2   : > { %17705 = vst [vmem:[#allocation305_spill] sm:$0xff] %v11322_v32 }
 0x3a6   : > { %2511 = vrot.lane.b32.xlu1 %v1549_v24, %s9544_s7  ;;  %2639 = vrot.lane.b32.xlu2 %v10550_v6, %s17196_s28  ;;  %v2192_v24 = vmul.f32 %v10686_v26, %v11045_v37  ;;  %v2029_v6 = vmul.f32 %v10522_v5, %v10671_v20  ;;  %v17714_v26 = vld [vmem:[#allocation100_spill] sm:$0xff] }
 0x3a7   : > { %2773 = vrot.lane.b32.xlu0 %v1712_v1, %s9542_s6  ;;  %v1869_v1 = vmul.f32 %v17710_v15, %v11345_v59  ;;  %v17713_v15 = vld [vmem:[#allocation98_spill] sm:$0xff]  ;;  %v1713_v32 = vmul.f32 %v17714_v26, %v10807_v0  ;;  %v17717_v0 = vld [vmem:[#allocation164_spill] sm:$0xff] }
 0x3a8   : > { %v11338_v57 = vpop.permute.xlu1 %2379  ;;  %v11341_v47 = vpop.permute.xlu2 %2399 }
 0x3a9   : > { %v11336_v56 = vpop.permute.xlu0 %2419 }
 0x3aa   : > { %17709 = vst [vmem:[#allocation307_spill] sm:$0xff] %v11336_v56  ;;  %v1550_v56 = vmul.f32 %v17713_v15, %v11311_v51 }
 0x3ae   : > { %2895 = vrot.lane.b32.xlu1 %v1869_v1, %s17179_s29  ;;  %3023 = vrot.lane.b32.xlu2 %v2029_v6, %s9547_s3  ;;  %v780_v6 = vrot.slane %v10564_v33, 7 }
 0x3af   : > { %3157 = vrot.lane.b32.xlu0 %v2192_v24, %s17183_s27 }
 0x3b0   : > { %v11358_v60 = vpop.permute.xlu1 %2385  ;;  %v11360_v62 = vpop.permute.xlu2 %2405  ;;  %v11379_v15 = vsel %vm809_vm1, %v779_v2, %v780_v6 }
 0x3b1   : > { %v11356_v39 = vpop.permute.xlu0 %2425  ;;  %17712 = vst [vmem:[#allocation309_spill] sm:$0xff] %v11360_v62 }
 0x3b2   : > { %17711 = vst [vmem:[#allocation308_spill] sm:$0xff] %v11356_v39 }
 0x3b6   : > { %2513 = vrot.lane.b32.xlu1 %v1550_v56, %s9544_s7  ;;  %2641 = vrot.lane.b32.xlu2 %v10665_v63, %s17196_s28  ;;  %v2193_v56 = vmul.f32 %v10472_v42, %v11061_v3  ;;  %v2030_v63 = vmul.f32 %v10492_v19, %v10564_v33  ;;  %v17721_v42 = vld [vmem:[#allocation144_spill] sm:$0xff] }
 0x3b7   : > { %2775 = vrot.lane.b32.xlu0 %v1713_v32, %s9542_s6  ;;  %v1870_v32 = vmul.f32 %v17717_v0, %v11379_v15  ;;  %v17720_v0 = vld [vmem:[#allocation108_spill] sm:$0xff] }
 0x3b8   : > { %v11372_v24 = vpop.permute.xlu1 %2391  ;;  %v11375_v5 = vpop.permute.xlu2 %2411  ;;  %v1551_v39 = vmul.f32 %v17720_v0, %v11345_v59 }
 0x3b9   : > { %v11370_v1 = vpop.permute.xlu0 %2431  ;;  %17716 = vst [vmem:[#allocation311_spill] sm:$0xff] %v11375_v5  ;;  %v1714_v5 = vmul.f32 %v17721_v42, %v11045_v37  ;;  %v17724_v37 = vld [vmem:[#allocation174_spill] sm:$0xff]  ;;  %v2031_v42 = vmul.f32 %v10543_v11, %v10689_v34 }
 0x3ba   : > { %17715 = vst [vmem:[#allocation310_spill] sm:$0xff] %v11370_v1 }
 0x3be   : > { %2897 = vrot.lane.b32.xlu1 %v1870_v32, %s17179_s29  ;;  %3025 = vrot.lane.b32.xlu2 %v2030_v63, %s9547_s3  ;;  %v781_v32 = vrot.slane %v10689_v34, 7 }
 0x3bf   : > { %3159 = vrot.lane.b32.xlu0 %v2193_v56, %s17183_s27 }
 0x3c0   : > { %v11392_v1 = vpop.permute.xlu1 %2397  ;;  %v11394_v2 = vpop.permute.xlu2 %2417  ;;  %v11413_v0 = vsel %vm809_vm1, %v780_v6, %v781_v32 }
 0x3c1   : > { %v11390_v26 = vpop.permute.xlu0 %2437  ;;  %17719 = vst [vmem:[#allocation313_spill] sm:$0xff] %v11394_v2  ;;  %v17733_v2 = vld [vmem:[#allocation200_spill] sm:$0xff] }
 0x3c2   : > { %17718 = vst [vmem:[#allocation312_spill] sm:$0xff] %v11390_v26  ;;  %v17729_v26 = vld [vmem:[#allocation137_spill] sm:$0xff] }
 0x3c6   : > { %2515 = vrot.lane.b32.xlu1 %v1551_v39, %s9544_s7  ;;  %2643 = vrot.lane.b32.xlu2 %v10671_v20, %s17196_s28  ;;  %v2194_v39 = vmul.f32 %v10797_v21, %v10838_v31  ;;  %v3517_v20 = vld [vmem:[%s17725_s5 + $0x50] sm:$0x1] }
 0x3c7   : > { %2777 = vrot.lane.b32.xlu0 %v1714_v5, %s9542_s6  ;;  %v1871_v5 = vmul.f32 %v17724_v37, %v11413_v0  ;;  %8437 = vmatpush.msk.msra.mxu0 %vm3615_vm2, %v3517_v20  ;;  %v3514_v20 = vld [vmem:[%s17725_s5 + $0x38] sm:$0xff]  ;;  %vm4690_vm2 = vcmask 654336  }
 0x3c8   : > { %v11407_v63 = vpop.permute.xlu1 %2403  ;;  %v11409_v19 = vpop.permute.xlu2 %2423 }
 0x3c9   : > { %v11405_v56 = vpop.permute.xlu0 %2763  ;;  %17722 = vst [vmem:[#allocation314_spill] sm:$0xff] %v11407_v63 }
 0x3ca   : > { %17723 = vst [vmem:[#allocation315_spill] sm:$0xff] %v11409_v19  ;;  %v1715_v19 = vmul.f32 %v17729_v26, %v11061_v3 }
 0x3ce   : > { %2899 = vrot.lane.b32.xlu1 %v1871_v5, %s17179_s29  ;;  %3027 = vrot.lane.b32.xlu2 %v2031_v42, %s9547_s3  ;;  %v3515_v42 = vld [vmem:[%s17725_s5 + $0x40] sm:$0xff]  ;;  %v17728_v5 = vld [vmem:[#allocation101_spill] sm:$0xff] }
 0x3cf   : > { %3161 = vrot.lane.b32.xlu0 %v2194_v39, %s17183_s27  ;;  %v3516_v39 = vld [vmem:[%s17725_s5 + $0x48] sm:$0xff]  ;;  %v1552_v11 = vmul.f32 %v17728_v5, %v11379_v15 }
 0x3d0   : > { %v11429_v37 = vpop.permute.xlu1 %2409  ;;  %v11431_v21 = vpop.permute.xlu2 %2429  ;;  %3625 = vmatpush.msra.mxu0 %v3516_v39  ;;  %v3513_v39 = vld [vmem:[%s17725_s5 + $0x30] sm:$0xff] }
 0x3d1   : > { %v11427_v6 = vpop.permute.xlu0 %3147  ;;  %17726 = vst [vmem:[#allocation316_spill] sm:$0xff] %v11429_v37  ;;  %v17739_v37 = vld [vmem:[#allocation216_spill] sm:$0xff] }
 0x3d2   : > { %17727 = vst [vmem:[#allocation317_spill] sm:$0xff] %v11431_v21  ;;  %3626 = vmatpush.msra.mxu0 %v3515_v42  ;;  %v782_v42 = vrot.slane %v10695_v43, 7 }
 0x3d4   : > { %3627 = vmatpush.msra.mxu0 %v3514_v20  ;;  %v17732_v20 = vld [vmem:[#allocation167_spill] sm:$0xff] }
 0x3d6   : > { %2517 = vrot.lane.b32.xlu1 %v1552_v11, %s9544_s7  ;;  %2645 = vrot.lane.b32.xlu2 %v10564_v33, %s17196_s28  ;;  %v3511_v33 = vld [vmem:[%s17725_s5 + $0x20] sm:$0xff]  ;;  %v11468_v11 = vsel %vm809_vm1, %v781_v32, %v782_v42  ;;  %v3509_v32 = vld [vmem:[%s17725_s5 + $0x10] sm:$0xff] }
 0x3d7   : > { %2779 = vrot.lane.b32.xlu0 %v1715_v19, %s9542_s6  ;;  %3628 = vmatpush.msra.mxu0 %v3513_v39  ;;  %v3512_v19 = vld [vmem:[%s17725_s5 + $0x28] sm:$0xff]  ;;  %v1872_v21 = vmul.f32 %v17732_v20, %v11468_v11  ;;  %v3510_v39 = vld [vmem:[%s17725_s5 + $0x18] sm:$0xff] }
 0x3d8   : > { %v11455_v3 = vpop.permute.xlu1 %2415  ;;  %v11458_v26 = vpop.permute.xlu2 %2435 }
 0x3d9   : > { %v11453_v5 = vpop.permute.xlu0 %2765  ;;  %17730 = vst [vmem:[#allocation318_spill] sm:$0xff] %v11455_v3  ;;  %3629 = vmatpush.msra.mxu0 %v3512_v19  ;;  %v2032_v3 = vmul.f32 %v17733_v2, %v10695_v43 }
 0x3da   : > { %17731 = vst [vmem:[#allocation319_spill] sm:$0xff] %v11458_v26  ;;  %v2195_v26 = vmul.f32 %v10710_v28, %v11081_v45 }
 0x3db   : > { %3630 = vmatpush.msra.mxu0 %v3511_v33  ;;  %v3508_v33 = vld [vmem:[%s17725_s5 + $0x8] sm:$0xff] }
 0x3dd   : > { %3631 = vmatpush.msra.mxu0 %v3510_v39  ;;  %v17737_v39 = vld [vmem:[#allocation103_spill] sm:$0xff] }
 0x3de   : > { %2901 = vrot.lane.b32.xlu1 %v1872_v21, %s17734_s2  ;;  %3029 = vrot.lane.b32.xlu2 %v2032_v3, %s9547_s3  ;;  %v3507_v21 = vld [vmem:[%s17725_s5] sm:$0xff]  ;;  %v1716_v2 = vmul.f32 %v17737_v39, %v10838_v31  ;;  %v17740_v31 = vld [vmem:[#allocation130_spill] sm:$0xff]  ;;  %v17742_v39 = vld [vmem:[#allocation160_spill] sm:$0xff]  ;;  %s18114_s5 = smov 36  }
 0x3df   : > { %3163 = vrot.lane.b32.xlu0 %v2195_v26, %s17183_s27  ;;  %3632 = vmatpush.msra.mxu0 %v3509_v32  ;;  %v17736_v26 = vld [vmem:[#allocation70_spill] sm:$0xff]  ;;  %s17743_s27 = smov 72  }
 0x3e0   : > { %v11487_v20 = vpop.permute.xlu1 %2421  ;;  %v2636_v28 = vpop.permute.xlu2 %2635  ;;  %v1553_v3 = vmul.f32 %v17736_v26, %v11413_v0 }
 0x3e1   : > { %v11485_v19 = vpop.permute.xlu0 %3149  ;;  %17735 = vst [vmem:[#allocation320_spill] sm:$0xff] %v11487_v20  ;;  %3633 = vmatpush.msra.mxu0 %v3508_v33  ;;  %v783_v33 = vrot.slane %v17739_v37, 7 }
 0x3e3   : > { %3634 = vmatpush.msra.mxu0 %v3507_v21  ;;  %v11510_v26 = vsel %vm809_vm1, %v782_v42, %v783_v33  ;;  %v17745_v42 = vld [vmem:[#allocation226_spill] sm:$0xff] }
 0x3e4   : > { %v1873_v21 = vmul.f32 %v17740_v31, %v11510_v26  ;;  %v805_v17 = vrot.slane %v17745_v42, 7  ;;  %v17746_v31 = vld [vmem:[#allocation239_spill] sm:$0xff] }
 0x3e5   : > { %v17189_v63 = vrot.slane %v17746_v31, 7  ;;  %v17753_v42 = vld [vmem:[#allocation255_spill] sm:$0xff] }
 0x3e6   : > { %2519 = vrot.lane.b32.xlu1 %v1553_v3, %s9544_s7  ;;  %2647 = vrot.lane.b32.xlu2 %v10689_v34, %s17196_s28  ;;  %v2033_v34 = vmul.f32 %v17742_v39, %v17739_v37  ;;  %v17748_v37 = vld [vmem:[#allocation147_spill] sm:$0xff] }
 0x3e7   : > { %2781 = vrot.lane.b32.xlu0 %v1716_v2, %s9542_s6  ;;  %v17741_v2 = vld [vmem:[#allocation193_spill] sm:$0xff]  ;;  %v1717_v39 = vmul.f32 %v17748_v37, %v11081_v45  ;;  %v17751_v45 = vld [vmem:[#allocation272_spill] sm:$0xff] }
 0x3e8   : > { %v11505_v20 = vpop.permute.xlu1 %2427  ;;  %v3020_v12 = vpop.permute.xlu2 %3019  ;;  %v2196_v3 = vmul.f32 %v17741_v2, %v11089_v29  ;;  %v17747_v2 = vld [vmem:[#allocation111_spill] sm:$0xff] }
 0x3e9   : > { %v11503_v32 = vpop.permute.xlu0 %2767  ;;  %17738 = vst [vmem:[#allocation321_spill] sm:$0xff] %v11505_v20  ;;  %v1554_v27 = vmul.f32 %v17747_v2, %v11468_v11 }
 0x3ee   : > { %2903 = vrot.lane.b32.xlu1 %v1873_v21, %s17734_s2  ;;  %3031 = vrot.lane.b32.xlu2 %v2033_v34, %s9547_s3  ;;  %v11535_v21 = vsel %vm809_vm1, %v17189_v63, %v805_v17 }
 0x3ef   : > { %3165 = vrot.lane.b32.xlu0 %v2196_v3, %s17743_s27  ;;  %17749 = vst [vmem:[#allocation322_spill] sm:$0xff] %v11535_v21  ;;  %v17750_v3 = vld [vmem:[#allocation219_spill] sm:$0xff] }
 0x3f0   : > { %v11523_v23 = vpop.permute.xlu1 %2433  ;;  %v2638_v62 = vpop.permute.xlu2 %2637  ;;  %v1002_v34 = vmul.f32 %v17750_v3, %v11535_v21 }
 0x3f1   : > { %v11521_v20 = vpop.permute.xlu0 %3151  ;;  %17744 = vst [vmem:[#allocation216_spill] sm:$0xff] %v11523_v23  ;;  %v784_v23 = vrot.slane %v10713_v50, 7 }
 0x3f2   : > { %v3244_v37 = vsel %vm3243_vm3, %v1002_v34, %v17751_v45  ;;  %v17754_v34 = vld [vmem:[#allocation250_spill] sm:$0xff] }
 0x3f3   : > { %v3277_v3 = vsel %vm3276_vm5, %v3244_v37, %v11338_v57  ;;  %v11553_v21 = vsel %vm809_vm1, %v783_v33, %v784_v23  ;;  %v2197_v45 = vmul.f32 %v17754_v34, %v17753_v42 }
 0x3f6   : > { %2521 = vrot.lane.b32.xlu1 %v1554_v27, %s9544_s7  ;;  %2649 = vrot.lane.b32.xlu2 %v10695_v43, %s17196_s28  ;;  %v17752_v43 = vld [vmem:[#allocation177_spill] sm:$0xff] }
 0x3f7   : > { %2783 = vrot.lane.b32.xlu0 %v1717_v39, %s9542_s6  ;;  %v1874_v31 = vmul.f32 %v17752_v43, %v11553_v21 }
 0x3f8   : > { %v2508_v2 = vpop.permute.xlu1 %2507  ;;  %v3022_v39 = vpop.permute.xlu2 %3021 }
 0x3f9   : > { %v11546_v63 = vpop.permute.xlu0 %2769  ;;  %v3310_v27 = vsel %vm3309_vm4, %v3277_v3, %v2508_v2 }
 0x3fa   : > { %v3343_v18 = vsel %vm3342_vm6, %v3310_v27, %v2636_v28 }
 0x3fb   : > { %v3376_v33 = vsel %vm3375_vm7, %v3343_v18, %v11405_v56  ;;  %v17758_v18 = vrot.slane %v10536_v25, 7 }
 0x3fd   : > { %v11582_v56 = vsel %vm809_vm1, %v805_v17, %v17758_v18 }
 0x3fe   : > { %2905 = vrot.lane.b32.xlu1 %v1874_v31, %s17734_s2  ;;  %3033 = vrot.lane.b32.xlu2 %v2034_v38, %s9547_s3  ;;  %v17756_v38 = vld [vmem:[#allocation104_spill] sm:$0xff] }
 0x3ff   : > { %3167 = vrot.lane.b32.xlu0 %v2197_v45, %s17743_s27  ;;  %v1555_v27 = vmul.f32 %v17756_v38, %v11510_v26  ;;  %v17757_v45 = vld [vmem:[#allocation140_spill] sm:$0xff] }
 0x400   : > { %v2892_v2 = vpop.permute.xlu1 %2891  ;;  %v2640_v37 = vpop.permute.xlu2 %2639  ;;  %v1718_v34 = vmul.f32 %v17757_v45, %v11089_v29 }
 0x401   : > { %v11565_v57 = vpop.permute.xlu0 %3153  ;;  %v3409_v28 = vsel %vm3408_vm8, %v3376_v33, %v2892_v2  ;;  %v17759_v33 = vld [vmem:[#allocation222_spill] sm:$0xff] }
 0x402   : > { %v3442_v3 = vsel %vm3441_vm9, %v3409_v28, %v3020_v12  ;;  %v1003_v12 = vmul.f32 %v17759_v33, %v11582_v56  ;;  %v17760_v2 = vld [vmem:[#allocation254_spill] sm:$0xff]  ;;  %v17763_v33 = vld [vmem:[#allocation203_spill] sm:$0xff] }
 0x403   : > { %v3475_v31 = vsel %vm3474_vm10, %v3442_v3, %v11427_v6  ;;  %v9462_v6 = vld [vmem:[%s10531_s1 + $0x40] sm:$0xff]  ;;  %v785_v3 = vrot.slane %v10719_v48, 7  ;;  %v2035_v45 = vmul.f32 %v17763_v33, %v10719_v48 }
 0x404   : > { %8438 = vmatmul.msk.f32.vlgmr.msra.gmra.mxu0 %vm3518_vm11, %v3475_v31  ;;  %v3245_v29 = vsel %vm3243_vm3, %v1003_v12, %v17760_v2  ;;  %v17762_v12 = vld [vmem:[#allocation243_spill] sm:$0xff] }
 0x405   : > { %v3278_v17 = vsel %vm3276_vm5, %v3245_v29, %v11288_v4  ;;  %v2198_v2 = vmul.f32 %v17762_v12, %v11109_v40 }
 0x406   : > { %2523 = vrot.lane.b32.xlu1 %v1555_v27, %s9544_s7  ;;  %2651 = vrot.lane.b32.xlu2 %v9462_v6, %s17196_s28  ;;  %v17761_v27 = vld [vmem:[#allocation170_spill] sm:$0xff] }
 0x407   : > { %2785 = vrot.lane.b32.xlu0 %v1718_v34, %s9542_s6  ;;  %v11600_v34 = vsel %vm809_vm1, %v784_v23, %v785_v3 }
 0x408   : > { %v2510_v25 = vpop.permute.xlu1 %2509  ;;  %v3024_v31 = vpop.permute.xlu2 %3023  ;;  %v1875_v6 = vmul.f32 %v17761_v27, %v11600_v34 }
 0x409   : > { %v11592_v28 = vpop.permute.xlu0 %2771  ;;  %v3311_v18 = vsel %vm3309_vm4, %v3278_v17, %v2510_v25 }
 0x40a   : > { %v3344_v36 = vsel %vm3342_vm6, %v3311_v18, %v2638_v62  ;;  %v17764_v18 = vld [vmem:[#allocation73_spill] sm:$0xff] }
 0x40b   : > { %v3377_v23 = vsel %vm3375_vm7, %v3344_v36, %v11453_v5  ;;  %v17766_v36 = vld [vmem:[#allocation7_spill] sm:$0xff] }
 0x40c   : > { %v1004_v5 = vmul.f32 %v17766_v36, %v11253_v7  ;;  %v17769_v36 = vld [vmem:[#allocation163_spill] sm:$0xff] }
 0x40e   : > { %2907 = vrot.lane.b32.xlu1 %v1875_v6, %s17734_s2  ;;  %3035 = vrot.lane.b32.xlu2 %v2035_v45, %s9547_s3  ;;  %v1556_v6 = vmul.f32 %v17764_v18, %v11553_v21  ;;  %v17765_v45 = vld [vmem:[#allocation106_spill] sm:$0xff] }
 0x40f   : > { %3169 = vrot.lane.b32.xlu0 %v2198_v2, %s17743_s27  ;;  %v1719_v2 = vmul.f32 %v17765_v45, %v17753_v42 }
 0x410   : > { %v2894_v29 = vpop.permute.xlu1 %2893  ;;  %v2642_v25 = vpop.permute.xlu2 %2641 }
 0x411   : > { %v11612_v4 = vpop.permute.xlu0 %3155  ;;  %v3410_v17 = vsel %vm3408_vm8, %v3377_v23, %v2894_v29  ;;  %v9463_v23 = vld [vmem:[%s10531_s1 + $0x58] sm:$0xff] }
 0x412   : > { %v3443_v12 = vsel %vm3441_vm9, %v3410_v17, %v3022_v39  ;;  %v786_v42 = vrot.slane %v9463_v23, 7  ;;  %v2036_v45 = vmul.f32 %v9463_v23, %v17769_v36  ;;  %v17772_v36 = vld [vmem:[#allocation10_spill] sm:$0xff] }
 0x413   : > { %v3476_v62 = vsel %vm3474_vm10, %v3443_v12, %v11485_v19  ;;  %v3246_v19 = vsel %vm3243_vm3, %v1004_v5, %v11103_v10  ;;  %v17768_v10 = vld [vmem:[#allocation196_spill] sm:$0xff] }
 0x414   : > { %8439 = vmatmul.msk.f32.gmra.mxu0 %vm3518_vm11, %v3476_v62  ;;  %v3279_v29 = vsel %vm3276_vm5, %v3246_v19, %v11213_v8  ;;  %v2199_v5 = vmul.f32 %v17768_v10, %v11117_v13 }
 0x416   : > { %2525 = vrot.lane.b32.xlu1 %v1556_v6, %s9544_s7  ;;  %2653 = vrot.lane.b32.xlu2 %v10713_v50, %s17196_s28  ;;  %v11641_v6 = vsel %vm809_vm1, %v785_v3, %v786_v42  ;;  %v17767_v50 = vld [vmem:[#allocation133_spill] sm:$0xff] }
 0x417   : > { %2787 = vrot.lane.b32.xlu0 %v1719_v2, %s9542_s6  ;;  %v1876_v2 = vmul.f32 %v17767_v50, %v11641_v6 }
 0x418   : > { %v2512_v12 = vpop.permute.xlu1 %2511  ;;  %v3026_v17 = vpop.permute.xlu2 %3025 }
 0x419   : > { %v11633_v39 = vpop.permute.xlu0 %2773  ;;  %v3312_v62 = vsel %vm3309_vm4, %v3279_v29, %v2512_v12 }
 0x41a   : > { %v3345_v27 = vsel %vm3342_vm6, %v3312_v62, %v2640_v37  ;;  %v17770_v62 = vld [vmem:[#allocation114_spill] sm:$0xff] }
 0x41b   : > { %v3378_v3 = vsel %vm3375_vm7, %v3345_v27, %v11503_v32  ;;  %v1005_v32 = vmul.f32 %v17772_v36, %v11292_v55  ;;  %v17776_v36 = vld [vmem:[#allocation253_spill] sm:$0xff] }
 0x41e   : > { %2909 = vrot.lane.b32.xlu1 %v1876_v2, %s17734_s2  ;;  %3037 = vrot.lane.b32.xlu2 %v2036_v45, %s9547_s3  ;;  %v17771_v2 = vld [vmem:[#allocation150_spill] sm:$0xff] }
 0x41f   : > { %3171 = vrot.lane.b32.xlu0 %v2199_v5, %s17743_s27  ;;  %v1557_v5 = vmul.f32 %v17770_v62, %v11600_v34  ;;  %v1720_v45 = vmul.f32 %v17771_v2, %v11109_v40 }
 0x420   : > { %v2896_v19 = vpop.permute.xlu1 %2895  ;;  %v2644_v12 = vpop.permute.xlu2 %2643 }
 0x421   : > { %v11652_v8 = vpop.permute.xlu0 %3157  ;;  %v3411_v29 = vsel %vm3408_vm8, %v3378_v3, %v2896_v19 }
 0x422   : > { %v3444_v10 = vsel %vm3441_vm9, %v3411_v29, %v3024_v31  ;;  %v787_v31 = vrot.slane %v10750_v35, 7 }
 0x423   : > { %v3477_v37 = vsel %vm3474_vm10, %v3444_v10, %v11521_v20  ;;  %v17773_v20 = vld [vmem:[#allocation276_spill] sm:$0xff] }
 0x424   : > { %8440 = vmatmul.msk.f32.gmra.mxu0 %vm3518_vm11, %v3477_v37  ;;  %v3247_v27 = vsel %vm3243_vm3, %v1005_v32, %v17773_v20  ;;  %v11681_v37 = vsel %vm809_vm1, %v786_v42, %v787_v31  ;;  %v17777_v32 = vld [vmem:[#allocation213_spill] sm:$0xff] }
 0x425   : > { %v3280_v3 = vsel %vm3276_vm5, %v3247_v27, %v11358_v60  ;;  %v2037_v20 = vmul.f32 %v17777_v32, %v10750_v35 }
 0x426   : > { %2527 = vrot.lane.b32.xlu1 %v1557_v5, %s9544_s7  ;;  %2655 = vrot.lane.b32.xlu2 %v10719_v48, %s17196_s28  ;;  %v17774_v5 = vld [vmem:[#allocation180_spill] sm:$0xff]  ;;  %v17775_v48 = vld [vmem:[#allocation259_spill] sm:$0xff] }
 0x427   : > { %2789 = vrot.lane.b32.xlu0 %v1720_v45, %s9542_s6  ;;  %v1877_v45 = vmul.f32 %v17774_v5, %v11681_v37  ;;  %v2200_v2 = vmul.f32 %v17776_v36, %v17775_v48  ;;  %v17780_v36 = vld [vmem:[#allocation3_spill] sm:$0xff] }
 0x428   : > { %v2514_v40 = vpop.permute.xlu1 %2513  ;;  %v3028_v19 = vpop.permute.xlu2 %3027  ;;  %v1006_v5 = vmul.f32 %v17780_v36, %v11273_v52 }
 0x429   : > { %v11674_v10 = vpop.permute.xlu0 %2775  ;;  %v3313_v29 = vsel %vm3309_vm4, %v3280_v3, %v2514_v40 }
 0x42a   : > { %v3346_v50 = vsel %vm3342_vm6, %v3313_v29, %v2642_v25 }
 0x42b   : > { %v3379_v27 = vsel %vm3375_vm7, %v3346_v50, %v11546_v63  ;;  %v17781_v63 = vld [vmem:[#allocation258_spill] sm:$0xff] }
 0x42e   : > { %2911 = vrot.lane.b32.xlu1 %v1877_v45, %s17734_s2  ;;  %3039 = vrot.lane.b32.xlu2 %v2037_v20, %s9547_s3  ;;  %v17779_v45 = vld [vmem:[#allocation143_spill] sm:$0xff] }
 0x42f   : > { %3173 = vrot.lane.b32.xlu0 %v2200_v2, %s17743_s27  ;;  %v17778_v2 = vld [vmem:[#allocation107_spill] sm:$0xff]  ;;  %v1721_v20 = vmul.f32 %v17779_v45, %v11117_v13 }
 0x430   : > { %v2898_v42 = vpop.permute.xlu1 %2897  ;;  %v2646_v40 = vpop.permute.xlu2 %2645  ;;  %v1558_v29 = vmul.f32 %v17778_v2, %v11641_v6 }
 0x431   : > { %v11693_v60 = vpop.permute.xlu0 %3159  ;;  %v3412_v3 = vsel %vm3408_vm8, %v3379_v27, %v2898_v42  ;;  %v9464_v42 = vld [vmem:[%s10531_s1 + $0x68] sm:$0xff] }
 0x432   : > { %v3445_v35 = vsel %vm3441_vm9, %v3412_v3, %v3026_v17  ;;  %v788_v27 = vrot.slane %v9464_v42, 7 }
 0x433   : > { %v3478_v25 = vsel %vm3474_vm10, %v3445_v35, %v11565_v57  ;;  %v3248_v57 = vsel %vm3243_vm3, %v1006_v5, %v17781_v63  ;;  %v17783_v5 = vld [vmem:[#allocation246_spill] sm:$0xff] }
 0x434   : > { %8441 = vmatmul.msk.f32.gmra.mxu0 %vm3518_vm11, %v3478_v25  ;;  %v3281_v13 = vsel %vm3276_vm5, %v3248_v57, %v11307_v58  ;;  %v11721_v35 = vsel %vm809_vm1, %v787_v31, %v788_v27 }
 0x436   : > { %2529 = vrot.lane.b32.xlu1 %v1558_v29, %s9544_s7  ;;  %2657 = vrot.lane.b32.xlu2 %v9463_v23, %s17196_s28  ;;  %v17782_v23 = vld [vmem:[#allocation173_spill] sm:$0xff]  ;;  %v2201_v29 = vmul.f32 %v17783_v5, %v11137_v14 }
 0x437   : > { %2791 = vrot.lane.b32.xlu0 %v1721_v20, %s9542_s6  ;;  %v1878_v25 = vmul.f32 %v17782_v23, %v11721_v35  ;;  %v17784_v20 = vld [vmem:[#allocation206_spill] sm:$0xff] }
 0x438   : > { %v2516_v50 = vpop.permute.xlu1 %2515  ;;  %v3030_v3 = vpop.permute.xlu2 %3029  ;;  %v2038_v63 = vmul.f32 %v9464_v42, %v17784_v20 }
 0x439   : > { %v11713_v17 = vpop.permute.xlu0 %2777  ;;  %v3314_v52 = vsel %vm3309_vm4, %v3281_v13, %v2516_v50 }
 0x43a   : > { %v3347_v45 = vsel %vm3342_vm6, %v3314_v52, %v2644_v12  ;;  %v17785_v52 = vld [vmem:[#allocation76_spill] sm:$0xff] }
 0x43b   : > { %v3380_v31 = vsel %vm3375_vm7, %v3347_v45, %v11592_v28  ;;  %v17787_v28 = vld [vmem:[#allocation4_spill] sm:$0xff] }
 0x43c   : > { %v1007_v45 = vmul.f32 %v17787_v28, %v11311_v51 }
 0x43e   : > { %2913 = vrot.lane.b32.xlu1 %v1878_v25, %s17734_s2  ;;  %3041 = vrot.lane.b32.xlu2 %v2038_v63, %s9547_s3  ;;  %v1559_v25 = vmul.f32 %v17785_v52, %v11681_v37 }
 0x43f   : > { %3175 = vrot.lane.b32.xlu0 %v2201_v29, %s17743_s27  ;;  %v17786_v29 = vld [vmem:[#allocation109_spill] sm:$0xff] }
 0x440   : > { %v2900_v57 = vpop.permute.xlu1 %2899  ;;  %v2648_v50 = vpop.permute.xlu2 %2647  ;;  %v1722_v63 = vmul.f32 %v17786_v29, %v17775_v48  ;;  %v17790_v29 = vld [vmem:[#allocation166_spill] sm:$0xff] }
 0x441   : > { %v11732_v58 = vpop.permute.xlu0 %3161  ;;  %v3413_v13 = vsel %vm3408_vm8, %v3380_v31, %v2900_v57  ;;  %v9465_v31 = vld [vmem:[%s10531_s1 + $0x60] sm:$0xff]  ;;  %v9466_v57 = vld [vmem:[%s10531_s1 + $0x70] sm:$0xff] }
 0x442   : > { %v3446_v5 = vsel %vm3441_vm9, %v3413_v13, %v3028_v19  ;;  %v789_v48 = vrot.slane %v9466_v57, 7  ;;  %v2039_v28 = vmul.f32 %v9466_v57, %v17790_v29 }
 0x443   : > { %v3479_v12 = vsel %vm3474_vm10, %v3446_v5, %v11612_v4  ;;  %v3249_v4 = vsel %vm3243_vm3, %v1007_v45, %v11131_v16  ;;  %v17789_v16 = vld [vmem:[#allocation199_spill] sm:$0xff] }
 0x444   : > { %8442 = vmatmul.msk.f32.gmra.mxu0 %vm3518_vm11, %v3479_v12  ;;  %v3282_v13 = vsel %vm3276_vm5, %v3249_v4, %v11243_v61  ;;  %v2202_v45 = vmul.f32 %v17789_v16, %v11145_v9 }
 0x446   : > { %2531 = vrot.lane.b32.xlu1 %v1559_v25, %s9544_s7  ;;  %2659 = vrot.lane.b32.xlu2 %v9465_v31, %s17196_s28  ;;  %v11761_v25 = vsel %vm809_vm1, %v788_v27, %v789_v48 }
 0x447   : > { %2793 = vrot.lane.b32.xlu0 %v1722_v63, %s9542_s6  ;;  %v17788_v63 = vld [vmem:[#allocation136_spill] sm:$0xff] }
 0x448   : > { %v2518_v5 = vpop.permute.xlu1 %2517  ;;  %v3032_v12 = vpop.permute.xlu2 %3031  ;;  %v1879_v31 = vmul.f32 %v17788_v63, %v11761_v25  ;;  %v17793_v63 = vld [vmem:[#allocation225_spill] sm:$0xff] }
 0x449   : > { %v11753_v19 = vpop.permute.xlu0 %2779  ;;  %v3315_v51 = vsel %vm3309_vm4, %v3282_v13, %v2518_v5 }
 0x44a   : > { %v3348_v36 = vsel %vm3342_vm6, %v3315_v51, %v2646_v40  ;;  %v17791_v51 = vld [vmem:[#allocation117_spill] sm:$0xff] }
 0x44b   : > { %v3381_v27 = vsel %vm3375_vm7, %v3348_v36, %v11633_v39  ;;  %v1008_v36 = vmul.f32 %v17793_v63, %v11345_v59  ;;  %v9467_v39 = vld [vmem:[%s10531_s1 + $0x78] sm:$0xff] }
 0x44e   : > { %2915 = vrot.lane.b32.xlu1 %v1879_v31, %s17734_s2  ;;  %3043 = vrot.lane.b32.xlu2 %v2039_v28, %s9547_s3  ;;  %v17792_v31 = vld [vmem:[#allocation153_spill] sm:$0xff] }
 0x44f   : > { %3177 = vrot.lane.b32.xlu0 %v2202_v45, %s17743_s27  ;;  %v1560_v45 = vmul.f32 %v17791_v51, %v11721_v35  ;;  %v1723_v28 = vmul.f32 %v17792_v31, %v11137_v14 }
 0x450   : > { %v2902_v4 = vpop.permute.xlu1 %2901  ;;  %v2650_v5 = vpop.permute.xlu2 %2649 }
 0x451   : > { %v11772_v61 = vpop.permute.xlu0 %3163  ;;  %v3414_v13 = vsel %vm3408_vm8, %v3381_v27, %v2902_v4 }
 0x452   : > { %v3447_v16 = vsel %vm3441_vm9, %v3414_v13, %v3030_v3  ;;  %v790_v3 = vrot.slane %v9467_v39, 7 }
 0x453   : > { %v3480_v40 = vsel %vm3474_vm10, %v3447_v16, %v11652_v8  ;;  %v3250_v8 = vsel %vm3243_vm3, %v1008_v36, %v11055_v44  ;;  %v17797_v44 = vld [vmem:[#allocation217_spill] sm:$0xff] }
 0x454   : > { %8443 = vmatmul.msk.f32.gmra.mxu0 %vm3518_vm11, %v3480_v40  ;;  %v3283_v14 = vsel %vm3276_vm5, %v3250_v8, %v11372_v24  ;;  %v11800_v13 = vsel %vm809_vm1, %v789_v48, %v790_v3  ;;  %v17794_v40 = vld [vmem:[#allocation183_spill] sm:$0xff]  ;;  %v2040_v36 = vmul.f32 %v9467_v39, %v17797_v44 }
 0x456   : > { %2533 = vrot.lane.b32.xlu1 %v1560_v45, %s9544_s7  ;;  %2661 = vrot.lane.b32.xlu2 %v9464_v42, %s17196_s28  ;;  %v1880_v45 = vmul.f32 %v17794_v40, %v11800_v13  ;;  %v17795_v42 = vld [vmem:[#allocation265_spill] sm:$0xff] }
 0x457   : > { %2795 = vrot.lane.b32.xlu0 %v1723_v28, %s9542_s6  ;;  %v17796_v28 = vld [vmem:[#allocation257_spill] sm:$0xff] }
 0x458   : > { %v2520_v27 = vpop.permute.xlu1 %2519  ;;  %v3034_v4 = vpop.permute.xlu2 %3033  ;;  %v2203_v63 = vmul.f32 %v17796_v28, %v17795_v42 }
 0x459   : > { %v11793_v16 = vpop.permute.xlu0 %2781  ;;  %v3316_v59 = vsel %vm3309_vm4, %v3283_v14, %v2520_v27 }
 0x45a   : > { %v3349_v31 = vsel %vm3342_vm6, %v3316_v59, %v2648_v50 }
 0x45b   : > { %v3382_v48 = vsel %vm3375_vm7, %v3349_v31, %v11674_v10  ;;  %v17800_v10 = vld [vmem:[#allocation13_spill] sm:$0xff] }
 0x45c   : > { %v1009_v31 = vmul.f32 %v17800_v10, %v11379_v15  ;;  %v17804_v10 = vld [vmem:[#allocation209_spill] sm:$0xff] }
 0x45e   : > { %2917 = vrot.lane.b32.xlu1 %v1880_v45, %s17734_s2  ;;  %3045 = vrot.lane.b32.xlu2 %v2040_v36, %s9547_s3  ;;  %v17799_v45 = vld [vmem:[#allocation146_spill] sm:$0xff] }
 0x45f   : > { %3179 = vrot.lane.b32.xlu0 %v2203_v63, %s17743_s27  ;;  %v17798_v63 = vld [vmem:[#allocation110_spill] sm:$0xff]  ;;  %v1724_v36 = vmul.f32 %v17799_v45, %v11145_v9 }
 0x460   : > { %v2904_v8 = vpop.permute.xlu1 %2903  ;;  %v2652_v27 = vpop.permute.xlu2 %2651  ;;  %v1561_v59 = vmul.f32 %v17798_v63, %v11761_v25  ;;  %v9483_v63 = vld [vmem:[%s10531_s1] sm:$0xff] }
 0x461   : > { %v11811_v24 = vpop.permute.xlu0 %3165  ;;  %v3415_v14 = vsel %vm3408_vm8, %v3382_v48, %v2904_v8  ;;  %v9468_v8 = vld [vmem:[%s10531_s1 + $0x80] sm:$0xff] }
 0x462   : > { %v3448_v28 = vsel %vm3441_vm9, %v3415_v14, %v3032_v12  ;;  %v17801_v12 = vld [vmem:[#allocation263_spill] sm:$0xff]  ;;  %v791_v14 = vrot.slane %v9468_v8, 7  ;;  %v2041_v45 = vmul.f32 %v9468_v8, %v17804_v10 }
 0x463   : > { %v3481_v50 = vsel %vm3474_vm10, %v3448_v28, %v11693_v60  ;;  %v3251_v60 = vsel %vm3243_vm3, %v1009_v31, %v17801_v12  ;;  %v17803_v31 = vld [vmem:[#allocation249_spill] sm:$0xff] }
 0x464   : > { %8444 = vmatmul.msk.f32.gmra.mxu0 %vm3518_vm11, %v3481_v50  ;;  %v3284_v9 = vsel %vm3276_vm5, %v3251_v60, %v11326_v30  ;;  %v2204_v12 = vmul.f32 %v17803_v31, %v11165_v22 }
 0x466   : > { %2535 = vrot.lane.b32.xlu1 %v1561_v59, %s9544_s7  ;;  %2663 = vrot.lane.b32.xlu2 %v9466_v57, %s17196_s28  ;;  %v17802_v57 = vld [vmem:[#allocation176_spill] sm:$0xff] }
 0x467   : > { %2797 = vrot.lane.b32.xlu0 %v1724_v36, %s9542_s6  ;;  %v11839_v36 = vsel %vm809_vm1, %v790_v3, %v791_v14 }
 0x468   : > { %v2522_v48 = vpop.permute.xlu1 %2521  ;;  %v3036_v50 = vpop.permute.xlu2 %3035  ;;  %v1881_v59 = vmul.f32 %v17802_v57, %v11839_v36  ;;  %v17813_v57 = vld [vmem:[#allocation228_spill] sm:$0xff] }
 0x469   : > { %v11831_v28 = vpop.permute.xlu0 %2783  ;;  %v3317_v15 = vsel %vm3309_vm4, %v3284_v9, %v2522_v48 }
 0x46a   : > { %v3350_v40 = vsel %vm3342_vm6, %v3317_v15, %v2650_v5  ;;  %v17805_v15 = vld [vmem:[#allocation79_spill] sm:$0xff] }
 0x46b   : > { %v3383_v3 = vsel %vm3375_vm7, %v3350_v40, %v11713_v17  ;;  %v17807_v17 = vld [vmem:[#allocation5_spill] sm:$0xff] }
 0x46c   : > { %v1010_v40 = vmul.f32 %v17807_v17, %v11413_v0 }
 0x46e   : > { %2919 = vrot.lane.b32.xlu1 %v1881_v59, %s17734_s2  ;;  %3047 = vrot.lane.b32.xlu2 %v2041_v45, %s9547_s3  ;;  %v1562_v59 = vmul.f32 %v17805_v15, %v11800_v13  ;;  %v17806_v45 = vld [vmem:[#allocation112_spill] sm:$0xff]  ;;  %v17917_v15 = vld [vmem:[#allocation181_spill] sm:$0xff] }
 0x46f   : > { %3181 = vrot.lane.b32.xlu0 %v2204_v12, %s17743_s27  ;;  %v1725_v12 = vmul.f32 %v17806_v45, %v17795_v42 }
 0x470   : > { %v2906_v60 = vpop.permute.xlu1 %2905  ;;  %v2654_v48 = vpop.permute.xlu2 %2653 }
 0x471   : > { %v11850_v30 = vpop.permute.xlu0 %3167  ;;  %v3416_v9 = vsel %vm3408_vm8, %v3383_v3, %v2906_v60  ;;  %v9469_v3 = vld [vmem:[%s10531_s1 + $0x88] sm:$0xff] }
 0x472   : > { %v3449_v31 = vsel %vm3441_vm9, %v3416_v9, %v3034_v4  ;;  %v792_v60 = vrot.slane %v9469_v3, 7 }
 0x473   : > { %v3482_v5 = vsel %vm3474_vm10, %v3449_v31, %v11732_v58  ;;  %v3252_v58 = vsel %vm3243_vm3, %v1010_v40, %v11159_v53  ;;  %v17809_v53 = vld [vmem:[#allocation202_spill] sm:$0xff]  ;;  %v17810_v40 = vld [vmem:[#allocation169_spill] sm:$0xff] }
 0x474   : > { %8445 = vmatmul.msk.f32.gmra.mxu0 %vm3518_vm11, %v3482_v5  ;;  %v3285_v42 = vsel %vm3276_vm5, %v3252_v58, %v11265_v41  ;;  %v11878_v5 = vsel %vm809_vm1, %v791_v14, %v792_v60  ;;  %v2042_v45 = vmul.f32 %v9469_v3, %v17810_v40 }
 0x476   : > { %2537 = vrot.lane.b32.xlu1 %v1562_v59, %s9544_s7  ;;  %2665 = vrot.lane.b32.xlu2 %v9467_v39, %s17196_s28  ;;  %v17808_v39 = vld [vmem:[#allocation139_spill] sm:$0xff] }
 0x477   : > { %2799 = vrot.lane.b32.xlu0 %v1725_v12, %s9542_s6  ;;  %v1882_v59 = vmul.f32 %v17808_v39, %v11878_v5  ;;  %v2205_v12 = vmul.f32 %v17809_v53, %v11173_v49 }
 0x478   : > { %v2524_v31 = vpop.permute.xlu1 %2523  ;;  %v3038_v9 = vpop.permute.xlu2 %3037 }
 0x479   : > { %v11870_v4 = vpop.permute.xlu0 %2785  ;;  %v3318_v0 = vsel %vm3309_vm4, %v3285_v42, %v2524_v31 }
 0x47a   : > { %v3351_v17 = vsel %vm3342_vm6, %v3318_v0, %v2652_v27  ;;  %v17811_v0 = vld [vmem:[#allocation120_spill] sm:$0xff] }
 0x47b   : > { %v3384_v14 = vsel %vm3375_vm7, %v3351_v17, %v11753_v19  ;;  %v1011_v19 = vmul.f32 %v17813_v57, %v11468_v11  ;;  %v9470_v17 = vld [vmem:[%s10531_s1 + $0x90] sm:$0xff] }
 0x47e   : > { %2921 = vrot.lane.b32.xlu1 %v1882_v59, %s17734_s2  ;;  %3049 = vrot.lane.b32.xlu2 %v2042_v45, %s9547_s3  ;;  %v17812_v59 = vld [vmem:[#allocation156_spill] sm:$0xff] }
 0x47f   : > { %3183 = vrot.lane.b32.xlu0 %v2205_v12, %s17743_s27  ;;  %v1563_v12 = vmul.f32 %v17811_v0, %v11839_v36  ;;  %v1726_v45 = vmul.f32 %v17812_v59, %v11165_v22 }
 0x480   : > { %v2908_v58 = vpop.permute.xlu1 %2907  ;;  %v2656_v31 = vpop.permute.xlu2 %2655 }
 0x481   : > { %v11889_v41 = vpop.permute.xlu0 %3169  ;;  %v3417_v42 = vsel %vm3408_vm8, %v3384_v14, %v2908_v58 }
 0x482   : > { %v3450_v53 = vsel %vm3441_vm9, %v3417_v42, %v3036_v50  ;;  %v793_v50 = vrot.slane %v9470_v17, 7 }
 0x483   : > { %v3483_v27 = vsel %vm3474_vm10, %v3450_v53, %v11772_v61  ;;  %v3253_v61 = vsel %vm3243_vm3, %v1011_v19, %v11083_v54  ;;  %v17817_v54 = vld [vmem:[#allocation220_spill] sm:$0xff] }
 0x484   : > { %8446 = vmatmul.msk.f32.gmra.mxu0 %vm3518_vm11, %v3483_v27  ;;  %v3286_v22 = vsel %vm3276_vm5, %v3253_v61, %v11392_v1  ;;  %v11917_v42 = vsel %vm809_vm1, %v792_v60, %v793_v50  ;;  %v17814_v27 = vld [vmem:[#allocation186_spill] sm:$0xff]  ;;  %v2043_v19 = vmul.f32 %v9470_v17, %v17817_v54 }
 0x486   : > { %2539 = vrot.lane.b32.xlu1 %v1563_v12, %s9544_s7  ;;  %2667 = vrot.lane.b32.xlu2 %v9468_v8, %s17196_s28  ;;  %v1883_v12 = vmul.f32 %v17814_v27, %v11917_v42  ;;  %v17815_v8 = vld [vmem:[#allocation271_spill] sm:$0xff] }
 0x487   : > { %2801 = vrot.lane.b32.xlu0 %v1726_v45, %s9542_s6  ;;  %v17816_v45 = vld [vmem:[#allocation262_spill] sm:$0xff] }
 0x488   : > { %v2526_v14 = vpop.permute.xlu1 %2525  ;;  %v3040_v58 = vpop.permute.xlu2 %3039  ;;  %v2206_v57 = vmul.f32 %v17816_v45, %v17815_v8 }
 0x489   : > { %v11910_v53 = vpop.permute.xlu0 %2787  ;;  %v3319_v11 = vsel %vm3309_vm4, %v3286_v22, %v2526_v14 }
 0x48a   : > { %v3352_v59 = vsel %vm3342_vm6, %v3319_v11, %v2654_v48 }
 0x48b   : > { %v3385_v60 = vsel %vm3375_vm7, %v3352_v59, %v11793_v16  ;;  %v17820_v16 = vld [vmem:[#allocation16_spill] sm:$0xff] }
 0x48c   : > { %v1012_v59 = vmul.f32 %v17820_v16, %v11510_v26  ;;  %v17825_v16 = vld [vmem:[#allocation212_spill] sm:$0xff] }
 0x48e   : > { %2923 = vrot.lane.b32.xlu1 %v1883_v12, %s17734_s2  ;;  %3051 = vrot.lane.b32.xlu2 %v2043_v19, %s9547_s3  ;;  %v17819_v12 = vld [vmem:[#allocation149_spill] sm:$0xff] }
 0x48f   : > { %3185 = vrot.lane.b32.xlu0 %v2206_v57, %s17743_s27  ;;  %v17818_v57 = vld [vmem:[#allocation113_spill] sm:$0xff]  ;;  %v1727_v19 = vmul.f32 %v17819_v12, %v11173_v49  ;;  %v17823_v12 = vld [vmem:[#allocation290_spill] sm:$0xff] }
 0x490   : > { %v2910_v61 = vpop.permute.xlu1 %2909  ;;  %v2658_v14 = vpop.permute.xlu2 %2657  ;;  %v1564_v11 = vmul.f32 %v17818_v57, %v11878_v5 }
 0x491   : > { %v11928_v1 = vpop.permute.xlu0 %3171  ;;  %v3418_v22 = vsel %vm3408_vm8, %v3385_v60, %v2910_v61  ;;  %v9471_v61 = vld [vmem:[%s10531_s1 + $0x98] sm:$0xff] }
 0x492   : > { %v3451_v45 = vsel %vm3441_vm9, %v3418_v22, %v3038_v9  ;;  %v17821_v9 = vld [vmem:[#allocation269_spill] sm:$0xff]  ;;  %v794_v22 = vrot.slane %v9471_v61, 7  ;;  %v2044_v27 = vmul.f32 %v9471_v61, %v17825_v16 }
 0x493   : > { %v3484_v48 = vsel %vm3474_vm10, %v3451_v45, %v11811_v24  ;;  %v3254_v24 = vsel %vm3243_vm3, %v1012_v59, %v17821_v9  ;;  %v17824_v59 = vld [vmem:[#allocation252_spill] sm:$0xff] }
 0x494   : > { %8447 = vmatmul.msk.f32.gmra.mxu0 %vm3518_vm11, %v3484_v48  ;;  %v3287_v49 = vsel %vm3276_vm5, %v3254_v24, %v11341_v47  ;;  %v2207_v9 = vmul.f32 %v17824_v59, %v17823_v12 }
 0x496   : > { %2541 = vrot.lane.b32.xlu1 %v1564_v11, %s9544_s7  ;;  %2669 = vrot.lane.b32.xlu2 %v9469_v3, %s17196_s28  ;;  %v17822_v3 = vld [vmem:[#allocation179_spill] sm:$0xff] }
 0x497   : > { %2803 = vrot.lane.b32.xlu0 %v1727_v19, %s9542_s6  ;;  %v11956_v19 = vsel %vm809_vm1, %v793_v50, %v794_v22 }
 0x498   : > { %v2528_v60 = vpop.permute.xlu1 %2527  ;;  %v3042_v48 = vpop.permute.xlu2 %3041  ;;  %v1884_v11 = vmul.f32 %v17822_v3, %v11956_v19  ;;  %v17834_v3 = vld [vmem:[#allocation172_spill] sm:$0xff] }
 0x499   : > { %v11948_v45 = vpop.permute.xlu0 %2789  ;;  %v3320_v26 = vsel %vm3309_vm4, %v3287_v49, %v2528_v60 }
 0x49a   : > { %v3353_v54 = vsel %vm3342_vm6, %v3320_v26, %v2656_v31  ;;  %v17826_v26 = vld [vmem:[#allocation82_spill] sm:$0xff] }
 0x49b   : > { %v3386_v50 = vsel %vm3375_vm7, %v3353_v54, %v11831_v28  ;;  %v17828_v28 = vld [vmem:[#allocation6_spill] sm:$0xff] }
 0x49c   : > { %v1013_v54 = vmul.f32 %v17828_v28, %v11553_v21  ;;  %v17832_v28 = vld [vmem:[#allocation292_spill] sm:$0xff] }
 0x49e   : > { %2925 = vrot.lane.b32.xlu1 %v1884_v11, %s17734_s2  ;;  %3053 = vrot.lane.b32.xlu2 %v2044_v27, %s9547_s3  ;;  %v1565_v11 = vmul.f32 %v17826_v26, %v11917_v42  ;;  %v17827_v27 = vld [vmem:[#allocation115_spill] sm:$0xff] }
 0x49f   : > { %3187 = vrot.lane.b32.xlu0 %v2207_v9, %s17743_s27  ;;  %v1728_v9 = vmul.f32 %v17827_v27, %v17815_v8  ;;  %v17830_v8 = vld [vmem:[#allocation301_spill] sm:$0xff] }
 0x4a0   : > { %v2912_v24 = vpop.permute.xlu1 %2911  ;;  %v2660_v60 = vpop.permute.xlu2 %2659 }
 0x4a1   : > { %v11967_v47 = vpop.permute.xlu0 %3173  ;;  %v3419_v49 = vsel %vm3408_vm8, %v3386_v50, %v2912_v24  ;;  %v9472_v24 = vld [vmem:[%s10531_s1 + $0xa0] sm:$0xff] }
 0x4a2   : > { %v3452_v59 = vsel %vm3441_vm9, %v3419_v49, %v3040_v58  ;;  %v17829_v58 = vld [vmem:[#allocation289_spill] sm:$0xff]  ;;  %v795_v49 = vrot.slane %v9472_v24, 7  ;;  %v2045_v16 = vmul.f32 %v9472_v24, %v17834_v3 }
 0x4a3   : > { %v3485_v31 = vsel %vm3474_vm10, %v3452_v59, %v11850_v30  ;;  %v3255_v30 = vsel %vm3243_vm3, %v1013_v54, %v17829_v58  ;;  %v17833_v54 = vld [vmem:[#allocation205_spill] sm:$0xff] }
 0x4a4   : > { %8448 = vmatmul.msk.f32.gmra.mxu0 %vm3518_vm11, %v3485_v31  ;;  %v3288_v31 = vsel %vm3276_vm5, %v3255_v30, %v17830_v8  ;;  %v2208_v58 = vmul.f32 %v17833_v54, %v17832_v28 }
 0x4a6   : > { %2543 = vrot.lane.b32.xlu1 %v1565_v11, %s9544_s7  ;;  %2671 = vrot.lane.b32.xlu2 %v9470_v17, %s17196_s28  ;;  %v17831_v17 = vld [vmem:[#allocation142_spill] sm:$0xff] }
 0x4a7   : > { %2805 = vrot.lane.b32.xlu0 %v1728_v9, %s9542_s6  ;;  %v11995_v9 = vsel %vm809_vm1, %v794_v22, %v795_v49 }
 0x4a8   : > { %v2530_v50 = vpop.permute.xlu1 %2529  ;;  %v3044_v27 = vpop.permute.xlu2 %3043  ;;  %v1885_v11 = vmul.f32 %v17831_v17, %v11995_v9  ;;  %v17837_v17 = vld [vmem:[#allocation231_spill] sm:$0xff] }
 0x4a9   : > { %v11987_v59 = vpop.permute.xlu0 %2791  ;;  %v3321_v21 = vsel %vm3309_vm4, %v3288_v31, %v2530_v50 }
 0x4aa   : > { %v3354_v26 = vsel %vm3342_vm6, %v3321_v21, %v2658_v14  ;;  %v17835_v21 = vld [vmem:[#allocation123_spill] sm:$0xff] }
 0x4ab   : > { %v3387_v22 = vsel %vm3375_vm7, %v3354_v26, %v11870_v4  ;;  %v1014_v4 = vmul.f32 %v17837_v17, %v11600_v34  ;;  %v9473_v26 = vld [vmem:[%s10531_s1 + $0xa8] sm:$0xff] }
 0x4ac   : > { %v17842_v17 = vld [vmem:[#allocation268_spill] sm:$0xff] }
 0x4ae   : > { %2927 = vrot.lane.b32.xlu1 %v1885_v11, %s17734_s2  ;;  %3055 = vrot.lane.b32.xlu2 %v2045_v16, %s9547_s3  ;;  %v17836_v11 = vld [vmem:[#allocation159_spill] sm:$0xff] }
 0x4af   : > { %3189 = vrot.lane.b32.xlu0 %v2208_v58, %s17743_s27  ;;  %v1566_v58 = vmul.f32 %v17835_v21, %v11956_v19  ;;  %v1729_v16 = vmul.f32 %v17836_v11, %v17823_v12  ;;  %v17839_v12 = vld [vmem:[#allocation314_spill] sm:$0xff] }
 0x4b0   : > { %v2914_v50 = vpop.permute.xlu1 %2913  ;;  %v2662_v8 = vpop.permute.xlu2 %2661 }
 0x4b1   : > { %v12006_v30 = vpop.permute.xlu0 %3175  ;;  %v3420_v31 = vsel %vm3408_vm8, %v3387_v22, %v2914_v50 }
 0x4b2   : > { %v3453_v54 = vsel %vm3441_vm9, %v3420_v31, %v3042_v48  ;;  %v796_v48 = vrot.slane %v9473_v26, 7 }
 0x4b3   : > { %v3486_v14 = vsel %vm3474_vm10, %v3453_v54, %v11889_v41  ;;  %v17838_v41 = vld [vmem:[#allocation283_spill] sm:$0xff] }
 0x4b4   : > { %8449 = vmatmul.msk.f32.gmra.mxu0 %vm3518_vm11, %v3486_v14  ;;  %v3256_v54 = vsel %vm3243_vm3, %v1014_v4, %v17838_v41  ;;  %v17843_v4 = vld [vmem:[#allocation223_spill] sm:$0xff] }
 0x4b5   : > { %v3289_v31 = vsel %vm3276_vm5, %v3256_v54, %v17839_v12  ;;  %v2046_v41 = vmul.f32 %v9473_v26, %v17843_v4 }
 0x4b6   : > { %2545 = vrot.lane.b32.xlu1 %v1566_v58, %s9544_s7  ;;  %2673 = vrot.lane.b32.xlu2 %v9471_v61, %s17196_s28  ;;  %v17840_v58 = vld [vmem:[#allocation189_spill] sm:$0xff]  ;;  %v17841_v61 = vld [vmem:[#allocation275_spill] sm:$0xff] }
 0x4b7   : > { %2807 = vrot.lane.b32.xlu0 %v1729_v16, %s9542_s6  ;;  %v12034_v16 = vsel %vm809_vm1, %v795_v49, %v796_v48  ;;  %v2209_v3 = vmul.f32 %v17842_v17, %v17841_v61 }
 0x4b8   : > { %v2532_v50 = vpop.permute.xlu1 %2531  ;;  %v3046_v14 = vpop.permute.xlu2 %3045  ;;  %v1886_v11 = vmul.f32 %v17840_v58, %v12034_v16  ;;  %v17852_v58 = vld [vmem:[#allocation215_spill] sm:$0xff] }
 0x4b9   : > { %v12027_v22 = vpop.permute.xlu0 %2793  ;;  %v3322_v34 = vsel %vm3309_vm4, %v3289_v31, %v2532_v50 }
 0x4ba   : > { %v3355_v21 = vsel %vm3342_vm6, %v3322_v34, %v2660_v60  ;;  %v17845_v34 = vld [vmem:[#allocation152_spill] sm:$0xff] }
 0x4bb   : > { %v3388_v49 = vsel %vm3375_vm7, %v3355_v21, %v11910_v53  ;;  %v17846_v53 = vld [vmem:[#allocation19_spill] sm:$0xff] }
 0x4bc   : > { %v1015_v21 = vmul.f32 %v17846_v53, %v11641_v6  ;;  %v17850_v53 = vld [vmem:[#allocation294_spill] sm:$0xff] }
 0x4be   : > { %2929 = vrot.lane.b32.xlu1 %v1886_v11, %s17734_s2  ;;  %3057 = vrot.lane.b32.xlu2 %v2046_v41, %s9547_s3  ;;  %v1730_v41 = vmul.f32 %v17845_v34, %v17832_v28  ;;  %v17848_v28 = vld [vmem:[#allocation309_spill] sm:$0xff] }
 0x4bf   : > { %3191 = vrot.lane.b32.xlu0 %v2209_v3, %s17743_s27  ;;  %v17844_v3 = vld [vmem:[#allocation116_spill] sm:$0xff] }
 0x4c0   : > { %v2916_v50 = vpop.permute.xlu1 %2915  ;;  %v2664_v12 = vpop.permute.xlu2 %2663  ;;  %v1567_v11 = vmul.f32 %v17844_v3, %v11995_v9 }
 0x4c1   : > { %v12045_v54 = vpop.permute.xlu0 %3177  ;;  %v3421_v31 = vsel %vm3408_vm8, %v3388_v49, %v2916_v50  ;;  %v9474_v50 = vld [vmem:[%s10531_s1 + $0xb0] sm:$0xff] }
 0x4c2   : > { %v3454_v17 = vsel %vm3441_vm9, %v3421_v31, %v3044_v27  ;;  %v17847_v27 = vld [vmem:[#allocation274_spill] sm:$0xff]  ;;  %v797_v31 = vrot.slane %v9474_v50, 7  ;;  %v2047_v3 = vmul.f32 %v9474_v50, %v17852_v58 }
 0x4c3   : > { %v3487_v60 = vsel %vm3474_vm10, %v3454_v17, %v11928_v1  ;;  %v3257_v1 = vsel %vm3243_vm3, %v1015_v21, %v17847_v27  ;;  %v17851_v21 = vld [vmem:[#allocation256_spill] sm:$0xff] }
 0x4c4   : > { %8450 = vmatmul.msk.f32.gmra.mxu0 %vm3518_vm11, %v3487_v60  ;;  %v3290_v60 = vsel %vm3276_vm5, %v3257_v1, %v17848_v28  ;;  %v2210_v27 = vmul.f32 %v17851_v21, %v17850_v53 }
 0x4c6   : > { %2547 = vrot.lane.b32.xlu1 %v1567_v11, %s9544_s7  ;;  %2675 = vrot.lane.b32.xlu2 %v9472_v24, %s17196_s28  ;;  %v17849_v24 = vld [vmem:[#allocation182_spill] sm:$0xff] }
 0x4c7   : > { %2809 = vrot.lane.b32.xlu0 %v1730_v41, %s9542_s6  ;;  %v12073_v41 = vsel %vm809_vm1, %v796_v48, %v797_v31 }
 0x4c8   : > { %v2534_v49 = vpop.permute.xlu1 %2533  ;;  %v3048_v34 = vpop.permute.xlu2 %3047  ;;  %v1887_v11 = vmul.f32 %v17849_v24, %v12073_v41  ;;  %v17861_v24 = vld [vmem:[#allocation175_spill] sm:$0xff] }
 0x4c9   : > { %v12065_v17 = vpop.permute.xlu0 %2795  ;;  %v3323_v6 = vsel %vm3309_vm4, %v3290_v60, %v2534_v49 }
 0x4ca   : > { %v3356_v4 = vsel %vm3342_vm6, %v3323_v6, %v2662_v8  ;;  %v17853_v6 = vld [vmem:[#allocation85_spill] sm:$0xff] }
 0x4cb   : > { %v3389_v48 = vsel %vm3375_vm7, %v3356_v4, %v11948_v45  ;;  %v17855_v45 = vld [vmem:[#allocation9_spill] sm:$0xff] }
 0x4cc   : > { %v1016_v4 = vmul.f32 %v17855_v45, %v11681_v37  ;;  %v17859_v45 = vld [vmem:[#allocation296_spill] sm:$0xff] }
 0x4ce   : > { %2931 = vrot.lane.b32.xlu1 %v1887_v11, %s17734_s2  ;;  %3059 = vrot.lane.b32.xlu2 %v2047_v3, %s9547_s3  ;;  %v1568_v11 = vmul.f32 %v17853_v6, %v12034_v16  ;;  %v17854_v3 = vld [vmem:[#allocation118_spill] sm:$0xff] }
 0x4cf   : > { %3193 = vrot.lane.b32.xlu0 %v2210_v27, %s17743_s27  ;;  %v1731_v27 = vmul.f32 %v17854_v3, %v17841_v61  ;;  %v17857_v61 = vld [vmem:[#allocation303_spill] sm:$0xff] }
 0x4d0   : > { %v2918_v49 = vpop.permute.xlu1 %2917  ;;  %v2666_v28 = vpop.permute.xlu2 %2665 }
 0x4d1   : > { %v12084_v1 = vpop.permute.xlu0 %3179  ;;  %v3422_v60 = vsel %vm3408_vm8, %v3389_v48, %v2918_v49  ;;  %v9475_v49 = vld [vmem:[%s10531_s1 + $0xb8] sm:$0xff] }
 0x4d2   : > { %v3455_v21 = vsel %vm3441_vm9, %v3422_v60, %v3046_v14  ;;  %v17856_v14 = vld [vmem:[#allocation293_spill] sm:$0xff]  ;;  %v798_v60 = vrot.slane %v9475_v49, 7  ;;  %v2048_v58 = vmul.f32 %v9475_v49, %v17861_v24 }
 0x4d3   : > { %v3488_v8 = vsel %vm3474_vm10, %v3455_v21, %v11967_v47  ;;  %v3258_v47 = vsel %vm3243_vm3, %v1016_v4, %v17856_v14  ;;  %v17860_v4 = vld [vmem:[#allocation208_spill] sm:$0xff] }
 0x4d4   : > { %8451 = vmatmul.msk.f32.gmra.mxu0 %vm3518_vm11, %v3488_v8  ;;  %v3291_v8 = vsel %vm3276_vm5, %v3258_v47, %v17857_v61  ;;  %v2211_v14 = vmul.f32 %v17860_v4, %v17859_v45 }
 0x4d6   : > { %2549 = vrot.lane.b32.xlu1 %v1568_v11, %s9544_s7  ;;  %2677 = vrot.lane.b32.xlu2 %v9473_v26, %s17196_s28  ;;  %v17858_v26 = vld [vmem:[#allocation145_spill] sm:$0xff] }
 0x4d7   : > { %2811 = vrot.lane.b32.xlu0 %v1731_v27, %s9542_s6  ;;  %v12112_v27 = vsel %vm809_vm1, %v797_v31, %v798_v60 }
 0x4d8   : > { %v2536_v48 = vpop.permute.xlu1 %2535  ;;  %v3050_v3 = vpop.permute.xlu2 %3049  ;;  %v1888_v11 = vmul.f32 %v17858_v26, %v12112_v27  ;;  %v17864_v26 = vld [vmem:[#allocation234_spill] sm:$0xff] }
 0x4d9   : > { %v12104_v21 = vpop.permute.xlu0 %2797  ;;  %v3324_v37 = vsel %vm3309_vm4, %v3291_v8, %v2536_v48 }
 0x4da   : > { %v3357_v6 = vsel %vm3342_vm6, %v3324_v37, %v2664_v12  ;;  %v17862_v37 = vld [vmem:[#allocation126_spill] sm:$0xff] }
 0x4db   : > { %v3390_v31 = vsel %vm3375_vm7, %v3357_v6, %v11987_v59  ;;  %v1017_v59 = vmul.f32 %v17864_v26, %v11721_v35  ;;  %v9476_v6 = vld [vmem:[%s10531_s1 + $0xc0] sm:$0xff]  ;;  %v17869_v26 = vld [vmem:[#allocation273_spill] sm:$0xff] }
 0x4de   : > { %2933 = vrot.lane.b32.xlu1 %v1888_v11, %s17734_s2  ;;  %3061 = vrot.lane.b32.xlu2 %v2048_v58, %s9547_s3  ;;  %v17863_v11 = vld [vmem:[#allocation162_spill] sm:$0xff] }
 0x4df   : > { %3195 = vrot.lane.b32.xlu0 %v2211_v14, %s17743_s27  ;;  %v1569_v14 = vmul.f32 %v17862_v37, %v12073_v41  ;;  %v1732_v58 = vmul.f32 %v17863_v11, %v17850_v53 }
 0x4e0   : > { %v2920_v48 = vpop.permute.xlu1 %2919  ;;  %v2668_v61 = vpop.permute.xlu2 %2667 }
 0x4e1   : > { %v12123_v47 = vpop.permute.xlu0 %3181  ;;  %v3423_v8 = vsel %vm3408_vm8, %v3390_v31, %v2920_v48  ;;  %v17866_v48 = vld [vmem:[#allocation316_spill] sm:$0xff] }
 0x4e2   : > { %v3456_v4 = vsel %vm3441_vm9, %v3423_v8, %v3048_v34  ;;  %v799_v34 = vrot.slane %v9476_v6, 7 }
 0x4e3   : > { %v3489_v12 = vsel %vm3474_vm10, %v3456_v4, %v12006_v30  ;;  %v17865_v30 = vld [vmem:[#allocation285_spill] sm:$0xff] }
 0x4e4   : > { %8452 = vmatmul.msk.f32.gmra.mxu0 %vm3518_vm11, %v3489_v12  ;;  %v3259_v4 = vsel %vm3243_vm3, %v1017_v59, %v17865_v30  ;;  %v17870_v59 = vld [vmem:[#allocation227_spill] sm:$0xff] }
 0x4e5   : > { %v3292_v53 = vsel %vm3276_vm5, %v3259_v4, %v17866_v48  ;;  %v2049_v30 = vmul.f32 %v9476_v6, %v17870_v59  ;;  %v17879_v59 = vld [vmem:[#allocation260_spill] sm:$0xff] }
 0x4e6   : > { %2551 = vrot.lane.b32.xlu1 %v1569_v14, %s9544_s7  ;;  %2679 = vrot.lane.b32.xlu2 %v9474_v50, %s17196_s28  ;;  %v17867_v14 = vld [vmem:[#allocation192_spill] sm:$0xff]  ;;  %v17868_v50 = vld [vmem:[#allocation279_spill] sm:$0xff] }
 0x4e7   : > { %2813 = vrot.lane.b32.xlu0 %v1732_v58, %s9542_s6  ;;  %v12151_v58 = vsel %vm809_vm1, %v798_v60, %v799_v34  ;;  %v2212_v24 = vmul.f32 %v17869_v26, %v17868_v50 }
 0x4e8   : > { %v2538_v31 = vpop.permute.xlu1 %2537  ;;  %v3052_v8 = vpop.permute.xlu2 %3051  ;;  %v1889_v11 = vmul.f32 %v17867_v14, %v12151_v58 }
 0x4e9   : > { %v12146_v12 = vpop.permute.xlu0 %2799  ;;  %v3325_v35 = vsel %vm3309_vm4, %v3292_v53, %v2538_v31 }
 0x4ea   : > { %v3358_v37 = vsel %vm3342_vm6, %v3325_v35, %v2666_v28  ;;  %v17871_v28 = vld [vmem:[#allocation119_spill] sm:$0xff] }
 0x4eb   : > { %v3391_v60 = vsel %vm3375_vm7, %v3358_v37, %v12027_v22  ;;  %v17872_v35 = vld [vmem:[#allocation155_spill] sm:$0xff]  ;;  %v17873_v22 = vld [vmem:[#allocation22_spill] sm:$0xff] }
 0x4ec   : > { %v1018_v37 = vmul.f32 %v17873_v22, %v11761_v25  ;;  %v17876_v22 = vld [vmem:[#allocation261_spill] sm:$0xff] }
 0x4ee   : > { %2935 = vrot.lane.b32.xlu1 %v1889_v11, %s17734_s2  ;;  %3063 = vrot.lane.b32.xlu2 %v2049_v30, %s9547_s3  ;;  %v1570_v11 = vmul.f32 %v17871_v28, %v12112_v27  ;;  %v1733_v30 = vmul.f32 %v17872_v35, %v17859_v45  ;;  %v9478_v45 = vld [vmem:[%s10531_s1 + $0xc8] sm:$0xff] }
 0x4ef   : > { %3197 = vrot.lane.b32.xlu0 %v2212_v24, %s17743_s27 }
 0x4f0   : > { %v2922_v4 = vpop.permute.xlu1 %2921  ;;  %v2670_v31 = vpop.permute.xlu2 %2669 }
 0x4f1   : > { %v3424_v48 = vsel %vm3408_vm8, %v3391_v60, %v2922_v4  ;;  %v12166_v26 = vpop.permute.xlu0 %3183 }
 0x4f2   : > { %v3457_v53 = vsel %vm3441_vm9, %v3424_v48, %v3050_v3  ;;  %v12180_v3 = vld [vmem:[%s10531_s1 + $0xe8] sm:$0xff] }
 0x4f3   : > { %v3490_v24 = vsel %vm3474_vm10, %v3457_v53, %v12045_v54  ;;  %v1223_v60 = vrot.slane %v12180_v3, 1  ;;  %v17874_v54 = vld [vmem:[#allocation278_spill] sm:$0xff]  ;;  %v800_v53 = vrot.slane %v9478_v45, 7 }
 0x4f4   : > { %8453 = vmatmul.msk.f32.gmra.mxu0 %vm3518_vm11, %v3490_v24  ;;  %v3260_v4 = vsel %vm3243_vm3, %v1018_v37, %v17874_v54  ;;  %v17875_v24 = vld [vmem:[#allocation311_spill] sm:$0xff]  ;;  %v17878_v37 = vld [vmem:[#allocation185_spill] sm:$0xff] }
 0x4f5   : > { %v3293_v35 = vsel %vm3276_vm5, %v3260_v4, %v17875_v24  ;;  %v17880_v4 = vld [vmem:[#allocation218_spill] sm:$0xff] }
 0x4f6   : > { %2553 = vrot.lane.b32.xlu1 %v1570_v11, %s9544_s7  ;;  %2681 = vrot.lane.b32.xlu2 %v9475_v49, %s17196_s28  ;;  %v17877_v11 = vrot.slane %v17876_v22, 1  ;;  %v12198_v49 = vsel %vm809_vm1, %v799_v34, %v800_v53  ;;  %v2050_v24 = vmul.f32 %v9478_v45, %v17880_v4 }
 0x4f7   : > { %2815 = vrot.lane.b32.xlu0 %v1733_v30, %s9542_s6  ;;  %v1890_v54 = vmul.f32 %v17878_v37, %v12198_v49 }
 0x4f8   : > { %v2540_v48 = vpop.permute.xlu1 %2539  ;;  %v3054_v25 = vpop.permute.xlu2 %3053  ;;  %v12194_v14 = vsel %vm1226_vm0, %v17877_v11, %v1223_v60 }
 0x4f9   : > { %v3326_v30 = vsel %vm3309_vm4, %v3293_v35, %v2540_v48  ;;  %v2213_v28 = vmul.f32 %v17879_v59, %v12194_v14  ;;  %v12205_v39 = vpop.permute.xlu0 %2801 }
 0x4fa   : > { %v3359_v35 = vsel %vm3342_vm6, %v3326_v30, %v2668_v61  ;;  %v17881_v61 = vld [vmem:[#allocation88_spill] sm:$0xff]  ;;  %v17882_v30 = vld [vmem:[#allocation121_spill] sm:$0xff] }
 0x4fb   : > { %v3392_v34 = vsel %vm3375_vm7, %v3359_v35, %v12065_v17  ;;  %v17883_v17 = vld [vmem:[#allocation12_spill] sm:$0xff] }
 0x4fe   : > { %2937 = vrot.lane.b32.xlu1 %v1890_v54, %s17734_s2  ;;  %3065 = vrot.lane.b32.xlu2 %v2050_v24, %s9547_s3  ;;  %v1734_v54 = vmul.f32 %v17882_v30, %v17868_v50  ;;  %v1019_v24 = vmul.f32 %v17883_v17, %v11800_v13  ;;  %v17885_v50 = vld [vmem:[#allocation305_spill] sm:$0xff]  ;;  %v17889_v17 = vld [vmem:[#allocation211_spill] sm:$0xff] }
 0x4ff   : > { %3199 = vrot.lane.b32.xlu0 %v2213_v28, %s17743_s27  ;;  %v1571_v28 = vmul.f32 %v17881_v61, %v12151_v58  ;;  %v12250_v61 = vpop.f32.mrf.mxu0 }
 0x500   : > { %v2924_v22 = vpop.permute.xlu1 %2923  ;;  %v2672_v48 = vpop.permute.xlu2 %2671 }
 0x501   : > { %v3425_v11 = vsel %vm3408_vm8, %v3392_v34, %v2924_v22  ;;  %v12226_v35 = vpop.permute.xlu0 %3185  ;;  %v9479_v34 = vld [vmem:[%s10531_s1 + $0xd0] sm:$0xff] }
 0x502   : > { %v3458_v59 = vsel %vm3441_vm9, %v3425_v11, %v3052_v8  ;;  %v801_v22 = vrot.slane %v9479_v34, 7 }
 0x503   : > { %v3491_v37 = vsel %vm3474_vm10, %v3458_v59, %v12084_v1  ;;  %v17884_v1 = vld [vmem:[#allocation297_spill] sm:$0xff] }
 0x504   : > { %8454 = vmatmul.msk.f32.gmra.mxu0 %vm3518_vm11, %v3491_v37  ;;  %v3261_v8 = vsel %vm3243_vm3, %v1019_v24, %v17884_v1  ;;  %v17888_v24 = vld [vmem:[#allocation148_spill] sm:$0xff] }
 0x505   : > { %v3294_v37 = vsel %vm3276_vm5, %v3261_v8, %v17885_v50  ;;  %v17890_v8 = vld [vmem:[#allocation178_spill] sm:$0xff] }
 0x506   : > { %2555 = vrot.lane.b32.xlu1 %v1571_v28, %s9544_s7  ;;  %2683 = vrot.lane.b32.xlu2 %v9476_v6, %s17196_s28  ;;  %v17886_v28 = vld [vmem:[#allocation226_spill] sm:$0xff]  ;;  %v2051_v50 = vmul.f32 %v9479_v34, %v17890_v8 }
 0x507   : > { %2817 = vrot.lane.b32.xlu0 %v1734_v54, %s9542_s6  ;;  %v12237_v54 = vsel %vm809_vm1, %v800_v53, %v801_v22  ;;  %v17887_v30 = vrot.slane %v17886_v28, 1 }
 0x508   : > { %v2542_v59 = vpop.permute.xlu1 %2541  ;;  %v3056_v11 = vpop.permute.xlu2 %3055  ;;  %v1891_v1 = vmul.f32 %v17888_v24, %v12237_v54 }
 0x509   : > { %v3327_v13 = vsel %vm3309_vm4, %v3294_v37, %v2542_v59  ;;  %v12243_v6 = vsel %vm1226_vm0, %v1223_v60, %v17887_v30  ;;  %v12258_v30 = vpop.permute.xlu0 %2803 }
 0x50a   : > { %v2214_v4 = vmul.f32 %v17889_v17, %v12243_v6  ;;  %v3360_v59 = vsel %vm3342_vm6, %v3327_v13, %v2670_v31 }
 0x50b   : > { %v3393_v60 = vsel %vm3375_vm7, %v3360_v59, %v12104_v21  ;;  %v12269_v21 = vpop.f32.mrf.mxu0  ;;  %v17893_v59 = vld [vmem:[#allocation237_spill] sm:$0xff] }
 0x50c   : > { %v1020_v24 = vmul.f32 %v17893_v59, %v11839_v36 }
 0x50e   : > { %2939 = vrot.lane.b32.xlu1 %v1891_v1, %s17734_s2  ;;  %3067 = vrot.lane.b32.xlu2 %v2051_v50, %s9547_s3  ;;  %v17892_v1 = vld [vmem:[#allocation165_spill] sm:$0xff] }
 0x50f   : > { %3201 = vrot.lane.b32.xlu0 %v2214_v4, %s17743_s27  ;;  %v17891_v4 = vld [vmem:[#allocation129_spill] sm:$0xff]  ;;  %v1735_v50 = vmul.f32 %v17892_v1, %v12194_v14 }
 0x510   : > { %v2926_v53 = vpop.permute.xlu1 %2925  ;;  %v2674_v37 = vpop.permute.xlu2 %2673  ;;  %v1572_v13 = vmul.f32 %v17891_v4, %v12198_v49  ;;  %v17898_v4 = vld [vmem:[#allocation277_spill] sm:$0xff] }
 0x511   : > { %v3426_v28 = vsel %vm3408_vm8, %v3393_v60, %v2926_v53 }
 0x512   : > { %v3459_v17 = vsel %vm3441_vm9, %v3426_v28, %v3054_v25  ;;  %v9480_v25 = vld [vmem:[%s10531_s1 + $0xd8] sm:$0xff] }
 0x513   : > { %v3492_v31 = vsel %vm3474_vm10, %v3459_v17, %v12123_v47  ;;  %v802_v60 = vrot.slane %v9480_v25, 7  ;;  %v17894_v47 = vld [vmem:[#allocation287_spill] sm:$0xff]  ;;  %v17895_v28 = vld [vmem:[#allocation318_spill] sm:$0xff]  ;;  %v12293_v0 = vpop.f32.mrf.mxu0 }
 0x514   : > { %8455 = vmatmul.msk.f32.gmra.mxu0 %vm3518_vm11, %v3492_v31  ;;  %v3262_v17 = vsel %vm3243_vm3, %v1020_v24, %v17894_v47  ;;  %v17899_v24 = vld [vmem:[#allocation230_spill] sm:$0xff] }
 0x515   : > { %v3295_v31 = vsel %vm3276_vm5, %v3262_v17, %v17895_v28  ;;  %v12284_v36 = vsel %vm809_vm1, %v801_v22, %v802_v60  ;;  %v2052_v47 = vmul.f32 %v9480_v25, %v17899_v24 }
 0x516   : > { %2557 = vrot.lane.b32.xlu1 %v1572_v13, %s9544_s7  ;;  %2685 = vrot.lane.b32.xlu2 %v9478_v45, %s17196_s28  ;;  %v17896_v13 = vld [vmem:[#allocation195_spill] sm:$0xff]  ;;  %v17897_v45 = vld [vmem:[#allocation264_spill] sm:$0xff] }
 0x517   : > { %2819 = vrot.lane.b32.xlu0 %v1735_v50, %s9542_s6  ;;  %v12286_v50 = vpop.permute.xlu0 %3187  ;;  %v1892_v59 = vmul.f32 %v17896_v13, %v12284_v36  ;;  %v2215_v40 = vmul.f32 %v17898_v4, %v17897_v45 }
 0x518   : > { %v2544_v53 = vpop.permute.xlu1 %2543  ;;  %v3058_v1 = vpop.permute.xlu2 %3057 }
 0x519   : > { %v3328_v8 = vsel %vm3309_vm4, %v3295_v31, %v2544_v53 }
 0x51a   : > { %v3361_v17 = vsel %vm3342_vm6, %v3328_v8, %v2672_v48  ;;  %v17900_v48 = vld [vmem:[#allocation122_spill] sm:$0xff]  ;;  %v17901_v8 = vld [vmem:[#allocation157_spill] sm:$0xff] }
 0x51b   : > { %v3394_v22 = vsel %vm3375_vm7, %v3361_v17, %v12146_v12  ;;  %v17902_v17 = vld [vmem:[#allocation25_spill] sm:$0xff] }
 0x51e   : > { %2941 = vrot.lane.b32.xlu1 %v1892_v59, %s17734_s2  ;;  %3069 = vrot.lane.b32.xlu2 %v2052_v47, %s9547_s3  ;;  %v1736_v59 = vmul.f32 %v17901_v8, %v12243_v6  ;;  %v12310_v47 = vpop.f32.mrf.mxu0 }
 0x51f   : > { %3203 = vrot.lane.b32.xlu0 %v2215_v40, %s17743_s27  ;;  %v1573_v40 = vmul.f32 %v17900_v48, %v12237_v54  ;;  %v12312_v12 = vpop.permute.xlu0 %2805 }
 0x520   : > { %v2928_v53 = vpop.permute.xlu1 %2927  ;;  %v2676_v28 = vpop.permute.xlu2 %2675 }
 0x521   : > { %v3427_v31 = vsel %vm3408_vm8, %v3394_v22, %v2928_v53  ;;  %v1021_v22 = vmul.f32 %v17902_v17, %v11878_v5  ;;  %v9481_v53 = vld [vmem:[%s10531_s1 + $0xe0] sm:$0xff]  ;;  %v17907_v17 = vld [vmem:[#allocation266_spill] sm:$0xff] }
 0x522   : > { %v3460_v4 = vsel %vm3441_vm9, %v3427_v31, %v3056_v11  ;;  %v803_v31 = vrot.slane %v9481_v53, 7 }
 0x523   : > { %v3493_v24 = vsel %vm3474_vm10, %v3460_v4, %v12166_v26  ;;  %v17903_v26 = vld [vmem:[#allocation281_spill] sm:$0xff] }
 0x524   : > { %8456 = vmatmul.msk.f32.gmra.mxu0 %vm3518_vm11, %v3493_v24  ;;  %v3263_v11 = vsel %vm3243_vm3, %v1021_v22, %v17903_v26  ;;  %v17904_v24 = vld [vmem:[#allocation313_spill] sm:$0xff]  ;;  %v12327_v5 = vsel %vm809_vm1, %v802_v60, %v803_v31 }
 0x525   : > { %v3296_v8 = vsel %vm3276_vm5, %v3263_v11, %v17904_v24  ;;  %v17908_v22 = vld [vmem:[#allocation221_spill] sm:$0xff] }
 0x526   : > { %2559 = vrot.lane.b32.xlu1 %v1573_v40, %s9544_s7  ;;  %2687 = vrot.lane.b32.xlu2 %v9479_v34, %s17196_s28  ;;  %v17905_v40 = vld [vmem:[#allocation187_spill] sm:$0xff]  ;;  %v2053_v26 = vmul.f32 %v9481_v53, %v17908_v22  ;;  %v12334_v10 = vpop.f32.mrf.mxu0 }
 0x527   : > { %2821 = vrot.lane.b32.xlu0 %v1736_v59, %s9542_s6  ;;  %v1893_v59 = vmul.f32 %v17905_v40, %v12327_v5  ;;  %v17906_v34 = vld [vmem:[#allocation267_spill] sm:$0xff] }
 0x528   : > { %v2546_v4 = vpop.permute.xlu1 %2545  ;;  %v3060_v48 = vpop.permute.xlu2 %3059  ;;  %v2216_v57 = vmul.f32 %v17907_v17, %v17906_v34 }
 0x529   : > { %v3329_v13 = vsel %vm3309_vm4, %v3296_v8, %v2546_v4  ;;  %v12339_v8 = vpop.permute.xlu0 %3189 }
 0x52a   : > { %v3362_v11 = vsel %vm3342_vm6, %v3329_v13, %v2674_v37 }
 0x52b   : > { %v3395_v60 = vsel %vm3375_vm7, %v3362_v11, %v12205_v39  ;;  %v9482_v11 = vld [vmem:[%s10531_s1 + $0xf0] sm:$0xff] }
 0x52e   : > { %2943 = vrot.lane.b32.xlu1 %v1893_v59, %s17734_s2  ;;  %3071 = vrot.lane.b32.xlu2 %v2053_v26, %s9547_s3  ;;  %v12351_v59 = vpop.f32.mrf.mxu0  ;;  %v17910_v26 = vld [vmem:[#allocation15_spill] sm:$0xff] }
 0x52f   : > { %3205 = vrot.lane.b32.xlu0 %v2216_v57, %s17743_s27  ;;  %v17909_v57 = vld [vmem:[#allocation91_spill] sm:$0xff]  ;;  %v1022_v39 = vmul.f32 %v17910_v26, %v11917_v42 }
 0x530   : > { %v2930_v4 = vpop.permute.xlu1 %2929  ;;  %v2678_v24 = vpop.permute.xlu2 %2677  ;;  %v1574_v13 = vmul.f32 %v17909_v57, %v12284_v36  ;;  %v17913_v42 = vld [vmem:[#allocation239_spill] sm:$0xff] }
 0x531   : > { %v3428_v17 = vsel %vm3408_vm8, %v3395_v60, %v2930_v4  ;;  %v12363_v4 = vpop.permute.xlu0 %2807  ;;  %v17914_v26 = vrot.slane %v17913_v42, 7 }
 0x532   : > { %v3461_v22 = vsel %vm3441_vm9, %v3428_v17, %v3058_v1  ;;  %v17911_v1 = vld [vmem:[#allocation299_spill] sm:$0xff] }
 0x533   : > { %v3494_v37 = vsel %vm3474_vm10, %v3461_v22, %v12226_v35  ;;  %v3264_v35 = vsel %vm3243_vm3, %v1022_v39, %v17911_v1  ;;  %v17912_v22 = vld [vmem:[#allocation307_spill] sm:$0xff]  ;;  %v12370_v57 = vsel %vm809_vm1, %v803_v31, %v17914_v26  ;;  %v17916_v39 = vld [vmem:[#allocation184_spill] sm:$0xff] }
 0x534   : > { %8457 = vmatmul.msk.f32.gmra.mxu0 %vm3518_vm11, %v3494_v37  ;;  %v3297_v60 = vsel %vm3276_vm5, %v3264_v35, %v17912_v22  ;;  %v2057_v1 = vmul.f32 %v9483_v63, %v17916_v39  ;;  %v2054_v35 = vmul.f32 %v12180_v3, %v17917_v15  ;;  %v17924_v15 = vld [vmem:[#allocation198_spill] sm:$0xff] }
 0x536   : > { %2561 = vrot.lane.b32.xlu1 %v1574_v13, %s9544_s7  ;;  %2689 = vrot.lane.b32.xlu2 %v9480_v25, %s17196_s28  ;;  %v17915_v25 = vld [vmem:[#allocation151_spill] sm:$0xff]  ;;  %v12378_v22 = vpop.f32.mrf.mxu0 }
 0x537   : > { %2695 = vrot.lane.b32.xlu0 %v9482_v11, %s17196_s28  ;;  %v1894_v13 = vmul.f32 %v17915_v25, %v12370_v57 }
 0x538   : > { %v2548_v17 = vpop.permute.xlu1 %2547  ;;  %v3062_v37 = vpop.permute.xlu2 %3061 }
 0x539   : > { %v3330_v40 = vsel %vm3309_vm4, %v3297_v60, %v2548_v17  ;;  %v3192_v42 = vpop.permute.xlu0 %3191 }
 0x53a   : > { %v3363_v44 = vsel %vm3342_vm6, %v3330_v40, %v2676_v28  ;;  %v17918_v28 = vld [vmem:[#allocation132_spill] sm:$0xff] }
 0x53b   : > { %v3396_v31 = vsel %vm3375_vm7, %v3363_v44, %v12258_v30  ;;  %v1575_v40 = vmul.f32 %v17918_v28, %v12327_v5  ;;  %v17920_v44 = vld [vmem:[#allocation241_spill] sm:$0xff] }
 0x53c   : > { %v1023_v30 = vmul.f32 %v17920_v44, %v11956_v19  ;;  %v17925_v19 = vld [vmem:[#allocation201_spill] sm:$0xff] }
 0x53d   : > { %v17926_v44 = vld [vmem:[#allocation233_spill] sm:$0xff] }
 0x53e   : > { %2945 = vrot.lane.b32.xlu1 %v1894_v13, %s17734_s2  ;;  %3073 = vrot.lane.b32.xlu2 %v2054_v35, %s9547_s3  ;;  %v17919_v13 = vld [vmem:[#allocation135_spill] sm:$0xff]  ;;  %v12395_v35 = vpop.f32.mrf.mxu0 }
 0x53f   : > { %3079 = vrot.lane.b32.xlu0 %v2057_v1, %s9547_s3  ;;  %v1578_v1 = vmul.f32 %v17919_v13, %v11582_v56  ;;  %v17923_v13 = vld [vmem:[#allocation322_spill] sm:$0xff] }
 0x540   : > { %v2932_v26 = vpop.permute.xlu1 %2931  ;;  %v2680_v17 = vpop.permute.xlu2 %2679  ;;  %v1895_v28 = vmul.f32 %v17924_v15, %v17923_v13 }
 0x541   : > { %v3429_v63 = vsel %vm3408_vm8, %v3396_v31, %v2932_v26  ;;  %v17922_v26 = vld [vmem:[#allocation320_spill] sm:$0xff] }
 0x542   : > { %v3462_v60 = vsel %vm3441_vm9, %v3429_v63, %v3060_v48 }
 0x543   : > { %v3495_v39 = vsel %vm3474_vm10, %v3462_v60, %v12286_v50  ;;  %v17921_v50 = vld [vmem:[#allocation291_spill] sm:$0xff] }
 0x544   : > { %8458 = vmatmul.msk.f32.gmra.mxu0 %vm3518_vm11, %v3495_v39  ;;  %v3265_v48 = vsel %vm3243_vm3, %v1023_v30, %v17921_v50 }
 0x545   : > { %v3298_v63 = vsel %vm3276_vm5, %v3265_v48, %v17922_v26 }
 0x546   : > { %2563 = vrot.lane.b32.xlu1 %v1575_v40, %s9544_s7  ;;  %2691 = vrot.lane.b32.xlu2 %v9481_v53, %s17196_s28  ;;  %v2055_v40 = vmul.f32 %v9482_v11, %v17926_v44  ;;  %v12412_v25 = vpop.f32.mrf.mxu0  ;;  %v12414_v53 = vpop.permute.xlu0 %2809 }
 0x547   : > { %2569 = vrot.lane.b32.xlu0 %v1578_v1, %s9544_s7  ;;  %v1898_v1 = vmul.f32 %v17925_v19, %v11292_v55  ;;  %v9484_v19 = vld [vmem:[%s10531_s1 + $0xf8] sm:$0xff] }
 0x548   : > { %v2550_v31 = vpop.permute.xlu1 %2549  ;;  %v3064_v60 = vpop.permute.xlu2 %3063 }
 0x549   : > { %v3331_v39 = vsel %vm3309_vm4, %v3298_v63, %v2550_v31 }
 0x54a   : > { %v3364_v30 = vsel %vm3342_vm6, %v3331_v39, %v2678_v24  ;;  %v12429_v24 = vld [vmem:[%s17927_s17] sm:$0xff] }
 0x54b   : > { %v3397_v50 = vsel %vm3375_vm7, %v3364_v30, %v12312_v12  ;;  %v17929_v39 = vld [vmem:[#allocation27_spill] sm:$0xff] }
 0x54e   : > { %2947 = vrot.lane.b32.xlu1 %v1895_v28, %s17734_s2  ;;  %3075 = vrot.lane.b32.xlu2 %v2055_v40, %s9547_s3  ;;  %v17928_v28 = vld [vmem:[#allocation125_spill] sm:$0xff]  ;;  %v12434_v12 = vpop.f32.mrf.mxu0 }
 0x54f   : > { %2953 = vrot.lane.b32.xlu0 %v1898_v1, %s17734_s2  ;;  %v1576_v63 = vmul.f32 %v17928_v28, %v12370_v57  ;;  %v1024_v1 = vmul.f32 %v17929_v39, %v11995_v9  ;;  %v4067_v9 = vld [vmem:[%s17927_s17 + $0x28] sm:$0xff] }
 0x550   : > { %v2934_v48 = vpop.permute.xlu1 %2933  ;;  %v2682_v31 = vpop.permute.xlu2 %2681  ;;  %v17933_v39 = vld [vmem:[#allocation224_spill] sm:$0xff] }
 0x551   : > { %v3430_v55 = vsel %vm3408_vm8, %v3397_v50, %v2934_v48  ;;  %v17931_v50 = vld [vmem:[#allocation315_spill] sm:$0xff] }
 0x552   : > { %v3463_v11 = vsel %vm3441_vm9, %v3430_v55, %v3062_v37  ;;  %v17930_v37 = vld [vmem:[#allocation282_spill] sm:$0xff] }
 0x553   : > { %v3496_v26 = vsel %vm3474_vm10, %v3463_v11, %v12339_v8  ;;  %v3194_v8 = vpop.permute.xlu0 %3193  ;;  %v3266_v40 = vsel %vm3243_vm3, %v1024_v1, %v17930_v37 }
 0x554   : > { %8459 = vmatmul.msk.f32.gmra.mxu0 %vm3518_vm11, %v3496_v26  ;;  %v3299_v48 = vsel %vm3276_vm5, %v3266_v40, %v17931_v50  ;;  %v17932_v26 = vld [vmem:[#allocation190_spill] sm:$0xff] }
 0x556   : > { %2565 = vrot.lane.b32.xlu1 %v1576_v63, %s9544_s7  ;;  %2693 = vrot.lane.b32.xlu2 %v12180_v3, %s17196_s28  ;;  %v1896_v63 = vmul.f32 %v17932_v26, %v11582_v56  ;;  %v2056_v3 = vmul.f32 %v9484_v19, %v17933_v39  ;;  %v12454_v44 = vpop.f32.mrf.mxu0  ;;  %v17934_v26 = vld [vmem:[#allocation64_spill] sm:$0xff] }
 0x557   : > { %4088 = vperm.xlu0 %8645, %v12429_v24  }
 0x558   : > { %v2552_v30 = vpop.permute.xlu1 %2551  ;;  %v3066_v55 = vpop.permute.xlu2 %3065 }
 0x559   : > { %v3332_v11 = vsel %vm3309_vm4, %v3299_v48, %v2552_v30 }
 0x55a   : > { %v3365_v1 = vsel %vm3342_vm6, %v3332_v11, %v2680_v17  ;;  %v1417_v17 = vmul.f32 %v17934_v26, %v12194_v14  ;;  %v17935_v11 = vld [vmem:[#allocation94_spill] sm:$0xff] }
 0x55b   : > { %v3398_v37 = vsel %vm3375_vm7, %v3365_v1, %v12363_v4  ;;  %v2812_v30 = vpop.permute.xlu0 %2811  ;;  %v17936_v4 = vld [vmem:[#allocation18_spill] sm:$0xff]  ;;  %v17938_v1 = vmov 3  }
 0x55e   : > { %2949 = vrot.lane.b32.xlu1 %v1896_v63, %s17734_s2  ;;  %3077 = vrot.lane.b32.xlu2 %v2056_v3, %s9547_s3  ;;  %v12469_v63 = vpop.f32.mrf.mxu0  ;;  %v1025_v3 = vmul.f32 %v17936_v4, %v12034_v16  ;;  %v17941_v16 = vld [vmem:[#allocation124_spill] sm:$0xff] }
 0x55f   : > { %4113 = vperm.xlu0 %8645, %v4067_v9   ;;  %v1577_v9 = vmul.f32 %v17935_v11, %v17923_v13 }
 0x560   : > { %v2936_v40 = vpop.permute.xlu1 %2935  ;;  %v2684_v50 = vpop.permute.xlu2 %2683 }
 0x561   : > { %v3431_v56 = vsel %vm3408_vm8, %v3398_v37, %v2936_v40 }
 0x562   : > { %v3464_v48 = vsel %vm3441_vm9, %v3431_v56, %v3064_v60 }
 0x563   : > { %v3497_v39 = vsel %vm3474_vm10, %v3464_v48, %v3192_v42  ;;  %v17939_v42 = vld [vmem:[#allocation302_spill] sm:$0xff]  ;;  %v3196_v56 = vpop.permute.xlu0 %3195  ;;  %v1737_v48 = vmul.f32 %v17941_v16, %v17897_v45 }
 0x564   : > { %8460 = vmatmul.msk.f32.gmra.mxu0 %vm3518_vm11, %v3497_v39  ;;  %v3267_v14 = vsel %vm3243_vm3, %v1025_v3, %v17939_v42  ;;  %v17940_v39 = vld [vmem:[#allocation308_spill] sm:$0xff]  ;;  %v17943_v3 = vmov 2   ;;  %v17945_v16 = vld [vmem:[#allocation214_spill] sm:$0xff] }
 0x565   : > { %v3300_v13 = vsel %vm3276_vm5, %v3267_v14, %v17940_v39 }
 0x566   : > { %2439 = vrot.lane.b32.xlu1 %v1417_v17, %s17937_s26  ;;  %2567 = vrot.lane.b32.xlu2 %v1577_v9, %s9544_s7  ;;  %v17942_v17 = vld [vmem:[#allocation154_spill] sm:$0xff]  ;;  %v12486_v9 = vpop.f32.mrf.mxu0  ;;  %s17217_s7 = smov 32  }
 0x567   : > { %8650 = vset.pattern.permute.xlu0 %v17938_v1  ;;  %v1897_v11 = vmul.f32 %v17942_v17, %v11253_v7 }
 0x568   : > { %4231 = vperm.xlu0 %8650, %v12429_v24   ;;  %v2554_v60 = vpop.permute.xlu1 %2553  ;;  %v3068_v37 = vpop.permute.xlu2 %3067 }
 0x569   : > { %v3333_v40 = vsel %vm3309_vm4, %v3300_v13, %v2554_v60  ;;  %v17944_v13 = vld [vmem:[#allocation242_spill] sm:$0xff] }
 0x56a   : > { %v3366_v4 = vsel %vm3342_vm6, %v3333_v40, %v2682_v31  ;;  %v2217_v31 = vmul.f32 %v17945_v16, %v17944_v13 }
 0x56b   : > { %v3399_v42 = vsel %vm3375_vm7, %v3366_v4, %v12414_v53  ;;  %v2814_v15 = vpop.permute.xlu0 %2813  ;;  %v17947_v53 = vld [vmem:[#allocation245_spill] sm:$0xff] }
 0x56c   : > { %v1026_v4 = vmul.f32 %v17947_v53, %v12073_v41 }
 0x56e   : > { %2823 = vrot.lane.b32.xlu1 %v1737_v48, %s9542_s6  ;;  %2951 = vrot.lane.b32.xlu2 %v1897_v11, %s17734_s2  ;;  %v17946_v11 = vld [vmem:[#allocation102_spill] sm:$0xff]  ;;  %v12502_v48 = vpop.f32.mrf.mxu0 }
 0x56f   : > { %v1418_v40 = vmul.f32 %v17946_v11, %v12243_v6 }
 0x570   : > { %8655 = vset.pattern.permute.xlu0 %v17943_v3  ;;  %v2938_v14 = vpop.permute.xlu1 %2937  ;;  %v2686_v60 = vpop.permute.xlu2 %2685 }
 0x571   : > { %v3432_v45 = vsel %vm3408_vm8, %v3399_v42, %v2938_v14  ;;  %v17949_v14 = vld [vmem:[#allocation321_spill] sm:$0xff] }
 0x572   : > { %v3465_v39 = vsel %vm3441_vm9, %v3432_v45, %v3066_v55  ;;  %v17948_v55 = vld [vmem:[#allocation295_spill] sm:$0xff] }
 0x573   : > { %v3498_v7 = vsel %vm3474_vm10, %v3465_v39, %v3194_v8  ;;  %v3268_v8 = vsel %vm3243_vm3, %v1026_v4, %v17948_v55 }
 0x574   : > { %8461 = vmatmul.msk.f32.gmra.mxu0 %vm3518_vm11, %v3498_v7  ;;  %v3301_v45 = vsel %vm3276_vm5, %v3268_v8, %v17949_v14  ;;  %v17950_v7 = vld [vmem:[#allocation168_spill] sm:$0xff] }
 0x575   : > { %v1738_v13 = vmul.f32 %v17950_v7, %v17906_v34  ;;  %v17951_v34 = vld [vmem:[#allocation236_spill] sm:$0xff] }
 0x576   : > { %3207 = vrot.lane.b32.xlu1 %v2217_v31, %s17743_s27  ;;  %2441 = vrot.lane.b32.xlu2 %v1418_v40, %s17937_s26  ;;  %v3678_v16 = vpop.f32.mrf.mxu0  ;;  %v3198_v31 = vpop.permute.xlu0 %3197 }
 0x578   : > { %v2556_v42 = vpop.permute.xlu1 %2555  ;;  %v3070_v39 = vpop.permute.xlu2 %3069 }
 0x579   : > { %v3334_v6 = vsel %vm3309_vm4, %v3301_v45, %v2556_v42  ;;  %v9485_v45 = vld [vmem:[%s10531_s1 + $0x8] sm:$0xff] }
 0x57a   : > { %v3367_v41 = vsel %vm3342_vm6, %v3334_v6, %v2684_v50  ;;  %v2058_v7 = vmul.f32 %v9485_v45, %v17951_v34  ;;  %v17952_v50 = vld [vmem:[#allocation270_spill] sm:$0xff] }
 0x57b   : > { %v3400_v40 = vsel %vm3375_vm7, %v3367_v41, %v2812_v30  ;;  %v17955_v41 = vld [vmem:[#allocation284_spill] sm:$0xff] }
 0x57e   : > { %2697 = vrot.lane.b32.xlu1 %v9484_v19, %s17196_s28  ;;  %2825 = vrot.lane.b32.xlu2 %v1738_v13, %s9542_s6  ;;  %v17953_v19 = vld [vmem:[#allocation280_spill] sm:$0xff]  ;;  %v3681_v26 = vpop.f32.mrf.mxu0  ;;  %v17954_v13 = vld [vmem:[#allocation30_spill] sm:$0xff]  ;;  %s17215_s28 = smov 80   ;;  %s17223_s6 = smov 16  }
 0x57f   : > { %v2218_v6 = vmul.f32 %v17953_v19, %v17952_v50  ;;  %v1027_v30 = vmul.f32 %v17954_v13, %v12112_v27 }
 0x580   : > { %v2940_v4 = vpop.permute.xlu1 %2939  ;;  %v2688_v55 = vpop.permute.xlu2 %2687 }
 0x581   : > { %v3433_v8 = vsel %vm3408_vm8, %v3400_v40, %v2940_v4  ;;  %v17956_v40 = vld [vmem:[#allocation317_spill] sm:$0xff] }
 0x582   : > { %v3466_v14 = vsel %vm3441_vm9, %v3433_v8, %v3068_v37  ;;  %v3269_v37 = vsel %vm3243_vm3, %v1027_v30, %v17955_v41  ;;  %v2816_v8 = vpop.permute.xlu0 %2815 }
 0x583   : > { %v3499_v42 = vsel %vm3474_vm10, %v3466_v14, %v3196_v56  ;;  %v3302_v4 = vsel %vm3276_vm5, %v3269_v37, %v17956_v40 }
 0x584   : > { %8462 = vmatmul.msk.f32.gmra.mxu0 %vm3518_vm11, %v3499_v42 }
 0x586   : > { %3081 = vrot.lane.b32.xlu1 %v2058_v7, %s9547_s3  ;;  %3209 = vrot.lane.b32.xlu2 %v2218_v6, %s17743_s27  ;;  %v3684_v45 = vpop.f32.mrf.mxu0  ;;  %s17958_s3 = sld [smem:[#allocation325_spill]] }
 0x588   : > { %v2558_v56 = vpop.permute.xlu1 %2557  ;;  %v3072_v42 = vpop.permute.xlu2 %3071 }
 0x589   : > { %v3335_v14 = vsel %vm3309_vm4, %v3302_v4, %v2558_v56  ;;  %v17957_v56 = vld [vmem:[#allocation21_spill] sm:$0xff] }
 0x58a   : > { %v3368_v50 = vsel %vm3342_vm6, %v3335_v14, %v2686_v60  ;;  %v3200_v34 = vpop.permute.xlu0 %3199  ;;  %v1028_v40 = vmul.f32 %v17957_v56, %v12151_v58  ;;  %v17959_v60 = vld [vmem:[#allocation304_spill] sm:$0xff]  ;;  %v17960_v14 = vld [vmem:[#allocation310_spill] sm:$0xff]  ;;  %v12560_v58 = vld [vmem:[%s17961_s25] ss:$0 sm:$0xff]  ;;  %s17229_s25 = smov 48  }
 0x58b   : > { %v3401_v27 = vsel %vm3375_vm7, %v3368_v50, %v2814_v15 }
 0x58c   : > { %v12549_v15 = vld [vmem:[%s17958_s3] ss:$0 sm:$0xff]  ;;  %s17212_s3 = smov 112  }
 0x590   : > { %v2942_v19 = vpop.permute.xlu1 %2941  ;;  %v12542_v41 = vpop.permute.xlu2 %2689 }
 0x591   : > { %v3434_v7 = vsel %vm3408_vm8, %v3401_v27, %v2942_v19  ;;  %v3687_v37 = vpop.f32.mrf.mxu0  ;;  %v3270_v19 = vsel %vm3243_vm3, %v1028_v40, %v17959_v60  ;;  %v3751_v27 = vmul.f32 %v12549_v15, %v3681_v26  ;;  %v3749_v60 = vmul.f32 %v12549_v15, %v12502_v48  ;;  %v17962_v26 = vld [vmem:[#allocation33_spill] sm:$0xff]  ;;  %v17963_v48 = vld [vmem:[#allocation248_spill] sm:$0xff] }
 0x592   : > { %v3467_v6 = vsel %vm3441_vm9, %v3434_v7, %v3070_v39  ;;  %v3752_v39 = vmul.f32 %v12549_v15, %v3684_v45  ;;  %v3303_v50 = vsel %vm3276_vm5, %v3270_v19, %v17960_v14  ;;  %v1030_v14 = vmul.f32 %v17962_v26, %v12237_v54 }
 0x593   : > { %v3500_v30 = vsel %vm3474_vm10, %v3467_v6, %v3198_v31  ;;  %v3753_v31 = vmul.f32 %v12549_v15, %v3687_v37  ;;  %v3750_v6 = vmul.f32 %v12549_v15, %v3678_v16  ;;  %v12569_v37 = vpop.permute.xlu0 %2817  ;;  %v3787_v19 = vadd.f32 %v12560_v58, %v3751_v27  ;;  %v17964_v27 = vld [vmem:[#allocation286_spill] sm:$0xff] }
 0x594   : > { %8463 = vmatmul.msk.f32.gmra.mxu0 %vm3518_vm11, %v3500_v30  ;;  %v12566_v30 = vadd.f32 %v12560_v58, %v3752_v39  ;;  %v3748_v16 = vmul.f32 %v12549_v15, %v12486_v9  ;;  %v1029_v56 = vmul.f32 %v17963_v48, %v12198_v49  ;;  %v3272_v13 = vsel %vm3243_vm3, %v1030_v14, %v17964_v27 }
 0x595   : > { %v3789_v45 = vadd.f32 %v12560_v58, %v3753_v31  ;;  %v3786_v39 = vadd.f32 %v12560_v58, %v3750_v6  ;;  %v3747_v54 = vmul.f32 %v12549_v15, %v12469_v63  ;;  %v3785_v6 = vadd.f32 %v12560_v58, %v3749_v60 }
 0x596   : > { %v3820_v31 = vmax.f32 %v12566_v30, 0.0  ;;  %v3819_v11 = vmax.f32 %v3787_v19, 0.0  ;;  %v3746_v49 = vmul.f32 %v12549_v15, %v12454_v44  ;;  %v12599_v14 = vadd.f32 %v12560_v58, %v3748_v16 }
 0x597   : > { %v12619_v16 = vmul.f32 %v12549_v15, %v12293_v0 }
 0x598   : > { %v2560_v4 = vpop.permute.xlu1 %2559 }
 0x599   : > { %v3336_v7 = vsel %vm3309_vm4, %v3303_v50, %v2560_v4  ;;  %v12579_v4 = vpop.permute.xlu2 %3073  ;;  %v3821_v50 = vmax.f32 %v3789_v45, 0.0  ;;  %v17965_v45 = vld [vmem:[#allocation298_spill] sm:$0xff] }
 0x59a   : > { %v3369_v40 = vsel %vm3342_vm6, %v3336_v7, %v2688_v55 }
 0x59b   : > { %v3402_v55 = vsel %vm3375_vm7, %v3369_v40, %v2816_v8  ;;  %v3271_v40 = vsel %vm3243_vm3, %v1029_v56, %v17965_v45  ;;  %v3853_v27 = vrot.slane %v3821_v50, 1  ;;  %v17967_v56 = vld [vmem:[#allocation216_spill] sm:$0xff]  ;;  %v3202_v45 = vpop.permute.xlu0 %3201 }
 0x59c   : > { %v3304_v44 = vsel %vm3276_vm5, %v3271_v40, %v17967_v56 }
 0x5a0   : > { %v2944_v7 = vpop.permute.xlu1 %2943 }
 0x5a1   : > { %v3435_v9 = vsel %vm3408_vm8, %v3402_v55, %v2944_v7  ;;  %v3690_v26 = vpop.f32.mrf.mxu0  ;;  %v3818_v55 = vmax.f32 %v3786_v39, 0.0  ;;  %v3852_v7 = vrot.slane %v3820_v31, 1  ;;  %v3817_v39 = vmax.f32 %v3785_v6, 0.0  ;;  %v12648_v56 = vpop.permute.xlu2 %2691 }
 0x5a2   : > { %v3468_v30 = vsel %vm3441_vm9, %v3435_v9, %v3072_v42  ;;  %v3754_v8 = vmul.f32 %v12549_v15, %v3690_v26  ;;  %v17966_v42 = vld [vmem:[#allocation319_spill] sm:$0xff]  ;;  %v3745_v26 = vmul.f32 %v12549_v15, %v12434_v12  ;;  %v3851_v9 = vrot.slane %v3819_v11, 1 }
 0x5a3   : > { %v3501_v63 = vsel %vm3474_vm10, %v3468_v30, %v3200_v34  ;;  %v12608_v19 = vsel %vm3276_vm5, %v3272_v13, %v17966_v42  ;;  %v12615_v34 = vadd.f32 %v12560_v58, %v3747_v54  ;;  %v12624_v13 = vmul.f32 %v12549_v15, %v12310_v47 }
 0x5a4   : > { %v12603_v60 = vadd.f32 %v12560_v58, %v3754_v8  ;;  %8464 = vmatmul.msk.f32.gmra.mxu0 %vm3518_vm11, %v3501_v63  ;;  %v3744_v8 = vmul.f32 %v12549_v15, %v12412_v25  ;;  %v12629_v12 = vadd.f32 %v12560_v58, %v3746_v49  ;;  %v3816_v54 = vmax.f32 %v12599_v14, 0.0 }
 0x5a5   : > { %v3850_v40 = vrot.slane %v3818_v55, 1  ;;  %v3883_v63 = vsel %vm1226_vm0, %v3851_v9, %v3852_v7  ;;  %v3882_v47 = vsel %vm1226_vm0, %v3852_v7, %v3853_v27  ;;  %v3741_v25 = vmul.f32 %v12549_v15, %v12351_v59 }
 0x5a6   : > { %v17195_v30 = vmax.f32 %v12603_v60, 0.0  ;;  %v3743_v49 = vmul.f32 %v12549_v15, %v12395_v35  ;;  %v12645_v14 = vadd.f32 %v12560_v58, %v3745_v26  ;;  %v3815_v42 = vmax.f32 %v12615_v34, 0.0 }
 0x5a7   : > { %v3884_v59 = vsel %vm1226_vm0, %v3850_v40, %v3851_v9  ;;  %v3742_v35 = vmul.f32 %v12549_v15, %v12378_v22  ;;  %v3915_v53 = vmax.f32 %v3819_v11, %v3883_v63  ;;  %v12660_v28 = vmax.f32 %v3820_v31, %v3882_v47 }
 0x5a8   : > { %v12634_v0 = vrot.slane %v17195_v30, 1  ;;  %v2562_v6 = vpop.permute.xlu1 %2561  ;;  %v3849_v30 = vrot.slane %v3817_v39, 1  ;;  %v12663_v34 = vadd.f32 %v12560_v58, %v3744_v8  ;;  %v12669_v17 = vadd.f32 %v12560_v58, %v3743_v49 }
 0x5a9   : > { %v3337_v48 = vsel %vm3309_vm4, %v3304_v44, %v2562_v6  ;;  %v3814_v44 = vmax.f32 %v12629_v12, 0.0  ;;  %v3848_v6 = vrot.slane %v3816_v54, 1  ;;  %v3740_v31 = vmul.f32 %v12549_v15, %v12334_v10 }
 0x5aa   : > { %v3881_v7 = vsel %vm1226_vm0, %v3853_v27, %v12634_v0  ;;  %v3885_v27 = vsel %vm1226_vm0, %v3849_v30, %v3850_v40  ;;  %v3370_v22 = vsel %vm3342_vm6, %v3337_v48, %v12542_v41  ;;  %v3813_v9 = vmax.f32 %v12645_v14, 0.0  ;;  %v12692_v14 = vpop.permute.xlu0 %2819 }
 0x5ab   : > { %v12658_v26 = vmax.f32 %v3821_v50, %v3881_v7  ;;  %v3914_v50 = vmax.f32 %v3818_v55, %v3884_v59  ;;  %v3847_v8 = vrot.slane %v3815_v42, 1  ;;  %v3886_v12 = vsel %vm1226_vm0, %v3848_v6, %v3849_v30 }
 0x5ac   : > { %v12680_v40 = vadd.f32 %v12560_v58, %v3741_v25  ;;  %v12683_v63 = vadd.f32 %v12560_v58, %v3742_v35  ;;  %v3913_v48 = vmax.f32 %v3817_v39, %v3885_v27  ;;  %v3812_v55 = vmax.f32 %v12663_v34, 0.0 }
 0x5ad   : > { %v3947_v11 = vmax.f32 %v3915_v53, %v12658_v26  ;;  %v3946_v41 = vmax.f32 %v3914_v50, %v12660_v28  ;;  %v3846_v47 = vrot.slane %v3814_v44, 1  ;;  %v3403_v10 = vsel %vm3375_vm7, %v3370_v22, %v12569_v37 }
 0x5ae   : > { %v3887_v30 = vsel %vm1226_vm0, %v3847_v8, %v3848_v6  ;;  %v3811_v25 = vmax.f32 %v12669_v17, 0.0  ;;  %v3945_v35 = vmax.f32 %v3913_v48, %v3915_v53  ;;  %v3912_v39 = vmax.f32 %v3816_v54, %v3886_v12  ;;  %v12703_v17 = vpop.permute.xlu2 %3075 }
 0x5af   : > { %3980 = vmatpush.msrb.mxu0 %v3947_v11  ;;  %v3845_v27 = vrot.slane %v3813_v9, 1  ;;  %v3888_v22 = vsel %vm1226_vm0, %v3846_v47, %v3847_v8  ;;  %v12701_v6 = vadd.f32 %v12560_v58, %v3740_v31  ;;  %v3911_v53 = vmax.f32 %v3815_v42, %v3887_v30 }
 0x5b0   : > { %v2946_v49 = vpop.permute.xlu1 %2945  ;;  %v3810_v54 = vmax.f32 %v12683_v63, 0.0  ;;  %v3844_v12 = vrot.slane %v3812_v55, 1  ;;  %v3737_v31 = vmul.f32 %v12549_v15, %v12269_v21  ;;  %v3910_v42 = vmax.f32 %v3814_v44, %v3888_v22 }
 0x5b1   : > { %v3436_v7 = vsel %vm3408_vm8, %v3403_v10, %v2946_v49  ;;  %v3693_v59 = vpop.f32.mrf.mxu0  ;;  %3981 = vmatpush.msrb.mxu0 %v3946_v41  ;;  %v3944_v41 = vmax.f32 %v3912_v39, %v3914_v50  ;;  %v3889_v8 = vsel %vm1226_vm0, %v3845_v27, %v3846_v47  ;;  %v12717_v10 = vadd.f32 %v12560_v58, %v12624_v13 }
 0x5b2   : > { %v3469_v34 = vsel %vm3441_vm9, %v3436_v7, %v12579_v4  ;;  %v3755_v37 = vmul.f32 %v12549_v15, %v3693_v59  ;;  %v3809_v50 = vmax.f32 %v12680_v40, 0.0  ;;  %v3843_v63 = vrot.slane %v3811_v25, 1 }
 0x5b3   : > { %3982 = vmatpush.msrb.mxu0 %v3945_v35  ;;  %v3502_v11 = vsel %vm3474_vm10, %v3469_v34, %v3202_v45  ;;  %v3943_v45 = vmax.f32 %v3911_v53, %v3913_v48  ;;  %v3890_v30 = vsel %vm1226_vm0, %v3844_v12, %v3845_v27  ;;  %v3736_v47 = vmul.f32 %v12549_v15, %v12250_v61 }
 0x5b4   : > { %v12708_v4 = vadd.f32 %v12560_v58, %v3755_v37  ;;  %8465 = vmatmul.msk.f32.gmra.mxu0 %vm3518_vm11, %v3502_v11  ;;  %v3774_v21 = vadd.f32 %v12560_v58, %v12619_v16  ;;  %v3942_v13 = vmax.f32 %v3910_v42, %v3912_v39  ;;  %v3909_v7 = vmax.f32 %v3813_v9, %v3889_v8 }
 0x5b5   : > { %3983 = vmatpush.msrb.mxu0 %v3944_v41  ;;  %v3808_v48 = vmax.f32 %v12701_v6, 0.0  ;;  %v3842_v44 = vrot.slane %v3810_v54, 1  ;;  %v3891_v35 = vsel %vm1226_vm0, %v3843_v63, %v3844_v12  ;;  %v3773_v27 = vadd.f32 %v12560_v58, %v3737_v31  ;;  %v3204_v6 = vpop.permute.xlu0 %3203 }
 0x5b6   : > { %v3823_v49 = vmax.f32 %v12708_v4, 0.0  ;;  %v3807_v61 = vmax.f32 %v12717_v10, 0.0  ;;  %v3941_v16 = vmax.f32 %v3909_v7, %v3911_v53  ;;  %v3908_v34 = vmax.f32 %v3812_v55, %v3890_v30  ;;  %v2694_v10 = vpop.permute.xlu2 %2693 }
 0x5b7   : > { %3984 = vmatpush.msrb.mxu0 %v3943_v45  ;;  %v3841_v39 = vrot.slane %v3809_v50, 1  ;;  %v3892_v37 = vsel %vm1226_vm0, %v3842_v44, %v3843_v63  ;;  %v3907_v41 = vmax.f32 %v3811_v25, %v3891_v35  ;;  %v17968_v12 = vmax.f32 %v12603_v60, 0.0 }
 0x5b8   : > { %v12730_v40 = vrot.slane %v3823_v49, 1  ;;  %v2564_v59 = vpop.permute.xlu1 %2563  ;;  %v3940_v11 = vmax.f32 %v3908_v34, %v3910_v42  ;;  %v3772_v55 = vadd.f32 %v12560_v58, %v3736_v47  ;;  %v3806_v8 = vmax.f32 %v3774_v21, 0.0 }
 0x5b9   : > { %3985 = vmatpush.msrb.mxu0 %v3942_v13  ;;  %v3338_v9 = vsel %vm3309_vm4, %v12608_v19, %v2564_v59  ;;  %v3840_v19 = vrot.slane %v3808_v48, 1  ;;  %v3893_v31 = vsel %vm1226_vm0, %v3841_v39, %v3842_v44  ;;  %v3906_v63 = vmax.f32 %v3810_v54, %v3892_v37 }
 0x5ba   : > { %v3880_v22 = vsel %vm1226_vm0, %v12634_v0, %v12730_v40  ;;  %v3371_v45 = vsel %vm3342_vm6, %v3338_v9, %v12648_v56  ;;  %v3939_v0 = vmax.f32 %v3907_v41, %v3909_v7  ;;  %v3805_v60 = vmax.f32 %v3773_v27, 0.0 }
 0x5bb   : > { %3986 = vmatpush.msrb.mxu0 %v3941_v16  ;;  %v12746_v53 = vmax.f32 %v17968_v12, %v3880_v22  ;;  %v3839_v42 = vrot.slane %v3807_v61, 1  ;;  %v3894_v30 = vsel %vm1226_vm0, %v3840_v19, %v3841_v39  ;;  %v3938_v47 = vmax.f32 %v3906_v63, %v3908_v34 }
 0x5bc   : > { %v3905_v21 = vmax.f32 %v3809_v50, %v3893_v31  ;;  %v3804_v13 = vmax.f32 %v3772_v55, 0.0  ;;  %v3838_v44 = vrot.slane %v3806_v8, 1  ;;  %v3404_v59 = vsel %vm3375_vm7, %v3371_v45, %v12692_v14  ;;  %v17970_v31 = vld [vmem:[#allocation306_spill] sm:$0xff] }
 0x5bd   : > { %3987 = vmatpush.msrb.mxu0 %v3940_v11  ;;  %v3948_v25 = vmax.f32 %v12660_v28, %v12746_v53  ;;  %v3895_v54 = vsel %vm1226_vm0, %v3839_v42, %v3840_v19  ;;  %v3904_v27 = vmax.f32 %v3808_v48, %v3894_v30  ;;  %v3837_v16 = vrot.slane %v3805_v60, 1  ;;  %v2822_v48 = vpop.permute.xlu0 %2821  ;;  %v3974_v28 = vld [vmem:[%s17980_s19 + $0x50] sm:$0xff] }
 0x5be   : > { %v3937_v35 = vmax.f32 %v3905_v21, %v3907_v41  ;;  %v3896_v50 = vsel %vm1226_vm0, %v3838_v44, %v3839_v42  ;;  %v3903_v9 = vmax.f32 %v3807_v61, %v3895_v54  ;;  %v12767_v37 = vrot.slane %v3804_v13, 1  ;;  %v3078_v55 = vpop.permute.xlu2 %3077 }
 0x5bf   : > { %3988 = vmatpush.msrb.mxu0 %v3939_v0  ;;  %v3936_v14 = vmax.f32 %v3904_v27, %v3906_v63  ;;  %v3897_v22 = vsel %vm1226_vm0, %v3837_v16, %v3838_v44  ;;  %v3902_v41 = vmax.f32 %v3806_v8, %v3896_v50  ;;  %v17971_v63 = vld [vmem:[#allocation312_spill] sm:$0xff] }
 0x5c0   : > { %v2948_v56 = vpop.permute.xlu1 %2947  ;;  %v3935_v11 = vmax.f32 %v3903_v9, %v3905_v21  ;;  %v12777_v19 = vmax.f32 %v3805_v60, %v3897_v22 }
 0x5c1   : > { %v3437_v7 = vsel %vm3408_vm8, %v3404_v59, %v2948_v56  ;;  %3989 = vmatpush.msrb.mxu0 %v3938_v47  ;;  %v3934_v61 = vmax.f32 %v3902_v41, %v3904_v27 }
 0x5c2   : > { %v3470_v39 = vsel %vm3441_vm9, %v3437_v7, %v12703_v17  ;;  %v17969_v17 = vld [vmem:[#allocation24_spill] sm:$0xff]  ;;  %v3933_v8 = vmax.f32 %v12777_v19, %v3903_v9 }
 0x5c3   : > { %3990 = vmatpush.msrb.mxu0 %v3937_v35  ;;  %v3503_v34 = vsel %vm3474_vm10, %v3470_v39, %v3204_v6  ;;  %v1031_v12 = vmul.f32 %v17969_v17, %v12284_v36  ;;  %v3898_v6 = vsel %vm1226_vm0, %v12767_v37, %v3837_v16  ;;  %v17972_v35 = vld [vmem:[#allocation251_spill] sm:$0xff] }
 0x5c4   : > { %8466 = vmatmul.msk.f32.gmra.mxu0 %vm3518_vm11, %v3503_v34  ;;  %v12784_v36 = vmax.f32 %v3804_v13, %v3898_v6  ;;  %v1032_v27 = vmul.f32 %v17972_v35, %v12327_v5 }
 0x5c5   : > { %3991 = vmatpush.msrb.mxu0 %v3936_v14  ;;  %v3273_v45 = vsel %vm3243_vm3, %v1031_v12, %v17970_v31  ;;  %v3206_v21 = vpop.permute.xlu0 %3205  ;;  %v17974_v31 = vld [vmem:[#allocation36_spill] sm:$0xff] }
 0x5c6   : > { %v3306_v42 = vsel %vm3276_vm5, %v3273_v45, %v17971_v63  ;;  %v3932_v47 = vmax.f32 %v12784_v36, %v3902_v41  ;;  %v2568_v56 = vpop.permute.xlu2 %2567  ;;  %v1033_v45 = vmul.f32 %v17974_v31, %v12370_v57 }
 0x5c7   : > { %3992 = vmatpush.msrb.mxu0 %v3935_v11 }
 0x5c8   : > { %v2566_v0 = vpop.permute.xlu1 %2565 }
 0x5c9   : > { %3993 = vmatpush.msrb.mxu0 %v3934_v61  ;;  %v3339_v30 = vsel %vm3309_vm4, %v3306_v42, %v2566_v0  ;;  %v17975_v0 = vld [vmem:[#allocation288_spill] sm:$0xff] }
 0x5ca   : > { %v3372_v60 = vsel %vm3342_vm6, %v3339_v30, %v2694_v10  ;;  %v17973_v10 = vld [vmem:[#allocation300_spill] sm:$0xff]  ;;  %v3275_v63 = vsel %vm3243_vm3, %v1033_v45, %v17975_v0  ;;  %v17979_v45 = vmov 6  }
 0x5cb   : > { %3994 = vmatpush.msrb.mxu0 %v3933_v8  ;;  %v3405_v44 = vsel %vm3375_vm7, %v3372_v60, %v2822_v48  ;;  %v3274_v50 = vsel %vm3243_vm3, %v1032_v27, %v17973_v10  ;;  %v12818_v27 = vpop.f32.mrf.mxu0 }
 0x5cd   : > { %3995 = vmatpush.msrb.mxu0 %v3932_v47  ;;  %v2696_v39 = vpop.permute.xlu0 %2695 }
 0x5ce   : > { %v2952_v34 = vpop.permute.xlu2 %2951 }
 0x5d0   : > { %v2950_v59 = vpop.permute.xlu1 %2949 }
 0x5d1   : > { %v3438_v54 = vsel %vm3408_vm8, %v3405_v44, %v2950_v59 }
 0x5d2   : > { %v3471_v7 = vsel %vm3441_vm9, %v3438_v54, %v3078_v55 }
 0x5d3   : > { %v3504_v13 = vsel %vm3474_vm10, %v3471_v7, %v3206_v21 }
 0x5d4   : > { %8467 = vmatmul.msk.f32.gmra.mxu0 %vm3518_vm11, %v3504_v13 }
 0x5d5   : > { %v3080_v41 = vpop.permute.xlu0 %3079 }
 0x5d6   : > { %v2442_v12 = vpop.permute.xlu2 %2441 }
 0x5d7   : > { %v3308_v8 = vsel %vm3276_vm5, %v3275_v63, %v2442_v12  ;;  %v17978_v12 = vmov 7  }
 0x5d8   : > { %v2440_v16 = vpop.permute.xlu1 %2439 }
 0x5d9   : > { %v3307_v14 = vsel %vm3276_vm5, %v3274_v50, %v2440_v16  ;;  %v12820_v16 = vpop.f32.mrf.mxu0  ;;  %v12827_v50 = vld [vmem:[%s17927_s17 + $0x8] sm:$0xff] }
 0x5da   : > { %v3340_v9 = vsel %vm3309_vm4, %v3307_v14, %v2568_v56  ;;  %4093 = vperm.xlu1 %8646, %v12827_v50   ;;  %4195 = vperm.xlu0 %8655, %v12827_v50  }
 0x5db   : > { %v3373_v48 = vsel %vm3342_vm6, %v3340_v9, %v2696_v39  ;;  %v17976_v9 = vmov 5  }
 0x5dd   : > { %v2570_v42 = vpop.permute.xlu0 %2569 }
 0x5de   : > { %v2826_v30 = vpop.permute.xlu2 %2825  ;;  %v3341_v60 = vsel %vm3309_vm4, %v3308_v8, %v2570_v42  ;;  %vm4699_vm4 = vcmask 785408  }
 0x5e0   : > { %v2824_v22 = vpop.permute.xlu1 %2823 }
 0x5e1   : > { %v3406_v11 = vsel %vm3375_vm7, %v3373_v48, %v2824_v22  ;;  %v12822_v39 = vpop.f32.mrf.mxu0  ;;  %v17977_v48 = vmov 1  }
 0x5e2   : > { %v3439_v6 = vsel %vm3408_vm8, %v3406_v11, %v2952_v34  ;;  %v12834_v34 = vld [vmem:[%s17927_s17 + $0x18] sm:$0xff]  ;;  %8672 = vset.pattern.permute.xlu0 %v17976_v9 }
 0x5e3   : > { %v3472_v5 = vsel %vm3441_vm9, %v3439_v6, %v3080_v41  ;;  %4103 = vperm.xlu1 %8646, %v12834_v34   ;;  %v12847_v6 = vld [vmem:[%s17927_s17 + $0x10] sm:$0xff] }
 0x5e4   : > { %4098 = vperm.xlu2 %8647, %v12847_v6  }
 0x5e5   : > { %v2954_v59 = vpop.permute.xlu0 %2953 }
 0x5e6   : > { %v3210_v7 = vpop.permute.xlu2 %3209 }
 0x5e8   : > { %v3208_v55 = vpop.permute.xlu1 %3207 }
 0x5e9   : > { %v3505_v61 = vsel %vm3474_vm10, %v3472_v5, %v3208_v55  ;;  %v12853_v5 = vld [vmem:[%s17927_s17 + $0x20] sm:$0xff] }
 0x5ea   : > { %8468 = vmatmul.msk.f32.gmra.mxu0 %vm3518_vm11, %v3505_v61  ;;  %4287 = vperm.xlu0 %8672, %v12853_v5  }
 0x5eb   : > { %8648 = vset.pattern.permute.xlu1 %v17977_v48 }
 0x5ec   : > { %4135 = vperm.xlu1 %8648, %v12429_v24   ;;  %4108 = vperm.xlu2 %8647, %v12853_v5  }
 0x5ed   : > { %v13128_v17 = vpop.permute.xlu0 %4088 }
 0x5ee   : > { %18002 = vst [vmem:[#allocation303_spill] sm:$0xff] %v13128_v17 }
 0x5f0   : > { %v2698_v47 = vpop.permute.xlu1 %2697 }
 0x5f1   : > { %v3374_v21 = vsel %vm3342_vm6, %v3341_v60, %v2698_v47  ;;  %v3705_v10 = vpop.f32.mrf.mxu0 }
 0x5f2   : > { %v3407_v44 = vsel %vm3375_vm7, %v3374_v21, %v2826_v30  ;;  %8673 = vset.pattern.permute.xlu0 %v17977_v48  ;;  %vm4708_vm7 = vcmask 916480  }
 0x5f3   : > { %v3440_v56 = vsel %vm3408_vm8, %v3407_v44, %v2954_v59  ;;  %4143 = vperm.xlu0 %8673, %v12847_v6  }
 0x5f4   : > { %8651 = vset.pattern.permute.xlu1 %v17976_v9  ;;  %8649 = vset.pattern.permute.xlu2 %v17943_v3 }
 0x5f5   : > { %4271 = vperm.xlu1 %8651, %v12429_v24   ;;  %4191 = vperm.xlu2 %8649, %v12429_v24  }
 0x5f8   : > { %v3082_v54 = vpop.permute.xlu1 %3081 }
 0x5f9   : > { %v3473_v57 = vsel %vm3441_vm9, %v3440_v56, %v3082_v54  ;;  %vm4957_vm9 = vcmp.lt.s32.totalorder %v10727_v46, 4 }
 0x5fa   : > { %v3506_v13 = vsel %vm3474_vm10, %v3473_v57, %v3210_v7 }
 0x5fb   : > { %8469 = vmatmul.msk.f32.gmra.mxu0 %vm3518_vm11, %v3506_v13  ;;  %vm4940_vm11 = vcmp.lt.s32.totalorder %v10727_v46, 5 }
 0x5fd   : > { %8653 = vset.pattern.permute.xlu1 %v17978_v12  ;;  %8652 = vset.pattern.permute.xlu2 %v17979_v45 }
 0x5fe   : > { %4351 = vperm.xlu1 %8653, %v12429_v24   ;;  %4311 = vperm.xlu2 %8652, %v12429_v24  }
 0x601   : > { %v3708_v14 = vpop.f32.mrf.mxu0 }
 0x606   : > { %8656 = vset.pattern.permute.xlu1 %v17938_v1  ;;  %8654 = vset.pattern.permute.xlu2 %v17977_v48 }
 0x607   : > { %4235 = vperm.xlu1 %8656, %v12827_v50   ;;  %4139 = vperm.xlu2 %8654, %v12827_v50  }
 0x60f   : > { %8658 = vset.pattern.permute.xlu1 %v17979_v45  ;;  %8657 = vset.pattern.permute.xlu2 %v17976_v9 }
 0x610   : > { %4315 = vperm.xlu1 %8658, %v12827_v50   ;;  %4275 = vperm.xlu2 %8657, %v12827_v50  }
 0x611   : > { %v3711_v22 = vpop.f32.mrf.mxu0 }
 0x612   : > { %v3761_v57 = vmul.f32 %v12549_v15, %v3711_v22 }
 0x618   : > { %8660 = vset.pattern.permute.xlu1 %v17943_v3  ;;  %8659 = vset.pattern.permute.xlu2 %v17978_v12 }
 0x619   : > { %4199 = vperm.xlu1 %8660, %v12847_v6   ;;  %4355 = vperm.xlu2 %8659, %v12827_v50  }
 0x621   : > { %v3714_v11 = vpop.f32.mrf.mxu0  ;;  %8662 = vset.pattern.permute.xlu1 %v17976_v9  ;;  %8661 = vset.pattern.permute.xlu2 %v17938_v1 }
 0x622   : > { %v3762_v59 = vmul.f32 %v12549_v15, %v3714_v11  ;;  %v3759_v11 = vmul.f32 %v12549_v15, %v3705_v10  ;;  %4279 = vperm.xlu1 %8662, %v12847_v6   ;;  %4239 = vperm.xlu2 %8661, %v12847_v6  }
 0x62a   : > { %8664 = vset.pattern.permute.xlu1 %v17977_v48  ;;  %8663 = vset.pattern.permute.xlu2 %v17979_v45 }
 0x62b   : > { %4147 = vperm.xlu1 %8664, %v12834_v34   ;;  %4319 = vperm.xlu2 %8663, %v12847_v6  }
 0x631   : > { %v3717_v41 = vpop.f32.mrf.mxu0 }
 0x632   : > { %v3763_v60 = vmul.f32 %v12549_v15, %v3717_v41  ;;  %v3760_v41 = vmul.f32 %v12549_v15, %v3708_v14 }
 0x633   : > { %8666 = vset.pattern.permute.xlu1 %v17938_v1  ;;  %8665 = vset.pattern.permute.xlu2 %v17943_v3 }
 0x634   : > { %v3799_v13 = vadd.f32 %v12560_v58, %v3763_v60  ;;  %v3758_v60 = vmul.f32 %v12549_v15, %v12822_v39  ;;  %4243 = vperm.xlu1 %8666, %v12834_v34   ;;  %4203 = vperm.xlu2 %8665, %v12834_v34  }
 0x636   : > { %v3831_v22 = vmax.f32 %v3799_v13, 0.0  ;;  %v3795_v13 = vadd.f32 %v12560_v58, %v3759_v11 }
 0x638   : > { %v3863_v39 = vrot.slane %v3831_v22, 1 }
 0x63c   : > { %8668 = vset.pattern.permute.xlu1 %v17978_v12  ;;  %8667 = vset.pattern.permute.xlu2 %v17976_v9 }
 0x63d   : > { %4363 = vperm.xlu1 %8668, %v12834_v34   ;;  %4283 = vperm.xlu2 %8667, %v12834_v34  }
 0x641   : > { %v3720_v55 = vpop.f32.mrf.mxu0 }
 0x642   : > { %v3764_v8 = vmul.f32 %v12549_v15, %v3720_v55 }
 0x644   : > { %v3800_v56 = vadd.f32 %v12560_v58, %v3764_v8  ;;  %v3797_v8 = vadd.f32 %v12560_v58, %v3761_v57 }
 0x645   : > { %8670 = vset.pattern.permute.xlu1 %v17943_v3  ;;  %8669 = vset.pattern.permute.xlu2 %v17977_v48 }
 0x646   : > { %4207 = vperm.xlu1 %8670, %v12853_v5   ;;  %4151 = vperm.xlu2 %8669, %v12853_v5  }
 0x64e   : > { %8674 = vset.pattern.permute.xlu1 %v17979_v45  ;;  %8671 = vset.pattern.permute.xlu2 %v17938_v1 }
 0x64f   : > { %4327 = vperm.xlu1 %8674, %v12853_v5   ;;  %4247 = vperm.xlu2 %8671, %v12853_v5  }
 0x651   : > { %v3723_v61 = vpop.f32.mrf.mxu0 }
 0x652   : > { %v3765_v42 = vmul.f32 %v12549_v15, %v3723_v61 }
 0x654   : > { %v3801_v21 = vadd.f32 %v12560_v58, %v3765_v42 }
 0x656   : > { %v3833_v55 = vmax.f32 %v3801_v21, 0.0 }
 0x657   : > { %8676 = vset.pattern.permute.xlu1 %v17977_v48  ;;  %8675 = vset.pattern.permute.xlu2 %v17978_v12 }
 0x658   : > { %4367 = vperm.xlu2 %8675, %v12853_v5  }
 0x660   : > { %8677 = vset.pattern.permute.xlu2 %v17943_v3 }
 0x667   : > { %v3726_v0 = vpop.f32.mrf.mxu0 }
 0x668   : > { %v3766_v63 = vmul.f32 %v12549_v15, %v3726_v0  ;;  %v3798_v0 = vadd.f32 %v12560_v58, %v3762_v59 }
 0x66a   : > { %v3802_v30 = vadd.f32 %v12560_v58, %v3766_v63  ;;  %v3832_v63 = vmax.f32 %v3800_v56, 0.0  ;;  %v3830_v59 = vmax.f32 %v3798_v0, 0.0 }
 0x66c   : > { %v3834_v54 = vmax.f32 %v3802_v30, 0.0  ;;  %v3865_v30 = vrot.slane %v3833_v55, 1  ;;  %v3864_v56 = vrot.slane %v3832_v63, 1  ;;  %v3862_v11 = vrot.slane %v3830_v59, 1 }
 0x66e   : > { %v3866_v42 = vrot.slane %v3834_v54, 1 }
 0x678   : > { %v3729_v47 = vpop.f32.mrf.mxu0 }
 0x679   : > { %v3767_v44 = vmul.f32 %v12549_v15, %v3729_v47 }
 0x67b   : > { %v3803_v7 = vadd.f32 %v12560_v58, %v3767_v44  ;;  %v3796_v44 = vadd.f32 %v12560_v58, %v3760_v41  ;;  %v3756_v41 = vmul.f32 %v12549_v15, %v12818_v27 }
 0x67d   : > { %v3835_v61 = vmax.f32 %v3803_v7, 0.0  ;;  %v3869_v7 = vsel %vm1226_vm0, %v3865_v30, %v3866_v42 }
 0x67f   : > { %v3867_v24 = vrot.slane %v3835_v61, 1 }
 0x681   : > { %v3899_v47 = vsel %vm1226_vm0, %v3867_v24, %v12767_v37  ;;  %v3868_v14 = vsel %vm1226_vm0, %v3866_v42, %v3867_v24  ;;  %v3757_v37 = vmul.f32 %v12549_v15, %v12820_v16  ;;  %v3829_v24 = vmax.f32 %v3797_v8, 0.0 }
 0x682   : > { %v3931_v21 = vmax.f32 %v3835_v61, %v3899_v47  ;;  %v3930_v10 = vmax.f32 %v3834_v54, %v3868_v14  ;;  %v3870_v54 = vsel %vm1226_vm0, %v3864_v56, %v3865_v30  ;;  %v3964_v61 = vld [vmem:[%s17980_s19] sm:$0xff]  ;;  %v3929_v16 = vmax.f32 %v3833_v55, %v3869_v7 }
 0x683   : > { %3996 = vmatmul.f32.vlgmr.msrb.gmra.mxu0 %v3964_v61  ;;  %v3828_v42 = vmax.f32 %v3796_v44, 0.0  ;;  %v3871_v8 = vsel %vm1226_vm0, %v3863_v39, %v3864_v56  ;;  %v3928_v47 = vmax.f32 %v3832_v63, %v3870_v54  ;;  %v3793_v14 = vadd.f32 %v12560_v58, %v3757_v37 }
 0x684   : > { %v3963_v57 = vmax.f32 %v3931_v21, %v12777_v19  ;;  %v3962_v0 = vmax.f32 %v3930_v10, %v12784_v36  ;;  %v3794_v19 = vadd.f32 %v12560_v58, %v3758_v60  ;;  %v3961_v30 = vmax.f32 %v3929_v16, %v3931_v21 }
 0x685   : > { %v3827_v15 = vmax.f32 %v3795_v13, 0.0  ;;  %v3861_v27 = vrot.slane %v3829_v24, 1  ;;  %v3872_v36 = vsel %vm1226_vm0, %v3862_v11, %v3863_v39  ;;  %v3960_v55 = vmax.f32 %v3928_v47, %v3930_v10 }
 0x686   : > { %4021 = vmatpush.msra.mxu2 %v3963_v57  ;;  %v3927_v60 = vmax.f32 %v3831_v22, %v3871_v8  ;;  %v3792_v44 = vadd.f32 %v12560_v58, %v3756_v41  ;;  %v3826_v21 = vmax.f32 %v3794_v19, 0.0  ;;  %v3860_v63 = vrot.slane %v3828_v42, 1  ;;  %v3966_v22 = vld [vmem:[%s17980_s19 + $0x10] sm:$0xff] }
 0x687   : > { %v3873_v56 = vsel %vm1226_vm0, %v3861_v27, %v3862_v11  ;;  %v3926_v37 = vmax.f32 %v3830_v59, %v3872_v36  ;;  %v3825_v57 = vmax.f32 %v3793_v14, 0.0  ;;  %v3859_v13 = vrot.slane %v3827_v15, 1 }
 0x688   : > { %4022 = vmatpush.msra.mxu2 %v3962_v0  ;;  %v3959_v7 = vmax.f32 %v3927_v60, %v3929_v16  ;;  %v3874_v10 = vsel %vm1226_vm0, %v3860_v63, %v3861_v27  ;;  %v3925_v39 = vmax.f32 %v3829_v24, %v3873_v56  ;;  %v3824_v54 = vmax.f32 %v3792_v44, 0.0 }
 0x689   : > { %v3958_v58 = vmax.f32 %v3926_v37, %v3928_v47  ;;  %v3858_v61 = vrot.slane %v3826_v21, 1  ;;  %v3875_v41 = vsel %vm1226_vm0, %v3859_v13, %v3860_v63  ;;  %v3924_v0 = vmax.f32 %v3828_v42, %v3874_v10  ;;  %v3978_v10 = vld [vmem:[%s17980_s19 + $0x70] sm:$0xff] }
 0x68a   : > { %4023 = vmatpush.msra.mxu2 %v3961_v30  ;;  %v3957_v59 = vmax.f32 %v3925_v39, %v3927_v60  ;;  %v3857_v16 = vrot.slane %v3825_v57, 1  ;;  %v3923_v8 = vmax.f32 %v3827_v15, %v3875_v41  ;;  %v3856_v24 = vrot.slane %v3824_v54, 1  ;;  %v3968_v15 = vld [vmem:[%s17980_s19 + $0x20] sm:$0xff] }
 0x68b   : > { %3999 = vmatmul.f32.gmra.mxu0 %v3966_v22  ;;  %v3876_v19 = vsel %vm1226_vm0, %v3858_v61, %v3859_v13  ;;  %v3956_v11 = vmax.f32 %v3924_v0, %v3926_v37  ;;  %v3967_v37 = vld [vmem:[%s17980_s19 + $0x18] sm:$0xff]  ;;  %v3973_v22 = vld [vmem:[%s17980_s19 + $0x48] sm:$0xff] }
 0x68c   : > { %4024 = vmatpush.msra.mxu2 %v3960_v55  ;;  %v3877_v30 = vsel %vm1226_vm0, %v3857_v16, %v3858_v61  ;;  %v3955_v47 = vmax.f32 %v3923_v8, %v3925_v39  ;;  %v3922_v42 = vmax.f32 %v3826_v21, %v3876_v19  ;;  %v3878_v14 = vsel %vm1226_vm0, %v3856_v24, %v3857_v16  ;;  %v3971_v13 = vld [vmem:[%s17980_s19 + $0x38] sm:$0xff]  ;;  %v3977_v39 = vld [vmem:[%s17980_s19 + $0x68] sm:$0xff]  ;;  %v13027_v61 = vpop.permute.xlu1 %4093 }
 0x68d   : > { %v3921_v36 = vmax.f32 %v3825_v57, %v3877_v30  ;;  %v3879_v55 = vsel %vm1226_vm0, %v12730_v40, %v3856_v24  ;;  %v3920_v44 = vmax.f32 %v3824_v54, %v3878_v14  ;;  %v3970_v40 = vld [vmem:[%s17980_s19 + $0x30] sm:$0xff]  ;;  %v12991_v57 = vld [vmem:[%s17927_s17 + $0x28] sm:$0xff]  ;;  %v3979_v54 = vld [vmem:[%s17980_s19 + $0x78] sm:$0xff]  ;;  %17981 = vst [vmem:[#allocation272_spill] sm:$0xff] %v13027_v61 }
 0x68e   : > { %4025 = vmatpush.msra.mxu2 %v3959_v7  ;;  %v3954_v27 = vmax.f32 %v3922_v42, %v3924_v0  ;;  %v3919_v63 = vmax.f32 %v3823_v49, %v3879_v55  ;;  %v3965_v49 = vld [vmem:[%s17980_s19 + $0x8] sm:$0xff]  ;;  %4155 = vperm.xlu1 %8676, %v12991_v57   ;;  %v13034_v0 = vpop.permute.xlu2 %4098 }
 0x68f   : > { %v3953_v60 = vmax.f32 %v3921_v36, %v3923_v8  ;;  %v3952_v21 = vmax.f32 %v3920_v44, %v3922_v42  ;;  %v3950_v7 = vmax.f32 %v12746_v53, %v3920_v44  ;;  %v3969_v53 = vld [vmem:[%s17980_s19 + $0x28] sm:$0xff]  ;;  %4211 = vperm.xlu2 %8677, %v12991_v57   ;;  %17984 = vst [vmem:[#allocation276_spill] sm:$0xff] %v13034_v0 }
 0x690   : > { %4026 = vmatpush.msra.mxu2 %v3958_v58  ;;  %v3951_v56 = vmax.f32 %v3919_v63, %v3921_v36  ;;  %v3949_v4 = vmax.f32 %v12658_v26, %v3919_v63  ;;  %v3972_v26 = vld [vmem:[%s17980_s19 + $0x40] sm:$0xff]  ;;  %v3975_v58 = vld [vmem:[%s17980_s19 + $0x58] sm:$0xff] }
 0x692   : > { %4027 = vmatpush.msra.mxu2 %v3957_v59 }
 0x693   : > { %4002 = vmatmul.f32.gmra.mxu0 %v3968_v15 }
 0x694   : > { %4028 = vmatpush.msra.mxu2 %v3956_v11  ;;  %v13030_v41 = vpop.permute.xlu1 %4103 }
 0x695   : > { %17982 = vst [vmem:[#allocation255_spill] sm:$0xff] %v13030_v41 }
 0x696   : > { %4029 = vmatpush.msra.mxu2 %v3955_v47  ;;  %8683 = vset.pattern.permute.xlu1 %v17938_v1  ;;  %v13038_v16 = vpop.permute.xlu2 %4108 }
 0x697   : > { %4251 = vperm.xlu1 %8683, %v12991_v57   ;;  %8705 = vset.pattern.permute.xlu2 %v17978_v12  ;;  %17986 = vst [vmem:[#allocation258_spill] sm:$0xff] %v13038_v16 }
 0x698   : > { %4030 = vmatpush.msra.mxu2 %v3954_v27 }
 0x69a   : > { %4031 = vmatpush.msra.mxu2 %v3953_v60 }
 0x69b   : > { %4005 = vmatmul.f32.gmra.mxu0 %v3970_v40 }
 0x69c   : > { %4032 = vmatpush.msra.mxu2 %v3952_v21  ;;  %v13032_v59 = vpop.permute.xlu1 %4135 }
 0x69d   : > { %17983 = vst [vmem:[#allocation254_spill] sm:$0xff] %v13032_v59 }
 0x69e   : > { %4033 = vmatpush.msra.mxu2 %v3951_v56  ;;  %v13042_v11 = vpop.permute.xlu2 %4191 }
 0x69f   : > { %8694 = vset.pattern.permute.xlu1 %v17976_v9  ;;  %17988 = vst [vmem:[#allocation263_spill] sm:$0xff] %v13042_v11 }
 0x6a0   : > { %4034 = vmatpush.msra.mxu2 %v3950_v7  ;;  %4291 = vperm.xlu1 %8694, %v12991_v57  }
 0x6a2   : > { %4035 = vmatpush.msra.mxu2 %v3949_v4 }
 0x6a3   : > { %4008 = vmatmul.f32.gmra.mxu0 %v3972_v26 }
 0x6a4   : > { %4036 = vmatpush.msra.mxu2 %v3948_v25  ;;  %v3976_v25 = vld [vmem:[%s17980_s19 + $0x60] sm:$0xff]  ;;  %v13036_v5 = vpop.permute.xlu1 %4271  ;;  %s18026_s19 = smov 112  }
 0x6a5   : > { %4037 = vmatmul.f32.vlgmr.msra.gmra.mxu2 %v3965_v49  ;;  %17985 = vst [vmem:[#allocation259_spill] sm:$0xff] %v13036_v5 }
 0x6a6   : > { %v13046_v30 = vpop.permute.xlu2 %4311 }
 0x6a7   : > { %17990 = vst [vmem:[#allocation269_spill] sm:$0xff] %v13046_v30 }
 0x6a8   : > { %8717 = vset.pattern.permute.xlu1 %v17943_v3 }
 0x6ab   : > { %4011 = vmatmul.f32.gmra.mxu0 %v3974_v28 }
 0x6ac   : > { %v13040_v19 = vpop.permute.xlu1 %4351 }
 0x6ad   : > { %4040 = vmatmul.f32.gmra.mxu2 %v3967_v37  ;;  %17987 = vst [vmem:[#allocation265_spill] sm:$0xff] %v13040_v19 }
 0x6ae   : > { %v13050_v14 = vpop.permute.xlu2 %4139 }
 0x6af   : > { %17992 = vst [vmem:[#allocation289_spill] sm:$0xff] %v13050_v14 }
 0x6b3   : > { %4014 = vmatmul.f32.gmra.mxu0 %v3976_v25 }
 0x6b4   : > { %v13044_v8 = vpop.permute.xlu1 %4235 }
 0x6b5   : > { %4043 = vmatmul.f32.gmra.mxu2 %v3969_v53  ;;  %17989 = vst [vmem:[#allocation271_spill] sm:$0xff] %v13044_v8 }
 0x6b6   : > { %v13054_v60 = vpop.permute.xlu2 %4275 }
 0x6b7   : > { %17994 = vst [vmem:[#allocation292_spill] sm:$0xff] %v13054_v60 }
 0x6bb   : > { %4017 = vmatmul.f32.gmra.mxu0 %v3978_v10 }
 0x6bc   : > { %v13048_v47 = vpop.permute.xlu1 %4315 }
 0x6bd   : > { %4046 = vmatmul.f32.gmra.mxu2 %v3971_v13  ;;  %17991 = vst [vmem:[#allocation290_spill] sm:$0xff] %v13048_v47 }
 0x6be   : > { %v13066_v26 = vpop.permute.xlu2 %4355 }
 0x6bf   : > { %17998 = vst [vmem:[#allocation274_spill] sm:$0xff] %v13066_v26 }
 0x6c4   : > { %v13052_v15 = vpop.permute.xlu1 %4199 }
 0x6c5   : > { %4049 = vmatmul.f32.gmra.mxu2 %v3973_v22  ;;  %17993 = vst [vmem:[#allocation301_spill] sm:$0xff] %v13052_v15 }
 0x6cc   : > { %v13056_v44 = vpop.permute.xlu1 %4279 }
 0x6cd   : > { %4052 = vmatmul.f32.gmra.mxu2 %v3975_v58  ;;  %17995 = vst [vmem:[#allocation283_spill] sm:$0xff] %v13056_v44 }
 0x6d4   : > { %v13068_v37 = vpop.permute.xlu1 %4147 }
 0x6d5   : > { %4055 = vmatmul.f32.gmra.mxu2 %v3977_v39  ;;  %17999 = vst [vmem:[#allocation309_spill] sm:$0xff] %v13068_v37 }
 0x6dd   : > { %4058 = vmatmul.f32.gmra.mxu2 %v3979_v54 }
 0x700   : > { %v3997_v24 = vpop.f32.mrf.mxu0 }
 0x708   : > { %v4000_v42 = vpop.f32.mrf.mxu0 }
 0x710   : > { %v4003_v36 = vpop.f32.mrf.mxu0 }
 0x718   : > { %v4006_v56 = vpop.f32.mrf.mxu0 }
 0x728   : > { %v4038_v27 = vpop.f32.mrf.mxu2 }
 0x729   : > { %v13060_v63 = vadd.f32 %v4038_v27, %v3997_v24  ;;  %v13087_v24 = vpop.f32.mrf.mxu0 }
 0x72b   : > { %v4174_v49 = vrot.slane %v13060_v63, 1  ;;  %v4070_v27 = vrot.slane %v13060_v63, 7  ;;  %v4167_v51 = vmul.f32 %v13050_v14, %v13060_v63 }
 0x730   : > { %v4041_v55 = vpop.f32.mrf.mxu2 }
 0x731   : > { %v13058_v21 = vadd.f32 %v4041_v55, %v4000_v42 }
 0x733   : > { %17996 = vst [vmem:[#allocation314_spill] sm:$0xff] %v13058_v21  ;;  %v4175_v40 = vrot.slane %v13058_v21, 1  ;;  %v4071_v58 = vrot.slane %v13058_v21, 7 }
 0x735   : > { %v13073_v53 = vsel %vm1226_vm0, %v4174_v49, %v4175_v40  ;;  %v13099_v55 = vsel %vm809_vm1, %v4070_v27, %v4071_v58 }
 0x736   : > { %v4302_v10 = vmul.f32 %v13036_v5, %v13073_v53 }
 0x738   : > { %v4044_v7 = vpop.f32.mrf.mxu2 }
 0x739   : > { %v13063_v4 = vadd.f32 %v4044_v7, %v4003_v36 }
 0x73b   : > { %17997 = vst [vmem:[#allocation275_spill] sm:$0xff] %v13063_v4  ;;  %v17198_v28 = vrot.slane %v13063_v4, 1  ;;  %v4072_v13 = vrot.slane %v13063_v4, 7 }
 0x73d   : > { %v13079_v25 = vsel %vm1226_vm0, %v4175_v40, %v17198_v28  ;;  %v13094_v36 = vsel %vm809_vm1, %v4071_v58, %v4072_v13 }
 0x73e   : > { %v4303_v22 = vmul.f32 %v13054_v60, %v13079_v25  ;;  %v4343_v7 = vmul.f32 %v13048_v47, %v13094_v36  ;;  %v8695_v47 = vpack.i.bf16 %v13058_v21, %v13060_v63 }
 0x740   : > { %v4047_v39 = vpop.f32.mrf.mxu2  ;;  %v8700_v54 = vpack.i.bf16 %v4303_v22, %v4302_v10  ;;  %v13106_v10 = vpop.permute.xlu1 %4243 }
 0x741   : > { %v13089_v42 = vadd.f32 %v4047_v39, %v4006_v56  ;;  %v13104_v56 = vpop.permute.xlu2 %4239  ;;  %18001 = vst [vmem:[#allocation293_spill] sm:$0xff] %v13106_v10  ;;  %v4342_v39 = vmul.f32 %v13046_v30, %v13099_v55 }
 0x742   : > { %8701 = vrot.lane.b32.xlu1 %v8700_v54, %s17215_s28  ;;  %18000 = vst [vmem:[#allocation294_spill] sm:$0xff] %v13104_v56  ;;  %v13118_v58 = vmul.f32 %v13104_v56, %v13094_v36  ;;  %s18021_s28 = smov 32  }
 0x743   : > { %v17199_v40 = vrot.slane %v13089_v42, 7  ;;  %v8706_v31 = vpack.i.bf16 %v4343_v7, %v4342_v39  ;;  %v13141_v7 = vpop.permute.xlu0 %4113 }
 0x744   : > { %18003 = vst [vmem:[#allocation296_spill] sm:$0xff] %v13141_v7 }
 0x745   : > { %v13112_v22 = vsel %vm809_vm1, %v4072_v13, %v17199_v40  ;;  %v13131_v13 = vpop.f32.mrf.mxu0  ;;  %v13136_v40 = vld [vmem:[%s17927_s17 + $0x30] sm:$0xff] }
 0x746   : > { %v13122_v54 = vmul.f32 %v13106_v10, %v13112_v22 }
 0x748   : > { %v13124_v28 = vpop.f32.mrf.mxu2 }
 0x749   : > { %v13160_v33 = vpop.permute.xlu2 %4319 }
 0x74a   : > { %8707 = vrot.lane.b32.xlu1 %v8706_v31, %s17205_s24  ;;  %18005 = vst [vmem:[#allocation316_spill] sm:$0xff] %v13160_v33  ;;  %s9556_s24 = smov 90  }
 0x74b   : > { %v13148_v31 = vpop.permute.xlu0 %4231 }
 0x74c   : > { %18004 = vst [vmem:[#allocation285_spill] sm:$0xff] %v13148_v31 }
 0x74d   : > { %v13143_v39 = vpop.f32.mrf.mxu0 }
 0x750   : > { %v13138_v29 = vpop.f32.mrf.mxu2 }
 0x752   : > { %4215 = vperm.xlu1 %8717, %v13136_v40  }
 0x753   : > { %v13163_v43 = vpop.permute.xlu0 %4195 }
 0x754   : > { %18006 = vst [vmem:[#allocation279_spill] sm:$0xff] %v13163_v43  ;;  %v4223_v18 = vmul.f32 %v13163_v43, %v13073_v53 }
 0x755   : > { %v4018_v23 = vpop.f32.mrf.mxu0 }
 0x758   : > { %v13145_v35 = vpop.f32.mrf.mxu2 }
 0x75a   : > { %8719 = vset.pattern.permute.xlu1 %v17976_v9 }
 0x75b   : > { %4295 = vperm.xlu1 %8719, %v13136_v40  }
 0x760   : > { %v4059_v20 = vpop.f32.mrf.mxu2 }
 0x761   : > { %v13151_v32 = vadd.f32 %v4059_v20, %v4018_v23 }
 0x763   : > { %8721 = vset.pattern.permute.xlu1 %v17978_v12  ;;  %v4166_v52 = vmul.f32 %v13032_v59, %v13151_v32  ;;  %v17201_v62 = vrot.slane %v13151_v32, 1  ;;  %v17202_v2 = vrot.slane %v13151_v32, 7 }
 0x764   : > { %4375 = vperm.xlu1 %8721, %v13136_v40  }
 0x765   : > { %v8678_v23 = vpack.i.bf16 %v4167_v51, %v4166_v52  ;;  %v13169_v20 = vsel %vm1226_vm0, %v17201_v62, %v4174_v49  ;;  %v13179_v30 = vsel %vm809_vm1, %v17202_v2, %v4070_v27  ;;  %v17207_v52 = vrot.slane %v13089_v42, 1  ;;  %v13189_v62 = vld [vmem:[%s17927_s17 + $0x38] sm:$0xff] }
 0x766   : > { %v4222_v38 = vmul.f32 %v13042_v11, %v13169_v20  ;;  %v4262_v49 = vmul.f32 %v13148_v31, %v13179_v30  ;;  %v4263_v27 = vmul.f32 %v13044_v8, %v13099_v55  ;;  %v4224_v8 = vmul.f32 %v13052_v15, %v13079_v25 }
 0x767   : > { %8679 = vrot.lane.b32.xlu0 %v8678_v23, %s17223_s6 }
 0x768   : > { %v8684_v51 = vpack.i.bf16 %v4223_v18, %v4222_v38  ;;  %v18007_v38 = vrot.slane %v13063_v4, 1  ;;  %v8689_v23 = vpack.i.bf16 %v4263_v27, %v4262_v49  ;;  %v4383_v49 = vmul.f32 %v13066_v26, %v13063_v4 }
 0x769   : > { %v4382_v27 = vmul.f32 %v13040_v19, %v13058_v21  ;;  %v4169_v26 = vmul.f32 %v13068_v37, %v13063_v4 }
 0x76a   : > { %8685 = vrot.lane.b32.xlu2 %v8684_v51, %s17217_s7  ;;  %v13200_v18 = vsel %vm1226_vm0, %v18007_v38, %v17207_v52  ;;  %v13203_v51 = vpop.permute.xlu2 %4203 }
 0x76b   : > { %18008 = vst [vmem:[#allocation278_spill] sm:$0xff] %v13203_v51  ;;  %v4225_v2 = vmul.f32 %v13203_v51, %v13200_v18 }
 0x76c   : > { %8723 = vset.pattern.permute.xlu1 %v17943_v3 }
 0x76d   : > { %4219 = vperm.xlu1 %8723, %v13189_v62   ;;  %v8731_v38 = vpack.i.bf16 %v4225_v2, %v4224_v8  ;;  %v8711_v2 = vpack.i.bf16 %v4383_v49, %v4382_v27  ;;  %v13227_v8 = vpop.permute.xlu1 %4363  ;;  %v9487_v27 = vld [vmem:[%s17927_s17] sm:$0xff] }
 0x76e   : > { %18009 = vst [vmem:[#allocation311_spill] sm:$0xff] %v13227_v8 }
 0x76f   : > { %8690 = vrot.lane.b32.xlu0 %v8689_v23, %s17229_s25  ;;  %v18011_v23 = vmov 8  }
 0x772   : > { %8696 = vrot.lane.b32.xlu2 %v8695_v47, %s17225_s0  ;;  %v13231_v47 = vpop.permute.xlu2 %4283 }
 0x773   : > { %18010 = vst [vmem:[#allocation261_spill] sm:$0xff] %v13231_v47 }
 0x775   : > { %8732 = vrot.lane.b32.xlu1 %v8731_v38, %s17217_s7  ;;  %v13239_v38 = vpop.permute.xlu0 %4287  ;;  %s18037_s7 = smov 48  }
 0x776   : > { %8741 = vset.pattern.permute.xlu1 %v17976_v9 }
 0x777   : > { %4159 = vperm.xlu0 %8673, %v13136_v40  }
 0x77a   : > { %4371 = vperm.xlu2 %8705, %v12991_v57   ;;  %v13241_v49 = vpop.permute.xlu2 %4151 }
 0x77d   : > { %4299 = vperm.xlu1 %8741, %v13189_v62   ;;  %v13252_v52 = vpop.permute.xlu0 %4143 }
 0x77e   : > { %18014 = vst [vmem:[#allocation226_spill] sm:$0xff] %v13252_v52 }
 0x77f   : > { %8716 = vset.pattern.permute.xlu0 %v17979_v45 }
 0x780   : > { %4323 = vperm.xlu0 %8716, %v12834_v34   ;;  %v13235_v34 = vpop.permute.xlu1 %4207 }
 0x781   : > { %18012 = vst [vmem:[#allocation297_spill] sm:$0xff] %v13235_v34 }
 0x782   : > { %8712 = vrot.lane.b32.xlu2 %v8711_v2, %s17212_s3  ;;  %v13254_v19 = vpop.permute.xlu2 %4247  ;;  %s18015_s3 = sld [smem:[#allocation327_spill]] }
 0x783   : > { %8718 = vset.pattern.permute.xlu2 %v17938_v1 }
 0x785   : > { %8748 = vset.pattern.permute.xlu1 %v17979_v45 }
 0x786   : > { %4339 = vperm.xlu1 %8748, %v13189_v62  }
 0x788   : > { %4331 = vperm.xlu0 %8716, %v12991_v57   ;;  %v13248_v2 = vpop.permute.xlu1 %4327  ;;  %v4732_v11 = vld [vmem:[%s18015_s3 + $0x78] sm:$0xff]  ;;  %v4731_v14 = vld [vmem:[%s18015_s3 + $0x70] sm:$0xff] }
 0x789   : > { %18013 = vst [vmem:[#allocation305_spill] sm:$0xff] %v13248_v2  ;;  %4759 = vmatpush.msra.mxu3 %v4732_v11  ;;  %v18017_v11 = vpack.i.bf16 %v13122_v54, %v13118_v58  ;;  %v4727_v54 = vld [vmem:[%s18015_s3 + $0x50] sm:$0xff] }
 0x78a   : > { %4255 = vperm.xlu2 %8718, %v13136_v40   ;;  %v13272_v59 = vpop.permute.xlu2 %4367 }
 0x78b   : > { %18016 = vst [vmem:[#allocation287_spill] sm:$0xff] %v13272_v59  ;;  %4760 = vmatpush.msra.mxu3 %v4731_v14  ;;  %v4729_v14 = vld [vmem:[%s18015_s3 + $0x60] sm:$0xff] }
 0x78e   : > { %8764 = vset.pattern.permute.xlu1 %v18011_v23 }
 0x790   : > { %4335 = vperm.xlu0 %8716, %v13136_v40   ;;  %v13262_v43 = vpop.permute.xlu1 %4155 }
 0x792   : > { %8720 = vset.pattern.permute.xlu2 %v18011_v23 }
 0x793   : > { %4391 = vperm.xlu2 %8720, %v9487_v27   ;;  %v4168_v27 = vmul.f32 %v13252_v52, %v13058_v21 }
 0x795   : > { %v8724_v31 = vpack.i.bf16 %v4169_v26, %v4168_v27  ;;  %v8743_v26 = vpack.i.bf16 %v13089_v42, %v13063_v4  ;;  %v13283_v27 = vadd.f32 %v13124_v28, %v13087_v24  ;;  %v4728_v24 = vld [vmem:[%s18015_s3 + $0x58] sm:$0xff] }
 0x797   : > { %v4178_v28 = vrot.slane %v13283_v27, 1 }
 0x798   : > { %8729 = vset.pattern.permute.xlu0 %v17938_v1  ;;  %v13285_v5 = vpop.permute.xlu1 %4251 }
 0x799   : > { %4259 = vperm.xlu0 %8729, %v13189_v62  }
 0x79b   : > { %8722 = vset.pattern.permute.xlu2 %v17977_v48 }
 0x79c   : > { %4163 = vperm.xlu2 %8722, %v13189_v62  }
 0x7a1   : > { %8730 = vset.pattern.permute.xlu0 %v17978_v12 }
 0x7a2   : > { %4359 = vperm.xlu0 %8730, %v12847_v6  }
 0x7a4   : > { %8725 = vrot.lane.b32.xlu2 %v8724_v31, %s17223_s6  ;;  %v13278_v31 = vadd.f32 %v13138_v29, %v13131_v13  ;;  %v4730_v29 = vld [vmem:[%s18015_s3 + $0x68] sm:$0xff]  ;;  %v13302_v13 = vpop.permute.xlu2 %4211  ;;  %s18022_s6 = smov 80  }
 0x7a5   : > { %8742 = vset.pattern.permute.xlu2 %v18011_v23  ;;  %4761 = vmatpush.msra.mxu3 %v4730_v29  ;;  %18018 = vst [vmem:[#allocation318_spill] sm:$0xff] %v13302_v13 }
 0x7a6   : > { %v17227_v60 = vrot.slane %v13278_v31, 1 }
 0x7a7   : > { %4762 = vmatpush.msra.mxu3 %v4729_v14 }
 0x7a8   : > { %v13308_v58 = vsel %vm1226_vm0, %v4178_v28, %v17227_v60  ;;  %v13325_v60 = vpop.permute.xlu1 %4291 }
 0x7a9   : > { %4763 = vmatpush.msra.mxu3 %v4728_v24  ;;  %v4227_v29 = vmul.f32 %v13302_v13, %v13308_v58  ;;  %18020 = vst [vmem:[#allocation264_spill] sm:$0xff] %v13325_v60  ;;  %v4725_v24 = vld [vmem:[%s18015_s3 + $0x40] sm:$0xff]  ;;  %v4724_v13 = vld [vmem:[%s18015_s3 + $0x38] sm:$0xff] }
 0x7aa   : > { %8744 = vrot.lane.b32.xlu0 %v8743_v26, %s17225_s0  ;;  %v18019_v26 = vrot.slane %v13089_v42, 1 }
 0x7ab   : > { %4764 = vmatpush.msra.mxu3 %v4727_v54 }
 0x7ac   : > { %8737 = vrot.lane.b32.xlu2 %v18017_v11, %s17229_s25  ;;  %v13318_v11 = vsel %vm1226_vm0, %v18019_v26, %v4178_v28  ;;  %v4726_v28 = vld [vmem:[%s18015_s3 + $0x48] sm:$0xff]  ;;  %s18034_s25 = smov 16  }
 0x7ad   : > { %v4226_v14 = vmul.f32 %v13235_v34, %v13318_v11  ;;  %v4305_v10 = vmul.f32 %v13231_v47, %v13318_v11  ;;  %4765 = vmatpush.msra.mxu3 %v4726_v28 }
 0x7af   : > { %v8770_v26 = vpack.i.bf16 %v4227_v29, %v4226_v14  ;;  %4766 = vmatpush.msra.mxu3 %v4725_v24  ;;  %v4723_v29 = vld [vmem:[%s18015_s3 + $0x30] sm:$0xff]  ;;  %v4722_v14 = vld [vmem:[%s18015_s3 + $0x28] sm:$0xff]  ;;  %v4720_v24 = vld [vmem:[%s18015_s3 + $0x18] sm:$0xff] }
 0x7b1   : > { %4767 = vmatpush.msra.mxu3 %v4724_v13  ;;  %v4721_v13 = vld [vmem:[%s18015_s3 + $0x20] sm:$0xff] }
 0x7b2   : > { %4379 = vperm.xlu0 %8730, %v13189_v62  }
 0x7b3   : > { %4768 = vmatpush.msra.mxu3 %v4723_v29 }
 0x7b4   : > { %4395 = vperm.xlu2 %8742, %v12827_v50   ;;  %v4304_v50 = vmul.f32 %v13056_v44, %v13200_v18  ;;  %v13349_v28 = vpop.permute.xlu1 %8701 }
 0x7b5   : > { %4769 = vmatpush.msra.mxu3 %v4722_v14  ;;  %v4717_v14 = vld [vmem:[%s18015_s3] sm:$0xff] }
 0x7b6   : > { %v8749_v54 = vpack.i.bf16 %v4305_v10, %v4304_v50  ;;  %v8780_v10 = vpack.i.bf16 %v13278_v31, %v13283_v27  ;;  %v4719_v50 = vld [vmem:[%s18015_s3 + $0x10] sm:$0xff] }
 0x7b7   : > { %4770 = vmatpush.msra.mxu3 %v4721_v13 }
 0x7b9   : > { %4771 = vmatpush.msra.mxu3 %v4720_v24  ;;  %v4733_v24 = vld [vmem:[%s18015_s3 + $0x80] sm:$0xff] }
 0x7ba   : > { %8771 = vrot.lane.b32.xlu0 %v8770_v26, %s18021_s28 }
 0x7bb   : > { %8816 = vset.pattern.permute.xlu0 %v18011_v23  ;;  %4772 = vmatpush.msra.mxu3 %v4719_v50 }
 0x7bc   : > { %8750 = vrot.lane.b32.xlu2 %v8749_v54, %s18022_s6  ;;  %v4718_v54 = vld [vmem:[%s18015_s3 + $0x8] sm:$0xff]  ;;  %v8708_v29 = vpop.permute.xlu1 %8707 }
 0x7bd   : > { %4773 = vmatpush.msra.mxu3 %v4718_v54  ;;  %v13379_v54 = vadd.f32 %v13145_v35, %v13143_v39 }
 0x7bf   : > { %4774 = vmatpush.msra.mxu3 %v4717_v14  ;;  %v4386_v14 = vmul.f32 %v13272_v59, %v13278_v31  ;;  %v17243_v44 = vrot.slane %v13379_v54, 7 }
 0x7c2   : > { %8781 = vrot.lane.b32.xlu0 %v8780_v10, %s18023_s16  ;;  %v4734_v10 = vld [vmem:[%s18015_s3 + $0x88] sm:$0xff] }
 0x7c3   : > { %4814 = vmatpush.msra.mxu1 %v4734_v10 }
 0x7c4   : > { %v8686_v26 = vpop.permute.xlu2 %8685  ;;  %v13375_v50 = vpop.permute.xlu1 %4215 }
 0x7c5   : > { %4815 = vmatpush.msra.mxu1 %v4733_v24  ;;  %18024 = vst [vmem:[#allocation281_spill] sm:$0xff] %v13375_v50  ;;  %v18027_v24 = vrot.slane %v13151_v32, 7  ;;  %v8688_v37 = vunpack.i.h.bf16 %v8686_v26 }
 0x7c7   : > { %v13395_v35 = vsel %vm809_vm1, %v17243_v44, %v18027_v24  ;;  %v8687_v24 = vunpack.i.l.bf16 %v8686_v26  ;;  %v8709_v26 = vunpack.i.l.bf16 %v8708_v29 }
 0x7cc   : > { %v8697_v13 = vpop.permute.xlu2 %8696 }
 0x7cd   : > { %v13397_v39 = vpop.permute.xlu1 %4295 }
 0x7d4   : > { %v13381_v34 = vpop.permute.xlu2 %4371 }
 0x7d5   : > { %18025 = vst [vmem:[#allocation313_spill] sm:$0xff] %v13381_v34  ;;  %v4387_v10 = vmul.f32 %v13381_v34, %v13379_v54 }
 0x7d6   : > { %v13413_v3 = vpop.permute.xlu1 %4375 }
 0x7d7   : > { %v8795_v47 = vpack.i.bf16 %v4387_v10, %v4386_v14  ;;  %v4126_v14 = vmul.f32 %v13128_v17, %v13395_v35  ;;  %18029 = vst [vmem:[#allocation299_spill] sm:$0xff] %v13413_v3 }
 0x7d9   : > { %v8680_v56 = vpop.permute.xlu0 %8679  ;;  %8796 = vrot.lane.b32.xlu0 %v8795_v47, %s18026_s19  ;;  %v4127_v47 = vmul.f32 %v13027_v61, %v13179_v30  ;;  %v8703_v61 = vunpack.i.l.bf16 %v13349_v28 }
 0x7da   : > { %v8682_v59 = vunpack.i.h.bf16 %v8680_v56  ;;  %v8681_v51 = vunpack.i.l.bf16 %v8680_v56  ;;  %v8698_v56 = vunpack.i.l.bf16 %v8697_v13 }
 0x7dc   : > { %v8713_v15 = vpop.permute.xlu2 %8712  ;;  %v4655_v10 = vsel %vm4654_vm12, %v4126_v14, %v8681_v51  ;;  %v4656_v34 = vsel %vm4654_vm12, %v4127_v47, %v8682_v59  ;;  %v8699_v47 = vunpack.i.h.bf16 %v8697_v13  ;;  %v8710_v13 = vunpack.i.h.bf16 %v8708_v29 }
 0x7dd   : > { %v4664_v4 = vsel %vm4663_vm13, %v4655_v10, %v8687_v24  ;;  %v4665_v17 = vsel %vm4663_vm13, %v4656_v34, %v8688_v37  ;;  %v8714_v10 = vunpack.i.l.bf16 %v8713_v15 }
 0x7e1   : > { %v8691_v44 = vpop.permute.xlu0 %8690 }
 0x7e2   : > { %v8693_v52 = vunpack.i.h.bf16 %v8691_v44  ;;  %v8692_v21 = vunpack.i.l.bf16 %v8691_v44 }
 0x7e4   : > { %v4674_v51 = vsel %vm4672_vm14, %v4665_v17, %v8693_v52  ;;  %v4673_v59 = vsel %vm4672_vm14, %v4664_v4, %v8692_v21  ;;  %v13410_v14 = vpop.permute.xlu2 %4255  ;;  %v8704_v17 = vunpack.i.h.bf16 %v13349_v28 }
 0x7e5   : > { %18028 = vst [vmem:[#allocation267_spill] sm:$0xff] %v13410_v14  ;;  %v4682_v44 = vsel %vm4681_vm15, %v4673_v59, %v8698_v56  ;;  %v4683_v24 = vsel %vm4681_vm15, %v4674_v51, %v8699_v47  ;;  %v18030_v47 = vrot.slane %v13089_v42, 7 }
 0x7e6   : > { %v4691_v37 = vsel %vm4690_vm2, %v4682_v44, %v8703_v61  ;;  %v4692_v52 = vsel %vm4690_vm2, %v4683_v24, %v8704_v17  ;;  %v4074_v61 = vrot.slane %v13283_v27, 7  ;;  %v8715_v44 = vunpack.i.h.bf16 %v8713_v15 }
 0x7e7   : > { %v4700_v34 = vsel %vm4699_vm4, %v4691_v37, %v8709_v26  ;;  %v4701_v59 = vsel %vm4699_vm4, %v4692_v52, %v8710_v13  ;;  %v13429_v26 = vpop.permute.xlu1 %4219  ;;  %v4344_v15 = vmul.f32 %v13160_v33, %v13112_v22  ;;  %v4075_v52 = vrot.slane %v13278_v31, 7 }
 0x7e8   : > { %v4709_v21 = vsel %vm4708_vm7, %v4700_v34, %v8714_v10  ;;  %v4710_v28 = vsel %vm4708_vm7, %v4701_v59, %v8715_v44  ;;  %v13437_v29 = vsel %vm809_vm1, %v18030_v47, %v4074_v61  ;;  %v4180_v47 = vrot.slane %v13379_v54, 1 }
 0x7e9   : > { %v13420_v4 = vpop.permute.xlu0 %4159  ;;  %4775 = vmatmul.f32.vlgmr.msra.gmra.mxu3 %v4709_v21  ;;  %v13460_v44 = vsel %vm809_vm1, %v4074_v61, %v4075_v52  ;;  %v4388_v33 = vmul.f32 %v13413_v3, %v13151_v32 }
 0x7ea   : > { %v4172_v24 = vmul.f32 %v13420_v4, %v13278_v31 }
 0x7ed   : > { %v13423_v56 = vpop.permute.xlu2 %4391 }
 0x7ee   : > { %v4422_v51 = vmul.f32 %v13423_v56, %v13079_v25 }
 0x7ef   : > { %v13453_v13 = vpop.permute.xlu1 %8732 }
 0x7f0   : > { %8470 = vmatmul.msk.f32.vlgmr.msra.gmra.mxu1 %vm4654_vm12, %v4422_v51 }
 0x7f1   : > { %4778 = vmatmul.f32.gmra.mxu3 %v4710_v28  ;;  %v4267_v28 = vmul.f32 %v13285_v5, %v13460_v44 }
 0x7f2   : > { %v13439_v10 = vpop.permute.xlu0 %4323 }
 0x7f3   : > { %18031 = vst [vmem:[#allocation307_spill] sm:$0xff] %v13439_v10  ;;  %v4345_v25 = vmul.f32 %v13439_v10, %v13437_v29 }
 0x7f5   : > { %v8754_v37 = vpack.i.bf16 %v4345_v25, %v4344_v15  ;;  %v4266_v25 = vmul.f32 %v13254_v19, %v13437_v29 }
 0x7f6   : > { %v13445_v34 = vpop.permute.xlu2 %4163 }
 0x7f7   : > { %v4173_v17 = vmul.f32 %v13445_v34, %v13379_v54  ;;  %8755 = vrot.lane.b32.xlu1 %v8754_v37, %s18032_s4  ;;  %v13473_v37 = vpop.permute.xlu1 %4299  ;;  %v8775_v61 = vpack.i.bf16 %v4267_v28, %v4266_v25 }
 0x7f9   : > { %v8801_v21 = vpack.i.bf16 %v4173_v17, %v4172_v24  ;;  %v18036_v24 = vrot.slane %v13278_v31, 1 }
 0x7fa   : > { %v13455_v59 = vpop.permute.xlu0 %4331 }
 0x7fb   : > { %18033 = vst [vmem:[#allocation239_spill] sm:$0xff] %v13455_v59  ;;  %8802 = vrot.lane.b32.xlu0 %v8801_v21, %s18034_s25 }
 0x7fe   : > { %v13462_v51 = vpop.permute.xlu2 %8725 }
 0x7ff   : > { %4399 = vperm.xlu1 %8764, %v12847_v6   ;;  %v13479_v6 = vsel %vm1226_vm0, %v18036_v24, %v4180_v47  ;;  %v13494_v24 = vpop.permute.xlu1 %4339 }
 0x800   : > { %v4307_v21 = vmul.f32 %v13325_v60, %v13479_v6  ;;  %18038 = vst [vmem:[#allocation320_spill] sm:$0xff] %v13494_v24  ;;  %v4349_v3 = vmul.f32 %v13494_v24, %v13179_v30  ;;  %v18040_v30 = vrot.slane %v13151_v32, 1 }
 0x802   : > { %v13468_v15 = vpop.permute.xlu0 %4335 }
 0x803   : > { %18035 = vst [vmem:[#allocation291_spill] sm:$0xff] %v13468_v15  ;;  %4411 = vperm.xlu0 %8816, %v12991_v57   ;;  %v4306_v57 = vmul.f32 %v13239_v38, %v13308_v58 }
 0x805   : > { %v8785_v25 = vpack.i.bf16 %v4307_v21, %v4306_v57  ;;  %v4385_v21 = vmul.f32 %v13227_v8, %v13283_v27 }
 0x806   : > { %v13481_v17 = vpop.permute.xlu2 %8737 }
 0x807   : > { %8776 = vrot.lane.b32.xlu1 %v8775_v61, %s18037_s7 }
 0x80b   : > { %4642 = vrot.lane.b32.xlu0 %v4388_v33, %s18026_s19  ;;  %v13491_v28 = vpop.permute.xlu0 %4259 }
 0x80c   : > { %8823 = vset.pattern.permute.xlu0 %v17976_v9 }
 0x80e   : > { %v13496_v10 = vpop.permute.xlu2 %4395 }
 0x80f   : > { %v4423_v61 = vmul.f32 %v13496_v10, %v13200_v18  ;;  %8786 = vrot.lane.b32.xlu1 %v8785_v25, %s18022_s6  ;;  %v9488_v18 = vld [vmem:[%s17927_s17 + $0x20] sm:$0xff]  ;;  %v13518_v25 = vsel %vm1226_vm0, %v4180_v47, %v18040_v30  ;;  %v8817_v47 = vpack.i.bf16 %v13151_v32, %v13379_v54  ;;  %v18041_v30 = vrot.slane %v13379_v54, 7 }
 0x811   : > { %8471 = vmatmul.msk.f32.gmra.mxu1 %vm4654_vm12, %v4423_v61  ;;  %v4171_v61 = vmul.f32 %v13262_v43, %v13283_v27 }
 0x813   : > { %4612 = vrot.lane.b32.xlu0 %v4349_v3, %s18032_s4  ;;  %v4229_v3 = vmul.f32 %v13429_v26, %v13518_v25 }
 0x814   : > { %v13505_v33 = vpop.permute.xlu0 %4359 }
 0x815   : > { %18039 = vst [vmem:[#allocation322_spill] sm:$0xff] %v13505_v33  ;;  %v4384_v57 = vmul.f32 %v13505_v33, %v13089_v42 }
 0x817   : > { %v8759_v60 = vpack.i.bf16 %v4385_v21, %v4384_v57  ;;  %4407 = vperm.xlu1 %8764, %v9488_v18   ;;  %v4228_v21 = vmul.f32 %v13375_v50, %v13479_v6  ;;  %v4170_v57 = vmul.f32 %v13241_v49, %v13089_v42 }
 0x819   : > { %8760 = vrot.lane.b32.xlu2 %v8759_v60, %s18026_s19  ;;  %v8806_v18 = vpack.i.bf16 %v4229_v3, %v4228_v21  ;;  %v8765_v33 = vpack.i.bf16 %v4171_v61, %v4170_v57  ;;  %v9489_v60 = vld [vmem:[%s17927_s17 + $0x18] sm:$0xff]  ;;  %v13541_v3 = vsel %vm809_vm1, %v4075_v52, %v18041_v30  ;;  %v4348_v21 = vmul.f32 %v13468_v15, %v13395_v35 }
 0x81a   : > { %v4347_v61 = vmul.f32 %v13455_v59, %v13541_v3  ;;  %v4268_v30 = vmul.f32 %v13410_v14, %v13541_v3 }
 0x81f   : > { %8807 = vrot.lane.b32.xlu1 %v8806_v18, %s18021_s28  ;;  %v8745_v18 = vpop.permute.xlu0 %8744 }
 0x821   : > { %8766 = vrot.lane.b32.xlu2 %v8765_v33, %s18034_s25  ;;  %v4346_v33 = vmul.f32 %v13248_v2, %v13460_v44 }
 0x823   : > { %v8790_v57 = vpack.i.bf16 %v4347_v61, %v4346_v33 }
 0x827   : > { %8818 = vrot.lane.b32.xlu1 %v8817_v47, %s18023_s16  ;;  %v18042_v47 = vmov 0   ;;  %v13554_v52 = vpop.permute.xlu0 %4379 }
 0x828   : > { %18043 = vst [vmem:[#allocation282_spill] sm:$0xff] %v13554_v52  ;;  %v4389_v61 = vmul.f32 %v13554_v52, %v13060_v63 }
 0x829   : > { %4403 = vperm.xlu2 %8742, %v9489_v60   ;;  %v4269_v60 = vmul.f32 %v13491_v28, %v13395_v35  ;;  %v4309_v35 = vmul.f32 %v13473_v37, %v13169_v20 }
 0x82b   : > { %v8811_v33 = vpack.i.bf16 %v4269_v60, %v4268_v30  ;;  %v4128_v60 = vmul.f32 %v13034_v0, %v13099_v55  ;;  %v8751_v30 = vpop.permute.xlu2 %8750 }
 0x82f   : > { %4610 = vrot.lane.b32.xlu1 %v4348_v21, %s18032_s4  ;;  %v8727_v21 = vunpack.i.l.bf16 %v13462_v51  ;;  %v8772_v52 = vpop.permute.xlu0 %8771 }
 0x831   : > { %8791 = vrot.lane.b32.xlu2 %v8790_v57, %s18032_s4 }
 0x832   : > { %8800 = vset.pattern.permute.xlu2 %v18042_v47 }
 0x837   : > { %4415 = vperm.xlu1 %8764, %v13136_v40  }
 0x839   : > { %4118 = vperm.xlu2 %8800, %v13136_v40   ;;  %v4308_v40 = vmul.f32 %v13397_v39, %v13518_v25 }
 0x83f   : > { %4644 = vrot.lane.b32.xlu1 %v4389_v61, %s18026_s19  ;;  %v4657_v61 = vsel %vm4654_vm12, %v4128_v60, %v8727_v21  ;;  %v4129_v21 = vmul.f32 %v13030_v41, %v13094_v36  ;;  %v8752_v60 = vunpack.i.l.bf16 %v8751_v30 }
 0x840   : > { %8824 = vset.pattern.permute.xlu1 %v17979_v45 }
 0x841   : > { %8812 = vrot.lane.b32.xlu2 %v8811_v33, %s18037_s7  ;;  %v8739_v33 = vunpack.i.l.bf16 %v13481_v17  ;;  %s18048_s7 = sld [smem:[#allocation328_spill]] }
 0x849   : > { %4578 = vrot.lane.b32.xlu2 %v4308_v40, %s18022_s6  ;;  %v8734_v40 = vunpack.i.l.bf16 %v13453_v13 }
 0x84b   : > { %v4666_v24 = vsel %vm4663_vm13, %v4657_v61, %v8734_v40  ;;  %v8740_v61 = vunpack.i.h.bf16 %v13481_v17 }
 0x84c   : > { %v4675_v15 = vsel %vm4672_vm14, %v4666_v24, %v8739_v33  ;;  %v8735_v33 = vunpack.i.h.bf16 %v13453_v13 }
 0x851   : > { %4123 = vperm.xlu2 %8800, %v13189_v62  }
 0x859   : > { %4580 = vrot.lane.b32.xlu2 %v4309_v35, %s18022_s6  ;;  %v8746_v35 = vunpack.i.l.bf16 %v8745_v18  ;;  %s18050_s6 = sld [smem:[#allocation329_spill]] }
 0x85a   : > { %8822 = vset.pattern.permute.xlu2 %v18011_v23 }
 0x85b   : > { %v4684_v55 = vsel %vm4681_vm15, %v4675_v15, %v8746_v35  ;;  %v8747_v15 = vunpack.i.h.bf16 %v8745_v18 }
 0x85c   : > { %v4693_v24 = vsel %vm4690_vm2, %v4684_v55, %v8752_v60 }
 0x861   : > { %4419 = vperm.xlu2 %8822, %v13189_v62   ;;  %v8728_v62 = vunpack.i.h.bf16 %v13462_v51 }
 0x863   : > { %v4658_v14 = vsel %vm4654_vm12, %v4129_v21, %v8728_v62 }
 0x864   : > { %v4667_v35 = vsel %vm4663_vm13, %v4658_v14, %v8735_v33  ;;  %v4130_v14 = vmul.f32 %v13038_v16, %v13112_v22 }
 0x865   : > { %v4676_v62 = vsel %vm4672_vm14, %v4667_v35, %v8740_v61 }
 0x866   : > { %v4685_v41 = vsel %vm4681_vm15, %v4676_v62, %v8747_v15 }
 0x869   : > { %v8756_v57 = vpop.permute.xlu1 %8755  ;;  %8825 = vset.pattern.permute.xlu2 %v17978_v12 }
 0x86a   : > { %v8757_v8 = vunpack.i.l.bf16 %v8756_v57  ;;  %v8758_v21 = vunpack.i.h.bf16 %v8756_v57 }
 0x86c   : > { %v4702_v40 = vsel %vm4699_vm4, %v4693_v24, %v8757_v8 }
 0x871   : > { %v13584_v2 = vpop.permute.xlu1 %4399 }
 0x872   : > { %v4424_v0 = vmul.f32 %v13584_v2, %v13318_v11  ;;  %v8782_v11 = vpop.permute.xlu0 %8781 }
 0x873   : > { %v8761_v59 = vpop.permute.xlu2 %8760 }
 0x874   : > { %v8762_v51 = vunpack.i.l.bf16 %v8761_v59  ;;  %8472 = vmatmul.msk.f32.gmra.mxu1 %vm4654_vm12, %v4424_v0  ;;  %v8753_v0 = vunpack.i.h.bf16 %v8751_v30  ;;  %v8763_v50 = vunpack.i.h.bf16 %v8761_v59  ;;  %v8773_v30 = vunpack.i.l.bf16 %v8772_v52 }
 0x876   : > { %v4711_v36 = vsel %vm4708_vm7, %v4702_v40, %v8762_v51  ;;  %v4694_v13 = vsel %vm4690_vm2, %v4685_v41, %v8753_v0 }
 0x877   : > { %4781 = vmatmul.f32.gmra.mxu3 %v4711_v36  ;;  %v4703_v18 = vsel %vm4699_vm4, %v4694_v13, %v8758_v21  ;;  %v8774_v21 = vunpack.i.h.bf16 %v8772_v52 }
 0x878   : > { %v4712_v8 = vsel %vm4708_vm7, %v4703_v18, %v8763_v50  ;;  %v4131_v50 = vmul.f32 %v13141_v7, %v13437_v29 }
 0x879   : > { %v8777_v17 = vpop.permute.xlu1 %8776 }
 0x87a   : > { %v8797_v60 = vpop.permute.xlu0 %8796  ;;  %v8778_v22 = vunpack.i.l.bf16 %v8777_v17 }
 0x87b   : > { %v8767_v55 = vpop.permute.xlu2 %8766 }
 0x87c   : > { %v8768_v51 = vunpack.i.l.bf16 %v8767_v55  ;;  %v8769_v41 = vunpack.i.h.bf16 %v8767_v55 }
 0x87e   : > { %v4659_v57 = vsel %vm4654_vm12, %v4130_v14, %v8768_v51  ;;  %v4660_v40 = vsel %vm4654_vm12, %v4131_v50, %v8769_v41  ;;  %v8779_v51 = vunpack.i.h.bf16 %v8777_v17  ;;  %v8784_v41 = vunpack.i.h.bf16 %v8782_v11 }
 0x87f   : > { %4784 = vmatmul.f32.gmra.mxu3 %v4712_v8  ;;  %v4668_v33 = vsel %vm4663_vm13, %v4659_v57, %v8773_v30  ;;  %v4669_v55 = vsel %vm4663_vm13, %v4660_v40, %v8774_v21  ;;  %v8798_v8 = vunpack.i.l.bf16 %v8797_v60 }
 0x880   : > { %v4677_v62 = vsel %vm4672_vm14, %v4668_v33, %v8778_v22 }
 0x881   : > { %v8787_v61 = vpop.permute.xlu1 %8786 }
 0x882   : > { %v13615_v15 = vpop.permute.xlu0 %8802  ;;  %v8788_v36 = vunpack.i.l.bf16 %v8787_v61  ;;  %v8789_v30 = vunpack.i.h.bf16 %v8787_v61 }
 0x883   : > { %v13607_v24 = vpop.permute.xlu2 %4403 }
 0x884   : > { %v4425_v59 = vmul.f32 %v13607_v24, %v13308_v58  ;;  %v8783_v58 = vunpack.i.l.bf16 %v8782_v11 }
 0x886   : > { %8473 = vmatmul.msk.f32.gmra.mxu1 %vm4654_vm12, %v4425_v59  ;;  %v4686_v29 = vsel %vm4681_vm15, %v4677_v62, %v8783_v58  ;;  %v4678_v59 = vsel %vm4672_vm14, %v4669_v55, %v8779_v51  ;;  %v8799_v62 = vunpack.i.h.bf16 %v8797_v60 }
 0x887   : > { %v4695_v14 = vsel %vm4690_vm2, %v4686_v29, %v8788_v36  ;;  %v4687_v22 = vsel %vm4681_vm15, %v4678_v59, %v8784_v41 }
 0x888   : > { %v4696_v40 = vsel %vm4690_vm2, %v4687_v22, %v8789_v30 }
 0x889   : > { %v13618_v35 = vpop.permute.xlu1 %4407 }
 0x88a   : > { %v4426_v13 = vmul.f32 %v13618_v35, %v13479_v6  ;;  %v13630_v6 = vpop.permute.xlu0 %4411 }
 0x88b   : > { %v8792_v0 = vpop.permute.xlu2 %8791  ;;  %v4427_v36 = vmul.f32 %v13630_v6, %v13518_v25 }
 0x88c   : > { %v8793_v18 = vunpack.i.l.bf16 %v8792_v0  ;;  %v8794_v33 = vunpack.i.h.bf16 %v8792_v0  ;;  %v8804_v0 = vunpack.i.l.bf16 %v13615_v15 }
 0x88e   : > { %8474 = vmatmul.msk.f32.gmra.mxu1 %vm4654_vm12, %v4426_v13  ;;  %v4704_v57 = vsel %vm4699_vm4, %v4695_v14, %v8793_v18  ;;  %v4705_v61 = vsel %vm4699_vm4, %v4696_v40, %v8794_v33  ;;  %v8805_v40 = vunpack.i.h.bf16 %v13615_v15 }
 0x88f   : > { %v4713_v52 = vsel %vm4708_vm7, %v4704_v57, %v8798_v8  ;;  %v4714_v11 = vsel %vm4708_vm7, %v4705_v61, %v8799_v62 }
 0x890   : > { %4787 = vmatmul.f32.gmra.mxu3 %v4713_v52 }
 0x891   : > { %v8808_v50 = vpop.permute.xlu1 %8807 }
 0x892   : > { %v8809_v29 = vunpack.i.l.bf16 %v8808_v50  ;;  %v4643_v30 = vpop.permute.xlu0 %4642  ;;  %v8810_v61 = vunpack.i.h.bf16 %v8808_v50 }
 0x893   : > { %v13633_v17 = vpop.permute.xlu2 %4118 }
 0x894   : > { %18044 = vst [vmem:[#allocation315_spill] sm:$0xff] %v13633_v17  ;;  %v4132_v21 = vmul.f32 %v13633_v17, %v13460_v44 }
 0x896   : > { %8475 = vmatmul.msk.f32.gmra.mxu1 %vm4654_vm12, %v4427_v36  ;;  %v4661_v13 = vsel %vm4654_vm12, %v4132_v21, %v8804_v0 }
 0x897   : > { %v4670_v25 = vsel %vm4663_vm13, %v4661_v13, %v8809_v29 }
 0x898   : > { %4790 = vmatmul.f32.gmra.mxu3 %v4714_v11 }
 0x899   : > { %v8819_v58 = vpop.permute.xlu1 %8818 }
 0x89a   : > { %v8820_v8 = vunpack.i.l.bf16 %v8819_v58  ;;  %v8821_v13 = vunpack.i.h.bf16 %v8819_v58  ;;  %v4613_v29 = vpop.permute.xlu0 %4612  ;;  %v4776_v58 = vpop.f32.mrf.mxu3 }
 0x89b   : > { %v8813_v55 = vpop.permute.xlu2 %8812 }
 0x89c   : > { %v8814_v18 = vunpack.i.l.bf16 %v8813_v55  ;;  %v8815_v62 = vunpack.i.h.bf16 %v8813_v55 }
 0x89e   : > { %v4679_v60 = vsel %vm4672_vm14, %v4670_v25, %v8814_v18 }
 0x89f   : > { %v4688_v57 = vsel %vm4681_vm15, %v4679_v60, %v8820_v8  ;;  %v4817_v8 = vpop.f32.mrf.mxu1 }
 0x8a1   : > { %v4611_v51 = vpop.permute.xlu1 %4610 }
 0x8a3   : > { %v4579_v14 = vpop.permute.xlu2 %4578 }
 0x8a4   : > { %v4697_v44 = vsel %vm4690_vm2, %v4688_v57, %v4579_v14 }
 0x8a5   : > { %v4706_v52 = vsel %vm4699_vm4, %v4697_v44, %v4611_v51  ;;  %v4779_v51 = vpop.f32.mrf.mxu3 }
 0x8a6   : > { %v4715_v59 = vsel %vm4708_vm7, %v4706_v52, %v4643_v30 }
 0x8a7   : > { %4793 = vmatmul.f32.gmra.mxu3 %v4715_v59  ;;  %v4820_v14 = vpop.f32.mrf.mxu1 }
 0x8a9   : > { %v13651_v41 = vpop.permute.xlu1 %4415 }
 0x8aa   : > { %18045 = vst [vmem:[#allocation302_spill] sm:$0xff] %v13651_v41  ;;  %v4428_v33 = vmul.f32 %v13651_v41, %v13169_v20 }
 0x8ab   : > { %v13655_v22 = vpop.permute.xlu2 %4123 }
 0x8ac   : > { %18046 = vst [vmem:[#allocation308_spill] sm:$0xff] %v13655_v22  ;;  %v4133_v36 = vmul.f32 %v13655_v22, %v13541_v3  ;;  %8476 = vmatmul.msk.f32.gmra.mxu1 %vm4654_vm12, %v4428_v33 }
 0x8ae   : > { %v4662_v11 = vsel %vm4654_vm12, %v4133_v36, %v8805_v40 }
 0x8af   : > { %v4671_v21 = vsel %vm4663_vm13, %v4662_v11, %v8810_v61  ;;  %v4821_v61 = vadd.f32 %v4820_v14, %v4779_v51 }
 0x8b0   : > { %v4680_v0 = vsel %vm4672_vm14, %v4671_v21, %v8815_v62  ;;  %v4818_v62 = vadd.f32 %v4817_v8, %v4776_v58  ;;  %vm4972_vm14 = vcmp.lt.s32.totalorder %v10727_v46, 3 }
 0x8b1   : > { %v4689_v20 = vsel %vm4681_vm15, %v4680_v0, %v8821_v13  ;;  %v4645_v25 = vpop.permute.xlu1 %4644  ;;  %v13679_v0 = vld [vmem:[%s18049_s18] sm:$0xff] }
 0x8b2   : > { %5014 = vperm.xlu1 %8824, %v13679_v0   ;;  %5004 = vperm.xlu0 %8823, %v13679_v0  }
 0x8b3   : > { %v4581_v18 = vpop.permute.xlu2 %4580  ;;  %5024 = vperm.xlu2 %8825, %v13679_v0  }
 0x8b4   : > { %v4698_v15 = vsel %vm4690_vm2, %v4689_v20, %v4581_v18  ;;  %vm7789_vm2 = vcmask 736256  }
 0x8b5   : > { %v4707_v3 = vsel %vm4699_vm4, %v4698_v15, %v4613_v29  ;;  %v9455_v29 = vld [vmem:[%s18050_s6] ss:$0 sm:$0xff] }
 0x8b6   : > { %v4716_v60 = vsel %vm4708_vm7, %v4707_v3, %v4645_v25  ;;  %vm7855_vm7 = vcmask 1031168  }
 0x8b7   : > { %4796 = vmatmul.f32.gmra.mxu3 %v4716_v60 }
 0x8ba   : > { %8826 = vset.pattern.permute.xlu1 %v17977_v48  ;;  %8828 = vset.pattern.permute.xlu0 %v17938_v1 }
 0x8bb   : > { %v13668_v50 = vpop.permute.xlu2 %4419  ;;  %4961 = vperm.xlu1 %8826, %v13679_v0   ;;  %4990 = vperm.xlu0 %8828, %v13679_v0  }
 0x8bc   : > { %18047 = vst [vmem:[#allocation242_spill] sm:$0xff] %v13668_v50  ;;  %v4429_v55 = vmul.f32 %v13668_v50, %v13073_v53  ;;  %v9454_v53 = vld [vmem:[%s18048_s7] ss:$0 sm:$0xff]  ;;  %s18053_s7 = sld [smem:[#allocation330_spill]] }
 0x8bd   : > { %v4846_v13 = vmul.f32 %v9454_v53, %v4821_v61  ;;  %v4845_v20 = vmul.f32 %v9454_v53, %v4818_v62 }
 0x8be   : > { %8477 = vmatmul.msk.f32.gmra.mxu1 %vm4654_vm12, %v4429_v55 }
 0x8bf   : > { %v13687_v25 = vadd.f32 %v9455_v29, %v4846_v13  ;;  %v4857_v55 = vadd.f32 %v9455_v29, %v4845_v20 }
 0x8c1   : > { %v4866_v14 = vmax.f32 %v13687_v25, 0.0  ;;  %v4906_v25 = vld [vmem:[%s18052_s20 + $0x8] sm:$0xff] }
 0x8c3   : > { %v4874_v13 = vrot.slane %v4866_v14, 1  ;;  %8829 = vset.pattern.permute.xlu1 %v17976_v9 }
 0x8f1   : > { %v4823_v57 = vpop.f32.mrf.mxu1 }
 0x8fa   : > { %v4782_v44 = vpop.f32.mrf.mxu3 }
 0x902   : > { %v4785_v52 = vpop.f32.mrf.mxu3 }
 0x903   : > { %v4826_v30 = vpop.f32.mrf.mxu1 }
 0x904   : > { %v4827_v58 = vadd.f32 %v4826_v30, %v4785_v52  ;;  %v4865_v30 = vmax.f32 %v4857_v55, 0.0 }
 0x906   : > { %v4848_v52 = vmul.f32 %v9454_v53, %v4827_v58  ;;  %v4873_v17 = vrot.slane %v4865_v30, 1 }
 0x908   : > { %v4887_v55 = vsel %vm1226_vm0, %v4873_v17, %v4874_v13 }
 0x90b   : > { %v4829_v59 = vpop.f32.mrf.mxu1 }
 0x913   : > { %v4788_v33 = vpop.f32.mrf.mxu3  ;;  %v4832_v40 = vpop.f32.mrf.mxu1 }
 0x914   : > { %v4830_v3 = vadd.f32 %v4829_v59, %v4788_v33  ;;  %v18051_v33 = vmov 2  }
 0x915   : > { %8827 = vset.pattern.permute.xlu2 %v18051_v33  ;;  %8833 = vset.pattern.permute.xlu0 %v18051_v33 }
 0x916   : > { %4976 = vperm.xlu2 %8827, %v13679_v0  }
 0x91b   : > { %v4791_v36 = vpop.f32.mrf.mxu3 }
 0x91c   : > { %v4833_v15 = vadd.f32 %v4832_v40, %v4791_v36  ;;  %v4824_v40 = vadd.f32 %v4823_v57, %v4782_v44  ;;  %v4849_v36 = vmul.f32 %v9454_v53, %v4830_v3  ;;  %v4860_v57 = vadd.f32 %v9455_v29, %v4848_v52 }
 0x91e   : > { %v4850_v8 = vmul.f32 %v9454_v53, %v4833_v15  ;;  %v4861_v20 = vadd.f32 %v9455_v29, %v4849_v36  ;;  %8830 = vset.pattern.permute.xlu2 %v17979_v45  ;;  %v4868_v9 = vmax.f32 %v4860_v57, 0.0 }
 0x929   : > { %v4835_v11 = vpop.f32.mrf.mxu1 }
 0x92a   : > { %v4794_v21 = vpop.f32.mrf.mxu3 }
 0x92b   : > { %v4836_v18 = vadd.f32 %v4835_v11, %v4794_v21  ;;  %v4862_v11 = vadd.f32 %v9455_v29, %v4850_v8 }
 0x92d   : > { %v4851_v60 = vmul.f32 %v9454_v53, %v4836_v18  ;;  %v4847_v18 = vmul.f32 %v9454_v53, %v4824_v40  ;;  %v4870_v3 = vmax.f32 %v4862_v11, 0.0 }
 0x92f   : > { %v4863_v62 = vadd.f32 %v9455_v29, %v4851_v60  ;;  %v13701_v60 = vld [vmem:[%s18049_s18 + $0x8] sm:$0xff]  ;;  %v4878_v36 = vrot.slane %v4870_v3, 1  ;;  %s9557_s18 = smov 108  }
 0x930   : > { %5008 = vperm.xlu1 %8829, %v13701_v60   ;;  %4980 = vperm.xlu0 %8833, %v13701_v60  }
 0x931   : > { %v4871_v22 = vmax.f32 %v4863_v62, 0.0  ;;  %5018 = vperm.xlu2 %8830, %v13701_v60  }
 0x933   : > { %v4879_v8 = vrot.slane %v4871_v22, 1 }
 0x935   : > { %v4882_v33 = vsel %vm1226_vm0, %v4878_v36, %v4879_v8 }
 0x938   : > { %8831 = vset.pattern.permute.xlu1 %v17978_v12  ;;  %8850 = vset.pattern.permute.xlu0 %v18011_v23 }
 0x939   : > { %5028 = vperm.xlu1 %8831, %v13701_v60   ;;  %5034 = vperm.xlu0 %8850, %v13679_v0  }
 0x93a   : > { %v4797_v51 = vpop.f32.mrf.mxu3  ;;  %8832 = vset.pattern.permute.xlu2 %v17977_v48 }
 0x93b   : > { %v4838_v61 = vpop.f32.mrf.mxu1  ;;  %4965 = vperm.xlu2 %8832, %v13701_v60  }
 0x93c   : > { %v4839_v59 = vadd.f32 %v4838_v61, %v4797_v51  ;;  %v4869_v51 = vmax.f32 %v4861_v20, 0.0  ;;  %v4894_v20 = vmax.f32 %v4870_v3, %v4882_v33 }
 0x93e   : > { %v4852_v21 = vmul.f32 %v9454_v53, %v4839_v59  ;;  %v4859_v53 = vadd.f32 %v9455_v29, %v4847_v18  ;;  %v4877_v52 = vrot.slane %v4869_v51, 1 }
 0x940   : > { %v4864_v15 = vadd.f32 %v9455_v29, %v4852_v21  ;;  %v4889_v29 = vmax.f32 %v4865_v30, %v4887_v55  ;;  %v4867_v11 = vmax.f32 %v4859_v53, 0.0  ;;  %v4883_v45 = vsel %vm1226_vm0, %v4877_v52, %v4878_v36 }
 0x941   : > { %v4893_v30 = vmax.f32 %v4869_v51, %v4883_v45  ;;  %8834 = vset.pattern.permute.xlu1 %v17938_v1  ;;  %5038 = vperm.xlu0 %8850, %v13701_v60   ;;  %v5138_v1 = vld [vmem:[%s18053_s7 + $0x118] sm:$0xff] }
 0x942   : > { %v4872_v44 = vmax.f32 %v4864_v15, 0.0  ;;  %v4875_v57 = vrot.slane %v4867_v11, 1  ;;  %4994 = vperm.xlu1 %8834, %v13701_v60   ;;  %5203 = vmatpush.msrb.mxu3 %v5138_v1 }
 0x943   : > { %v4901_v3 = vmax.f32 %v4893_v30, %v4894_v20 }
 0x944   : > { %v4880_v58 = vrot.slane %v4872_v44, 1  ;;  %v4886_v12 = vsel %vm1226_vm0, %v4874_v13, %v4875_v57  ;;  %v4905_v13 = vld [vmem:[%s18052_s20] sm:$0xff] }
 0x946   : > { %v4888_v61 = vsel %vm1226_vm0, %v4880_v58, %v4873_v17  ;;  %v4881_v40 = vsel %vm1226_vm0, %v4879_v8, %v4880_v58  ;;  %v4876_v17 = vrot.slane %v4868_v9, 1  ;;  %v4890_v8 = vmax.f32 %v4866_v14, %v4886_v12  ;;  %v5015_v14 = vpop.permute.xlu1 %5014 }
 0x947   : > { %v4896_v62 = vmax.f32 %v4872_v44, %v4888_v61  ;;  %v4895_v59 = vmax.f32 %v4871_v22, %v4881_v40  ;;  %v5137_v61 = vld [vmem:[%s18053_s7 + $0x110] sm:$0xff]  ;;  %v5005_v40 = vpop.permute.xlu0 %5004 }
 0x948   : > { %v4884_v15 = vsel %vm1226_vm0, %v4876_v17, %v4877_v52  ;;  %v4885_v44 = vsel %vm1226_vm0, %v4875_v57, %v4876_v17  ;;  %v4897_v48 = vmax.f32 %v4889_v29, %v4890_v8  ;;  %5204 = vmatpush.msrb.mxu3 %v5137_v61 }
 0x949   : > { %v4904_v21 = vmax.f32 %v4896_v62, %v4889_v29  ;;  %v4903_v18 = vmax.f32 %v4895_v59, %v4896_v62  ;;  %v4902_v22 = vmax.f32 %v4894_v20, %v4895_v59  ;;  %v4892_v55 = vmax.f32 %v4868_v9, %v4884_v15  ;;  %v5135_v9 = vld [vmem:[%s18053_s7 + $0x100] sm:$0xff]  ;;  %v5025_v59 = vpop.permute.xlu2 %5024 }
 0x94a   : > { %v4891_v53 = vmax.f32 %v4867_v11, %v4885_v44  ;;  %8851 = vset.pattern.permute.xlu1 %v18042_v47  ;;  %v5136_v47 = vld [vmem:[%s18053_s7 + $0x108] sm:$0xff] }
 0x94b   : > { %4921 = vmatpush.msrb.mxu2 %v4904_v21  ;;  %v4900_v23 = vmax.f32 %v4892_v55, %v4893_v30  ;;  %5205 = vmatpush.msrb.mxu3 %v5136_v47 }
 0x94c   : > { %v4899_v58 = vmax.f32 %v4891_v53, %v4892_v55  ;;  %v4898_v51 = vmax.f32 %v4890_v8, %v4891_v53 }
 0x94d   : > { %4922 = vmatpush.msrb.mxu2 %v4903_v18  ;;  %5206 = vmatpush.msrb.mxu3 %v5135_v9 }
 0x94e   : > { %v4962_v36 = vpop.permute.xlu1 %4961 }
 0x94f   : > { %4923 = vmatpush.msrb.mxu2 %v4902_v22  ;;  %v4991_v29 = vpop.permute.xlu0 %4990 }
 0x951   : > { %4924 = vmatpush.msrb.mxu2 %v4901_v3 }
 0x953   : > { %4925 = vmatpush.msrb.mxu2 %v4900_v23 }
 0x955   : > { %4926 = vmatpush.msrb.mxu2 %v4899_v58 }
 0x957   : > { %4927 = vmatpush.msrb.mxu2 %v4898_v51 }
 0x959   : > { %4928 = vmatpush.msrb.mxu2 %v4897_v48 }
 0x95a   : > { %8478 = vmatmul.msk.f32.vlgmr.msrb.gmra.mxu2 %vm4681_vm15, %v4905_v13 }
 0x962   : > { %8479 = vmatmul.msk.f32.gmra.mxu2 %vm4681_vm15, %v4906_v25 }
 0x970   : > { %v4977_v21 = vpop.permute.xlu2 %4976 }
 0x98b   : > { %v5019_v50 = vpop.permute.xlu2 %5018 }
 0x9a2   : > { %v5009_v62 = vpop.permute.xlu1 %5008  ;;  %v13757_v33 = vpop.permute.xlu0 %4980 }
 0x9ab   : > { %v5029_v11 = vpop.permute.xlu1 %5028  ;;  %v5035_v15 = vpop.permute.xlu0 %5034 }
 0x9b4   : > { %v4995_v44 = vpop.permute.xlu1 %4994 }
 0x9dd   : > { %v13759_v52 = vpop.f32.mrf.mxu2 }
 0x9de   : > { %v4955_v57 = vrot.slane %v13759_v52, 4  ;;  %v4985_v30 = vrot.slane %v13759_v52, 7  ;;  %v4938_v3 = vrot.slane %v13759_v52, 3  ;;  %v4970_v55 = vrot.slane %v13759_v52, 5 }
 0x9df   : > { %v4999_v51 = vrot.slane %v13759_v52, 1 }
 0x9e5   : > { %v13761_v45 = vpop.f32.mrf.mxu2 }
 0x9e6   : > { %v4956_v17 = vrot.slane %v13761_v45, 4  ;;  %v4986_v18 = vrot.slane %v13761_v45, 7  ;;  %v4939_v20 = vrot.slane %v13761_v45, 3  ;;  %v4971_v22 = vrot.slane %v13761_v45, 5 }
 0x9e7   : > { %v5000_v23 = vrot.slane %v13761_v45, 1 }
 0x9e8   : > { %v4959_v12 = vsel %vm4957_vm9, %v4956_v17, %v4955_v57  ;;  %v4987_v53 = vsel %vm809_vm1, %v4985_v30, %v4986_v18  ;;  %v13781_v58 = vsel %vm4940_vm11, %v4938_v3, %v4939_v20  ;;  %v4973_v8 = vsel %vm4972_vm14, %v4970_v55, %v4971_v22 }
 0x9e9   : > { %v4998_v48 = vmul.f32 %v4995_v44, %v4987_v53  ;;  %v4974_v13 = vsel %vm4972_vm14, %v4971_v22, %v4970_v55  ;;  %v5021_v25 = vmul.f32 %v5015_v14, %v13781_v58  ;;  %v4968_v1 = vmul.f32 %v4962_v36, %v4959_v12  ;;  %v5039_v36 = vpop.permute.xlu0 %5038  ;;  %v18054_v55 = vld [vmem:[#allocation275_spill] sm:$0xff]  ;;  %v5113_v53 = vld [vmem:[%s18053_s7 + $0x50] sm:$0xff] }
 0x9ea   : > { %v4983_v61 = vmul.f32 %v4977_v21, %v4974_v13  ;;  %v5041_v47 = vmul.f32 %v5035_v15, %v4973_v8  ;;  %v5001_v9 = vsel %vm1226_vm0, %v4999_v51, %v5000_v23  ;;  %v4958_v22 = vsel %vm4957_vm9, %v4955_v57, %v4956_v17  ;;  %v5127_v57 = vld [vmem:[%s18053_s7 + $0xc0] sm:$0xff] }
 0x9eb   : > { %5063 = vrot.lane.b32.xlu0 %v4998_v48, %s18032_s4  ;;  %v5011_v16 = vmul.f32 %v5005_v40, %v5001_v9  ;;  %v4988_v14 = vsel %vm809_vm1, %v4986_v18, %v4985_v30  ;;  %v5031_v15 = vmul.f32 %v5025_v59, %v4958_v22  ;;  %v5042_v44 = vmul.f32 %v5039_v36, %v4974_v13  ;;  %v5115_v30 = vld [vmem:[%s18053_s7 + $0x60] sm:$0xff]  ;;  %v5120_v9 = vld [vmem:[%s18053_s7 + $0x88] sm:$0xff] }
 0x9ec   : > { %v8840_v7 = vpack.i.bf16 %v4983_v61, %v5021_v25  ;;  %8480 = vmatmul.msk.f32.vlgmr.msrb.gmra.mxu3 %vm4663_vm13, %v5041_v47  ;;  %v4997_v21 = vmul.f32 %v4991_v29, %v4988_v14  ;;  %v5002_v40 = vsel %vm1226_vm0, %v5000_v23, %v4999_v51  ;;  %v5125_v23 = vld [vmem:[%s18053_s7 + $0xb0] sm:$0xff]  ;;  %v5112_v51 = vld [vmem:[%s18053_s7 + $0x48] sm:$0xff]  ;;  %v5123_v48 = vld [vmem:[%s18053_s7 + $0xa0] sm:$0xff] }
 0x9ed   : > { %v8835_v41 = vpack.i.bf16 %v4968_v1, %v5011_v16  ;;  %v5012_v29 = vmul.f32 %v5009_v62, %v5002_v40  ;;  %v5134_v62 = vld [vmem:[%s18053_s7 + $0xf8] sm:$0xff]  ;;  %v5111_v13 = vld [vmem:[%s18053_s7 + $0x40] sm:$0xff]  ;;  %v5121_v61 = vld [vmem:[%s18053_s7 + $0x90] sm:$0xff] }
 0x9ee   : > { %8841 = vrot.lane.b32.xlu1 %v8840_v7, %s18023_s16  ;;  %v8845_v16 = vpack.i.bf16 %v4997_v21, %v5031_v15  ;;  %v4966_v7 = vpop.permute.xlu2 %4965  ;;  %5168 = vmatpush.msra.mxu2 %v5134_v62  ;;  %v5122_v25 = vld [vmem:[%s18053_s7 + $0x98] sm:$0xff]  ;;  %v5109_v47 = vld [vmem:[%s18053_s7 + $0x30] sm:$0xff]  ;;  %v5119_v14 = vld [vmem:[%s18053_s7 + $0x80] sm:$0xff] }
 0x9ef   : > { %8836 = vrot.lane.b32.xlu2 %v8835_v41, %s18021_s28  ;;  %v13804_v41 = vsel %vm4940_vm11, %v4939_v20, %v4938_v3  ;;  %v4969_v59 = vmul.f32 %v4966_v7, %v4958_v22  ;;  %v5116_v20 = vld [vmem:[%s18053_s7 + $0x68] sm:$0xff]  ;;  %v5126_v3 = vld [vmem:[%s18053_s7 + $0xb8] sm:$0xff]  ;;  %v5107_v36 = vld [vmem:[%s18053_s7 + $0x20] sm:$0xff] }
 0x9f0   : > { %v5022_v17 = vmul.f32 %v5019_v50, %v13804_v41  ;;  %v4984_v50 = vmul.f32 %v13757_v33, %v4973_v8  ;;  %v5118_v33 = vld [vmem:[%s18053_s7 + $0x78] sm:$0xff]  ;;  %v5124_v8 = vld [vmem:[%s18053_s7 + $0xa8] sm:$0xff]  ;;  %v5105_v15 = vld [vmem:[%s18053_s7 + $0x10] sm:$0xff] }
 0x9f1   : > { %v8852_v18 = vpack.i.bf16 %v4969_v59, %v5012_v29  ;;  %5145 = vmatpush.msra.mxu0 %v5118_v33  ;;  %v5110_v1 = vld [vmem:[%s18053_s7 + $0x38] sm:$0xff]  ;;  %v5108_v22 = vld [vmem:[%s18053_s7 + $0x28] sm:$0xff] }
 0x9f2   : > { %v5106_v21 = vld [vmem:[%s18053_s7 + $0x18] sm:$0xff] }
 0x9f3   : > { %5305 = vrot.lane.b32.xlu0 %v18054_v55, %s18034_s25  ;;  %v5103_v55 = vld [vmem:[%s18053_s7] sm:$0xff] }
 0x9f4   : > { %8481 = vmatmul.msk.f32.gmra.mxu3 %vm4663_vm13, %v5042_v44  ;;  %v5104_v44 = vld [vmem:[%s18053_s7 + $0x8] sm:$0xff] }
 0x9f6   : > { %4945 = vperm.xlu1 %8851, %v13679_v0   ;;  %v5032_v0 = vmul.f32 %v5029_v11, %v4959_v12  ;;  %v5128_v11 = vld [vmem:[%s18053_s7 + $0xc8] sm:$0xff]  ;;  %v5114_v12 = vld [vmem:[%s18053_s7 + $0x58] sm:$0xff] }
 0x9f7   : > { %8846 = vrot.lane.b32.xlu2 %v8845_v16, %s18032_s4 }
 0x9fb   : > { %5311 = vrot.lane.b32.xlu0 %v13278_v31, %s18034_s25  ;;  %v5133_v31 = vld [vmem:[%s18053_s7 + $0xf0] sm:$0xff] }
 0x9fc   : > { %5169 = vmatpush.msra.mxu2 %v5133_v31 }
 0x9fe   : > { %5079 = vrot.lane.b32.xlu1 %v5022_v17, %s18023_s16 }
 0x9ff   : > { %8853 = vrot.lane.b32.xlu2 %v8852_v18, %s18021_s28 }
 0xa06   : > { %4950 = vperm.xlu1 %8851, %v13701_v60   ;;  %v18055_v60 = vld [vmem:[#allocation314_spill] sm:$0xff] }
 0xa07   : > { %5087 = vrot.lane.b32.xlu2 %v5032_v0, %s18032_s4 }
 0xa0e   : > { %5301 = vrot.lane.b32.xlu1 %v13060_v63, %s18034_s25  ;;  %v5132_v63 = vld [vmem:[%s18053_s7 + $0xe8] sm:$0xff] }
 0xa0f   : > { %5055 = vrot.lane.b32.xlu2 %v4984_v50, %s18023_s16  ;;  %5170 = vmatpush.msra.mxu2 %v5132_v63 }
 0xa16   : > { %5307 = vrot.lane.b32.xlu1 %v13089_v42, %s18034_s25  ;;  %v5131_v42 = vld [vmem:[%s18053_s7 + $0xe0] sm:$0xff] }
 0xa17   : > { %5303 = vrot.lane.b32.xlu2 %v18055_v60, %s18034_s25  ;;  %5171 = vmatpush.msra.mxu2 %v5131_v42 }
 0xa1e   : > { %5313 = vrot.lane.b32.xlu1 %v13379_v54, %s18034_s25  ;;  %v5117_v54 = vld [vmem:[%s18053_s7 + $0x70] sm:$0xff] }
 0xa1f   : > { %5309 = vrot.lane.b32.xlu2 %v13283_v27, %s18034_s25  ;;  %v5130_v27 = vld [vmem:[%s18053_s7 + $0xd8] sm:$0xff]  ;;  %5146 = vmatpush.msra.mxu0 %v5117_v54 }
 0xa20   : > { %5172 = vmatpush.msra.mxu2 %v5130_v27 }
 0xa21   : > { %5147 = vmatpush.msra.mxu0 %v5116_v20 }
 0xa23   : > { %5148 = vmatpush.msra.mxu0 %v5115_v30 }
 0xa25   : > { %5149 = vmatpush.msra.mxu0 %v5114_v12 }
 0xa27   : > { %5315 = vrot.lane.b32.xlu2 %v13151_v32, %s18034_s25  ;;  %v5129_v32 = vld [vmem:[%s18053_s7 + $0xd0] sm:$0xff]  ;;  %5150 = vmatpush.msra.mxu0 %v5113_v53 }
 0xa28   : > { %5173 = vmatpush.msra.mxu2 %v5129_v32 }
 0xa29   : > { %5151 = vmatpush.msra.mxu0 %v5112_v51 }
 0xa2a   : > { %5174 = vmatpush.msra.mxu2 %v5128_v11 }
 0xa2b   : > { %5152 = vmatpush.msra.mxu0 %v5111_v13 }
 0xa2c   : > { %5175 = vmatpush.msra.mxu2 %v5127_v57 }
 0xa2d   : > { %5153 = vmatpush.msra.mxu0 %v5110_v1 }
 0xa2e   : > { %5176 = vmatpush.msra.mxu2 %v5126_v3 }
 0xa2f   : > { %5154 = vmatpush.msra.mxu0 %v5109_v47 }
 0xa30   : > { %5177 = vmatpush.msra.mxu2 %v5125_v23 }
 0xa31   : > { %5155 = vmatpush.msra.mxu0 %v5108_v22 }
 0xa32   : > { %5178 = vmatpush.msra.mxu2 %v5124_v8 }
 0xa33   : > { %5156 = vmatpush.msra.mxu0 %v5107_v36 }
 0xa34   : > { %5179 = vmatpush.msra.mxu2 %v5123_v48 }
 0xa35   : > { %5157 = vmatpush.msra.mxu0 %v5106_v21 }
 0xa36   : > { %5180 = vmatpush.msra.mxu2 %v5122_v25 }
 0xa37   : > { %5158 = vmatpush.msra.mxu0 %v5105_v15 }
 0xa38   : > { %5181 = vmatpush.msra.mxu2 %v5121_v61 }
 0xa39   : > { %5159 = vmatpush.msra.mxu0 %v5104_v44  ;;  %v9457_v44 = vld [vmem:[%s16831_s9] ss:$0 sm:$0xff] }
 0xa3a   : > { %5182 = vmatpush.msra.mxu2 %v5120_v9  ;;  %v9456_v9 = vld [vmem:[%s16830_s8] ss:$0 sm:$0xff] }
 0xa3b   : > { %5160 = vmatpush.msra.mxu0 %v5103_v55 }
 0xa3c   : > { %5183 = vmatpush.msra.mxu2 %v5119_v14 }
 0xa49   : > { %v8837_v16 = vpop.permute.xlu2 %8836 }
 0xa4a   : > { %v8838_v40 = vunpack.i.l.bf16 %v8837_v16  ;;  %v8839_v60 = vunpack.i.h.bf16 %v8837_v16 }
 0xa4c   : > { %v5097_v18 = vsel %vm4663_vm13, %v13759_v52, %v8838_v40 }
 0xa51   : > { %v8847_v7 = vpop.permute.xlu2 %8846 }
 0xa52   : > { %v8848_v17 = vunpack.i.l.bf16 %v8847_v7  ;;  %v8849_v33 = vunpack.i.h.bf16 %v8847_v7 }
 0xa59   : > { %v8854_v31 = vpop.permute.xlu2 %8853 }
 0xa5a   : > { %v8855_v32 = vunpack.i.l.bf16 %v8854_v31  ;;  %v8856_v12 = vunpack.i.h.bf16 %v8854_v31  ;;  %v5233_v31 = vld [vmem:[%s16843_s21 + $0x28] sm:$0xff] }
 0xa5c   : > { %v5098_v52 = vsel %vm4663_vm13, %v13761_v45, %v8855_v32 }
 0xa5d   : > { %v5064_v51 = vpop.permute.xlu0 %5063 }
 0xa60   : > { %v8842_v29 = vpop.permute.xlu1 %8841 }
 0xa61   : > { %v8843_v59 = vunpack.i.l.bf16 %v8842_v29  ;;  %v8844_v42 = vunpack.i.h.bf16 %v8842_v29  ;;  %v5088_v57 = vpop.permute.xlu2 %5087 }
 0xa63   : > { %v5099_v0 = vsel %vm4681_vm15, %v5097_v18, %v8843_v59  ;;  %v5228_v59 = vld [vmem:[%s16843_s21] sm:$0xff]  ;;  %v5230_v18 = vld [vmem:[%s16843_s21 + $0x10] sm:$0xff] }
 0xa64   : > { %v5101_v62 = vsel %vm4699_vm4, %v5099_v0, %v8848_v17  ;;  %v5229_v17 = vld [vmem:[%s16843_s21 + $0x8] sm:$0xff]  ;;  %v5231_v0 = vld [vmem:[%s16843_s21 + $0x18] sm:$0xff] }
 0xa65   : > { %5184 = vmatmul.f32.vlgmr.msra.gmra.mxu2 %v5101_v62  ;;  %v5232_v62 = vld [vmem:[%s16843_s21 + $0x20] sm:$0xff] }
 0xa68   : > { %v4946_v50 = vpop.permute.xlu1 %4945 }
 0xa69   : > { %v4953_v63 = vmul.f32 %v4946_v50, %v13804_v41  ;;  %v5056_v53 = vpop.permute.xlu2 %5055  ;;  %v5234_v50 = vld [vmem:[%s16843_s21 + $0x30] sm:$0xff] }
 0xa6b   : > { %v5091_v27 = vsel %vm4663_vm13, %v4953_v63, %v8839_v60  ;;  %v5235_v60 = vld [vmem:[%s16843_s21 + $0x38] sm:$0xff] }
 0xa6c   : > { %v5093_v54 = vsel %vm4681_vm15, %v5091_v27, %v8844_v42  ;;  %v5704_v63 = vld [vmem:[%s16832_s10 + $0x118] sm:$0xff]  ;;  %v5703_v42 = vld [vmem:[%s16832_s10 + $0x110] sm:$0xff]  ;;  %v5701_v27 = vld [vmem:[%s16832_s10 + $0x100] sm:$0xff] }
 0xa6d   : > { %v5095_v11 = vsel %vm4699_vm4, %v5093_v54, %v8849_v33  ;;  %v5702_v33 = vld [vmem:[%s16832_s10 + $0x108] sm:$0xff] }
 0xa6e   : > { %5161 = vmatmul.f32.vlgmr.msra.gmra.mxu0 %v5095_v11 }
 0xa6f   : > { %v5208_v45 = vpop.f32.mrf.mxu3 }
 0xa70   : > { %v5080_v20 = vpop.permute.xlu1 %5079 }
 0xa71   : > { %v5100_v30 = vsel %vm4681_vm15, %v5098_v52, %v5080_v20  ;;  %v5304_v11 = vpop.permute.xlu2 %5303 }
 0xa72   : > { %v5102_v3 = vsel %vm4699_vm4, %v5100_v30, %v5088_v57  ;;  %v5306_v57 = vpop.permute.xlu0 %5305 }
 0xa73   : > { %5187 = vmatmul.f32.gmra.mxu2 %v5102_v3 }
 0xa77   : > { %v5211_v36 = vpop.f32.mrf.mxu3 }
 0xa78   : > { %v4951_v41 = vpop.permute.xlu1 %4950 }
 0xa79   : > { %v4954_v23 = vmul.f32 %v4951_v41, %v13781_v58  ;;  %v18056_v41 = vld [vmem:[#allocation226_spill] sm:$0xff] }
 0xa7b   : > { %v5092_v8 = vsel %vm4663_vm13, %v4954_v23, %v8856_v12 }
 0xa7c   : > { %v5094_v48 = vsel %vm4681_vm15, %v5092_v8, %v5056_v53  ;;  %v18057_v53 = vld [vmem:[#allocation309_spill] sm:$0xff] }
 0xa7d   : > { %v5096_v13 = vsel %vm4699_vm4, %v5094_v48, %v5064_v51 }
 0xa7e   : > { %5164 = vmatmul.f32.gmra.mxu0 %v5096_v13 }
 0xa80   : > { %v5302_v52 = vpop.permute.xlu1 %5301 }
 0xae8   : > { %v5185_v25 = vpop.f32.mrf.mxu2 }
 0xaeb   : > { %v5162_v1 = vpop.f32.mrf.mxu0 }
 0xaec   : > { %v5186_v61 = vadd.f32 %v5185_v25, %v5162_v1  ;;  %v5308_v1 = vpop.permute.xlu1 %5307 }
 0xaee   : > { %v5209_v47 = vadd.f32 %v5208_v45, %v5186_v61 }
 0xaf0   : > { %v5218_v21 = vmul.f32 %v9456_v9, %v5209_v47 }
 0xaf2   : > { %v5224_v7 = vadd.f32 %v9457_v44, %v5218_v21  ;;  %v18058_v21 = vld [vmem:[#allocation301_spill] sm:$0xff] }
 0xaf4   : > { %v5226_v29 = vmax.f32 %v5224_v7, 0.0 }
 0xaf6   : > { %v5188_v22 = vpop.f32.mrf.mxu2 }
 0xafb   : > { %v5165_v58 = vpop.f32.mrf.mxu0 }
 0xafc   : > { %v5189_v14 = vadd.f32 %v5188_v22, %v5165_v58 }
 0xafe   : > { %v5212_v15 = vadd.f32 %v5211_v36, %v5189_v14 }
 0xb00   : > { %v5219_v55 = vmul.f32 %v9456_v9, %v5212_v15 }
 0xb02   : > { %v5225_v16 = vadd.f32 %v9457_v44, %v5219_v55  ;;  %v18059_v55 = vld [vmem:[#allocation278_spill] sm:$0xff] }
 0xb04   : > { %v5227_v40 = vmax.f32 %v5225_v16, 0.0 }
 0xb06   : > { %5274 = vmatpush.msra.mxu3 %v5227_v40  ;;  %v18060_v40 = vld [vmem:[#allocation294_spill] sm:$0xff] }
 0xb08   : > { %5275 = vmatpush.msra.mxu3 %v5226_v29 }
 0xb09   : > { %8482 = vmatmul.msk.f32.vlgmr.msra.gmra.mxu3 %vm4654_vm12, %v5228_v59  ;;  %v18061_v59 = vld [vmem:[#allocation293_spill] sm:$0xff] }
 0xb0a   : > { %5823 = vmatpush.msrb.mxu3 %v5704_v63 }
 0xb0c   : > { %5824 = vmatpush.msrb.mxu3 %v5703_v42  ;;  %v18062_v42 = vld [vmem:[#allocation292_spill] sm:$0xff] }
 0xb0e   : > { %5825 = vmatpush.msrb.mxu3 %v5702_v33 }
 0xb10   : > { %5826 = vmatpush.msrb.mxu3 %v5701_v27 }
 0xb11   : > { %8483 = vmatmul.msk.f32.gmra.mxu3 %vm4654_vm12, %v5229_v17 }
 0xb19   : > { %8484 = vmatmul.msk.f32.gmra.mxu3 %vm4654_vm12, %v5230_v18 }
 0xb21   : > { %8485 = vmatmul.msk.f32.gmra.mxu3 %vm4654_vm12, %v5231_v0 }
 0xb29   : > { %8486 = vmatmul.msk.f32.gmra.mxu3 %vm4654_vm12, %v5232_v62  ;;  %v5310_v62 = vpop.permute.xlu2 %5309 }
 0xb31   : > { %8487 = vmatmul.msk.f32.gmra.mxu3 %vm4654_vm12, %v5233_v31 }
 0xb39   : > { %8488 = vmatmul.msk.f32.gmra.mxu3 %vm4654_vm12, %v5234_v50 }
 0xb41   : > { %8489 = vmatmul.msk.f32.gmra.mxu3 %vm4654_vm12, %v5235_v60 }
 0xb8c   : > { %v5277_v32 = vpop.f32.mrf.mxu3 }
 0xb8d   : > { %v14020_v14 = vsel %vm4654_vm12, %v5277_v32, %v5302_v52  ;;  %v18064_v52 = vld [vmem:[#allocation261_spill] sm:$0xff] }
 0xb8e   : > { %v5365_v31 = vrot.slane %v14020_v14, 1 }
 0xb94   : > { %v5280_v54 = vpop.f32.mrf.mxu3 }
 0xb95   : > { %v13990_v20 = vsel %vm4654_vm12, %v5280_v54, %v5304_v11  ;;  %v18063_v54 = vld [vmem:[#allocation283_spill] sm:$0xff] }
 0xb96   : > { %v5359_v12 = vmul.f32 %v13990_v20, %v18056_v41  ;;  %v5366_v23 = vrot.slane %v13990_v20, 1  ;;  %v5334_v61 = vrot.slane %v13990_v20, 7  ;;  %v18065_v41 = vld [vmem:[#allocation259_spill] sm:$0xff] }
 0xb98   : > { %v14047_v63 = vsel %vm1226_vm0, %v5365_v31, %v5366_v23 }
 0xb9c   : > { %v5283_v30 = vpop.f32.mrf.mxu3 }
 0xb9d   : > { %v13993_v3 = vsel %vm4654_vm12, %v5283_v30, %v5306_v57 }
 0xb9e   : > { %v5360_v8 = vmul.f32 %v13993_v3, %v18057_v53  ;;  %v5367_v51 = vrot.slane %v13993_v3, 1  ;;  %v5335_v25 = vrot.slane %v13993_v3, 7 }
 0xba0   : > { %v5378_v48 = vsel %vm1226_vm0, %v5366_v23, %v5367_v51  ;;  %v8857_v13 = vpack.i.bf16 %v5360_v8, %v5359_v12  ;;  %v5397_v12 = vmul.f32 %v14047_v63, %v18065_v41 }
 0xba1   : > { %v5421_v45 = vmul.f32 %v5378_v48, %v13423_v56  ;;  %v14017_v56 = vsel %vm809_vm1, %v5334_v61, %v5335_v25  ;;  %v5383_v15 = vmul.f32 %v5378_v48, %v18058_v21  ;;  %v5398_v33 = vmul.f32 %v5378_v48, %v18062_v42  ;;  %v18067_v21 = vld [vmem:[#allocation318_spill] sm:$0xff] }
 0xba2   : > { %8858 = vrot.lane.b32.xlu1 %v8857_v13, %s18021_s28  ;;  %v5391_v29 = vmul.f32 %v14017_v56, %v18060_v40 }
 0xba3   : > { %8490 = vmatmul.msk.f32.vlgmr.msrb.gmra.mxu3 %vm4663_vm13, %v5421_v45 }
 0xba4   : > { %v5286_v47 = vpop.f32.mrf.mxu3 }
 0xba5   : > { %v14009_v9 = vsel %vm4654_vm12, %v5286_v47, %v5308_v1  ;;  %v18066_v1 = vld [vmem:[#allocation297_spill] sm:$0xff] }
 0xba6   : > { %v5336_v22 = vrot.slane %v14009_v9, 7  ;;  %v5368_v58 = vrot.slane %v14009_v9, 1  ;;  %v5361_v23 = vmul.f32 %v14009_v9, %v13241_v49 }
 0xba8   : > { %v5377_v36 = vsel %vm1226_vm0, %v5367_v51, %v5368_v58  ;;  %v14027_v44 = vsel %vm809_vm1, %v5335_v25, %v5336_v22  ;;  %v5312_v51 = vpop.permute.xlu0 %5311 }
 0xba9   : > { %v5384_v16 = vmul.f32 %v5377_v36, %v18059_v55  ;;  %v5422_v7 = vmul.f32 %v5377_v36, %v13496_v10  ;;  %v5392_v17 = vmul.f32 %v14027_v44, %v18061_v59  ;;  %v5399_v11 = vmul.f32 %v5377_v36, %v18063_v54 }
 0xbab   : > { %8491 = vmatmul.msk.f32.gmra.mxu3 %vm4663_vm13, %v5422_v7  ;;  %v8862_v18 = vpack.i.bf16 %v5384_v16, %v5383_v15  ;;  %v8867_v0 = vpack.i.bf16 %v5392_v17, %v5391_v29  ;;  %v5314_v29 = vpop.permute.xlu1 %5313 }
 0xbac   : > { %v5289_v50 = vpop.f32.mrf.mxu3 }
 0xbad   : > { %v14038_v60 = vsel %vm4654_vm12, %v5289_v50, %v5310_v62  ;;  %8863 = vrot.lane.b32.xlu2 %v8862_v18, %s18023_s16  ;;  %8868 = vrot.lane.b32.xlu0 %v8867_v0, %s18032_s4  ;;  %v18068_v62 = vld [vmem:[#allocation264_spill] sm:$0xff] }
 0xbae   : > { %v5369_v10 = vrot.slane %v14038_v60, 1  ;;  %v5362_v27 = vmul.f32 %v14038_v60, %v13262_v43  ;;  %v5337_v53 = vrot.slane %v14038_v60, 7  ;;  %v8872_v43 = vpack.i.bf16 %v5398_v33, %v5397_v12  ;;  %v18070_v12 = vld [vmem:[#allocation289_spill] sm:$0xff] }
 0xbb0   : > { %v5376_v32 = vsel %vm1226_vm0, %v5368_v58, %v5369_v10  ;;  %v8877_v13 = vpack.i.bf16 %v5362_v27, %v5361_v23  ;;  %v14073_v25 = vsel %vm809_vm1, %v5336_v22, %v5337_v53  ;;  %v5316_v27 = vpop.permute.xlu2 %5315  ;;  %v5358_v23 = vmul.f32 %v14020_v14, %v18070_v12  ;;  %v18086_v12 = vld [vmem:[#allocation291_spill] sm:$0xff] }
 0xbb1   : > { %v5400_v57 = vmul.f32 %v5376_v32, %v18064_v52  ;;  %v5423_v30 = vmul.f32 %v5376_v32, %v13584_v2  ;;  %v5385_v47 = vmul.f32 %v5376_v32, %v18066_v1  ;;  %v5393_v16 = vmul.f32 %v14073_v25, %v13254_v19 }
 0xbb3   : > { %8492 = vmatmul.msk.f32.gmra.mxu3 %vm4663_vm13, %v5423_v30  ;;  %v8882_v8 = vpack.i.bf16 %v5400_v57, %v5399_v11 }
 0xbb4   : > { %v5292_v48 = vpop.f32.mrf.mxu3 }
 0xbb5   : > { %v14064_v45 = vsel %vm4654_vm12, %v5292_v48, %v5312_v51  ;;  %8873 = vrot.lane.b32.xlu0 %v8872_v43, %s18021_s28  ;;  %8883 = vrot.lane.b32.xlu1 %v8882_v8, %s18021_s28  ;;  %v18071_v43 = vld [vmem:[#allocation263_spill] sm:$0xff]  ;;  %v18073_v48 = vld [vmem:[#allocation285_spill] sm:$0xff] }
 0xbb6   : > { %v5338_v2 = vrot.slane %v14064_v45, 7  ;;  %v5370_v49 = vrot.slane %v14064_v45, 1  ;;  %8878 = vrot.lane.b32.xlu2 %v8877_v13, %s18021_s28  ;;  %v5363_v18 = vmul.f32 %v14064_v45, %v13420_v4  ;;  %v18072_v8 = vld [vmem:[#allocation279_spill] sm:$0xff] }
 0xbb7   : > { %v5382_v51 = vmul.f32 %v14047_v63, %v18072_v8 }
 0xbb8   : > { %v5375_v58 = vsel %vm1226_vm0, %v5369_v10, %v5370_v49  ;;  %v14080_v36 = vsel %vm809_vm1, %v5337_v53, %v5338_v2 }
 0xbb9   : > { %v5386_v15 = vmul.f32 %v5375_v58, %v18067_v21  ;;  %v5424_v55 = vmul.f32 %v5375_v58, %v13607_v24  ;;  %v5394_v22 = vmul.f32 %v14080_v36, %v13285_v5  ;;  %v5401_v0 = vmul.f32 %v5375_v58, %v13239_v38 }
 0xbbb   : > { %8493 = vmatmul.msk.f32.gmra.mxu3 %vm4663_vm13, %v5424_v55  ;;  %v8887_v7 = vpack.i.bf16 %v5386_v15, %v5385_v47  ;;  %v8892_v40 = vpack.i.bf16 %v5394_v22, %v5393_v16 }
 0xbbc   : > { %v5295_v59 = vpop.f32.mrf.mxu3 }
 0xbbd   : > { %v14090_v17 = vsel %vm4654_vm12, %v5295_v59, %v5314_v29  ;;  %8888 = vrot.lane.b32.xlu0 %v8887_v7, %s18023_s16  ;;  %8893 = vrot.lane.b32.xlu1 %v8892_v40, %s18032_s4  ;;  %v18075_v40 = vld [vmem:[#allocation281_spill] sm:$0xff]  ;;  %v18076_v59 = vld [vmem:[#allocation302_spill] sm:$0xff] }
 0xbbe   : > { %v5371_v24 = vrot.slane %v14090_v17, 1  ;;  %v5364_v19 = vmul.f32 %v14090_v17, %v13445_v34  ;;  %v5333_v34 = vrot.slane %v14020_v14, 7  ;;  %v5339_v1 = vrot.slane %v14090_v17, 7 }
 0xbc0   : > { %v5374_v5 = vsel %vm1226_vm0, %v5370_v49, %v5371_v24  ;;  %v8897_v33 = vpack.i.bf16 %v5364_v19, %v5363_v18  ;;  %v14119_v52 = vsel %vm809_vm1, %v5333_v34, %v5334_v61  ;;  %v18074_v49 = vld [vmem:[#allocation271_spill] sm:$0xff]  ;;  %v14155_v22 = vsel %vm809_vm1, %v5338_v2, %v5339_v1 }
 0xbc1   : > { %v5402_v50 = vmul.f32 %v5374_v5, %v18068_v62  ;;  %v5425_v10 = vmul.f32 %v5374_v5, %v13618_v35  ;;  %v18069_v35 = vld [vmem:[#allocation254_spill] sm:$0xff]  ;;  %v5387_v29 = vmul.f32 %v5374_v5, %v18075_v40  ;;  %v18077_v19 = vld [vmem:[#allocation267_spill] sm:$0xff] }
 0xbc2   : > { %v5395_v18 = vmul.f32 %v14155_v22, %v18077_v19  ;;  %v18079_v2 = vld [vmem:[#allocation239_spill] sm:$0xff]  ;;  %v18094_v40 = vld [vmem:[#allocation282_spill] sm:$0xff] }
 0xbc3   : > { %8494 = vmatmul.msk.f32.gmra.mxu3 %vm4663_vm13, %v5425_v10  ;;  %v8902_v42 = vpack.i.bf16 %v5402_v50, %v5401_v0  ;;  %v5410_v5 = vmul.f32 %v14155_v22, %v18079_v2  ;;  %v18080_v62 = vld [vmem:[#allocation307_spill] sm:$0xff]  ;;  %v18081_v10 = vld [vmem:[#allocation242_spill] sm:$0xff] }
 0xbc4   : > { %v5298_v32 = vpop.f32.mrf.mxu3  ;;  %v5408_v50 = vmul.f32 %v14073_v25, %v18080_v62  ;;  %v9490_v19 = vld [vmem:[%s10531_s1] sm:$0xff]  ;;  %v5684_v2 = vld [vmem:[%s16832_s10 + $0x78] sm:$0xff]  ;;  %v9498_v62 = vld [vmem:[%s10531_s1 + $0x48] sm:$0xff] }
 0xbc5   : > { %v14107_v54 = vsel %vm4654_vm12, %v5298_v32, %v5316_v27  ;;  %8903 = vrot.lane.b32.xlu2 %v8902_v42, %s18021_s28  ;;  %8898 = vrot.lane.b32.xlu0 %v8897_v33, %s18021_s28  ;;  %v5428_v42 = vmul.f32 %v14047_v63, %v18081_v10  ;;  %v18082_v33 = vld [vmem:[#allocation269_spill] sm:$0xff]  ;;  %v18085_v63 = vld [vmem:[#allocation311_spill] sm:$0xff] }
 0xbc6   : > { %v5340_v38 = vrot.slane %v14107_v54, 7  ;;  %v5372_v4 = vrot.slane %v14107_v54, 1  ;;  %v5357_v11 = vmul.f32 %v14107_v54, %v18069_v35  ;;  %v5405_v27 = vmul.f32 %v14119_v52, %v18082_v33  ;;  %v18083_v32 = vld [vmem:[#allocation305_spill] sm:$0xff]  ;;  %5729 = vmatpush.msrb.mxu1 %v5684_v2  ;;  %v5681_v33 = vld [vmem:[%s16832_s10 + $0x60] sm:$0xff]  ;;  %v5690_v2 = vld [vmem:[%s16832_s10 + $0xa8] sm:$0xff] }
 0xbc7   : > { %v5683_v10 = vld [vmem:[%s16832_s10 + $0x70] sm:$0xff] }
 0xbc8   : > { %v5373_v57 = vsel %vm1226_vm0, %v5371_v24, %v5372_v4  ;;  %v5380_v30 = vsel %vm1226_vm0, %v5372_v4, %v5365_v31  ;;  %v14129_v41 = vsel %vm809_vm1, %v5340_v38, %v5333_v34  ;;  %v5390_v31 = vmul.f32 %v14119_v52, %v18074_v49  ;;  %5730 = vmatpush.msrb.mxu1 %v5683_v10  ;;  %v9512_v10 = vld [vmem:[%s10531_s1 + $0xc0] sm:$0xff] }
 0xbc9   : > { %v5426_v53 = vmul.f32 %v5373_v57, %v13630_v6  ;;  %v5381_v61 = vmul.f32 %v5380_v30, %v18071_v43  ;;  %v5389_v13 = vmul.f32 %v14129_v41, %v18073_v48  ;;  %v8907_v58 = vpack.i.bf16 %v5358_v23, %v5357_v11 }
 0xbca   : > { %v14147_v6 = vsel %vm809_vm1, %v5339_v1, %v5340_v38  ;;  %v5388_v15 = vmul.f32 %v5373_v57, %v13429_v26  ;;  %v5403_v55 = vmul.f32 %v5373_v57, %v13397_v39  ;;  %v5404_v16 = vmul.f32 %v5380_v30, %v13473_v37  ;;  %v18078_v37 = vld [vmem:[#allocation290_spill] sm:$0xff]  ;;  %v18084_v38 = vld [vmem:[#allocation316_spill] sm:$0xff] }
 0xbcb   : > { %8495 = vmatmul.msk.f32.gmra.mxu3 %vm4663_vm13, %v5426_v53  ;;  %v8912_v47 = vpack.i.bf16 %v5382_v51, %v5381_v61  ;;  %v8922_v21 = vpack.i.bf16 %v5390_v31, %v5389_v13  ;;  %v5396_v7 = vmul.f32 %v14147_v6, %v13491_v28  ;;  %v5427_v24 = vmul.f32 %v5380_v30, %v18076_v59  ;;  %v18087_v53 = vld [vmem:[#allocation320_spill] sm:$0xff]  ;;  %v18088_v61 = vld [vmem:[#allocation274_spill] sm:$0xff]  ;;  %v18090_v13 = vld [vmem:[#allocation265_spill] sm:$0xff] }
 0xbcc   : > { %v8917_v26 = vpack.i.bf16 %v5388_v15, %v5387_v29  ;;  %v8932_v39 = vpack.i.bf16 %v5404_v16, %v5403_v55  ;;  %v5406_v28 = vmul.f32 %v14017_v56, %v18078_v37  ;;  %v5409_v34 = vmul.f32 %v14080_v36, %v18083_v32  ;;  %v18089_v51 = vld [vmem:[#allocation322_spill] sm:$0xff]  ;;  %v18092_v15 = vld [vmem:[#allocation299_spill] sm:$0xff]  ;;  %v9495_v37 = vld [vmem:[%s10531_s1 + $0x30] sm:$0xff] }
 0xbcd   : > { %8913 = vrot.lane.b32.xlu1 %v8912_v47, %s18023_s16  ;;  %8908 = vrot.lane.b32.xlu0 %v8907_v58, %s18021_s28  ;;  %v8927_v0 = vpack.i.bf16 %v5396_v7, %v5395_v18  ;;  %v5407_v4 = vmul.f32 %v14027_v44, %v18084_v38  ;;  %v5416_v30 = vmul.f32 %v14038_v60, %v18085_v63  ;;  %v18091_v58 = vld [vmem:[#allocation313_spill] sm:$0xff]  ;;  %v18093_v16 = vld [vmem:[#allocation287_spill] sm:$0xff]  ;;  %v9491_v18 = vld [vmem:[%s10531_s1 + $0x8] sm:$0xff] }
 0xbce   : > { %8923 = vrot.lane.b32.xlu2 %v8922_v21, %s18032_s4  ;;  %v8937_v35 = vpack.i.bf16 %v5406_v28, %v5405_v27  ;;  %v8947_v11 = vpack.i.bf16 %v5410_v5, %v5409_v34  ;;  %v5411_v23 = vmul.f32 %v14147_v6, %v18086_v12  ;;  %v5412_v43 = vmul.f32 %v14129_v41, %v18087_v53  ;;  %v9496_v28 = vld [vmem:[%s10531_s1 + $0x28] sm:$0xff]  ;;  %v9497_v5 = vld [vmem:[%s10531_s1 + $0x38] sm:$0xff]  ;;  %v9500_v32 = vld [vmem:[%s10531_s1 + $0x60] sm:$0xff] }
 0xbcf   : > { %v8942_v57 = vpack.i.bf16 %v5408_v50, %v5407_v4  ;;  %v5414_v8 = vmul.f32 %v13993_v3, %v18088_v61  ;;  %v5415_v48 = vmul.f32 %v14009_v9, %v18089_v51  ;;  %v5413_v49 = vmul.f32 %v13990_v20, %v18090_v13  ;;  %v9499_v50 = vld [vmem:[%s10531_s1 + $0x40] sm:$0xff]  ;;  %v5680_v27 = vld [vmem:[%s16832_s10 + $0x58] sm:$0xff]  ;;  %v9501_v34 = vld [vmem:[%s10531_s1 + $0x50] sm:$0xff] }
 0xbd0   : > { %v8952_v1 = vpack.i.bf16 %v5412_v43, %v5411_v23  ;;  %v5418_v21 = vmul.f32 %v14090_v17, %v18091_v58  ;;  %v5419_v55 = vmul.f32 %v14107_v54, %v18092_v15  ;;  %v5417_v7 = vmul.f32 %v14064_v45, %v18093_v16  ;;  %v9502_v38 = vld [vmem:[%s10531_s1 + $0x58] sm:$0xff]  ;;  %v5679_v4 = vld [vmem:[%s16832_s10 + $0x50] sm:$0xff]  ;;  %v9504_v23 = vld [vmem:[%s10531_s1 + $0x68] sm:$0xff] }
 0xbd1   : > { %v8962_v31 = vpack.i.bf16 %v5416_v30, %v5415_v48  ;;  %v8957_v47 = vpack.i.bf16 %v5414_v8, %v5413_v49  ;;  %v5420_v29 = vmul.f32 %v14020_v14, %v18094_v40  ;;  %v5676_v30 = vld [vmem:[%s16832_s10 + $0x38] sm:$0xff]  ;;  %v5699_v53 = vld [vmem:[%s16832_s10 + $0xf0] sm:$0xff]  ;;  %v5698_v8 = vld [vmem:[%s16832_s10 + $0xe8] sm:$0xff] }
 0xbd2   : > { %v8967_v59 = vpack.i.bf16 %v5418_v21, %v5417_v7  ;;  %v9503_v12 = vld [vmem:[%s10531_s1 + $0x78] sm:$0xff]  ;;  %v9505_v43 = vld [vmem:[%s10531_s1 + $0x70] sm:$0xff]  ;;  %v5674_v51 = vld [vmem:[%s16832_s10 + $0x28] sm:$0xff] }
 0xbd3   : > { %8496 = vmatmul.msk.f32.gmra.mxu3 %vm4663_vm13, %v5427_v24  ;;  %v8972_v24 = vpack.i.bf16 %v5420_v29, %v5419_v55  ;;  %v5675_v61 = vld [vmem:[%s16832_s10 + $0x30] sm:$0xff]  ;;  %v5697_v48 = vld [vmem:[%s16832_s10 + $0xe0] sm:$0xff]  ;;  %v5696_v49 = vld [vmem:[%s16832_s10 + $0xd8] sm:$0xff] }
 0xbd4   : > { %v5673_v13 = vld [vmem:[%s16832_s10 + $0x20] sm:$0xff]  ;;  %v5695_v21 = vld [vmem:[%s16832_s10 + $0xd0] sm:$0xff]  ;;  %v9508_v55 = vld [vmem:[%s10531_s1 + $0x88] sm:$0xff] }
 0xbd5   : > { %8918 = vrot.lane.b32.xlu1 %v8917_v26, %s18023_s16  ;;  %8933 = vrot.lane.b32.xlu0 %v8932_v39, %s18021_s28  ;;  %v9492_v26 = vld [vmem:[%s10531_s1 + $0x18] sm:$0xff]  ;;  %v9493_v39 = vld [vmem:[%s10531_s1 + $0x10] sm:$0xff] }
 0xbd6   : > { %8928 = vrot.lane.b32.xlu2 %v8927_v0, %s18032_s4  ;;  %v9494_v0 = vld [vmem:[%s10531_s1 + $0x20] sm:$0xff]  ;;  %v5671_v16 = vld [vmem:[%s16832_s10 + $0x10] sm:$0xff]  ;;  %v5694_v7 = vld [vmem:[%s16832_s10 + $0xc8] sm:$0xff] }
 0xbd7   : > { %v5670_v40 = vld [vmem:[%s16832_s10 + $0x8] sm:$0xff]  ;;  %v5693_v29 = vld [vmem:[%s16832_s10 + $0xc0] sm:$0xff] }
 0xbdb   : > { %8497 = vmatmul.msk.f32.gmra.mxu3 %vm4663_vm13, %v5428_v42  ;;  %v5682_v42 = vld [vmem:[%s16832_s10 + $0x68] sm:$0xff] }
 0xbdc   : > { %5731 = vmatpush.msrb.mxu1 %v5682_v42  ;;  %v9513_v42 = vld [vmem:[%s10531_s1 + $0xb0] sm:$0xff] }
 0xbdd   : > { %8938 = vrot.lane.b32.xlu1 %v8937_v35, %s18023_s16  ;;  %8948 = vrot.lane.b32.xlu0 %v8947_v11, %s18023_s16  ;;  %v5678_v35 = vld [vmem:[%s16832_s10 + $0x48] sm:$0xff]  ;;  %v5700_v11 = vld [vmem:[%s16832_s10 + $0xf8] sm:$0xff] }
 0xbde   : > { %8943 = vrot.lane.b32.xlu2 %v8942_v57, %s18023_s16  ;;  %5732 = vmatpush.msrb.mxu1 %v5681_v33  ;;  %v5677_v57 = vld [vmem:[%s16832_s10 + $0x40] sm:$0xff]  ;;  %v5687_v33 = vld [vmem:[%s16832_s10 + $0x90] sm:$0xff] }
 0xbdf   : > { %5770 = vmatpush.msrb.mxu2 %v5700_v11  ;;  %v9516_v11 = vld [vmem:[%s10531_s1 + $0xc8] sm:$0xff] }
 0xbe0   : > { %5733 = vmatpush.msrb.mxu1 %v5680_v27 }
 0xbe1   : > { %5771 = vmatpush.msrb.mxu2 %v5699_v53  ;;  %v9518_v53 = vld [vmem:[%s10531_s1 + $0xf0] sm:$0xff] }
 0xbe2   : > { %5734 = vmatpush.msrb.mxu1 %v5679_v4  ;;  %v5685_v4 = vld [vmem:[%s16832_s10 + $0x80] sm:$0xff] }
 0xbe3   : > { %5772 = vmatpush.msrb.mxu2 %v5698_v8 }
 0xbe4   : > { %5735 = vmatpush.msrb.mxu1 %v5678_v35  ;;  %v9515_v35 = vld [vmem:[%s10531_s1 + $0xd8] sm:$0xff] }
 0xbe5   : > { %8963 = vrot.lane.b32.xlu0 %v8962_v31, %s18032_s4  ;;  %8953 = vrot.lane.b32.xlu1 %v8952_v1, %s18023_s16  ;;  %s18095_s16 = smov 9   ;;  %v5672_v31 = vld [vmem:[%s16832_s10 + $0x18] sm:$0xff]  ;;  %v9506_v1 = vld [vmem:[%s10531_s1 + $0x90] sm:$0xff] }
 0xbe6   : > { %8958 = vrot.lane.b32.xlu2 %v8957_v47, %s18032_s4  ;;  %5736 = vmatpush.msrb.mxu1 %v5677_v57  ;;  %v9507_v47 = vld [vmem:[%s10531_s1 + $0x80] sm:$0xff] }
 0xbe7   : > { %5773 = vmatpush.msrb.mxu2 %v5697_v48 }
 0xbe8   : > { %5737 = vmatpush.msrb.mxu1 %v5676_v30 }
 0xbe9   : > { %5774 = vmatpush.msrb.mxu2 %v5696_v49  ;;  %v18096_v49 = vld [vmem:[#allocation303_spill] sm:$0xff] }
 0xbea   : > { %5738 = vmatpush.msrb.mxu1 %v5675_v61 }
 0xbeb   : > { %5775 = vmatpush.msrb.mxu2 %v5695_v21 }
 0xbec   : > { %5739 = vmatpush.msrb.mxu1 %v5674_v51  ;;  %v9520_v51 = vld [vmem:[%s10531_s1 + $0xe8] sm:$0xff] }
 0xbed   : > { %8968 = vrot.lane.b32.xlu1 %v8967_v59, %s18032_s4  ;;  %6125 = vrot.lane.b32.xlu0 %v9490_v19, %s18095_s16  ;;  %v5669_v59 = vld [vmem:[%s16832_s10] sm:$0xff]  ;;  %v5692_v19 = vld [vmem:[%s16832_s10 + $0xb8] sm:$0xff] }
 0xbee   : > { %8973 = vrot.lane.b32.xlu2 %v8972_v24, %s18032_s4  ;;  %5740 = vmatpush.msrb.mxu1 %v5673_v13 }
 0xbef   : > { %5776 = vmatpush.msrb.mxu2 %v5694_v7 }
 0xbf0   : > { %5741 = vmatpush.msrb.mxu1 %v5672_v31  ;;  %v5349_v31 = vmul.f32 %v14147_v6, %v18096_v49 }
 0xbf1   : > { %5777 = vmatpush.msrb.mxu2 %v5693_v29 }
 0xbf2   : > { %5742 = vmatpush.msrb.mxu1 %v5671_v16 }
 0xbf3   : > { %5778 = vmatpush.msrb.mxu2 %v5692_v19  ;;  %v9521_v19 = vld [vmem:[%s10531_s1 + $0xf8] sm:$0xff] }
 0xbf4   : > { %5743 = vmatpush.msrb.mxu1 %v5670_v40  ;;  %v18097_v40 = vld [vmem:[#allocation272_spill] sm:$0xff] }
 0xbf5   : > { %6127 = vrot.lane.b32.xlu1 %v9491_v18, %s18095_s16  ;;  %6131 = vrot.lane.b32.xlu0 %v9492_v26, %s18095_s16  ;;  %v9509_v18 = vld [vmem:[%s10531_s1 + $0xa8] sm:$0xff]  ;;  %v9510_v26 = vld [vmem:[%s10531_s1 + $0x98] sm:$0xff]  ;;  %v5350_v29 = vmul.f32 %v14129_v41, %v18097_v40 }
 0xbf6   : > { %6129 = vrot.lane.b32.xlu2 %v9493_v39, %s18095_s16  ;;  %5744 = vmatpush.msrb.mxu1 %v5669_v59 }
 0xbfd   : > { %6133 = vrot.lane.b32.xlu1 %v9494_v0, %s18095_s16  ;;  %6137 = vrot.lane.b32.xlu0 %v9495_v37, %s18095_s16  ;;  %v5691_v0 = vld [vmem:[%s16832_s10 + $0xb0] sm:$0xff] }
 0xbfe   : > { %6135 = vrot.lane.b32.xlu2 %v9496_v28, %s18095_s16  ;;  %v9511_v28 = vld [vmem:[%s10531_s1 + $0xa0] sm:$0xff]  ;;  %5779 = vmatpush.msrb.mxu2 %v5691_v0 }
 0xc00   : > { %5780 = vmatpush.msrb.mxu2 %v5690_v2 }
 0xc05   : > { %6139 = vrot.lane.b32.xlu1 %v9497_v5, %s18095_s16  ;;  %6143 = vrot.lane.b32.xlu0 %v9498_v62, %s18095_s16  ;;  %v5689_v5 = vld [vmem:[%s16832_s10 + $0xa0] sm:$0xff] }
 0xc06   : > { %6141 = vrot.lane.b32.xlu2 %v9499_v50, %s18095_s16  ;;  %5781 = vmatpush.msrb.mxu2 %v5689_v5  ;;  %v5688_v50 = vld [vmem:[%s16832_s10 + $0x98] sm:$0xff] }
 0xc07   : > { %v14263_v63 = vpop.permute.xlu2 %8863 }
 0xc08   : > { %5782 = vmatpush.msrb.mxu2 %v5688_v50 }
 0xc0a   : > { %5783 = vmatpush.msrb.mxu2 %v5687_v33 }
 0xc0d   : > { %6149 = vrot.lane.b32.xlu0 %v9500_v32, %s18095_s16  ;;  %6145 = vrot.lane.b32.xlu1 %v9501_v34, %s18095_s16  ;;  %v9514_v32 = vld [vmem:[%s10531_s1 + $0xb8] sm:$0xff] }
 0xc0e   : > { %6147 = vrot.lane.b32.xlu2 %v9502_v38, %s18095_s16  ;;  %v5686_v38 = vld [vmem:[%s16832_s10 + $0x88] sm:$0xff] }
 0xc0f   : > { %5784 = vmatpush.msrb.mxu2 %v5686_v38 }
 0xc10   : > { %v14302_v58 = vpop.permute.xlu2 %8878 }
 0xc11   : > { %5785 = vmatpush.msrb.mxu2 %v5685_v4 }
 0xc14   : > { %v14326_v24 = vpop.permute.xlu1 %8858 }
 0xc15   : > { %6155 = vrot.lane.b32.xlu0 %v9503_v12, %s18095_s16  ;;  %6151 = vrot.lane.b32.xlu1 %v9504_v23, %s18095_s16  ;;  %v9517_v12 = vld [vmem:[%s10531_s1 + $0xd0] sm:$0xff]  ;;  %v8860_v2 = vunpack.i.l.bf16 %v14326_v24 }
 0xc16   : > { %6153 = vrot.lane.b32.xlu2 %v9505_v43, %s18095_s16  ;;  %v9519_v43 = vld [vmem:[%s10531_s1 + $0xe0] sm:$0xff]  ;;  %s9555_s1 = smov 126  }
 0xc1d   : > { %6161 = vrot.lane.b32.xlu0 %v9506_v1, %s18095_s16  ;;  %6157 = vrot.lane.b32.xlu1 %v9507_v47, %s18095_s16 }
 0xc1e   : > { %6159 = vrot.lane.b32.xlu2 %v9508_v55, %s18095_s16 }
 0xc1f   : > { %v14307_v15 = vpop.permute.xlu0 %8868  ;;  %v14335_v39 = vpop.permute.xlu2 %8903 }
 0xc25   : > { %6167 = vrot.lane.b32.xlu0 %v9509_v18, %s18095_s16  ;;  %6163 = vrot.lane.b32.xlu1 %v9510_v26, %s18095_s16 }
 0xc26   : > { %6165 = vrot.lane.b32.xlu2 %v9511_v28, %s18095_s16 }
 0xc27   : > { %v14340_v37 = vpop.permute.xlu0 %8873  ;;  %v14350_v62 = vpop.permute.xlu1 %8883 }
 0xc28   : > { %v8924_v34 = vpop.permute.xlu2 %8923  ;;  %v8875_v41 = vunpack.i.l.bf16 %v14340_v37 }
 0xc29   : > { %v8925_v1 = vunpack.i.l.bf16 %v8924_v34  ;;  %v8926_v28 = vunpack.i.h.bf16 %v8924_v34 }
 0xc2d   : > { %6173 = vrot.lane.b32.xlu0 %v9512_v10, %s18095_s16  ;;  %6169 = vrot.lane.b32.xlu1 %v9513_v42, %s18095_s16  ;;  %v18098_v10 = vld [vmem:[#allocation276_spill] sm:$0xff] }
 0xc2e   : > { %6171 = vrot.lane.b32.xlu2 %v9514_v32, %s18095_s16  ;;  %v5351_v42 = vmul.f32 %v14119_v52, %v18098_v10  ;;  %v8870_v32 = vunpack.i.l.bf16 %v14307_v15  ;;  %v8881_v10 = vunpack.i.h.bf16 %v14302_v58 }
 0xc2f   : > { %v14362_v27 = vpop.permute.xlu0 %8888  ;;  %v14376_v57 = vpop.permute.xlu1 %8893 }
 0xc30   : > { %v14382_v23 = vpop.permute.xlu2 %8928  ;;  %v5623_v4 = vsel %vm4663_vm13, %v5351_v42, %v8860_v2  ;;  %v8886_v42 = vunpack.i.h.bf16 %v14350_v62 }
 0xc35   : > { %6179 = vrot.lane.b32.xlu0 %v9515_v35, %s18095_s16  ;;  %6175 = vrot.lane.b32.xlu1 %v9516_v11, %s18095_s16  ;;  %v8865_v35 = vunpack.i.l.bf16 %v14263_v63  ;;  %v5645_v11 = vsel %vm4663_vm13, %v14020_v14, %v8875_v41 }
 0xc36   : > { %6177 = vrot.lane.b32.xlu2 %v9517_v12, %s18095_s16 }
 0xc37   : > { %v14378_v30 = vpop.permute.xlu0 %8898 }
 0xc38   : > { %v14394_v16 = vpop.permute.xlu2 %8943 }
 0xc3d   : > { %6185 = vrot.lane.b32.xlu0 %v9518_v53, %s18095_s16  ;;  %6181 = vrot.lane.b32.xlu1 %v9519_v43, %s18095_s16  ;;  %v8876_v43 = vunpack.i.h.bf16 %v14340_v37 }
 0xc3e   : > { %6183 = vrot.lane.b32.xlu2 %v9520_v51, %s18095_s16 }
 0xc3f   : > { %v8914_v61 = vpop.permute.xlu1 %8913  ;;  %v8909_v8 = vpop.permute.xlu0 %8908  ;;  %v5646_v49 = vsel %vm4663_vm13, %v13990_v20, %v8876_v43  ;;  %v8885_v20 = vunpack.i.l.bf16 %v14350_v62  ;;  %v8905_v43 = vunpack.i.l.bf16 %v14335_v39 }
 0xc40   : > { %v8915_v48 = vunpack.i.l.bf16 %v8914_v61  ;;  %v8910_v13 = vunpack.i.l.bf16 %v8909_v8  ;;  %v8911_v47 = vunpack.i.h.bf16 %v8909_v8  ;;  %v8916_v59 = vunpack.i.h.bf16 %v8914_v61  ;;  %v8959_v50 = vpop.permute.xlu2 %8958 }
 0xc41   : > { %v8960_v34 = vunpack.i.l.bf16 %v8959_v50  ;;  %v5631_v61 = vsel %vm4681_vm15, %v5623_v4, %v8865_v35  ;;  %v8861_v8 = vunpack.i.h.bf16 %v14326_v24  ;;  %v8961_v24 = vunpack.i.h.bf16 %v8959_v50 }
 0xc42   : > { %v5621_v21 = vsel %vm4663_vm13, %v5349_v31, %v8910_v13  ;;  %v5622_v6 = vsel %vm4663_vm13, %v5350_v29, %v8911_v47  ;;  %v18099_v13 = vld [vmem:[#allocation255_spill] sm:$0xff]  ;;  %v8871_v31 = vunpack.i.h.bf16 %v14307_v15  ;;  %v8866_v47 = vunpack.i.h.bf16 %v14263_v63 }
 0xc43   : > { %v5629_v55 = vsel %vm4681_vm15, %v5621_v21, %v8915_v48  ;;  %v5630_v0 = vsel %vm4681_vm15, %v5622_v6, %v8916_v59  ;;  %v5639_v48 = vsel %vm4699_vm4, %v5631_v61, %v8870_v32  ;;  %v5352_v14 = vmul.f32 %v14017_v56, %v18099_v13  ;;  %v18100_v59 = vld [vmem:[#allocation258_spill] sm:$0xff]  ;;  %v18101_v32 = vld [vmem:[#allocation296_spill] sm:$0xff] }
 0xc44   : > { %v5637_v7 = vsel %vm4699_vm4, %v5629_v55, %v8925_v1  ;;  %v5638_v5 = vsel %vm4699_vm4, %v5630_v0, %v8926_v28  ;;  %v8890_v15 = vunpack.i.l.bf16 %v14362_v27  ;;  %v8945_v29 = vunpack.i.l.bf16 %v14394_v16 }
 0xc45   : > { %5745 = vmatmul.f32.vlgmr.msrb.gmra.mxu1 %v5637_v7  ;;  %6187 = vrot.lane.b32.xlu1 %v9521_v19, %s18095_s16  ;;  %v5624_v1 = vsel %vm4663_vm13, %v5352_v14, %v8861_v8  ;;  %v8880_v7 = vunpack.i.l.bf16 %v14302_v58  ;;  %v5353_v63 = vmul.f32 %v14027_v44, %v18100_v59  ;;  %v8895_v6 = vunpack.i.l.bf16 %v14376_v57  ;;  %s18398_s16 = sshll.u32 %s18461_s30, 8 }
 0xc46   : > { %v5632_v55 = vsel %vm4681_vm15, %v5624_v1, %v8866_v47  ;;  %v5647_v28 = vsel %vm4663_vm13, %v13993_v3, %v8885_v20  ;;  %v8946_v3 = vunpack.i.h.bf16 %v14394_v16  ;;  %v8896_v35 = vunpack.i.h.bf16 %v14376_v57 }
 0xc47   : > { %v14402_v18 = vpop.permute.xlu1 %8918  ;;  %v14404_v26 = vpop.permute.xlu0 %8933  ;;  %v5640_v56 = vsel %vm4699_vm4, %v5632_v55, %v8871_v31  ;;  %v5625_v0 = vsel %vm4663_vm13, %v5353_v63, %v8880_v7  ;;  %v5655_v41 = vsel %vm4681_vm15, %v5647_v28, %v8945_v29  ;;  %v5648_v58 = vsel %vm4663_vm13, %v14009_v9, %v8886_v42  ;;  %v18102_v9 = vld [vmem:[#allocation315_spill] sm:$0xff] }
 0xc48   : > { %v5633_v2 = vsel %vm4681_vm15, %v5625_v0, %v8890_v15  ;;  %v5656_v62 = vsel %vm4681_vm15, %v5648_v58, %v8946_v3  ;;  %v8920_v57 = vunpack.i.l.bf16 %v14402_v18  ;;  %v5355_v61 = vmul.f32 %v14080_v36, %v18102_v9  ;;  %v8974_v15 = vpop.permute.xlu2 %8973 }
 0xc49   : > { %v5641_v44 = vsel %vm4699_vm4, %v5633_v2, %v8895_v6  ;;  %v8930_v14 = vunpack.i.l.bf16 %v14382_v23  ;;  %v8906_v36 = vunpack.i.h.bf16 %v14335_v39  ;;  %v8921_v47 = vunpack.i.h.bf16 %v14402_v18 }
 0xc4a   : > { %v8935_v18 = vunpack.i.l.bf16 %v14404_v26  ;;  %v8975_v59 = vunpack.i.l.bf16 %v8974_v15  ;;  %v8976_v28 = vunpack.i.h.bf16 %v8974_v15 }
 0xc4d   : > { %5748 = vmatmul.f32.gmra.mxu1 %v5638_v5 }
 0xc4f   : > { %v8939_v33 = vpop.permute.xlu1 %8938  ;;  %v14417_v12 = vpop.permute.xlu0 %8948 }
 0xc50   : > { %v8940_v38 = vunpack.i.l.bf16 %v8939_v33  ;;  %v8941_v51 = vunpack.i.h.bf16 %v8939_v33  ;;  %v8891_v33 = vunpack.i.h.bf16 %v14362_v27 }
 0xc52   : > { %v5653_v53 = vsel %vm4681_vm15, %v5645_v11, %v8940_v38  ;;  %v5654_v37 = vsel %vm4681_vm15, %v5646_v49, %v8941_v51  ;;  %v5354_v38 = vmul.f32 %v14073_v25, %v18101_v32 }
 0xc53   : > { %v5661_v52 = vsel %vm4699_vm4, %v5653_v53, %v8960_v34  ;;  %v5662_v21 = vsel %vm4699_vm4, %v5654_v37, %v8961_v24  ;;  %v8900_v53 = vunpack.i.l.bf16 %v14378_v30  ;;  %v8901_v37 = vunpack.i.h.bf16 %v14378_v30  ;;  %v18103_v24 = vld [vmem:[#allocation308_spill] sm:$0xff] }
 0xc54   : > { %5786 = vmatmul.f32.vlgmr.msrb.gmra.mxu2 %v5661_v52  ;;  %v5626_v34 = vsel %vm4663_vm13, %v5354_v38, %v8881_v10  ;;  %v8950_v52 = vunpack.i.l.bf16 %v14417_v12 }
 0xc55   : > { %5751 = vmatmul.f32.gmra.mxu1 %v5639_v48  ;;  %v5634_v11 = vsel %vm4681_vm15, %v5626_v34, %v8891_v33  ;;  %v5627_v51 = vsel %vm4663_vm13, %v5355_v61, %v8900_v53  ;;  %v5649_v48 = vsel %vm4663_vm13, %v14038_v60, %v8905_v43  ;;  %v8951_v60 = vunpack.i.h.bf16 %v14417_v12  ;;  %v9458_v61 = vld [vmem:[%s16833_s11] ss:$0 sm:$0xff] }
 0xc56   : > { %v5642_v25 = vsel %vm4699_vm4, %v5634_v11, %v8896_v35  ;;  %v5635_v13 = vsel %vm4681_vm15, %v5627_v51, %v8920_v57  ;;  %v5657_v49 = vsel %vm4681_vm15, %v5649_v48, %v8950_v52 }
 0xc57   : > { %v8964_v40 = vpop.permute.xlu0 %8963  ;;  %v14447_v5 = vpop.permute.xlu1 %8953  ;;  %v5643_v1 = vsel %vm4699_vm4, %v5635_v13, %v8930_v14 }
 0xc58   : > { %v8965_v19 = vunpack.i.l.bf16 %v8964_v40  ;;  %v8966_v4 = vunpack.i.h.bf16 %v8964_v40  ;;  %v5650_v40 = vsel %vm4663_vm13, %v14064_v45, %v8906_v36  ;;  %v8955_v12 = vunpack.i.l.bf16 %v14447_v5 }
 0xc59   : > { %v5658_v39 = vsel %vm4681_vm15, %v5650_v40, %v8951_v60  ;;  %v5651_v45 = vsel %vm4663_vm13, %v14090_v17, %v8935_v18 }
 0xc5a   : > { %v5663_v50 = vsel %vm4699_vm4, %v5655_v41, %v8965_v19  ;;  %v5664_v27 = vsel %vm4699_vm4, %v5656_v62, %v8966_v4  ;;  %v5659_v29 = vsel %vm4681_vm15, %v5651_v45, %v8955_v12  ;;  %v8956_v19 = vunpack.i.h.bf16 %v14447_v5  ;;  %v5828_v41 = vpop.f32.mrf.mxu3 }
 0xc5b   : > { %v5667_v63 = vsel %vm4699_vm4, %v5659_v29, %v8975_v59 }
 0xc5c   : > { %5789 = vmatmul.f32.gmra.mxu2 %v5662_v21  ;;  %v5356_v21 = vmul.f32 %v14155_v22, %v18103_v24  ;;  %v9459_v24 = vld [vmem:[%s16834_s12] ss:$0 sm:$0xff] }
 0xc5d   : > { %5754 = vmatmul.f32.gmra.mxu1 %v5640_v56  ;;  %v8931_v56 = vunpack.i.h.bf16 %v14382_v23  ;;  %v8936_v23 = vunpack.i.h.bf16 %v14404_v26 }
 0xc5e   : > { %v5628_v7 = vsel %vm4663_vm13, %v5356_v21, %v8901_v37 }
 0xc5f   : > { %v8969_v16 = vpop.permute.xlu1 %8968  ;;  %v5636_v30 = vsel %vm4681_vm15, %v5628_v7, %v8921_v47  ;;  %v5652_v6 = vsel %vm4663_vm13, %v14107_v54, %v8936_v23  ;;  %vm8038_vm13 = vcmask 1041408  }
 0xc60   : > { %v8970_v8 = vunpack.i.l.bf16 %v8969_v16  ;;  %v8971_v55 = vunpack.i.h.bf16 %v8969_v16  ;;  %v5644_v22 = vsel %vm4699_vm4, %v5636_v30, %v8931_v56  ;;  %v5660_v0 = vsel %vm4681_vm15, %v5652_v6, %v8956_v19 }
 0xc61   : > { %v5668_v2 = vsel %vm4699_vm4, %v5660_v0, %v8976_v28 }
 0xc62   : > { %v5665_v31 = vsel %vm4699_vm4, %v5657_v49, %v8970_v8  ;;  %v5666_v20 = vsel %vm4699_vm4, %v5658_v39, %v8971_v55  ;;  %v5831_v10 = vpop.f32.mrf.mxu3  ;;  %vm7822_vm4 = vcmask 883712  }
 0xc64   : > { %5792 = vmatmul.f32.gmra.mxu2 %v5663_v50 }
 0xc65   : > { %5757 = vmatmul.f32.gmra.mxu1 %v5641_v44 }
 0xc6a   : > { %v5834_v42 = vpop.f32.mrf.mxu3 }
 0xc6c   : > { %5795 = vmatmul.f32.gmra.mxu2 %v5664_v27 }
 0xc6d   : > { %5760 = vmatmul.f32.gmra.mxu1 %v5642_v25 }
 0xc72   : > { %v5837_v32 = vpop.f32.mrf.mxu3 }
 0xc74   : > { %5798 = vmatmul.f32.gmra.mxu2 %v5665_v31 }
 0xc75   : > { %5763 = vmatmul.f32.gmra.mxu1 %v5643_v1 }
 0xc7a   : > { %v5840_v54 = vpop.f32.mrf.mxu3 }
 0xc7c   : > { %5801 = vmatmul.f32.gmra.mxu2 %v5666_v20 }
 0xc7d   : > { %5766 = vmatmul.f32.gmra.mxu1 %v5644_v22 }
 0xc82   : > { %v5843_v58 = vpop.f32.mrf.mxu3 }
 0xc84   : > { %5804 = vmatmul.f32.gmra.mxu2 %v5667_v63 }
 0xc8a   : > { %v5846_v27 = vpop.f32.mrf.mxu3 }
 0xc8c   : > { %5807 = vmatmul.f32.gmra.mxu2 %v5668_v2 }
 0xc92   : > { %v5849_v13 = vpop.f32.mrf.mxu3 }
 0xcc2   : > { %v5746_v17 = vpop.f32.mrf.mxu1 }
 0xcca   : > { %v5749_v50 = vpop.f32.mrf.mxu1 }
 0xcd2   : > { %v5752_v26 = vpop.f32.mrf.mxu1 }
 0xcd7   : > { %v5787_v44 = vpop.f32.mrf.mxu2 }
 0xcd8   : > { %v5788_v21 = vadd.f32 %v5787_v44, %v5746_v17  ;;  %v5885_v44 = vld [vmem:[%s16844_s22 + $0x8] sm:$0xff] }
 0xcda   : > { %v5755_v3 = vpop.f32.mrf.mxu1  ;;  %v5829_v12 = vadd.f32 %v5828_v41, %v5788_v21 }
 0xcdc   : > { %v5856_v63 = vmul.f32 %v9458_v61, %v5829_v12  ;;  %v18111_v12 = vld [vmem:[#allocation97_spill] sm:$0xff] }
 0xcde   : > { %v5868_v17 = vadd.f32 %v9459_v24, %v5856_v63 }
 0xcdf   : > { %v5790_v33 = vpop.f32.mrf.mxu2 }
 0xce0   : > { %v5791_v1 = vadd.f32 %v5790_v33, %v5749_v50  ;;  %v5876_v50 = vmax.f32 %v5868_v17, 0.0  ;;  %v5888_v33 = vld [vmem:[%s16844_s22 + $0x20] sm:$0xff] }
 0xce2   : > { %v5758_v4 = vpop.f32.mrf.mxu1  ;;  %v5832_v56 = vadd.f32 %v5831_v10, %v5791_v1  ;;  %v5884_v10 = vld [vmem:[%s16844_s22] sm:$0xff] }
 0xce4   : > { %v5857_v29 = vmul.f32 %v9458_v61, %v5832_v56 }
 0xce6   : > { %v5869_v28 = vadd.f32 %v9459_v24, %v5857_v29  ;;  %v18113_v29 = vld [vmem:[#allocation65_spill] sm:$0xff] }
 0xce7   : > { %v5793_v5 = vpop.f32.mrf.mxu2 }
 0xce8   : > { %v5794_v14 = vadd.f32 %v5793_v5, %v5752_v26  ;;  %v5877_v41 = vmax.f32 %v5869_v28, 0.0  ;;  %v5886_v26 = vld [vmem:[%s16844_s22 + $0x10] sm:$0xff]  ;;  %v5903_v28 = vld [vmem:[%s16844_s22 + $0x98] sm:$0xff] }
 0xce9   : > { %v5890_v5 = vld [vmem:[%s16844_s22 + $0x30] sm:$0xff] }
 0xcea   : > { %v5761_v34 = vpop.f32.mrf.mxu1  ;;  %v5835_v55 = vadd.f32 %v5834_v42, %v5794_v14  ;;  %v5887_v42 = vld [vmem:[%s16844_s22 + $0x18] sm:$0xff]  ;;  %v18106_v14 = vld [vmem:[#allocation32_spill] sm:$0xff] }
 0xcec   : > { %v5858_v22 = vmul.f32 %v9458_v61, %v5835_v55 }
 0xcee   : > { %v5870_v6 = vadd.f32 %v9459_v24, %v5858_v22 }
 0xcef   : > { %v5796_v38 = vpop.f32.mrf.mxu2 }
 0xcf0   : > { %v5797_v8 = vadd.f32 %v5796_v38, %v5755_v3  ;;  %v5878_v2 = vmax.f32 %v5870_v6, 0.0  ;;  %v5889_v3 = vld [vmem:[%s16844_s22 + $0x28] sm:$0xff]  ;;  %v5892_v38 = vld [vmem:[%s16844_s22 + $0x40] sm:$0xff] }
 0xcf2   : > { %v5764_v62 = vpop.f32.mrf.mxu1  ;;  %v5838_v36 = vadd.f32 %v5837_v32, %v5797_v8  ;;  %v5891_v32 = vld [vmem:[%s16844_s22 + $0x38] sm:$0xff] }
 0xcf4   : > { %v5859_v39 = vmul.f32 %v9458_v61, %v5838_v36 }
 0xcf6   : > { %v5871_v23 = vadd.f32 %v9459_v24, %v5859_v39 }
 0xcf7   : > { %v5799_v35 = vpop.f32.mrf.mxu2 }
 0xcf8   : > { %v5800_v43 = vadd.f32 %v5799_v35, %v5758_v4  ;;  %v5879_v0 = vmax.f32 %v5871_v23, 0.0  ;;  %v5893_v4 = vld [vmem:[%s16844_s22 + $0x48] sm:$0xff]  ;;  %v5895_v35 = vld [vmem:[%s16844_s22 + $0x58] sm:$0xff] }
 0xcfa   : > { %v5767_v52 = vpop.f32.mrf.mxu1  ;;  %v5841_v49 = vadd.f32 %v5840_v54, %v5800_v43  ;;  %v5894_v54 = vld [vmem:[%s16844_s22 + $0x50] sm:$0xff]  ;;  %v6128_v43 = vpop.permute.xlu1 %6127 }
 0xcfc   : > { %v5860_v7 = vmul.f32 %v9458_v61, %v5841_v49 }
 0xcfe   : > { %v5872_v45 = vadd.f32 %v9459_v24, %v5860_v7 }
 0xcff   : > { %v5802_v11 = vpop.f32.mrf.mxu2 }
 0xd00   : > { %v5803_v25 = vadd.f32 %v5802_v11, %v5761_v34  ;;  %v5880_v19 = vmax.f32 %v5872_v45, 0.0  ;;  %v5896_v34 = vld [vmem:[%s16844_s22 + $0x60] sm:$0xff]  ;;  %v5898_v11 = vld [vmem:[%s16844_s22 + $0x70] sm:$0xff] }
 0xd02   : > { %v5844_v51 = vadd.f32 %v5843_v58, %v5803_v25  ;;  %v5897_v58 = vld [vmem:[%s16844_s22 + $0x68] sm:$0xff] }
 0xd04   : > { %v5861_v47 = vmul.f32 %v9458_v61, %v5844_v51  ;;  %v18105_v51 = vld [vmem:[#allocation39_spill] sm:$0xff] }
 0xd06   : > { %v5873_v20 = vadd.f32 %v9459_v24, %v5861_v47 }
 0xd07   : > { %v5805_v53 = vpop.f32.mrf.mxu2 }
 0xd08   : > { %v5806_v16 = vadd.f32 %v5805_v53, %v5764_v62  ;;  %v5881_v59 = vmax.f32 %v5873_v20, 0.0  ;;  %v5899_v62 = vld [vmem:[%s16844_s22 + $0x78] sm:$0xff]  ;;  %v5900_v53 = vld [vmem:[%s16844_s22 + $0x80] sm:$0xff] }
 0xd0a   : > { %v5847_v57 = vadd.f32 %v5846_v27, %v5806_v16  ;;  %v6126_v16 = vpop.permute.xlu0 %6125 }
 0xd0c   : > { %v5862_v31 = vmul.f32 %v9458_v61, %v5847_v57 }
 0xd0e   : > { %v5874_v30 = vadd.f32 %v9459_v24, %v5862_v31 }
 0xd0f   : > { %v5808_v9 = vpop.f32.mrf.mxu2 }
 0xd10   : > { %v5809_v48 = vadd.f32 %v5808_v9, %v5767_v52  ;;  %v5882_v15 = vmax.f32 %v5874_v30, 0.0  ;;  %v5901_v52 = vld [vmem:[%s16844_s22 + $0x88] sm:$0xff]  ;;  %v6130_v9 = vpop.permute.xlu2 %6129 }
 0xd12   : > { %v5850_v37 = vadd.f32 %v5849_v13, %v5809_v48  ;;  %v6132_v63 = vpop.permute.xlu0 %6131 }
 0xd14   : > { %v5863_v60 = vmul.f32 %v9458_v61, %v5850_v37 }
 0xd16   : > { %v5875_v40 = vadd.f32 %v9459_v24, %v5863_v60  ;;  %v5902_v24 = vld [vmem:[%s16844_s22 + $0x90] sm:$0xff] }
 0xd18   : > { %v5883_v18 = vmax.f32 %v5875_v40, 0.0  ;;  %v6136_v21 = vpop.permute.xlu2 %6135  ;;  %v18107_v40 = vld [vmem:[#allocation194_spill] sm:$0xff] }
 0xd1a   : > { %6020 = vmatpush.msra.mxu1 %v5883_v18  ;;  %v18110_v18 = vld [vmem:[#allocation128_spill] sm:$0xff] }
 0xd1c   : > { %6021 = vmatpush.msra.mxu1 %v5882_v15  ;;  %v18112_v15 = vld [vmem:[#allocation72_spill] sm:$0xff] }
 0xd1e   : > { %6022 = vmatpush.msra.mxu1 %v5881_v59 }
 0xd20   : > { %6023 = vmatpush.msra.mxu1 %v5880_v19 }
 0xd22   : > { %6024 = vmatpush.msra.mxu1 %v5879_v0 }
 0xd24   : > { %6025 = vmatpush.msra.mxu1 %v5878_v2 }
 0xd26   : > { %6026 = vmatpush.msra.mxu1 %v5877_v41 }
 0xd28   : > { %6027 = vmatpush.msra.mxu1 %v5876_v50  ;;  %v14643_v50 = vpop.permute.xlu2 %6141 }
 0xd29   : > { %8498 = vmatmul.msk.f32.vlgmr.msra.gmra.mxu1 %vm4681_vm15, %v5884_v10  ;;  %v18116_v10 = vld [vmem:[#allocation35_spill] sm:$0xff] }
 0xd31   : > { %8499 = vmatmul.msk.f32.gmra.mxu1 %vm4681_vm15, %v5885_v44 }
 0xd39   : > { %8500 = vmatmul.msk.f32.gmra.mxu1 %vm4681_vm15, %v5886_v26 }
 0xd41   : > { %8501 = vmatmul.msk.f32.gmra.mxu1 %vm4681_vm15, %v5887_v42  ;;  %v18118_v42 = vld [vmem:[#allocation42_spill] sm:$0xff] }
 0xd49   : > { %8502 = vmatmul.msk.f32.gmra.mxu1 %vm4681_vm15, %v5888_v33 }
 0xd51   : > { %8503 = vmatmul.msk.f32.gmra.mxu1 %vm4681_vm15, %v5889_v3  ;;  %v18119_v3 = vld [vmem:[#allocation105_spill] sm:$0xff] }
 0xd59   : > { %8504 = vmatmul.msk.f32.gmra.mxu1 %vm4681_vm15, %v5890_v5 }
 0xd61   : > { %8505 = vmatmul.msk.f32.gmra.mxu1 %vm4681_vm15, %v5891_v32  ;;  %v18120_v32 = vld [vmem:[#allocation98_spill] sm:$0xff] }
 0xd69   : > { %8506 = vmatmul.msk.f32.gmra.mxu1 %vm4681_vm15, %v5892_v38 }
 0xd71   : > { %8507 = vmatmul.msk.f32.gmra.mxu1 %vm4681_vm15, %v5893_v4 }
 0xd79   : > { %8508 = vmatmul.msk.f32.gmra.mxu1 %vm4681_vm15, %v5894_v54  ;;  %v6134_v54 = vpop.permute.xlu1 %6133 }
 0xd81   : > { %8509 = vmatmul.msk.f32.gmra.mxu1 %vm4681_vm15, %v5895_v35 }
 0xd89   : > { %8510 = vmatmul.msk.f32.gmra.mxu1 %vm4681_vm15, %v5896_v34 }
 0xd91   : > { %8511 = vmatmul.msk.f32.gmra.mxu1 %vm4681_vm15, %v5897_v58 }
 0xd99   : > { %8512 = vmatmul.msk.f32.gmra.mxu1 %vm4681_vm15, %v5898_v11 }
 0xda1   : > { %8513 = vmatmul.msk.f32.gmra.mxu1 %vm4681_vm15, %v5899_v62  ;;  %v5904_v62 = vld [vmem:[%s16844_s22 + $0xa0] sm:$0xff] }
 0xda6   : > { %v6029_v27 = vpop.f32.mrf.mxu1 }
 0xda7   : > { %v14581_v25 = vsel %vm3243_vm3, %v6029_v27, %v6126_v16 }
 0xda8   : > { %v17273_v61 = vrot.slane %v14581_v25, 7  ;;  %v6351_v48 = vmul.f32 %v14581_v25, %v18105_v51  ;;  %v17272_v47 = vrot.slane %v14581_v25, 1  ;;  %v18124_v51 = vld [vmem:[#allocation68_spill] sm:$0xff] }
 0xda9   : > { %8514 = vmatmul.msk.f32.gmra.mxu1 %vm4681_vm15, %v5900_v53 }
 0xdae   : > { %v6032_v57 = vpop.f32.mrf.mxu1 }
 0xdaf   : > { %v14588_v8 = vsel %vm3243_vm3, %v6032_v57, %v6128_v43  ;;  %v14672_v57 = vpop.permute.xlu2 %6147 }
 0xdb0   : > { %18104 = vst [vmem:[#allocation295_spill] sm:$0xff] %v14588_v8  ;;  %v6254_v13 = vrot.slane %v14588_v8, 7  ;;  %v6352_v49 = vmul.f32 %v14588_v8, %v18106_v14  ;;  %v8977_v31 = vpack.i.bf16 %v14588_v8, %v14581_v25  ;;  %v6382_v36 = vrot.slane %v14588_v8, 1 }
 0xdb1   : > { %8515 = vmatmul.msk.f32.gmra.mxu1 %vm4681_vm15, %v5901_v52  ;;  %v18123_v52 = vld [vmem:[#allocation75_spill] sm:$0xff] }
 0xdb2   : > { %v14602_v37 = vsel %vm809_vm1, %v17273_v61, %v6254_v13  ;;  %8978 = vrot.lane.b32.xlu2 %v8977_v31, %s17743_s27  ;;  %v8982_v1 = vpack.i.bf16 %v6352_v49, %v6351_v48  ;;  %v14617_v56 = vsel %vm1226_vm0, %v17272_v47, %v6382_v36  ;;  %v18126_v49 = vld [vmem:[#allocation158_spill] sm:$0xff] }
 0xdb3   : > { %18108 = vst [vmem:[#allocation321_spill] sm:$0xff] %v14617_v56  ;;  %v6509_v20 = vmul.f32 %v14617_v56, %v18110_v18  ;;  %v6447_v45 = vmul.f32 %v14617_v56, %v18112_v15  ;;  %v18127_v18 = vld [vmem:[#allocation204_spill] sm:$0xff]  ;;  %v18206_v56 = vld [vmem:[#allocation106_spill] sm:$0xff] }
 0xdb4   : > { %8983 = vrot.lane.b32.xlu0 %v8982_v1, %s17937_s26 }
 0xdb6   : > { %v6035_v60 = vpop.f32.mrf.mxu1 }
 0xdb7   : > { %v6223_v55 = vsel %vm3243_vm3, %v6035_v60, %v6130_v9  ;;  %v5905_v60 = vld [vmem:[%s16844_s22 + $0xa8] sm:$0xff] }
 0xdb8   : > { %v6383_v7 = vrot.slane %v6223_v55, 1  ;;  %v6573_v30 = vmul.f32 %v6223_v55, %v18107_v40  ;;  %v6255_v23 = vrot.slane %v6223_v55, 7  ;;  %v6353_v33 = vmul.f32 %v6223_v55, %v18118_v42 }
 0xdb9   : > { %8516 = vmatmul.msk.f32.gmra.mxu1 %vm4681_vm15, %v5902_v24 }
 0xdba   : > { %7437 = vrot.lane.b32.xlu2 %v6573_v30, %s9555_s1  ;;  %v14623_v39 = vsel %vm1226_vm0, %v6382_v36, %v6383_v7  ;;  %v14641_v41 = vsel %vm809_vm1, %v6254_v13, %v6255_v23  ;;  %v18125_v13 = vld [vmem:[#allocation229_spill] sm:$0xff]  ;;  %v14689_v30 = vpop.permute.xlu2 %6153 }
 0xdbb   : > { %18109 = vst [vmem:[#allocation270_spill] sm:$0xff] %v14623_v39  ;;  %v6510_v22 = vmul.f32 %v14623_v39, %v18111_v12  ;;  %v6448_v59 = vmul.f32 %v14623_v39, %v18113_v29  ;;  %v6479_v5 = vmul.f32 %v14641_v41, %v18119_v3  ;;  %v5906_v29 = vld [vmem:[%s16844_s22 + $0xb0] sm:$0xff] }
 0xdbc   : > { %18115 = vst [vmem:[#allocation284_spill] sm:$0xff] %v14641_v41 }
 0xdbd   : > { %v8992_v19 = vpack.i.bf16 %v6510_v22, %v6509_v20  ;;  %v8987_v6 = vpack.i.bf16 %v6448_v59, %v6447_v45  ;;  %v18128_v45 = vld [vmem:[#allocation188_spill] sm:$0xff] }
 0xdbe   : > { %v6038_v0 = vpop.f32.mrf.mxu1 }
 0xdbf   : > { %v6224_v2 = vsel %vm3243_vm3, %v6038_v0, %v6132_v63  ;;  %8993 = vrot.lane.b32.xlu0 %v8992_v19, %s9556_s24  ;;  %8988 = vrot.lane.b32.xlu1 %v8987_v6, %s18114_s5  ;;  %v6140_v19 = vpop.permute.xlu1 %6139  ;;  %v18131_v6 = vld [vmem:[#allocation101_spill] sm:$0xff] }
 0xdc0   : > { %v6256_v17 = vrot.slane %v6224_v2, 7  ;;  %v6354_v44 = vmul.f32 %v6224_v2, %v18116_v10  ;;  %v6384_v4 = vrot.slane %v6224_v2, 1  ;;  %v8997_v35 = vpack.i.bf16 %v6224_v2, %v6223_v55  ;;  %v6138_v55 = vpop.permute.xlu0 %6137 }
 0xdc1   : > { %8517 = vmatmul.msk.f32.gmra.mxu1 %vm4681_vm15, %v5903_v28  ;;  %v6574_v31 = vmul.f32 %v6224_v2, %v18126_v49  ;;  %v18132_v2 = vld [vmem:[#allocation45_spill] sm:$0xff] }
 0xdc2   : > { %v14649_v26 = vsel %vm809_vm1, %v6255_v23, %v6256_v17  ;;  %v9002_v34 = vpack.i.bf16 %v6354_v44, %v6353_v33  ;;  %v14665_v16 = vsel %vm1226_vm0, %v6383_v7, %v6384_v4  ;;  %v18134_v33 = vld [vmem:[#allocation108_spill] sm:$0xff] }
 0xdc3   : > { %18117 = vst [vmem:[#allocation317_spill] sm:$0xff] %v14649_v26  ;;  %v6480_v38 = vmul.f32 %v14649_v26, %v18120_v32  ;;  %v6449_v9 = vmul.f32 %v14665_v16, %v18123_v52  ;;  %v6605_v14 = vmul.f32 %v14665_v16, %v18125_v13 }
 0xdc4   : > { %18121 = vst [vmem:[#allocation304_spill] sm:$0xff] %v14665_v16 }
 0xdc5   : > { %v9007_v58 = vpack.i.bf16 %v6480_v38, %v6479_v5  ;;  %v18136_v38 = vld [vmem:[#allocation240_spill] sm:$0xff] }
 0xdc6   : > { %v6041_v11 = vpop.f32.mrf.mxu1 }
 0xdc7   : > { %v6225_v27 = vsel %vm3243_vm3, %v6041_v11, %v6134_v54  ;;  %8998 = vrot.lane.b32.xlu0 %v8997_v35, %s17743_s27  ;;  %9003 = vrot.lane.b32.xlu1 %v9002_v34, %s17937_s26  ;;  %v14729_v11 = vpop.permute.xlu2 %6159 }
 0xdc8   : > { %v6385_v53 = vrot.slane %v6225_v27, 1  ;;  %9008 = vrot.lane.b32.xlu2 %v9007_v58, %s17734_s2  ;;  %v6257_v40 = vrot.slane %v6225_v27, 7  ;;  %v6575_v20 = vmul.f32 %v6225_v27, %v18127_v18  ;;  %v6144_v28 = vpop.permute.xlu0 %6143  ;;  %v5907_v58 = vld [vmem:[%s16844_s22 + $0xb8] sm:$0xff] }
 0xdc9   : > { %8518 = vmatmul.msk.f32.gmra.mxu1 %vm4681_vm15, %v5904_v62 }
 0xdca   : > { %v14670_v43 = vsel %vm1226_vm0, %v6384_v4, %v6385_v53  ;;  %v14709_v63 = vsel %vm809_vm1, %v6256_v17, %v6257_v40  ;;  %v18135_v17 = vld [vmem:[#allocation11_spill] sm:$0xff] }
 0xdcb   : > { %18122 = vst [vmem:[#allocation310_spill] sm:$0xff] %v14670_v43  ;;  %v6450_v48 = vmul.f32 %v14670_v43, %v18124_v51  ;;  %v6481_v3 = vmul.f32 %v14709_v63, %v18134_v33  ;;  %v6355_v5 = vmul.f32 %v6225_v27, %v18135_v17  ;;  %v18147_v33 = vld [vmem:[#allocation232_spill] sm:$0xff] }
 0xdcc   : > { %18130 = vst [vmem:[#allocation298_spill] sm:$0xff] %v14709_v63 }
 0xdcd   : > { %v9012_v1 = vpack.i.bf16 %v6450_v48, %v6449_v9  ;;  %v18139_v9 = vld [vmem:[#allocation78_spill] sm:$0xff]  ;;  %v14749_v48 = vpop.permute.xlu1 %6145 }
 0xdce   : > { %v6044_v36 = vpop.f32.mrf.mxu1 }
 0xdcf   : > { %v6226_v24 = vsel %vm3243_vm3, %v6044_v36, %v6136_v21  ;;  %7565 = vrot.lane.b32.xlu0 %v6605_v14, %s18034_s25  ;;  %7439 = vrot.lane.b32.xlu1 %v6574_v31, %s9555_s1  ;;  %v6606_v21 = vmul.f32 %v14670_v43, %v18128_v45  ;;  %v18140_v14 = vld [vmem:[#allocation40_spill] sm:$0xff]  ;;  %v18141_v31 = vld [vmem:[#allocation70_spill] sm:$0xff]  ;;  %v18142_v36 = vld [vmem:[#allocation111_spill] sm:$0xff] }
 0xdd0   : > { %9013 = vrot.lane.b32.xlu2 %v9012_v1, %s18114_s5  ;;  %v6258_v7 = vrot.slane %v6226_v24, 7  ;;  %v9017_v12 = vpack.i.bf16 %v6226_v24, %v6225_v27  ;;  %v6386_v22 = vrot.slane %v6226_v24, 1  ;;  %v6356_v10 = vmul.f32 %v6226_v24, %v18132_v2 }
 0xdd1   : > { %8519 = vmatmul.msk.f32.gmra.mxu1 %vm4681_vm15, %v5905_v60 }
 0xdd2   : > { %v14699_v59 = vsel %vm809_vm1, %v6257_v40, %v6258_v7  ;;  %v14718_v42 = vsel %vm1226_vm0, %v6385_v53, %v6386_v22  ;;  %v9022_v34 = vpack.i.bf16 %v6356_v10, %v6355_v5 }
 0xdd3   : > { %18129 = vst [vmem:[#allocation286_spill] sm:$0xff] %v14699_v59  ;;  %v6482_v0 = vmul.f32 %v14699_v59, %v18131_v6  ;;  %v6607_v4 = vmul.f32 %v14718_v42, %v18136_v38  ;;  %v6451_v49 = vmul.f32 %v14718_v42, %v18140_v14  ;;  %v18151_v14 = vld [vmem:[#allocation38_spill] sm:$0xff] }
 0xdd4   : > { %18133 = vst [vmem:[#allocation319_spill] sm:$0xff] %v14718_v42  ;;  %v18207_v42 = vld [vmem:[#allocation180_spill] sm:$0xff] }
 0xdd5   : > { %v9027_v54 = vpack.i.bf16 %v6482_v0, %v6481_v3  ;;  %v18146_v0 = vld [vmem:[#allocation43_spill] sm:$0xff]  ;;  %v14790_v10 = vpop.permute.xlu1 %6151 }
 0xdd6   : > { %v6047_v15 = vpop.f32.mrf.mxu1 }
 0xdd7   : > { %v14702_v23 = vsel %vm3243_vm3, %v6047_v15, %v6138_v55  ;;  %7441 = vrot.lane.b32.xlu0 %v6575_v20, %s9555_s1  ;;  %9018 = vrot.lane.b32.xlu1 %v9017_v12, %s17743_s27  ;;  %v14761_v55 = vpop.permute.xlu0 %6149  ;;  %v18143_v12 = vld [vmem:[#allocation197_spill] sm:$0xff]  ;;  %v5908_v15 = vld [vmem:[%s16844_s22 + $0xc0] sm:$0xff] }
 0xdd8   : > { %7567 = vrot.lane.b32.xlu2 %v6606_v21, %s18034_s25  ;;  %v6387_v44 = vrot.slane %v14702_v23, 1  ;;  %v6259_v32 = vrot.slane %v14702_v23, 7 }
 0xdd9   : > { %8520 = vmatmul.msk.f32.gmra.mxu1 %vm4681_vm15, %v5906_v29  ;;  %v14776_v29 = vpop.permute.xlu2 %6165 }
 0xdda   : > { %v14733_v62 = vsel %vm1226_vm0, %v6386_v22, %v6387_v44  ;;  %v14744_v52 = vsel %vm809_vm1, %v6258_v7, %v6259_v32  ;;  %v6576_v22 = vmul.f32 %v6226_v24, %v18143_v12  ;;  %v5910_v12 = vld [vmem:[%s16844_s22 + $0xd0] sm:$0xff] }
 0xddb   : > { %18137 = vst [vmem:[#allocation216_spill] sm:$0xff] %v14733_v62  ;;  %v6452_v51 = vmul.f32 %v14733_v62, %v18139_v9  ;;  %v6483_v1 = vmul.f32 %v14744_v52, %v18141_v31  ;;  %v6608_v3 = vmul.f32 %v14733_v62, %v18147_v33  ;;  %v18155_v33 = vld [vmem:[#allocation48_spill] sm:$0xff]  ;;  %v18199_v62 = vld [vmem:[#allocation193_spill] sm:$0xff] }
 0xddd   : > { %v9032_v40 = vpack.i.bf16 %v6452_v51, %v6451_v49  ;;  %v6357_v49 = vmul.f32 %v14702_v23, %v18151_v14 }
 0xdde   : > { %v6050_v35 = vpop.f32.mrf.mxu1 }
 0xddf   : > { %v14736_v27 = vsel %vm3243_vm3, %v6050_v35, %v6140_v19  ;;  %7569 = vrot.lane.b32.xlu1 %v6607_v4, %s18034_s25  ;;  %9028 = vrot.lane.b32.xlu0 %v9027_v54, %s17734_s2  ;;  %v18145_v19 = vld [vmem:[#allocation71_spill] sm:$0xff]  ;;  %v5909_v4 = vld [vmem:[%s16844_s22 + $0xc8] sm:$0xff]  ;;  %v18149_v35 = vld [vmem:[#allocation14_spill] sm:$0xff] }
 0xde0   : > { %18138 = vst [vmem:[#allocation306_spill] sm:$0xff] %v14736_v27  ;;  %v6260_v53 = vrot.slane %v14736_v27, 7  ;;  %9023 = vrot.lane.b32.xlu2 %v9022_v34, %s17937_s26  ;;  %v6388_v7 = vrot.slane %v14736_v27, 1  ;;  %v6358_v34 = vmul.f32 %v14736_v27, %v18149_v35 }
 0xde1   : > { %8521 = vmatmul.msk.f32.gmra.mxu1 %vm4681_vm15, %v5907_v58  ;;  %v18150_v58 = vld [vmem:[#allocation144_spill] sm:$0xff]  ;;  %v14812_v51 = vpop.permute.xlu2 %6171 }
 0xde2   : > { %v14753_v13 = vsel %vm809_vm1, %v6259_v32, %v6260_v53  ;;  %v6437_v24 = vsel %vm1226_vm0, %v6387_v44, %v6388_v7  ;;  %v14794_v44 = vpop.permute.xlu0 %6155  ;;  %v18148_v32 = vld [vmem:[#allocation207_spill] sm:$0xff] }
 0xde3   : > { %v6484_v60 = vmul.f32 %v14753_v13, %v18142_v36  ;;  %v6453_v6 = vmul.f32 %v6437_v24, %v18145_v19  ;;  %v6577_v38 = vmul.f32 %v14702_v23, %v18148_v32  ;;  %v18153_v19 = vld [vmem:[#allocation41_spill] sm:$0xff] }
 0xde5   : > { %v9047_v18 = vpack.i.bf16 %v6484_v60, %v6483_v1  ;;  %v18152_v1 = vld [vmem:[#allocation100_spill] sm:$0xff]  ;;  %v9042_v60 = vpack.i.bf16 %v6358_v34, %v6357_v49  ;;  %v18158_v49 = vld [vmem:[#allocation177_spill] sm:$0xff] }
 0xde6   : > { %v6053_v20 = vpop.f32.mrf.mxu1 }
 0xde7   : > { %v14770_v45 = vsel %vm3243_vm3, %v6053_v20, %v14643_v50  ;;  %9033 = vrot.lane.b32.xlu0 %v9032_v40, %s18114_s5  ;;  %9048 = vrot.lane.b32.xlu1 %v9047_v18, %s17734_s2  ;;  %v14819_v40 = vpop.permute.xlu1 %6157  ;;  %v9037_v20 = vpack.i.bf16 %v14736_v27, %v14702_v23 }
 0xde8   : > { %v6389_v21 = vrot.slane %v14770_v45, 1  ;;  %7443 = vrot.lane.b32.xlu2 %v6576_v22, %s9555_s1  ;;  %v6261_v36 = vrot.slane %v14770_v45, 7 }
 0xde9   : > { %8522 = vmatmul.msk.f32.gmra.mxu1 %vm4681_vm15, %v5908_v15 }
 0xdea   : > { %v14785_v50 = vsel %vm1226_vm0, %v6388_v7, %v6389_v21  ;;  %v14828_v22 = vpop.permute.xlu0 %6161 }
 0xdeb   : > { %18144 = vst [vmem:[#allocation312_spill] sm:$0xff] %v14785_v50  ;;  %v6454_v2 = vmul.f32 %v14785_v50, %v18146_v0  ;;  %v6516_v9 = vmul.f32 %v14785_v50, %v18150_v58  ;;  %v18154_v0 = vld [vmem:[#allocation73_spill] sm:$0xff]  ;;  %v18225_v50 = vld [vmem:[#allocation196_spill] sm:$0xff] }
 0xded   : > { %v9052_v17 = vpack.i.bf16 %v6454_v2, %v6453_v6  ;;  %v14842_v6 = vsel %vm809_vm1, %v6260_v53, %v6261_v36  ;;  %v5911_v53 = vld [vmem:[%s16844_s22 + $0xd8] sm:$0xff] }
 0xdee   : > { %v6056_v5 = vpop.f32.mrf.mxu1 }
 0xdef   : > { %7571 = vrot.lane.b32.xlu0 %v6608_v3, %s18034_s25  ;;  %9053 = vrot.lane.b32.xlu1 %v9052_v17, %s18114_s5  ;;  %v14804_v54 = vsel %vm3243_vm3, %v6056_v5, %v6144_v28  ;;  %v6515_v28 = vmul.f32 %v6437_v24, %v18152_v1  ;;  %v6359_v3 = vmul.f32 %v14770_v45, %v18155_v33  ;;  %v14848_v17 = vpop.permute.xlu2 %6177  ;;  %v18156_v5 = vld [vmem:[#allocation104_spill] sm:$0xff] }
 0xdf0   : > { %7445 = vrot.lane.b32.xlu2 %v6577_v38, %s9555_s1  ;;  %v6262_v31 = vrot.slane %v14804_v54, 7  ;;  %v6360_v23 = vmul.f32 %v14804_v54, %v18153_v19  ;;  %v6485_v32 = vmul.f32 %v14842_v6, %v18156_v5  ;;  %v18157_v38 = vld [vmem:[#allocation244_spill] sm:$0xff] }
 0xdf1   : > { %8523 = vmatmul.msk.f32.gmra.mxu1 %vm4681_vm15, %v5909_v4  ;;  %v9057_v7 = vpack.i.bf16 %v6516_v9, %v6515_v28  ;;  %v6609_v4 = vmul.f32 %v6437_v24, %v18157_v38  ;;  %v14858_v9 = vpop.permute.xlu1 %6163  ;;  %v18165_v38 = vld [vmem:[#allocation74_spill] sm:$0xff] }
 0xdf2   : > { %v14834_v15 = vsel %vm809_vm1, %v6261_v36, %v6262_v31  ;;  %v9067_v35 = vpack.i.bf16 %v6360_v23, %v6359_v3  ;;  %v14866_v24 = vpop.permute.xlu0 %6167  ;;  %v18159_v36 = vld [vmem:[#allocation130_spill] sm:$0xff] }
 0xdf3   : > { %v6486_v2 = vmul.f32 %v14834_v15, %v18154_v0  ;;  %v6548_v1 = vmul.f32 %v14834_v15, %v18158_v49  ;;  %v9062_v49 = vpack.i.bf16 %v14804_v54, %v14770_v45 }
 0xdf5   : > { %v9072_v58 = vpack.i.bf16 %v6486_v2, %v6485_v32  ;;  %v5912_v2 = vld [vmem:[%s16844_s22 + $0xe0] sm:$0xff] }
 0xdf6   : > { %v6059_v18 = vpop.f32.mrf.mxu1 }
 0xdf7   : > { %9043 = vrot.lane.b32.xlu0 %v9042_v60, %s17937_s26  ;;  %9058 = vrot.lane.b32.xlu1 %v9057_v7, %s9556_s24  ;;  %v14862_v14 = vsel %vm3243_vm3, %v6059_v18, %v14749_v48  ;;  %v6547_v60 = vmul.f32 %v14842_v6, %v18159_v36  ;;  %v6390_v7 = vrot.slane %v14804_v54, 1  ;;  %v18161_v18 = vld [vmem:[#allocation210_spill] sm:$0xff]  ;;  %v14878_v19 = vpop.permute.xlu2 %6183 }
 0xdf8   : > { %9038 = vrot.lane.b32.xlu2 %v9037_v20, %s17743_s27  ;;  %v6391_v28 = vrot.slane %v14862_v14, 1  ;;  %v18160_v20 = vld [vmem:[#allocation160_spill] sm:$0xff]  ;;  %18162 = vst [vmem:[#allocation300_spill] sm:$0xff] %v14878_v19 }
 0xdf9   : > { %8524 = vmatmul.msk.f32.gmra.mxu1 %vm4681_vm15, %v5910_v12  ;;  %v6579_v48 = vmul.f32 %v14770_v45, %v18160_v20  ;;  %v6580_v12 = vmul.f32 %v14804_v54, %v18161_v18  ;;  %v9077_v0 = vpack.i.bf16 %v6548_v1, %v6547_v60  ;;  %v14899_v5 = vsel %vm1226_vm0, %v6389_v21, %v6390_v7  ;;  %v18167_v1 = vld [vmem:[#allocation203_spill] sm:$0xff] }
 0xdfa   : > { %v14891_v3 = vsel %vm1226_vm0, %v6390_v7, %v6391_v28  ;;  %18164 = vst [vmem:[#allocation275_spill] sm:$0xff] %v14899_v5  ;;  %v6581_v21 = vmul.f32 %v14862_v14, %v18167_v1  ;;  %v5913_v7 = vld [vmem:[%s16844_s22 + $0xe8] sm:$0xff] }
 0xdfb   : > { %18163 = vst [vmem:[#allocation288_spill] sm:$0xff] %v14891_v3 }
 0xdfe   : > { %v6062_v34 = vpop.f32.mrf.mxu1 }
 0xdff   : > { %7573 = vrot.lane.b32.xlu0 %v6609_v4, %s18034_s25  ;;  %9068 = vrot.lane.b32.xlu1 %v9067_v35, %s17937_s26  ;;  %v14885_v33 = vsel %vm3243_vm3, %v6062_v34, %v14672_v57  ;;  %v14901_v57 = vpop.permute.xlu1 %6169  ;;  %v6456_v4 = vmul.f32 %v14891_v3, %v18165_v38  ;;  %v14906_v35 = vpop.permute.xlu0 %6173  ;;  %v6263_v34 = vrot.slane %v14862_v14, 7  ;;  %v18171_v38 = vld [vmem:[#allocation114_spill] sm:$0xff] }
 0xe00   : > { %9073 = vrot.lane.b32.xlu2 %v9072_v58, %s17734_s2  ;;  %v17275_v32 = vrot.slane %v14885_v33, 7  ;;  %v18166_v58 = vld [vmem:[#allocation81_spill] sm:$0xff]  ;;  %v6392_v54 = vrot.slane %v14885_v33, 1 }
 0xe01   : > { %8525 = vmatmul.msk.f32.gmra.mxu1 %vm4681_vm15, %v5911_v53  ;;  %v6455_v53 = vmul.f32 %v14899_v5, %v18166_v58  ;;  %v14937_v18 = vsel %vm809_vm1, %v6262_v31, %v6263_v34 }
 0xe02   : > { %v14922_v20 = vsel %vm809_vm1, %v6263_v34, %v17275_v32 }
 0xe03   : > { %v9082_v60 = vpack.i.bf16 %v6456_v4, %v6455_v53  ;;  %v6487_v4 = vmul.f32 %v14937_v18, %v18171_v38  ;;  %v18172_v53 = vld [vmem:[#allocation137_spill] sm:$0xff] }
 0xe04   : > { %v6517_v31 = vmul.f32 %v14899_v5, %v18172_v53  ;;  %v7935_v5 = vld [vmem:[%s16835_s13 + $0x78] sm:$0xff] }
 0xe05   : > { %8567 = vmatpush.msra.mxu2 %v7935_v5  ;;  %8042 = vmatpush.msrb.mxu1 %v7935_v5  ;;  %v7932_v5 = vld [vmem:[%s16835_s13 + $0x60] sm:$0xff] }
 0xe06   : > { %v6065_v23 = vpop.f32.mrf.mxu1 }
 0xe07   : > { %7449 = vrot.lane.b32.xlu0 %v6579_v48, %s9555_s1  ;;  %7451 = vrot.lane.b32.xlu1 %v6580_v12, %s9555_s1  ;;  %v14926_v48 = vsel %vm3243_vm3, %v6065_v23, %v14761_v55  ;;  %v18169_v12 = vld [vmem:[#allocation107_spill] sm:$0xff]  ;;  %v14947_v58 = vpop.permute.xlu1 %6175  ;;  %v14952_v34 = vpop.permute.xlu0 %6179 }
 0xe08   : > { %9078 = vrot.lane.b32.xlu2 %v9077_v0, %s9557_s18  ;;  %v6488_v55 = vmul.f32 %v14922_v20, %v18169_v12  ;;  %v17274_v23 = vrot.slane %v14926_v48, 1  ;;  %v18170_v0 = vld [vmem:[#allocation103_spill] sm:$0xff]  ;;  %18173 = vst [vmem:[#allocation226_spill] sm:$0xff] %v14952_v34 }
 0xe09   : > { %8526 = vmatmul.msk.f32.gmra.mxu1 %vm4681_vm15, %v5912_v2  ;;  %v6518_v2 = vmul.f32 %v14891_v3, %v18170_v0 }
 0xe0a   : > { %v9102_v1 = vpack.i.bf16 %v6488_v55, %v6487_v4  ;;  %v14963_v12 = vsel %vm1226_vm0, %v6392_v54, %v17274_v23  ;;  %v14974_v55 = vsel %vm1226_vm0, %v6391_v28, %v6392_v54  ;;  %v18176_v4 = vld [vmem:[#allocation140_spill] sm:$0xff]  ;;  %v18180_v28 = vld [vmem:[#allocation147_spill] sm:$0xff] }
 0xe0b   : > { %18174 = vst [vmem:[#allocation309_spill] sm:$0xff] %v14974_v55  ;;  %v6520_v53 = vmul.f32 %v14963_v12, %v18176_v4  ;;  %v6519_v54 = vmul.f32 %v14974_v55, %v18180_v28 }
 0xe0c   : > { %v14930_v45 = vpop.permute.xlu2 %8978 }
 0xe0d   : > { %18168 = vst [vmem:[#allocation314_spill] sm:$0xff] %v14930_v45  ;;  %v9117_v4 = vpack.i.bf16 %v6520_v53, %v6519_v54  ;;  %v18185_v54 = vld [vmem:[#allocation117_spill] sm:$0xff] }
 0xe0e   : > { %v6068_v36 = vpop.f32.mrf.mxu1 }
 0xe0f   : > { %9063 = vrot.lane.b32.xlu0 %v9062_v49, %s17743_s27  ;;  %7453 = vrot.lane.b32.xlu1 %v6581_v21, %s9555_s1  ;;  %v9092_v49 = vpack.i.bf16 %v14885_v33, %v14862_v14  ;;  %v14967_v0 = vsel %vm3243_vm3, %v6068_v36, %v14790_v10  ;;  %v18177_v10 = vld [vmem:[#allocation51_spill] sm:$0xff]  ;;  %v14993_v23 = vpop.permute.xlu1 %6181  ;;  %v15012_v53 = vpop.permute.xlu0 %6185 }
 0xe10   : > { %9083 = vrot.lane.b32.xlu2 %v9082_v60, %s18114_s5  ;;  %v9087_v60 = vpack.i.bf16 %v6518_v2, %v6517_v31  ;;  %v18175_v2 = vld [vmem:[#allocation133_spill] sm:$0xff]  ;;  %v6362_v36 = vmul.f32 %v14885_v33, %v18177_v10  ;;  %v17276_v31 = vrot.slane %v14967_v0, 7  ;;  %18182 = vst [vmem:[#allocation278_spill] sm:$0xff] %v14993_v23  ;;  %v7940_v10 = vld [vmem:[%s16835_s13 + $0xa0] sm:$0x3] }
 0xe11   : > { %8527 = vmatmul.msk.f32.gmra.mxu1 %vm4681_vm15, %v5913_v7  ;;  %v5914_v7 = vld [vmem:[%s16844_s22 + $0xf0] sm:$0xff]  ;;  %v6550_v38 = vmul.f32 %v14922_v20, %v18175_v2  ;;  %v6265_v2 = vrot.slane %v14926_v48, 7  ;;  %8530 = vmatpush.msk.msrb.mxu0 %vm8038_vm13, %v7940_v10  ;;  %18183 = vst [vmem:[#allocation294_spill] sm:$0xff] %v15012_v53  ;;  %v18230_v53 = vld [vmem:[#allocation143_spill] sm:$0xff] }
 0xe12   : > { %8583 = vmatpush.msk.msra.mxu3 %vm8038_vm13, %v7940_v10 }
 0xe16   : > { %v6071_v21 = vpop.f32.mrf.mxu1 }
 0xe17   : > { %9093 = vrot.lane.b32.xlu1 %v9092_v49, %s17743_s27  ;;  %9103 = vrot.lane.b32.xlu0 %v9102_v1, %s17734_s2  ;;  %v14984_v49 = vpop.permute.xlu2 %7437  ;;  %v18179_v1 = vld [vmem:[#allocation170_spill] sm:$0xff] }
 0xe18   : > { %9088 = vrot.lane.b32.xlu2 %v9087_v60, %s9556_s24  ;;  %18178 = vst [vmem:[#allocation301_spill] sm:$0xff] %v14984_v49  ;;  %v6549_v60 = vmul.f32 %v14937_v18, %v18179_v1  ;;  %v7939_v1 = vld [vmem:[%s16835_s13 + $0x98] sm:$0xff] }
 0xe19   : > { %8528 = vmatmul.msk.f32.gmra.mxu1 %vm4681_vm15, %v5914_v7  ;;  %v18181_v7 = vld [vmem:[#allocation17_spill] sm:$0xff]  ;;  %8167 = vmatpush.msrb.mxu0 %v7939_v1 }
 0xe1a   : > { %v6361_v47 = vmul.f32 %v14862_v14, %v18181_v7  ;;  %v9107_v61 = vpack.i.bf16 %v6550_v38, %v6549_v60  ;;  %v5915_v14 = vld [vmem:[%s16844_s22 + $0xf8] sm:$0xff]  ;;  %v15010_v38 = vsel %vm809_vm1, %v6265_v2, %v17276_v31  ;;  %v7938_v60 = vld [vmem:[%s16835_s13 + $0x90] sm:$0xff]  ;;  %v7937_v7 = vld [vmem:[%s16835_s13 + $0x88] sm:$0xff]  ;;  %8584 = vmatpush.msra.mxu3 %v7939_v1  ;;  %v6394_v31 = vrot.slane %v14967_v0, 1 }
 0xe1b   : > { %8168 = vmatpush.msrb.mxu0 %v7938_v60 }
 0xe1c   : > { %v9097_v28 = vpack.i.bf16 %v6362_v36, %v6361_v47  ;;  %v18184_v47 = vrot.slane %v14885_v33, 7  ;;  %8585 = vmatpush.msra.mxu3 %v7938_v60  ;;  %v15052_v60 = vpop.permute.xlu1 %6187 }
 0xe1d   : > { %8169 = vmatpush.msrb.mxu0 %v7937_v7 }
 0xe1e   : > { %v15001_v32 = vpop.f32.mrf.mxu1  ;;  %v15021_v36 = vsel %vm809_vm1, %v18184_v47, %v6265_v2  ;;  %v18187_v2 = vld [vmem:[#allocation76_spill] sm:$0xff]  ;;  %8586 = vmatpush.msra.mxu3 %v7937_v7 }
 0xe1f   : > { %9108 = vrot.lane.b32.xlu0 %v9107_v61, %s9557_s18  ;;  %9118 = vrot.lane.b32.xlu1 %v9117_v4, %s9556_s24  ;;  %v6490_v61 = vmul.f32 %v15010_v38, %v18185_v54  ;;  %v6489_v10 = vmul.f32 %v15021_v36, %v18187_v2  ;;  %v15048_v2 = vsel %vm3243_vm3, %v6071_v21, %v14689_v30  ;;  %v18191_v7 = vld [vmem:[#allocation84_spill] sm:$0xff]  ;;  %v18192_v30 = vrot.slane %v14926_v48, 1 }
 0xe20   : > { %9098 = vrot.lane.b32.xlu2 %v9097_v28, %s17937_s26  ;;  %v7936_v28 = vld [vmem:[%s16835_s13 + $0x80] sm:$0xff] }
 0xe21   : > { %8529 = vmatmul.msk.f32.gmra.mxu1 %vm4681_vm15, %v5915_v14  ;;  %v18188_v14 = vld [vmem:[#allocation213_spill] sm:$0xff]  ;;  %v9132_v54 = vpack.i.bf16 %v6490_v61, %v6489_v10  ;;  %8170 = vmatpush.msrb.mxu0 %v7936_v28  ;;  %v6458_v10 = vmul.f32 %v14963_v12, %v18191_v7  ;;  %v6431_v21 = vsel %vm1226_vm0, %v18192_v30, %v6394_v31  ;;  %vm7941_vm15 = vcmask 277504  }
 0xe22   : > { %v15032_v4 = vpop.permute.xlu2 %9008  ;;  %v6583_v47 = vmul.f32 %v14926_v48, %v18188_v14  ;;  %8587 = vmatpush.msra.mxu3 %v7936_v28  ;;  %v18193_v14 = vld [vmem:[#allocation46_spill] sm:$0xff]  ;;  %v9122_v7 = vpack.i.bf16 %v14967_v0, %v14926_v48 }
 0xe23   : > { %18186 = vst [vmem:[#allocation293_spill] sm:$0xff] %v15032_v4  ;;  %v18189_v4 = vld [vmem:[#allocation163_spill] sm:$0xff] }
 0xe24   : > { %v6582_v45 = vmul.f32 %v14885_v33, %v18189_v4  ;;  %v17284_v33 = vrot.slane %v15048_v2, 1 }
 0xe26   : > { %v15042_v1 = vpop.f32.mrf.mxu1  ;;  %v15055_v61 = vpop.permute.xlu0 %8983 }
 0xe27   : > { %7457 = vrot.lane.b32.xlu0 %v6583_v47, %s9555_s1  ;;  %9133 = vrot.lane.b32.xlu1 %v9132_v54, %s17734_s2  ;;  %18190 = vst [vmem:[#allocation292_spill] sm:$0xff] %v15055_v61  ;;  %v6457_v47 = vmul.f32 %v14974_v55, %v18193_v14  ;;  %v15077_v61 = vsel %vm1226_vm0, %v6394_v31, %v17284_v33  ;;  %v18197_v14 = vld [vmem:[#allocation49_spill] sm:$0xff] }
 0xe28   : > { %7455 = vrot.lane.b32.xlu2 %v6582_v45, %s9555_s1  ;;  %v18194_v45 = vld [vmem:[#allocation250_spill] sm:$0xff]  ;;  %v18198_v55 = vld [vmem:[#allocation77_spill] sm:$0xff]  ;;  %v6614_v31 = vmul.f32 %v14963_v12, %v18199_v62 }
 0xe29   : > { %v9112_v54 = vpack.i.bf16 %v6458_v10, %v6457_v47  ;;  %v6615_v28 = vmul.f32 %v6431_v21, %v18194_v45  ;;  %v6460_v47 = vmul.f32 %v15077_v61, %v18197_v14  ;;  %v6459_v3 = vmul.f32 %v6431_v21, %v18198_v55  ;;  %v18201_v14 = vld [vmem:[#allocation20_spill] sm:$0xff]  ;;  %v18203_v62 = vld [vmem:[#allocation150_spill] sm:$0xff] }
 0xe2a   : > { %v15060_v4 = vpop.permute.xlu2 %9013 }
 0xe2b   : > { %v9142_v33 = vpack.i.bf16 %v6460_v47, %v6459_v3  ;;  %v6522_v3 = vmul.f32 %v15077_v61, %v18203_v62  ;;  %v18204_v47 = vld [vmem:[#allocation173_spill] sm:$0xff]  ;;  %v15123_v62 = vsel %vm3243_vm3, %v15001_v32, %v14794_v44  ;;  %v18208_v44 = vld [vmem:[#allocation47_spill] sm:$0xff] }
 0xe2c   : > { %v6366_v32 = vmul.f32 %v15123_v62, %v18208_v44 }
 0xe2e   : > { %v15069_v39 = vpop.f32.mrf.mxu1 }
 0xe2f   : > { %9113 = vrot.lane.b32.xlu0 %v9112_v54, %s18114_s5  ;;  %7585 = vrot.lane.b32.xlu1 %v6615_v28, %s18034_s25  ;;  %v18200_v28 = vld [vmem:[#allocation206_spill] sm:$0xff] }
 0xe30   : > { %9123 = vrot.lane.b32.xlu2 %v9122_v7, %s17743_s27  ;;  %v6584_v7 = vmul.f32 %v14967_v0, %v18200_v28  ;;  %v6552_v28 = vmul.f32 %v15010_v38, %v18204_v47 }
 0xe31   : > { %v15082_v10 = vpop.permute.xlu0 %8993  ;;  %v15084_v30 = vpop.permute.xlu1 %8988 }
 0xe32   : > { %18195 = vst [vmem:[#allocation283_spill] sm:$0xff] %v15082_v10  ;;  %v15088_v45 = vpop.permute.xlu2 %7567 }
 0xe33   : > { %18196 = vst [vmem:[#allocation261_spill] sm:$0xff] %v15084_v30  ;;  %v6364_v30 = vmul.f32 %v14967_v0, %v18201_v14  ;;  %v6551_v14 = vmul.f32 %v15021_v36, %v18207_v42  ;;  %v7933_v42 = vld [vmem:[%s16835_s13 + $0x68] sm:$0xff] }
 0xe35   : > { %v9137_v27 = vpack.i.bf16 %v6552_v28, %v6551_v14  ;;  %v6267_v28 = vrot.slane %v15048_v2, 7  ;;  %v7931_v14 = vld [vmem:[%s16835_s13 + $0x58] sm:$0xff] }
 0xe36   : > { %v15093_v54 = vpop.f32.mrf.mxu1 }
 0xe37   : > { %7583 = vrot.lane.b32.xlu0 %v6614_v31, %s18034_s25  ;;  %9143 = vrot.lane.b32.xlu1 %v9142_v33, %s18114_s5  ;;  %v18205_v31 = vld [vmem:[#allocation44_spill] sm:$0xff] }
 0xe38   : > { %7459 = vrot.lane.b32.xlu2 %v6584_v7, %s9555_s1  ;;  %v6363_v33 = vmul.f32 %v14926_v48, %v18205_v31  ;;  %v6521_v7 = vmul.f32 %v6431_v21, %v18206_v56  ;;  %v7934_v56 = vld [vmem:[%s16835_s13 + $0x70] sm:$0xff]  ;;  %v18212_v31 = vld [vmem:[#allocation166_spill] sm:$0xff] }
 0xe39   : > { %v15102_v10 = vpop.permute.xlu0 %8998  ;;  %v15104_v55 = vpop.permute.xlu1 %9003  ;;  %8568 = vmatpush.msra.mxu2 %v7934_v56  ;;  %8043 = vmatpush.msrb.mxu1 %v7934_v56  ;;  %v6396_v56 = vrot.slane %v15123_v62, 1 }
 0xe3a   : > { %18202 = vst [vmem:[#allocation259_spill] sm:$0xff] %v15102_v10  ;;  %v15108_v12 = vpop.permute.xlu2 %9023  ;;  %v9127_v8 = vpack.i.bf16 %v6364_v30, %v6363_v33  ;;  %v9147_v10 = vpack.i.bf16 %v6522_v3, %v6521_v7  ;;  %v17293_v3 = vrot.slane %v15123_v62, 7  ;;  %v6585_v33 = vmul.f32 %v15048_v2, %v18212_v31  ;;  %v7929_v31 = vld [vmem:[%s16835_s13 + $0x48] sm:$0xff] }
 0xe3b   : > { %8569 = vmatpush.msra.mxu2 %v7933_v42  ;;  %8044 = vmatpush.msrb.mxu1 %v7933_v42  ;;  %v15165_v42 = vsel %vm3243_vm3, %v15042_v1, %v14819_v40  ;;  %v18217_v1 = vrot.slane %v14967_v0, 7 }
 0xe3c   : > { %v18227_v16 = vrot.slane %v15165_v42, 1 }
 0xe3d   : > { %8570 = vmatpush.msra.mxu2 %v7932_v5  ;;  %8045 = vmatpush.msrb.mxu1 %v7932_v5  ;;  %v15187_v5 = vsel %vm809_vm1, %v18217_v1, %v6267_v28 }
 0xe3e   : > { %v15125_v47 = vpop.f32.mrf.mxu1  ;;  %18218 = vst [vmem:[#allocation263_spill] sm:$0xff] %v15187_v5 }
 0xe3f   : > { %9128 = vrot.lane.b32.xlu0 %v9127_v8, %s17937_s26  ;;  %9148 = vrot.lane.b32.xlu1 %v9147_v10, %s9556_s24  ;;  %v18211_v10 = vld [vmem:[#allocation54_spill] sm:$0xff] }
 0xe40   : > { %9138 = vrot.lane.b32.xlu2 %v9137_v27, %s9557_s18  ;;  %v6365_v30 = vmul.f32 %v15048_v2, %v18211_v10  ;;  %8571 = vmatpush.msra.mxu2 %v7931_v14  ;;  %v7930_v10 = vld [vmem:[%s16835_s13 + $0x50] sm:$0xff] }
 0xe41   : > { %v7566_v48 = vpop.permute.xlu0 %7565  ;;  %v15138_v21 = vpop.permute.xlu1 %7439  ;;  %8046 = vmatpush.msrb.mxu1 %v7931_v14  ;;  %v9006_v14 = vunpack.i.h.bf16 %v15104_v55 }
 0xe42   : > { %18209 = vst [vmem:[#allocation297_spill] sm:$0xff] %v15138_v21  ;;  %v7888_v8 = vsel %vm4654_vm12, %v14984_v49, %v7566_v48  ;;  %v15142_v27 = vpop.permute.xlu2 %7443  ;;  %v9157_v7 = vpack.i.bf16 %v6366_v32, %v6365_v30  ;;  %v18213_v48 = vld [vmem:[#allocation217_spill] sm:$0xff]  ;;  %v15173_v32 = vsel %vm809_vm1, %v6267_v28, %v17293_v3  ;;  %v18221_v28 = vld [vmem:[#allocation79_spill] sm:$0xff]  ;;  %8572 = vmatpush.msra.mxu2 %v7930_v10  ;;  %v9005_v3 = vunpack.i.l.bf16 %v15104_v55  ;;  %v7927_v55 = vld [vmem:[%s16835_s13 + $0x38] sm:$0xff] }
 0xe43   : > { %18210 = vst [vmem:[#allocation318_spill] sm:$0xff] %v15142_v27  ;;  %8531 = vmatmul.msk.f32.vlgmr.msrb.gmra.mxu0 %vm7941_vm15, %v7888_v8  ;;  %v6586_v8 = vmul.f32 %v15123_v62, %v18213_v48  ;;  %v7889_v48 = vsel %vm4654_vm12, %v15138_v21, %v15088_v45  ;;  %v6492_v1 = vmul.f32 %v15173_v32, %v18221_v28  ;;  %v18223_v45 = vld [vmem:[#allocation3_spill] sm:$0xff] }
 0xe44   : > { %18214 = vst [vmem:[#allocation264_spill] sm:$0xff] %v15173_v32  ;;  %8573 = vmatpush.msra.mxu2 %v7929_v31  ;;  %8047 = vmatpush.msrb.mxu1 %v7930_v10  ;;  %v6321_v21 = vmul.f32 %v14641_v41, %v18223_v45 }
 0xe46   : > { %v15158_v44 = vpop.f32.mrf.mxu1  ;;  %8048 = vmatpush.msrb.mxu1 %v7929_v31 }
 0xe47   : > { %7461 = vrot.lane.b32.xlu0 %v6585_v33, %s9555_s1  ;;  %9158 = vrot.lane.b32.xlu1 %v9157_v7, %s17937_s26  ;;  %v18222_v33 = vld [vmem:[#allocation110_spill] sm:$0xff] }
 0xe48   : > { %7463 = vrot.lane.b32.xlu2 %v6586_v8, %s9555_s1  ;;  %v18220_v8 = vrot.slane %v15048_v2, 1 }
 0xe49   : > { %v15179_v30 = vpop.permute.xlu0 %7441  ;;  %v15181_v40 = vpop.permute.xlu1 %9018 }
 0xe4a   : > { %18215 = vst [vmem:[#allocation254_spill] sm:$0xff] %v15179_v30  ;;  %v15193_v7 = vpop.permute.xlu2 %7445  ;;  %v15202_v0 = vsel %vm1226_vm0, %v18220_v8, %v6396_v56  ;;  %v18224_v8 = vld [vmem:[#allocation243_spill] sm:$0xff] }
 0xe4b   : > { %18216 = vst [vmem:[#allocation289_spill] sm:$0xff] %v15181_v40  ;;  %8532 = vmatmul.msk.f32.gmra.mxu0 %vm7941_vm15, %v7889_v48  ;;  %v6491_v40 = vmul.f32 %v15187_v5, %v18222_v33  ;;  %v6616_v49 = vmul.f32 %v15077_v61, %v18224_v8  ;;  %v6617_v28 = vmul.f32 %v15202_v0, %v18225_v50  ;;  %v7928_v48 = vld [vmem:[%s16835_s13 + $0x40] sm:$0xff]  ;;  %v18226_v33 = vld [vmem:[#allocation4_spill] sm:$0xff] }
 0xe4c   : > { %18219 = vst [vmem:[#allocation279_spill] sm:$0xff] %v15193_v7  ;;  %v6322_v10 = vmul.f32 %v14649_v26, %v18226_v33  ;;  %v15231_v61 = vsel %vm1226_vm0, %v6396_v56, %v18227_v16  ;;  %8574 = vmatpush.msra.mxu2 %v7928_v48  ;;  %v7665_v50 = vsel %vm3276_vm5, %v6321_v21, %v9005_v3  ;;  %v9016_v16 = vunpack.i.h.bf16 %v15060_v4  ;;  %v7925_v21 = vld [vmem:[%s16835_s13 + $0x28] sm:$0xff] }
 0xe4d   : > { %v9162_v45 = vpack.i.bf16 %v6492_v1, %v6491_v40  ;;  %v7926_v40 = vld [vmem:[%s16835_s13 + $0x30] sm:$0xff]  ;;  %v9015_v56 = vunpack.i.l.bf16 %v15060_v4  ;;  %8049 = vmatpush.msrb.mxu1 %v7928_v48  ;;  %v6523_v48 = vmul.f32 %v15202_v0, %v18230_v53  ;;  %v7923_v53 = vld [vmem:[%s16835_s13 + $0x18] sm:$0xff] }
 0xe4e   : > { %v15225_v43 = vpop.f32.mrf.mxu1  ;;  %v7666_v8 = vsel %vm3276_vm5, %v6322_v10, %v9006_v14  ;;  %8575 = vmatpush.msra.mxu2 %v7927_v55 }
 0xe4f   : > { %7587 = vrot.lane.b32.xlu0 %v6616_v49, %s18034_s25  ;;  %7589 = vrot.lane.b32.xlu1 %v6617_v28, %s18034_s25  ;;  %v18228_v49 = vld [vmem:[#allocation109_spill] sm:$0xff]  ;;  %v7697_v26 = vsel %vm3342_vm6, %v7665_v50, %v9015_v56  ;;  %v7924_v50 = vld [vmem:[%s16835_s13 + $0x20] sm:$0xff] }
 0xe50   : > { %9163 = vrot.lane.b32.xlu2 %v9162_v45, %s17734_s2  ;;  %v6524_v28 = vmul.f32 %v15231_v61, %v18228_v49  ;;  %v18229_v45 = vld [vmem:[#allocation183_spill] sm:$0xff]  ;;  %8576 = vmatpush.msra.mxu2 %v7926_v40  ;;  %v7698_v49 = vsel %vm3342_vm6, %v7666_v8, %v9016_v16  ;;  %v9152_v8 = vpack.i.bf16 %v15123_v62, %v15048_v2  ;;  %v7922_v2 = vld [vmem:[%s16835_s13 + $0x10] sm:$0xff] }
 0xe51   : > { %v7570_v31 = vpop.permute.xlu1 %7569  ;;  %v9029_v1 = vpop.permute.xlu0 %9028  ;;  %v6554_v4 = vmul.f32 %v15173_v32, %v18229_v45  ;;  %8050 = vmatpush.msrb.mxu1 %v7927_v55  ;;  %v18250_v32 = vld [vmem:[#allocation169_spill] sm:$0xff] }
 0xe52   : > { %v7890_v3 = vsel %vm4654_vm12, %v15179_v30, %v7570_v31  ;;  %v9031_v14 = vunpack.i.h.bf16 %v9029_v1  ;;  %v9030_v33 = vunpack.i.l.bf16 %v9029_v1  ;;  %v15250_v10 = vpop.permute.xlu2 %9038  ;;  %v18233_v30 = vld [vmem:[#allocation136_spill] sm:$0xff]  ;;  %8577 = vmatpush.msra.mxu2 %v7925_v21  ;;  %v9177_v16 = vpack.i.bf16 %v6524_v28, %v6523_v48  ;;  %v18236_v48 = vld [vmem:[#allocation209_spill] sm:$0xff] }
 0xe53   : > { %8533 = vmatmul.msk.f32.gmra.mxu0 %vm7941_vm15, %v7890_v3  ;;  %v6553_v45 = vmul.f32 %v15187_v5, %v18233_v30  ;;  %8051 = vmatpush.msrb.mxu1 %v7926_v40  ;;  %v7921_v40 = vld [vmem:[%s16835_s13 + $0x8] sm:$0xff]  ;;  %v15293_v28 = vsel %vm3243_vm3, %v15069_v39, %v14729_v11  ;;  %v7920_v39 = vld [vmem:[%s16835_s13] sm:$0xff] }
 0xe54   : > { %v15260_v31 = vsel %vm3408_vm8, %v7698_v49, %v9031_v14  ;;  %v15263_v1 = vsel %vm3408_vm8, %v7697_v26, %v9030_v33  ;;  %8578 = vmatpush.msra.mxu2 %v7924_v50  ;;  %v18234_v14 = vld [vmem:[#allocation80_spill] sm:$0xff]  ;;  %v6398_v11 = vrot.slane %v15293_v28, 1  ;;  %v6588_v5 = vmul.f32 %v15293_v28, %v18250_v32 }
 0xe55   : > { %18231 = vst [vmem:[#allocation285_spill] sm:$0xff] %v15260_v31  ;;  %v9167_v26 = vpack.i.bf16 %v6554_v4, %v6553_v45  ;;  %8052 = vmatpush.msrb.mxu1 %v7925_v21  ;;  %v6462_v33 = vmul.f32 %v15231_v61, %v18234_v14  ;;  %v18235_v4 = vld [vmem:[#allocation87_spill] sm:$0xff]  ;;  %v6587_v45 = vmul.f32 %v15165_v42, %v18236_v48  ;;  %v18237_v14 = vld [vmem:[#allocation57_spill] sm:$0xff]  ;;  %v6269_v48 = vrot.slane %v15165_v42, 7 }
 0xe56   : > { %18232 = vst [vmem:[#allocation271_spill] sm:$0xff] %v15263_v1  ;;  %v15275_v55 = vpop.f32.mrf.mxu1  ;;  %8579 = vmatpush.msra.mxu2 %v7923_v53  ;;  %v6461_v49 = vmul.f32 %v15202_v0, %v18235_v4  ;;  %v9182_v21 = vpack.i.bf16 %v15293_v28, %v15165_v42  ;;  %v15314_v0 = vsel %vm3243_vm3, %v15093_v54, %v14828_v22 }
 0xe57   : > { %9153 = vrot.lane.b32.xlu0 %v9152_v8, %s17743_s27  ;;  %9178 = vrot.lane.b32.xlu1 %v9177_v16, %s9556_s24  ;;  %v6270_v16 = vrot.slane %v15293_v28, 7 }
 0xe58   : > { %9168 = vrot.lane.b32.xlu2 %v9167_v26, %s9557_s18  ;;  %8580 = vmatpush.msra.mxu2 %v7922_v2 }
 0xe59   : > { %v15283_v30 = vpop.permute.xlu0 %9033  ;;  %v15285_v56 = vpop.permute.xlu1 %9048  ;;  %8053 = vmatpush.msrb.mxu1 %v7924_v50  ;;  %v9172_v50 = vpack.i.bf16 %v6462_v33, %v6461_v49  ;;  %v6368_v33 = vmul.f32 %v15293_v28, %v18237_v14  ;;  %v18238_v49 = vrot.slane %v15165_v42, 1  ;;  %v18241_v14 = vld [vmem:[#allocation246_spill] sm:$0xff] }
 0xe5a   : > { %v15295_v3 = vpop.permute.xlu2 %9073  ;;  %8581 = vmatpush.msra.mxu2 %v7921_v40 }
 0xe5b   : > { %8054 = vmatpush.msrb.mxu1 %v7923_v53 }
 0xe5c   : > { %8582 = vmatpush.msra.mxu2 %v7920_v39 }
 0xe5d   : > { %8055 = vmatpush.msrb.mxu1 %v7922_v2  ;;  %v15333_v2 = vsel %vm1226_vm0, %v18238_v49, %v6398_v11 }
 0xe5e   : > { %v15309_v8 = vpop.f32.mrf.mxu1  ;;  %v6619_v4 = vmul.f32 %v15333_v2, %v18241_v14  ;;  %v18248_v14 = vld [vmem:[#allocation153_spill] sm:$0xff] }
 0xe5f   : > { %7465 = vrot.lane.b32.xlu0 %v6587_v45, %s9555_s1  ;;  %9183 = vrot.lane.b32.xlu1 %v9182_v21, %s17743_s27  ;;  %v18239_v45 = vld [vmem:[#allocation23_spill] sm:$0xff] }
 0xe60   : > { %9173 = vrot.lane.b32.xlu2 %v9172_v50, %s18114_s5  ;;  %8056 = vmatpush.msrb.mxu1 %v7921_v40  ;;  %v6367_v21 = vmul.f32 %v15165_v42, %v18239_v45  ;;  %v18240_v50 = vld [vmem:[#allocation253_spill] sm:$0xff]  ;;  %v15347_v40 = vsel %vm809_vm1, %v6269_v48, %v6270_v16  ;;  %v15358_v42 = vsel %vm3243_vm3, %v15125_v47, %v14858_v9  ;;  %v18246_v47 = vld [vmem:[#allocation146_spill] sm:$0xff] }
 0xe61   : > { %v7572_v53 = vpop.permute.xlu0 %7571  ;;  %v15320_v26 = vpop.permute.xlu1 %9053  ;;  %v18245_v45 = vld [vmem:[#allocation113_spill] sm:$0xff] }
 0xe62   : > { %v7891_v22 = vsel %vm4654_vm12, %v15142_v27, %v7572_v53  ;;  %v15327_v54 = vpop.permute.xlu2 %9078  ;;  %8057 = vmatpush.msrb.mxu1 %v7920_v39  ;;  %v6618_v53 = vmul.f32 %v15231_v61, %v18240_v50  ;;  %v9187_v1 = vpack.i.bf16 %v6368_v33, %v6367_v21  ;;  %v18243_v61 = vrot.slane %v15123_v62, 7 }
 0xe63   : > { %8534 = vmatmul.msk.f32.gmra.mxu0 %vm7941_vm15, %v7891_v22  ;;  %v18242_v22 = vrot.slane %v15314_v0, 1  ;;  %v6494_v9 = vmul.f32 %v15347_v40, %v18245_v45  ;;  %v9035_v62 = vunpack.i.l.bf16 %v15283_v30  ;;  %v18249_v45 = vld [vmem:[#allocation225_spill] sm:$0xff] }
 0xe64   : > { %v15367_v39 = vsel %vm809_vm1, %v18243_v61, %v6269_v48  ;;  %v18247_v48 = vld [vmem:[#allocation120_spill] sm:$0xff]  ;;  %v6271_v61 = vrot.slane %v15314_v0, 7  ;;  %v6323_v27 = vmul.f32 %v14709_v63, %v18249_v45 }
 0xe65   : > { %v15353_v49 = vsel %vm1226_vm0, %v6398_v11, %v18242_v22  ;;  %18244 = vst [vmem:[#allocation281_spill] sm:$0xff] %v15367_v39  ;;  %v6525_v22 = vmul.f32 %v15333_v2, %v18248_v14 }
 0xe66   : > { %v15343_v31 = vpop.f32.mrf.mxu1  ;;  %v6526_v21 = vmul.f32 %v15353_v49, %v18246_v47  ;;  %v15409_v32 = vsel %vm809_vm1, %v6270_v16, %v6271_v61 }
 0xe67   : > { %7591 = vrot.lane.b32.xlu0 %v6618_v53, %s18034_s25  ;;  %7593 = vrot.lane.b32.xlu1 %v6619_v4, %s18034_s25  ;;  %v9025_v4 = vunpack.i.l.bf16 %v15108_v12  ;;  %v6493_v53 = vmul.f32 %v15367_v39, %v18247_v48  ;;  %v18251_v48 = vrot.slane %v15358_v42, 7 }
 0xe68   : > { %9188 = vrot.lane.b32.xlu2 %v9187_v1, %s17937_s26  ;;  %v9207_v41 = vpack.i.bf16 %v6526_v21, %v6525_v22  ;;  %v9050_v1 = vunpack.i.l.bf16 %v15285_v56 }
 0xe69   : > { %v15369_v33 = vpop.permute.xlu0 %9043  ;;  %v15371_v11 = vpop.permute.xlu1 %9058  ;;  %v9192_v47 = vpack.i.bf16 %v6494_v9, %v6493_v53  ;;  %v7667_v19 = vsel %vm3276_vm5, %v6323_v27, %v9025_v4  ;;  %v15399_v14 = vsel %vm809_vm1, %v6271_v61, %v18251_v48  ;;  %v18252_v27 = vld [vmem:[#allocation139_spill] sm:$0xff]  ;;  %v18253_v4 = vld [vmem:[#allocation176_spill] sm:$0xff]  ;;  %v9040_v61 = vunpack.i.l.bf16 %v15250_v10  ;;  %v18255_v48 = vld [vmem:[#allocation82_spill] sm:$0xff] }
 0xe6a   : > { %v15379_v50 = vpop.permute.xlu2 %9083  ;;  %v7699_v34 = vsel %vm3342_vm6, %v7667_v19, %v9035_v62  ;;  %v6556_v9 = vmul.f32 %v15347_v40, %v18252_v27  ;;  %v6555_v53 = vmul.f32 %v15367_v39, %v18253_v4  ;;  %v18254_v19 = vld [vmem:[#allocation123_spill] sm:$0xff]  ;;  %v9060_v22 = vunpack.i.l.bf16 %v15371_v11 }
 0xe6b   : > { %v6496_v62 = vmul.f32 %v15399_v14, %v18254_v19  ;;  %v6495_v27 = vmul.f32 %v15409_v32, %v18255_v48  ;;  %v6400_v4 = vrot.slane %v15358_v42, 1  ;;  %v18257_v19 = vld [vmem:[#allocation220_spill] sm:$0xff] }
 0xe6e   : > { %v15391_v23 = vpop.f32.mrf.mxu1 }
 0xe6f   : > { %9193 = vrot.lane.b32.xlu0 %v9192_v47, %s17734_s2  ;;  %9208 = vrot.lane.b32.xlu1 %v9207_v41, %s9556_s24  ;;  %v9026_v41 = vunpack.i.h.bf16 %v15108_v12  ;;  %v9036_v47 = vunpack.i.h.bf16 %v15283_v30  ;;  %v18256_v12 = vld [vmem:[#allocation13_spill] sm:$0xff] }
 0xe70   : > { %7467 = vrot.lane.b32.xlu2 %v6588_v5, %s9555_s1  ;;  %v7731_v5 = vsel %vm3408_vm8, %v7699_v34, %v9050_v1  ;;  %v6324_v34 = vmul.f32 %v14699_v59, %v18256_v12  ;;  %v9197_v1 = vpack.i.bf16 %v6556_v9, %v6555_v53  ;;  %v15443_v9 = vsel %vm3243_vm3, %v15158_v44, %v14776_v29 }
 0xe71   : > { %v7574_v28 = vpop.permute.xlu0 %7573  ;;  %v15411_v21 = vpop.permute.xlu1 %9068  ;;  %v7763_v63 = vsel %vm3474_vm10, %v7731_v5, %v9040_v61  ;;  %v18260_v5 = vld [vmem:[#allocation90_spill] sm:$0xff]  ;;  %v18261_v44 = vrot.slane %v15314_v0, 1  ;;  %v17309_v61 = vrot.slane %v15443_v9, 1 }
 0xe72   : > { %v7892_v45 = vsel %vm4654_vm12, %v15193_v7, %v7574_v28  ;;  %v15422_v16 = vpop.permute.xlu2 %9088  ;;  %v6589_v28 = vmul.f32 %v15314_v0, %v18257_v19  ;;  %v9222_v7 = vpack.i.bf16 %v6496_v62, %v6495_v27  ;;  %v7668_v30 = vsel %vm3276_vm5, %v6324_v34, %v9026_v41 }
 0xe73   : > { %8535 = vmatmul.msk.f32.gmra.mxu0 %vm7941_vm15, %v7892_v45  ;;  %v9051_v45 = vunpack.i.h.bf16 %v15285_v56  ;;  %v7796_v48 = vsel %vm7789_vm2, %v7763_v63, %v9060_v22  ;;  %v7700_v53 = vsel %vm3342_vm6, %v7668_v30, %v9036_v47  ;;  %v9080_v62 = vunpack.i.l.bf16 %v15327_v54  ;;  %v18263_v30 = vld [vmem:[#allocation257_spill] sm:$0xff] }
 0xe74   : > { %v6464_v29 = vmul.f32 %v15353_v49, %v18260_v5  ;;  %v6425_v22 = vsel %vm1226_vm0, %v18261_v44, %v6400_v4  ;;  %v9061_v47 = vunpack.i.h.bf16 %v15371_v11  ;;  %v9041_v34 = vunpack.i.h.bf16 %v15250_v10  ;;  %v18265_v44 = vld [vmem:[#allocation55_spill] sm:$0xff] }
 0xe75   : > { %v7829_v63 = vsel %vm7822_vm4, %v7796_v48, %v9080_v62  ;;  %v6621_v48 = vmul.f32 %v6425_v22, %v18263_v30  ;;  %v9212_v11 = vpack.i.bf16 %v15358_v42, %v15314_v0  ;;  %v15482_v10 = vsel %vm1226_vm0, %v6400_v4, %v17309_v61  ;;  %v18266_v4 = vld [vmem:[#allocation83_spill] sm:$0xff] }
 0xe76   : > { %v15437_v39 = vpop.f32.mrf.mxu1 }
 0xe77   : > { %7469 = vrot.lane.b32.xlu0 %v6589_v28, %s9555_s1  ;;  %9223 = vrot.lane.b32.xlu1 %v9222_v7, %s17734_s2  ;;  %v7732_v7 = vsel %vm3408_vm8, %v7700_v53, %v9051_v45 }
 0xe78   : > { %9198 = vrot.lane.b32.xlu2 %v9197_v1, %s9557_s18  ;;  %v18262_v1 = vld [vmem:[#allocation52_spill] sm:$0xff]  ;;  %v7764_v62 = vsel %vm3474_vm10, %v7732_v7, %v9041_v34  ;;  %v6466_v7 = vmul.f32 %v15482_v10, %v18265_v44  ;;  %v9045_v34 = vunpack.i.l.bf16 %v15369_v33 }
 0xe79   : > { %v15450_v56 = vpop.permute.xlu0 %7449  ;;  %v15453_v41 = vpop.permute.xlu1 %7451  ;;  %v6463_v19 = vmul.f32 %v15333_v2, %v18262_v1  ;;  %v7797_v45 = vsel %vm7789_vm2, %v7764_v62, %v9061_v47  ;;  %v9081_v2 = vunpack.i.h.bf16 %v15327_v54  ;;  %v18267_v1 = vld [vmem:[#allocation199_spill] sm:$0xff] }
 0xe7a   : > { %18258 = vst [vmem:[#allocation302_spill] sm:$0xff] %v15450_v56  ;;  %v7862_v27 = vsel %vm7855_vm7, %v7829_v63, %v15450_v56  ;;  %v15466_v12 = vpop.permute.xlu2 %9098  ;;  %v18276_v56 = vld [vmem:[#allocation186_spill] sm:$0xff] }
 0xe7b   : > { %18259 = vst [vmem:[#allocation267_spill] sm:$0xff] %v15453_v41  ;;  %8076 = vmatmul.f32.vlgmr.msra.gmra.mxu2 %v7862_v27  ;;  %v9202_v28 = vpack.i.bf16 %v6464_v29, %v6463_v19  ;;  %v7830_v29 = vsel %vm7822_vm4, %v7797_v45, %v9081_v2  ;;  %v6465_v27 = vmul.f32 %v6425_v22, %v18266_v4  ;;  %v18270_v2 = vld [vmem:[#allocation26_spill] sm:$0xff] }
 0xe7c   : > { %v7863_v54 = vsel %vm7855_vm7, %v7830_v29, %v15453_v41  ;;  %v6620_v19 = vmul.f32 %v15353_v49, %v18267_v1  ;;  %v6370_v29 = vmul.f32 %v15358_v42, %v18270_v2  ;;  %v18275_v2 = vld [vmem:[#allocation228_spill] sm:$0xff]  ;;  %v6557_v59 = vmul.f32 %v15409_v32, %v18276_v56  ;;  %v18277_v56 = vld [vmem:[#allocation53_spill] sm:$0xff] }
 0xe7d   : > { %v6326_v61 = vmul.f32 %v14753_v13, %v18275_v2 }
 0xe7e   : > { %v15473_v5 = vpop.f32.mrf.mxu1 }
 0xe7f   : > { %9203 = vrot.lane.b32.xlu0 %v9202_v28, %s18114_s5  ;;  %7597 = vrot.lane.b32.xlu1 %v6621_v48, %s18034_s25  ;;  %v9232_v28 = vpack.i.bf16 %v6466_v7, %v6465_v27  ;;  %v18268_v48 = vld [vmem:[#allocation212_spill] sm:$0xff]  ;;  %v9055_v27 = vunpack.i.l.bf16 %v15320_v26 }
 0xe80   : > { %9213 = vrot.lane.b32.xlu2 %v9212_v11, %s17743_s27  ;;  %v6590_v62 = vmul.f32 %v15358_v42, %v18268_v48  ;;  %v18269_v11 = vld [vmem:[#allocation5_spill] sm:$0xff]  ;;  %v18273_v48 = vld [vmem:[#allocation50_spill] sm:$0xff] }
 0xe81   : > { %v15488_v53 = vpop.permute.xlu0 %9063  ;;  %v15490_v63 = vpop.permute.xlu1 %7453  ;;  %v6325_v45 = vmul.f32 %v14744_v52, %v18269_v11  ;;  %v9046_v11 = vunpack.i.h.bf16 %v15369_v33 }
 0xe82   : > { %18264 = vst [vmem:[#allocation290_spill] sm:$0xff] %v15490_v63  ;;  %v15495_v47 = vpop.permute.xlu2 %7455 }
 0xe83   : > { %8079 = vmatmul.f32.gmra.mxu2 %v7863_v54  ;;  %v7669_v49 = vsel %vm3276_vm5, %v6325_v45, %v9045_v34  ;;  %v18271_v54 = vld [vmem:[#allocation156_spill] sm:$0xff]  ;;  %v7670_v2 = vsel %vm3276_vm5, %v6326_v61, %v9046_v11 }
 0xe84   : > { %v6528_v4 = vmul.f32 %v15482_v10, %v18271_v54  ;;  %v18274_v34 = vld [vmem:[#allocation112_spill] sm:$0xff]  ;;  %v7701_v41 = vsel %vm3342_vm6, %v7669_v49, %v9055_v27  ;;  %v9065_v54 = vunpack.i.l.bf16 %v15488_v53 }
 0xe85   : > { %v6527_v45 = vmul.f32 %v6425_v22, %v18274_v34  ;;  %v18278_v61 = vld [vmem:[#allocation60_spill] sm:$0xff] }
 0xe86   : > { %v15503_v30 = vpop.f32.mrf.mxu1 }
 0xe87   : > { %7595 = vrot.lane.b32.xlu0 %v6620_v19, %s18034_s25  ;;  %9233 = vrot.lane.b32.xlu1 %v9232_v28, %s18114_s5  ;;  %v18272_v19 = vld [vmem:[#allocation179_spill] sm:$0xff] }
 0xe88   : > { %7471 = vrot.lane.b32.xlu2 %v6590_v62, %s9555_s1  ;;  %v6558_v28 = vmul.f32 %v15399_v14, %v18272_v19  ;;  %v6369_v62 = vmul.f32 %v15314_v0, %v18273_v48  ;;  %v15539_v19 = vsel %vm3243_vm3, %v15225_v43, %v14866_v24  ;;  %v9075_v0 = vunpack.i.l.bf16 %v15295_v3 }
 0xe89   : > { %v15515_v44 = vpop.permute.xlu1 %9093  ;;  %v15517_v7 = vpop.permute.xlu0 %9103  ;;  %v9237_v48 = vpack.i.bf16 %v6528_v4, %v6527_v45  ;;  %v6372_v27 = vmul.f32 %v15539_v19, %v18277_v56  ;;  %v9056_v43 = vunpack.i.h.bf16 %v15320_v26  ;;  %v6273_v26 = vrot.slane %v15443_v9, 7 }
 0xe8a   : > { %v15522_v1 = vpop.permute.xlu2 %9123  ;;  %v9217_v33 = vpack.i.bf16 %v6370_v29, %v6369_v62  ;;  %v9227_v34 = vpack.i.bf16 %v6558_v28, %v6557_v59  ;;  %v7733_v49 = vsel %vm3408_vm8, %v7701_v41, %v9075_v0  ;;  %v9090_v29 = vunpack.i.l.bf16 %v15422_v16 }
 0xe8b   : > { %v7765_v24 = vsel %vm3474_vm10, %v7733_v49, %v9065_v54  ;;  %v6371_v41 = vmul.f32 %v15443_v9, %v18278_v61  ;;  %v7702_v28 = vsel %vm3342_vm6, %v7670_v2, %v9056_v43  ;;  %v9066_v62 = vunpack.i.h.bf16 %v15488_v53  ;;  %v18279_v49 = vld [vmem:[#allocation172_spill] sm:$0xff] }
 0xe8c   : > { %v17313_v54 = vrot.slane %v15539_v19, 7  ;;  %v9076_v0 = vunpack.i.h.bf16 %v15295_v3  ;;  %v6591_v2 = vmul.f32 %v15443_v9, %v18279_v49  ;;  %v15573_v53 = vsel %vm3243_vm3, %v15275_v55, %v14901_v57 }
 0xe8d   : > { %v9247_v56 = vpack.i.bf16 %v6372_v27, %v6371_v41  ;;  %v9070_v43 = vunpack.i.l.bf16 %v15411_v21  ;;  %v18281_v41 = vld [vmem:[#allocation16_spill] sm:$0xff]  ;;  %v9091_v55 = vunpack.i.h.bf16 %v15422_v16 }
 0xe8e   : > { %v15542_v22 = vpop.f32.mrf.mxu1  ;;  %v7734_v61 = vsel %vm3408_vm8, %v7702_v28, %v9076_v0  ;;  %v6327_v57 = vmul.f32 %v14842_v6, %v18281_v41  ;;  %v6403_v28 = vrot.slane %v15573_v53, 1  ;;  %v9105_v0 = vunpack.i.l.bf16 %v15517_v7 }
 0xe8f   : > { %9218 = vrot.lane.b32.xlu0 %v9217_v33, %s17937_s26  ;;  %9238 = vrot.lane.b32.xlu1 %v9237_v48, %s9556_s24  ;;  %v7798_v33 = vsel %vm7789_vm2, %v7765_v24, %v9090_v29  ;;  %v6402_v48 = vrot.slane %v15539_v19, 1  ;;  %v7766_v24 = vsel %vm3474_vm10, %v7734_v61, %v9066_v62  ;;  %v18282_v62 = vrot.slane %v15358_v42, 7 }
 0xe90   : > { %9228 = vrot.lane.b32.xlu2 %v9227_v34, %s9557_s18  ;;  %v7671_v16 = vsel %vm3276_vm5, %v6327_v57, %v9070_v43  ;;  %v9085_v42 = vunpack.i.l.bf16 %v15379_v50  ;;  %v18286_v57 = vld [vmem:[#allocation116_spill] sm:$0xff] }
 0xe91   : > { %v9109_v59 = vpop.permute.xlu0 %9108  ;;  %v15554_v4 = vpop.permute.xlu1 %9118  ;;  %v15601_v6 = vsel %vm809_vm1, %v18282_v62, %v6273_v26 }
 0xe92   : > { %v9110_v11 = vunpack.i.l.bf16 %v9109_v59  ;;  %v15560_v45 = vpop.permute.xlu2 %7459  ;;  %v9111_v29 = vunpack.i.h.bf16 %v9109_v59  ;;  %v15593_v59 = vsel %vm809_vm1, %v6273_v26, %v17313_v54  ;;  %v7703_v62 = vsel %vm3342_vm6, %v7671_v16, %v9085_v42 }
 0xe94   : > { %v7831_v34 = vsel %vm7822_vm4, %v7798_v33, %v9110_v11  ;;  %v18280_v33 = vld [vmem:[#allocation223_spill] sm:$0xff] }
 0xe95   : > { %v7864_v3 = vsel %vm7855_vm7, %v7831_v34, %v15490_v63  ;;  %v6592_v27 = vmul.f32 %v15539_v19, %v18280_v33 }
 0xe96   : > { %v15580_v11 = vpop.f32.mrf.mxu1  ;;  %8082 = vmatmul.f32.gmra.mxu2 %v7864_v3  ;;  %v18284_v3 = vld [vmem:[#allocation85_spill] sm:$0xff] }
 0xe97   : > { %7473 = vrot.lane.b32.xlu0 %v6591_v2, %s9555_s1  ;;  %9248 = vrot.lane.b32.xlu1 %v9247_v56, %s17937_s26  ;;  %v7799_v2 = vsel %vm7789_vm2, %v7766_v24, %v9091_v55  ;;  %v18283_v56 = vrot.slane %v15443_v9, 1  ;;  %v6498_v33 = vmul.f32 %v15593_v59, %v18284_v3  ;;  %v6497_v24 = vmul.f32 %v15601_v6, %v18286_v57 }
 0xe98   : > { %7475 = vrot.lane.b32.xlu2 %v6592_v27, %s9555_s1  ;;  %v7832_v43 = vsel %vm7822_vm4, %v7799_v2, %v9111_v29  ;;  %v18285_v27 = vld [vmem:[#allocation249_spill] sm:$0xff]  ;;  %v9095_v55 = vunpack.i.l.bf16 %v15515_v44  ;;  %v15634_v29 = vsel %vm1226_vm0, %v6402_v48, %v6403_v28  ;;  %v9071_v2 = vunpack.i.h.bf16 %v15411_v21 }
 0xe99   : > { %v15605_v34 = vpop.permute.xlu0 %7457  ;;  %v15607_v49 = vpop.permute.xlu1 %9133  ;;  %v15614_v61 = vsel %vm1226_vm0, %v18283_v56, %v6402_v48  ;;  %v6622_v41 = vmul.f32 %v15482_v10, %v18285_v27  ;;  %v18287_v56 = vld [vmem:[#allocation202_spill] sm:$0xff]  ;;  %v7735_v10 = vsel %vm3408_vm8, %v7703_v62, %v9105_v0  ;;  %v9120_v3 = vunpack.i.l.bf16 %v15554_v4 }
 0xe9a   : > { %v15617_v26 = vpop.permute.xlu2 %9138  ;;  %v6623_v54 = vmul.f32 %v15614_v61, %v18287_v56  ;;  %v7865_v27 = vsel %vm7855_vm7, %v7832_v43, %v15495_v47  ;;  %v9252_v57 = vpack.i.bf16 %v6498_v33, %v6497_v24  ;;  %v18288_v56 = vld [vmem:[#allocation6_spill] sm:$0xff]  ;;  %v7767_v0 = vsel %vm3474_vm10, %v7735_v10, %v9095_v55  ;;  %v18289_v43 = vld [vmem:[#allocation115_spill] sm:$0xff]  ;;  %v18290_v55 = vld [vmem:[#allocation189_spill] sm:$0xff] }
 0xe9b   : > { %v9140_v16 = vunpack.i.l.bf16 %v15617_v26  ;;  %v6328_v63 = vmul.f32 %v14834_v15, %v18288_v56  ;;  %v6530_v33 = vmul.f32 %v15634_v29, %v18289_v43  ;;  %v9106_v15 = vunpack.i.h.bf16 %v15517_v7  ;;  %v18293_v43 = vld [vmem:[#allocation67_spill] sm:$0xff] }
 0xe9c   : > { %v6560_v10 = vmul.f32 %v15593_v59, %v18290_v55  ;;  %v9242_v7 = vpack.i.bf16 %v15539_v19, %v15443_v9 }
 0xe9d   : > { %v7672_v24 = vsel %vm3276_vm5, %v6328_v63, %v9071_v2  ;;  %v18292_v2 = vld [vmem:[#allocation142_spill] sm:$0xff] }
 0xe9e   : > { %v6122_v42 = vpop.f32.mrf.mxu1  ;;  %8085 = vmatmul.f32.gmra.mxu2 %v7865_v27  ;;  %v6559_v56 = vmul.f32 %v15601_v6, %v18292_v2 }
 0xe9f   : > { %v15646_v48 = vsel %vm3243_vm3, %v6122_v42, %v15052_v60  ;;  %7599 = vrot.lane.b32.xlu0 %v6622_v41, %s18034_s25  ;;  %7601 = vrot.lane.b32.xlu1 %v6623_v54, %s18034_s25  ;;  %v7800_v41 = vsel %vm7789_vm2, %v7767_v0, %v9120_v3  ;;  %v9086_v54 = vunpack.i.h.bf16 %v15379_v50  ;;  %v15676_v3 = vmul.f32 %v14602_v37, %v18293_v43  ;;  %v18295_v43 = vld [vmem:[#allocation95_spill] sm:$0xff] }
 0xea0   : > { %v6284_v21 = vrot.slane %v15646_v48, 7  ;;  %9253 = vrot.lane.b32.xlu2 %v9252_v57, %s17734_s2  ;;  %v7833_v42 = vsel %vm7822_vm4, %v7800_v41, %v9140_v16  ;;  %v18291_v57 = vld [vmem:[#allocation149_spill] sm:$0xff]  ;;  %v9096_v50 = vunpack.i.h.bf16 %v15515_v44  ;;  %v18294_v41 = vrot.slane %v14581_v25, 7 }
 0xea1   : > { %v15657_v62 = vpop.permute.xlu0 %9113  ;;  %v15659_v60 = vpop.permute.xlu1 %7585  ;;  %v6529_v63 = vmul.f32 %v15614_v61, %v18291_v57  ;;  %v7704_v16 = vsel %vm3342_vm6, %v7672_v24, %v9086_v54  ;;  %v9121_v57 = vunpack.i.h.bf16 %v15554_v4  ;;  %v7866_v2 = vsel %vm7855_vm7, %v7833_v42, %v15605_v34  ;;  %v18296_v54 = vld [vmem:[#allocation174_spill] sm:$0xff] }
 0xea2   : > { %v15663_v27 = vpop.permute.xlu2 %7463  ;;  %v15686_v55 = vsel %vm809_vm1, %v6284_v21, %v18294_v41  ;;  %v7736_v9 = vsel %vm3408_vm8, %v7704_v16, %v9106_v15  ;;  %v9257_v24 = vpack.i.bf16 %v6560_v10, %v6559_v56  ;;  %v15703_v4 = vmul.f32 %v14744_v52, %v18296_v54  ;;  %v18297_v42 = vld [vmem:[#allocation154_spill] sm:$0xff] }
 0xea3   : > { %v9267_v0 = vpack.i.bf16 %v6530_v33, %v6529_v63  ;;  %v15694_v44 = vmul.f32 %v15686_v55, %v18295_v43  ;;  %v9141_v33 = vunpack.i.h.bf16 %v15617_v26  ;;  %v15707_v63 = vmul.f32 %v15686_v55, %v18297_v42  ;;  %v18298_v16 = vld [vmem:[#allocation86_spill] sm:$0xff]  ;;  %v18300_v42 = vld [vmem:[#allocation93_spill] sm:$0xff] }
 0xea4   : > { %v7768_v26 = vsel %vm3474_vm10, %v7736_v9, %v9096_v50  ;;  %v15721_v41 = vsel %vm3243_vm3, %v15309_v8, %v14812_v51  ;;  %v9115_v43 = vunpack.i.l.bf16 %v15657_v62  ;;  %v6467_v51 = vmul.f32 %v15614_v61, %v18300_v42 }
 0xea5   : > { %v6404_v8 = vrot.slane %v15721_v41, 1  ;;  %v9136_v15 = vunpack.i.h.bf16 %v15607_v49 }
 0xea6   : > { %8088 = vmatmul.f32.gmra.mxu2 %v7866_v2  ;;  %v9100_v2 = vunpack.i.l.bf16 %v15466_v12 }
 0xea7   : > { %9243 = vrot.lane.b32.xlu0 %v9242_v7, %s17743_s27  ;;  %9268 = vrot.lane.b32.xlu1 %v9267_v0, %s9556_s24  ;;  %v7801_v7 = vsel %vm7789_vm2, %v7768_v26, %v9121_v57  ;;  %v6468_v0 = vmul.f32 %v15634_v29, %v18298_v16 }
 0xea8   : > { %9258 = vrot.lane.b32.xlu2 %v9257_v24, %s9557_s18  ;;  %v7834_v57 = vsel %vm7822_vm4, %v7801_v7, %v9141_v33  ;;  %v18299_v24 = vld [vmem:[#allocation231_spill] sm:$0xff]  ;;  %v9272_v33 = vpack.i.bf16 %v15721_v41, %v15573_v53 }
 0xea9   : > { %v7584_v10 = vpop.permute.xlu0 %7583  ;;  %v15711_v56 = vpop.permute.xlu1 %9143  ;;  %v6329_v54 = vmul.f32 %v14937_v18, %v18299_v24  ;;  %v7867_v26 = vsel %vm7855_vm7, %v7834_v57, %v15560_v45  ;;  %v9262_v16 = vpack.i.bf16 %v6468_v0, %v6467_v51  ;;  %v15746_v18 = vsel %vm3243_vm3, %v15343_v31, %v14906_v35  ;;  %v18302_v57 = vld [vmem:[#allocation19_spill] sm:$0xff] }
 0xeaa   : > { %v7897_v50 = vsel %vm4654_vm12, %v15495_v47, %v7584_v10  ;;  %v15726_v9 = vpop.permute.xlu2 %9163  ;;  %v18301_v47 = vld [vmem:[#allocation215_spill] sm:$0xff]  ;;  %v6330_v24 = vmul.f32 %v14922_v20, %v18302_v57  ;;  %v6276_v0 = vrot.slane %v15721_v41, 7  ;;  %v9116_v31 = vunpack.i.h.bf16 %v15657_v62  ;;  %v18304_v62 = vld [vmem:[#allocation28_spill] sm:$0xff]  ;;  %v18305_v57 = vld [vmem:[#allocation262_spill] sm:$0xff] }
 0xeab   : > { %8540 = vmatmul.msk.f32.vlgmr.msra.gmra.mxu3 %vm7941_vm15, %v7897_v50  ;;  %v6593_v10 = vmul.f32 %v15573_v53, %v18301_v47  ;;  %v7673_v7 = vsel %vm3276_vm5, %v6329_v54, %v9100_v2  ;;  %v9101_v50 = vunpack.i.h.bf16 %v15466_v12  ;;  %v9135_v2 = vunpack.i.l.bf16 %v15607_v49  ;;  %v18303_v54 = vld [vmem:[#allocation63_spill] sm:$0xff] }
 0xeac   : > { %v7705_v61 = vsel %vm3342_vm6, %v7673_v7, %v9115_v43  ;;  %v6374_v35 = vmul.f32 %v15721_v41, %v18303_v54  ;;  %v15766_v12 = vsel %vm1226_vm0, %v6403_v28, %v6404_v8  ;;  %v6405_v20 = vrot.slane %v15746_v18, 1 }
 0xead   : > { %v7737_v51 = vsel %vm3408_vm8, %v7705_v61, %v9135_v2  ;;  %v9125_v7 = vunpack.i.l.bf16 %v15522_v1  ;;  %v6275_v28 = vrot.slane %v15573_v53, 7  ;;  %v6624_v61 = vmul.f32 %v15634_v29, %v18305_v57  ;;  %v18306_v2 = vld [vmem:[#allocation252_spill] sm:$0xff]  ;;  %v18311_v57 = vld [vmem:[#allocation159_spill] sm:$0xff] }
 0xeae   : > { %8091 = vmatmul.f32.gmra.mxu2 %v7867_v26  ;;  %v7898_v26 = vsel %vm4654_vm12, %v15605_v34, %v15659_v60  ;;  %v6625_v54 = vmul.f32 %v15766_v12, %v18306_v2  ;;  %v15795_v29 = vsel %vm1226_vm0, %v6404_v8, %v6405_v20 }
 0xeaf   : > { %7477 = vrot.lane.b32.xlu0 %v6593_v10, %s9555_s1  ;;  %9273 = vrot.lane.b32.xlu1 %v9272_v33, %s17743_s27  ;;  %v6373_v33 = vmul.f32 %v15573_v53, %v18304_v62  ;;  %v7769_v62 = vsel %vm3474_vm10, %v7737_v51, %v9125_v7  ;;  %v15789_v53 = vsel %vm809_vm1, %v6275_v28, %v6276_v0 }
 0xeb0   : > { %9263 = vrot.lane.b32.xlu2 %v9262_v16, %s18114_s5  ;;  %v7674_v16 = vsel %vm3276_vm5, %v6330_v24, %v9101_v50  ;;  %v15800_v50 = vsel %vm3243_vm3, %v15391_v23, %v14947_v58 }
 0xeb1   : > { %v15760_v43 = vpop.permute.xlu0 %9128  ;;  %v9149_v42 = vpop.permute.xlu1 %9148  ;;  %v7706_v34 = vsel %vm3342_vm6, %v7674_v16, %v9116_v31  ;;  %v9277_v52 = vpack.i.bf16 %v6374_v35, %v6373_v33  ;;  %v18307_v35 = vrot.slane %v15539_v19, 7  ;;  %v9126_v31 = vunpack.i.h.bf16 %v15522_v1  ;;  %v18310_v1 = vld [vmem:[#allocation126_spill] sm:$0xff] }
 0xeb2   : > { %v9150_v47 = vunpack.i.l.bf16 %v9149_v42  ;;  %v9169_v10 = vpop.permute.xlu2 %9168  ;;  %v7738_v49 = vsel %vm3408_vm8, %v7706_v34, %v9136_v15  ;;  %v9151_v24 = vunpack.i.h.bf16 %v9149_v42  ;;  %v18309_v15 = vld [vmem:[#allocation152_spill] sm:$0xff] }
 0xeb3   : > { %8541 = vmatmul.msk.f32.gmra.mxu3 %vm7941_vm15, %v7898_v26  ;;  %v9170_v60 = vunpack.i.l.bf16 %v9169_v10  ;;  %v15810_v8 = vsel %vm809_vm1, %v18307_v35, %v6275_v28  ;;  %v6532_v42 = vmul.f32 %v15795_v29, %v18309_v15  ;;  %v9171_v28 = vunpack.i.h.bf16 %v9169_v10 }
 0xeb4   : > { %v7802_v26 = vsel %vm7789_vm2, %v7769_v62, %v9150_v47  ;;  %v18308_v47 = vld [vmem:[#allocation119_spill] sm:$0xff]  ;;  %v6499_v16 = vmul.f32 %v15810_v8, %v18310_v1  ;;  %v7770_v2 = vsel %vm3474_vm10, %v7738_v49, %v9126_v31 }
 0xeb5   : > { %v7835_v58 = vsel %vm7822_vm4, %v7802_v26, %v9170_v60  ;;  %v6500_v33 = vmul.f32 %v15789_v53, %v18308_v47  ;;  %v7803_v34 = vsel %vm7789_vm2, %v7770_v2, %v9151_v24  ;;  %v18312_v26 = vld [vmem:[#allocation175_spill] sm:$0xff] }
 0xeb6   : > { %v6594_v35 = vmul.f32 %v15721_v41, %v18312_v26  ;;  %v7836_v49 = vsel %vm7822_vm4, %v7803_v34, %v9171_v28  ;;  %v18318_v34 = vld [vmem:[#allocation227_spill] sm:$0xff]  ;;  %v6406_v26 = vrot.slane %v15800_v50, 1 }
 0xeb7   : > { %7603 = vrot.lane.b32.xlu0 %v6624_v61, %s18034_s25  ;;  %7605 = vrot.lane.b32.xlu1 %v6625_v54, %s18034_s25  ;;  %v6531_v61 = vmul.f32 %v15766_v12, %v18311_v57  ;;  %v6277_v54 = vrot.slane %v15746_v18, 7  ;;  %v9282_v60 = vpack.i.bf16 %v6500_v33, %v6499_v16  ;;  %v18316_v57 = vld [vmem:[#allocation88_spill] sm:$0xff] }
 0xeb8   : > { %9278 = vrot.lane.b32.xlu2 %v9277_v52, %s17937_s26  ;;  %v6278_v52 = vrot.slane %v15800_v50, 7 }
 0xeb9   : > { %v7462_v51 = vpop.permute.xlu0 %7461  ;;  %v15813_v23 = vpop.permute.xlu1 %9158  ;;  %v9297_v62 = vpack.i.bf16 %v6532_v42, %v6531_v61  ;;  %v15845_v24 = vsel %vm809_vm1, %v6276_v0, %v6277_v54  ;;  %v7869_v42 = vsel %vm7855_vm7, %v7836_v49, %v15663_v27  ;;  %v18315_v0 = vld [vmem:[#allocation25_spill] sm:$0xff]  ;;  %v15877_v49 = vsel %vm3243_vm3, %v15437_v39, %v14848_v17 }
 0xeba   : > { %v15821_v19 = vpop.permute.xlu2 %9173  ;;  %v7868_v7 = vsel %vm7855_vm7, %v7835_v58, %v7462_v51  ;;  %v15837_v10 = vsel %vm809_vm1, %v6277_v54, %v6278_v52  ;;  %v18313_v58 = vld [vmem:[#allocation129_spill] sm:$0xff]  ;;  %v6336_v16 = vmul.f32 %v15347_v40, %v18315_v0  ;;  %v6501_v61 = vmul.f32 %v15845_v24, %v18316_v57 }
 0xebb   : > { %8094 = vmatmul.f32.gmra.mxu2 %v7868_v7  ;;  %v6502_v47 = vmul.f32 %v15837_v10, %v18313_v58  ;;  %v18314_v7 = vld [vmem:[#allocation145_spill] sm:$0xff]  ;;  %v9130_v40 = vunpack.i.l.bf16 %v15760_v43  ;;  %v6419_v17 = vsel %vm1226_vm0, %v6405_v20, %v6406_v26  ;;  %v9145_v39 = vunpack.i.l.bf16 %v15711_v56  ;;  %v18323_v20 = vld [vmem:[#allocation234_spill] sm:$0xff] }
 0xebc   : > { %v6562_v28 = vmul.f32 %v15789_v53, %v18314_v7 }
 0xebf   : > { %9283 = vrot.lane.b32.xlu0 %v9282_v60, %s17734_s2  ;;  %9298 = vrot.lane.b32.xlu1 %v9297_v62, %s9556_s24  ;;  %v6595_v60 = vmul.f32 %v15746_v18, %v18318_v34  ;;  %v9312_v62 = vpack.i.bf16 %v6502_v47, %v6501_v61  ;;  %v9131_v61 = vunpack.i.h.bf16 %v15760_v43 }
 0xec0   : > { %7479 = vrot.lane.b32.xlu2 %v6594_v35, %s9555_s1 }
 0xec1   : > { %v7588_v31 = vpop.permute.xlu0 %7587  ;;  %v7590_v41 = vpop.permute.xlu1 %7589 }
 0xec2   : > { %v7899_v33 = vsel %vm4654_vm12, %v15560_v45, %v7588_v31  ;;  %v15851_v15 = vpop.permute.xlu2 %9188  ;;  %v18317_v45 = vld [vmem:[#allocation182_spill] sm:$0xff]  ;;  %v18319_v31 = vld [vmem:[#allocation9_spill] sm:$0xff] }
 0xec3   : > { %v9191_v1 = vunpack.i.h.bf16 %v15851_v15  ;;  %8097 = vmatmul.f32.gmra.mxu2 %v7869_v42  ;;  %8542 = vmatmul.msk.f32.gmra.mxu3 %vm7941_vm15, %v7899_v33  ;;  %v6561_v2 = vmul.f32 %v15810_v8, %v18317_v45  ;;  %v6331_v58 = vmul.f32 %v15021_v36, %v18319_v31  ;;  %v18320_v42 = vld [vmem:[#allocation96_spill] sm:$0xff]  ;;  %v6407_v36 = vrot.slane %v15877_v49, 1 }
 0xec4   : > { %v6470_v7 = vmul.f32 %v15795_v29, %v18320_v42 }
 0xec5   : > { %v15866_v54 = vsel %vm3276_vm5, %v6336_v16, %v9191_v1  ;;  %v9287_v35 = vpack.i.bf16 %v6562_v28, %v6561_v2  ;;  %v7675_v28 = vsel %vm3276_vm5, %v6331_v58, %v9130_v40  ;;  %v7900_v1 = vsel %vm4654_vm12, %v7462_v51, %v7590_v41  ;;  %v18321_v16 = vld [vmem:[#allocation58_spill] sm:$0xff]  ;;  %v18322_v2 = vld [vmem:[#allocation268_spill] sm:$0xff] }
 0xec6   : > { %v6469_v57 = vmul.f32 %v15766_v12, %v18321_v16  ;;  %v7707_v51 = vsel %vm3342_vm6, %v7675_v28, %v9145_v39  ;;  %v6627_v34 = vmul.f32 %v6419_v17, %v18322_v2  ;;  %v9302_v40 = vpack.i.bf16 %v15800_v50, %v15746_v18 }
 0xec7   : > { %7481 = vrot.lane.b32.xlu0 %v6595_v60, %s9555_s1  ;;  %9313 = vrot.lane.b32.xlu1 %v9312_v62, %s17734_s2  ;;  %v9165_v60 = vunpack.i.l.bf16 %v15726_v9  ;;  %v6332_v62 = vmul.f32 %v15010_v38, %v18323_v20  ;;  %v15911_v43 = vsel %vm1226_vm0, %v6406_v26, %v6407_v36  ;;  %v9146_v38 = vunpack.i.h.bf16 %v15711_v56 }
 0xec8   : > { %9288 = vrot.lane.b32.xlu2 %v9287_v35, %s9557_s18  ;;  %v9292_v45 = vpack.i.bf16 %v6470_v7, %v6469_v57 }
 0xec9   : > { %v9154_v47 = vpop.permute.xlu0 %9153  ;;  %v9179_v33 = vpop.permute.xlu1 %9178  ;;  %v7676_v12 = vsel %vm3276_vm5, %v6332_v62, %v9131_v61  ;;  %v7739_v35 = vsel %vm3408_vm8, %v7707_v51, %v9165_v60  ;;  %v9166_v61 = vunpack.i.h.bf16 %v15726_v9  ;;  %v18327_v60 = vld [vmem:[#allocation218_spill] sm:$0xff] }
 0xeca   : > { %v15886_v0 = vpop.permute.xlu2 %7467  ;;  %v9155_v41 = vunpack.i.l.bf16 %v9154_v47  ;;  %v9180_v31 = vunpack.i.l.bf16 %v9179_v33  ;;  %v7708_v26 = vsel %vm3342_vm6, %v7676_v12, %v9146_v38  ;;  %v9156_v16 = vunpack.i.h.bf16 %v9154_v47 }
 0xecb   : > { %8543 = vmatmul.msk.f32.gmra.mxu3 %vm7941_vm15, %v7900_v1  ;;  %v18324_v1 = vld [vmem:[#allocation61_spill] sm:$0xff]  ;;  %v6596_v20 = vmul.f32 %v15800_v50, %v18327_v60  ;;  %v7740_v62 = vsel %vm3408_vm8, %v7708_v26, %v9166_v61  ;;  %v18331_v61 = vld [vmem:[#allocation56_spill] sm:$0xff]  ;;  %v9160_v60 = vunpack.i.l.bf16 %v15813_v23 }
 0xecc   : > { %v7771_v58 = vsel %vm3474_vm10, %v7739_v35, %v9155_v41  ;;  %v6472_v39 = vmul.f32 %v15911_v43, %v18324_v1  ;;  %v18326_v41 = vld [vmem:[#allocation205_spill] sm:$0xff]  ;;  %v7772_v9 = vsel %vm3474_vm10, %v7740_v62, %v9156_v16  ;;  %v18330_v16 = vld [vmem:[#allocation162_spill] sm:$0xff] }
 0xecd   : > { %v7804_v51 = vsel %vm7789_vm2, %v7771_v58, %v9180_v31 }
 0xecf   : > { %9293 = vrot.lane.b32.xlu0 %v9292_v45, %s18114_s5  ;;  %7609 = vrot.lane.b32.xlu1 %v6627_v34, %s18034_s25  ;;  %v18325_v45 = vld [vmem:[#allocation89_spill] sm:$0xff]  ;;  %v6626_v34 = vmul.f32 %v15795_v29, %v18326_v41  ;;  %v18328_v29 = vld [vmem:[#allocation31_spill] sm:$0xff] }
 0xed0   : > { %9303 = vrot.lane.b32.xlu2 %v9302_v40, %s17743_s27  ;;  %v6471_v2 = vmul.f32 %v6419_v17, %v18325_v45  ;;  %v9181_v40 = vunpack.i.h.bf16 %v9179_v33  ;;  %v6376_v31 = vmul.f32 %v15800_v50, %v18328_v29 }
 0xed1   : > { %v7466_v42 = vpop.permute.xlu0 %7465  ;;  %v15918_v7 = vpop.permute.xlu1 %9183 }
 0xed2   : > { %v9199_v28 = vpop.permute.xlu2 %9198  ;;  %v9322_v12 = vpack.i.bf16 %v6472_v39, %v6471_v2  ;;  %v7805_v39 = vsel %vm7789_vm2, %v7772_v9, %v9181_v40  ;;  %v18332_v2 = vld [vmem:[#allocation192_spill] sm:$0xff]  ;;  %v18336_v9 = vld [vmem:[#allocation263_spill] sm:$0xff] }
 0xed3   : > { %v9200_v57 = vunpack.i.l.bf16 %v9199_v28  ;;  %v9201_v35 = vunpack.i.h.bf16 %v9199_v28  ;;  %v18329_v28 = vld [vmem:[#allocation185_spill] sm:$0xff] }
 0xed4   : > { %v6564_v26 = vmul.f32 %v15837_v10, %v18329_v28 }
 0xed5   : > { %v7837_v56 = vsel %vm7822_vm4, %v7804_v51, %v9200_v57  ;;  %v6534_v57 = vmul.f32 %v15911_v43, %v18330_v16  ;;  %v6375_v51 = vmul.f32 %v15746_v18, %v18331_v61  ;;  %v7838_v45 = vsel %vm7822_vm4, %v7805_v39, %v9201_v35 }
 0xed6   : > { %v7870_v47 = vsel %vm7855_vm7, %v7837_v56, %v7466_v42  ;;  %v18333_v56 = vld [vmem:[#allocation118_spill] sm:$0xff] }
 0xed7   : > { %8100 = vmatmul.f32.gmra.mxu2 %v7870_v47  ;;  %7607 = vrot.lane.b32.xlu0 %v6626_v34, %s18034_s25  ;;  %v6533_v41 = vmul.f32 %v6419_v17, %v18333_v56  ;;  %v9307_v34 = vpack.i.bf16 %v6376_v31, %v6375_v51  ;;  %v18334_v47 = vld [vmem:[#allocation226_spill] sm:$0xff]  ;;  %v9175_v17 = vunpack.i.l.bf16 %v15821_v19  ;;  %v9161_v51 = vunpack.i.h.bf16 %v15813_v23 }
 0xed8   : > { %7483 = vrot.lane.b32.xlu2 %v6596_v20, %s9555_s1  ;;  %9323 = vrot.lane.b32.xlu1 %v9322_v12, %s18114_s5  ;;  %v7871_v20 = vsel %vm7855_vm7, %v7838_v45, %v15886_v0  ;;  %v15961_v18 = vsel %vm3243_vm3, %v15473_v5, %v18334_v47  ;;  %v18335_v12 = vld [vmem:[#allocation22_spill] sm:$0xff]  ;;  %v6279_v45 = vrot.slane %v15877_v49, 7  ;;  %v9185_v23 = vunpack.i.l.bf16 %v15918_v7 }
 0xed9   : > { %v7592_v38 = vpop.permute.xlu0 %7591  ;;  %v7594_v58 = vpop.permute.xlu1 %7593  ;;  %v9327_v40 = vpack.i.bf16 %v6534_v57, %v6533_v41  ;;  %v6333_v35 = vmul.f32 %v18336_v9, %v18335_v12  ;;  %v6280_v16 = vrot.slane %v15961_v18, 7  ;;  %v18338_v57 = vld [vmem:[#allocation66_spill] sm:$0xff] }
 0xeda   : > { %v7901_v33 = vsel %vm4654_vm12, %v15663_v27, %v7592_v38  ;;  %v15941_v1 = vpop.permute.xlu2 %9213  ;;  %v6563_v27 = vmul.f32 %v15845_v24, %v18332_v2  ;;  %v18337_v38 = vld [vmem:[#allocation59_spill] sm:$0xff]  ;;  %v7902_v39 = vsel %vm4654_vm12, %v7466_v42, %v7594_v58  ;;  %v6377_v61 = vmul.f32 %v15877_v49, %v18338_v57  ;;  %v18340_v42 = vld [vmem:[#allocation12_spill] sm:$0xff]  ;;  %v18343_v47 = vld [vmem:[#allocation278_spill] sm:$0xff] }
 0xedb   : > { %8544 = vmatmul.msk.f32.gmra.mxu3 %vm7941_vm15, %v7901_v33  ;;  %v6378_v33 = vmul.f32 %v15961_v18, %v18337_v38  ;;  %v7677_v5 = vsel %vm3276_vm5, %v6333_v35, %v9160_v60  ;;  %v18341_v58 = vld [vmem:[#allocation264_spill] sm:$0xff]  ;;  %v18342_v60 = vld [vmem:[#allocation178_spill] sm:$0xff]  ;;  %v16001_v12 = vsel %vm3243_vm3, %v15503_v30, %v18343_v47 }
 0xedc   : > { %v9317_v62 = vpack.i.bf16 %v6564_v26, %v6563_v27  ;;  %v7709_v2 = vsel %vm3342_vm6, %v7677_v5, %v9175_v17  ;;  %v18339_v27 = vld [vmem:[#allocation256_spill] sm:$0xff]  ;;  %v6334_v41 = vmul.f32 %v18341_v58, %v18340_v42  ;;  %v6408_v58 = vrot.slane %v15961_v18, 1 }
 0xedd   : > { %v6628_v56 = vmul.f32 %v15911_v43, %v18339_v27  ;;  %v15996_v43 = vsel %vm809_vm1, %v6279_v45, %v6280_v16 }
 0xede   : > { %v7678_v9 = vsel %vm3276_vm5, %v6334_v41, %v9161_v51  ;;  %v9186_v41 = vunpack.i.h.bf16 %v15918_v7 }
 0xedf   : > { %8103 = vmatmul.f32.gmra.mxu2 %v7871_v20  ;;  %9308 = vrot.lane.b32.xlu0 %v9307_v34, %s17937_s26  ;;  %v6597_v20 = vmul.f32 %v15877_v49, %v18342_v60  ;;  %v9332_v60 = vpack.i.bf16 %v15961_v18, %v15877_v49  ;;  %v18351_v49 = vld [vmem:[#allocation273_spill] sm:$0xff] }
 0xee0   : > { %9318 = vrot.lane.b32.xlu2 %v9317_v62, %s9557_s18  ;;  %9328 = vrot.lane.b32.xlu1 %v9327_v40, %s9556_s24  ;;  %v9337_v62 = vpack.i.bf16 %v6378_v33, %v6377_v61  ;;  %v9176_v40 = vunpack.i.h.bf16 %v15821_v19  ;;  %v16015_v33 = vsel %vm809_vm1, %v6278_v52, %v6279_v45  ;;  %v6409_v61 = vrot.slane %v16001_v12, 1  ;;  %v18347_v45 = vld [vmem:[#allocation122_spill] sm:$0xff] }
 0xee1   : > { %v9194_v29 = vpop.permute.xlu0 %9193  ;;  %v9209_v31 = vpop.permute.xlu1 %9208  ;;  %v6503_v42 = vmul.f32 %v16015_v33, %v18347_v45 }
 0xee2   : > { %v9195_v28 = vunpack.i.l.bf16 %v9194_v29  ;;  %v15973_v26 = vpop.permute.xlu2 %7471  ;;  %v9196_v35 = vunpack.i.h.bf16 %v9194_v29  ;;  %v9210_v30 = vunpack.i.l.bf16 %v9209_v31  ;;  %v7710_v51 = vsel %vm3342_vm6, %v7678_v9, %v9176_v40 }
 0xee3   : > { %8545 = vmatmul.msk.f32.gmra.mxu3 %vm7941_vm15, %v7902_v39  ;;  %v18344_v39 = vld [vmem:[#allocation195_spill] sm:$0xff]  ;;  %v6416_v7 = vsel %vm1226_vm0, %v6408_v58, %v6409_v61  ;;  %v9211_v9 = vunpack.i.h.bf16 %v9209_v31 }
 0xee4   : > { %v7741_v34 = vsel %vm3408_vm8, %v7709_v2, %v9195_v28  ;;  %v6566_v29 = vmul.f32 %v15996_v43, %v18344_v39  ;;  %v18345_v28 = vld [vmem:[#allocation91_spill] sm:$0xff]  ;;  %v7742_v27 = vsel %vm3408_vm8, %v7710_v51, %v9196_v35 }
 0xee5   : > { %v7773_v38 = vsel %vm3474_vm10, %v7741_v34, %v9185_v23  ;;  %v6504_v57 = vmul.f32 %v15996_v43, %v18345_v28  ;;  %v7774_v47 = vsel %vm3474_vm10, %v7742_v27, %v9186_v41  ;;  %v18349_v31 = vld [vmem:[#allocation99_spill] sm:$0xff] }
 0xee6   : > { %v7806_v50 = vsel %vm7789_vm2, %v7773_v38, %v9210_v30  ;;  %v6417_v30 = vsel %vm1226_vm0, %v6407_v36, %v6408_v58  ;;  %v7807_v39 = vsel %vm7789_vm2, %v7774_v47, %v9211_v9  ;;  %v9190_v58 = vunpack.i.l.bf16 %v15851_v15  ;;  %v18354_v47 = vld [vmem:[#allocation237_spill] sm:$0xff] }
 0xee7   : > { %7611 = vrot.lane.b32.xlu0 %v6628_v56, %s18034_s25  ;;  %v18346_v56 = vld [vmem:[#allocation148_spill] sm:$0xff]  ;;  %v9342_v40 = vpack.i.bf16 %v6504_v57, %v6503_v42  ;;  %v6473_v51 = vmul.f32 %v6417_v30, %v18349_v31  ;;  %v6281_v42 = vrot.slane %v16001_v12, 7  ;;  %v18355_v9 = vld [vmem:[#allocation281_spill] sm:$0xff] }
 0xee8   : > { %7485 = vrot.lane.b32.xlu2 %v6597_v20, %s9555_s1  ;;  %9338 = vrot.lane.b32.xlu1 %v9337_v62, %s17937_s26  ;;  %v6565_v52 = vmul.f32 %v16015_v33, %v18346_v56  ;;  %v6630_v56 = vmul.f32 %v6416_v7, %v18351_v49  ;;  %v18358_v49 = vld [vmem:[#allocation187_spill] sm:$0xff] }
 0xee9   : > { %v16006_v19 = vpop.permute.xlu0 %7469  ;;  %v16008_v17 = vpop.permute.xlu1 %9223 }
 0xeea   : > { %v9229_v5 = vpop.permute.xlu2 %9228  ;;  %v9347_v62 = vpack.i.bf16 %v6566_v29, %v6565_v52  ;;  %v18348_v29 = vld [vmem:[#allocation92_spill] sm:$0xff] }
 0xeeb   : > { %v9230_v2 = vunpack.i.l.bf16 %v9229_v5  ;;  %v9231_v23 = vunpack.i.h.bf16 %v9229_v5  ;;  %v6474_v28 = vmul.f32 %v6416_v7, %v18348_v29  ;;  %v18356_v29 = vld [vmem:[#allocation155_spill] sm:$0xff] }
 0xeec   : > { %v6535_v15 = vmul.f32 %v6417_v30, %v18356_v29 }
 0xeed   : > { %v7839_v34 = vsel %vm7822_vm4, %v7806_v50, %v9230_v2  ;;  %v7840_v57 = vsel %vm7822_vm4, %v7807_v39, %v9231_v23  ;;  %v18350_v2 = vld [vmem:[#allocation230_spill] sm:$0xff]  ;;  %v9352_v52 = vpack.i.bf16 %v6474_v28, %v6473_v51  ;;  %v6335_v39 = vmul.f32 %v18355_v9, %v18354_v47  ;;  %v18357_v28 = vld [vmem:[#allocation208_spill] sm:$0xff]  ;;  %v18361_v47 = vld [vmem:[#allocation221_spill] sm:$0xff] }
 0xeee   : > { %v7872_v20 = vsel %vm7855_vm7, %v7839_v34, %v16006_v19  ;;  %v6598_v27 = vmul.f32 %v15961_v18, %v18350_v2  ;;  %v7873_v50 = vsel %vm7855_vm7, %v7840_v57, %v15973_v26  ;;  %v6629_v57 = vmul.f32 %v6417_v30, %v18357_v28  ;;  %v18362_v28 = vld [vmem:[#allocation260_spill] sm:$0xff] }
 0xeef   : > { %8106 = vmatmul.f32.gmra.mxu2 %v7872_v20  ;;  %9333 = vrot.lane.b32.xlu0 %v9332_v60, %s17743_s27  ;;  %v18352_v60 = vld [vmem:[#allocation121_spill] sm:$0xff]  ;;  %v9225_v30 = vunpack.i.l.bf16 %v16008_v17  ;;  %v6599_v9 = vmul.f32 %v16001_v12, %v18361_v47 }
 0xef0   : > { %9348 = vrot.lane.b32.xlu1 %v9347_v62, %s9557_s18  ;;  %9343 = vrot.lane.b32.xlu2 %v9342_v40, %s17734_s2  ;;  %v6536_v20 = vmul.f32 %v6416_v7, %v18352_v60  ;;  %v18353_v62 = vld [vmem:[#allocation300_spill] sm:$0xff]  ;;  %v9215_v60 = vunpack.i.l.bf16 %v15941_v1 }
 0xef1   : > { %v9204_v35 = vpop.permute.xlu0 %9203  ;;  %v7598_v38 = vpop.permute.xlu1 %7597  ;;  %v16074_v40 = vsel %vm3243_vm3, %v15542_v22, %v18353_v62  ;;  %v16088_v22 = vsel %vm809_vm1, %v6280_v16, %v6281_v42 }
 0xef2   : > { %v16048_v5 = vpop.permute.xlu2 %7475  ;;  %v9205_v23 = vunpack.i.l.bf16 %v9204_v35  ;;  %v9357_v31 = vpack.i.bf16 %v6536_v20, %v6535_v15  ;;  %v9367_v7 = vpack.i.bf16 %v16074_v40, %v16001_v12  ;;  %v6410_v51 = vrot.slane %v16074_v40, 1  ;;  %v18360_v20 = vld [vmem:[#allocation284_spill] sm:$0xff] }
 0xef3   : > { %v6567_v16 = vmul.f32 %v16088_v22, %v18358_v49  ;;  %v9226_v15 = vunpack.i.h.bf16 %v16008_v17  ;;  %v18364_v49 = vld [vmem:[#allocation125_spill] sm:$0xff] }
 0xef7   : > { %8109 = vmatmul.f32.gmra.mxu2 %v7873_v50  ;;  %7487 = vrot.lane.b32.xlu0 %v6598_v27, %s9555_s1  ;;  %v9206_v27 = vunpack.i.h.bf16 %v9204_v35  ;;  %v18359_v35 = vld [vmem:[#allocation161_spill] sm:$0xff] }
 0xef8   : > { %7615 = vrot.lane.b32.xlu1 %v6630_v56, %s18034_s25  ;;  %9353 = vrot.lane.b32.xlu2 %v9352_v52, %s18114_s5  ;;  %v6282_v56 = vrot.slane %v16074_v40, 7  ;;  %v6541_v62 = vmul.f32 %v18360_v20, %v18359_v35  ;;  %v18367_v20 = vld [vmem:[#allocation132_spill] sm:$0xff] }
 0xef9   : > { %v7596_v36 = vpop.permute.xlu0 %7595  ;;  %v16062_v45 = vpop.permute.xlu1 %9233 }
 0xefa   : > { %v7903_v41 = vsel %vm4654_vm12, %v15886_v0, %v7596_v36  ;;  %v16068_v34 = vpop.permute.xlu2 %9253  ;;  %v7679_v0 = vsel %vm3276_vm5, %v6335_v39, %v9190_v58  ;;  %v7904_v36 = vsel %vm4654_vm12, %v16006_v19, %v7598_v38  ;;  %v7712_v19 = vsel %vm3342_vm6, %v15866_v54, %v9206_v27 }
 0xefb   : > { %8546 = vmatmul.msk.f32.gmra.mxu3 %vm7941_vm15, %v7903_v41  ;;  %v7711_v2 = vsel %vm3342_vm6, %v7679_v0, %v9205_v23  ;;  %v6415_v23 = vsel %vm1226_vm0, %v6409_v61, %v6410_v51  ;;  %v9362_v39 = vpack.i.bf16 %v6541_v62, %v6567_v16  ;;  %v16124_v61 = vsel %vm809_vm1, %v6281_v42, %v6282_v56  ;;  %v18365_v16 = vld [vmem:[#allocation69_spill] sm:$0xff] }
 0xefc   : > { %v7743_v52 = vsel %vm3408_vm8, %v7711_v2, %v9225_v30  ;;  %v9216_v2 = vunpack.i.h.bf16 %v15941_v1  ;;  %v6505_v62 = vmul.f32 %v16088_v22, %v18367_v20 }
 0xefd   : > { %v7775_v29 = vsel %vm3474_vm10, %v7743_v52, %v9215_v60  ;;  %v6380_v52 = vmul.f32 %v16074_v40, %v18365_v16  ;;  %v18366_v60 = vld [vmem:[#allocation151_spill] sm:$0xff] }
 0xefe   : > { %v6568_v1 = vmul.f32 %v16124_v61, %v18366_v60 }
 0xeff   : > { %7613 = vrot.lane.b32.xlu0 %v6629_v57, %s18034_s25  ;;  %v6631_v57 = vmul.f32 %v6415_v23, %v18362_v28 }
 0xf00   : > { %9358 = vrot.lane.b32.xlu2 %v9357_v31, %s9556_s24  ;;  %9368 = vrot.lane.b32.xlu1 %v9367_v7, %s17743_s27  ;;  %v18363_v31 = vld [vmem:[#allocation294_spill] sm:$0xff]  ;;  %v7744_v7 = vsel %vm3408_vm8, %v7712_v19, %v9226_v15 }
 0xf01   : > { %v16096_v50 = vpop.permute.xlu0 %9218  ;;  %v9239_v18 = vpop.permute.xlu1 %9238  ;;  %v16129_v54 = vsel %vm3243_vm3, %v15580_v11, %v18363_v31  ;;  %v6506_v11 = vmul.f32 %v16124_v61, %v18364_v49  ;;  %v7776_v47 = vsel %vm3474_vm10, %v7744_v7, %v9216_v2  ;;  %v18371_v2 = vld [vmem:[#allocation245_spill] sm:$0xff]  ;;  %v18372_v49 = vld [vmem:[#allocation102_spill] sm:$0xff] }
 0xf02   : > { %v9240_v58 = vunpack.i.l.bf16 %v9239_v18  ;;  %v9259_v41 = vpop.permute.xlu2 %9258  ;;  %v9241_v17 = vunpack.i.h.bf16 %v9239_v18  ;;  %v16161_v31 = vpop.f32.mrf.mxu2  ;;  %v6283_v20 = vrot.slane %v16129_v54, 7 }
 0xf03   : > { %8547 = vmatmul.msk.f32.gmra.mxu3 %vm7941_vm15, %v7904_v36  ;;  %v9260_v38 = vunpack.i.l.bf16 %v9259_v41  ;;  %v6411_v36 = vrot.slane %v16129_v54, 1  ;;  %v9261_v35 = vunpack.i.h.bf16 %v9259_v41  ;;  %v9377_v28 = vpack.i.bf16 %v6506_v11, %v6505_v62 }
 0xf04   : > { %v7808_v0 = vsel %vm7789_vm2, %v7775_v29, %v9240_v58  ;;  %v7809_v15 = vsel %vm7789_vm2, %v7776_v47, %v9241_v17 }
 0xf05   : > { %v7841_v42 = vsel %vm7822_vm4, %v7808_v0, %v9260_v38  ;;  %v18369_v38 = vld [vmem:[#allocation127_spill] sm:$0xff]  ;;  %v6414_v41 = vsel %vm1226_vm0, %v6410_v51, %v6411_v36  ;;  %v7842_v7 = vsel %vm7822_vm4, %v7809_v15, %v9261_v35  ;;  %v9220_v15 = vunpack.i.l.bf16 %v16096_v50 }
 0xf06   : > { %v6476_v11 = vmul.f32 %v6414_v41, %v18372_v49  ;;  %v7875_v60 = vsel %vm7855_vm7, %v7842_v7, %v16048_v5  ;;  %v18379_v7 = vld [vmem:[#allocation15_spill] sm:$0xff] }
 0xf07   : > { %7489 = vrot.lane.b32.xlu0 %v6599_v9, %s9555_s1  ;;  %v18368_v9 = vld [vmem:[#allocation34_spill] sm:$0xff] }
 0xf08   : > { %9363 = vrot.lane.b32.xlu2 %v9362_v39, %s9557_s18  ;;  %7617 = vrot.lane.b32.xlu1 %v6631_v57, %s18034_s25  ;;  %v6379_v19 = vmul.f32 %v16001_v12, %v18368_v9  ;;  %v18370_v39 = vld [vmem:[#allocation317_spill] sm:$0xff] }
 0xf09   : > { %v7474_v30 = vpop.permute.xlu0 %7473  ;;  %v16136_v27 = vpop.permute.xlu1 %9248  ;;  %v6542_v29 = vmul.f32 %v18370_v39, %v18369_v38 }
 0xf0a   : > { %v16144_v18 = vpop.permute.xlu2 %9263  ;;  %v7874_v58 = vsel %vm7855_vm7, %v7841_v42, %v7474_v30  ;;  %v9372_v57 = vpack.i.bf16 %v6380_v52, %v6379_v19  ;;  %v6341_v42 = vmul.f32 %v15810_v8, %v18371_v2  ;;  %v18373_v52 = vld [vmem:[#allocation30_spill] sm:$0xff]  ;;  %v18375_v8 = vld [vmem:[#allocation64_spill] sm:$0xff]  ;;  %v16204_v2 = vpop.f32.mrf.mxu2 }
 0xf0b   : > { %8112 = vmatmul.f32.gmra.mxu2 %v7874_v58  ;;  %v9382_v0 = vpack.i.bf16 %v6542_v29, %v6568_v1  ;;  %v6342_v58 = vmul.f32 %v15789_v53, %v18373_v52  ;;  %v18374_v1 = vld [vmem:[#allocation165_spill] sm:$0xff]  ;;  %v6475_v9 = vmul.f32 %v6415_v23, %v18375_v8  ;;  %v18376_v19 = vld [vmem:[#allocation138_spill] sm:$0xff]  ;;  %v9235_v52 = vunpack.i.l.bf16 %v16062_v45 }
 0xf0c   : > { %v6537_v35 = vmul.f32 %v6415_v23, %v18374_v1  ;;  %v16198_v23 = vsel %vm809_vm1, %v6282_v56, %v6283_v20  ;;  %v18384_v8 = vld [vmem:[#allocation241_spill] sm:$0xff] }
 0xf0d   : > { %v9392_v29 = vpack.i.bf16 %v6476_v11, %v6475_v9  ;;  %v6338_v9 = vmul.f32 %v15399_v14, %v18384_v8  ;;  %v9407_v8 = vpack.i.bf16 %v15646_v48, %v16129_v54 }
 0xf0f   : > { %9378 = vrot.lane.b32.xlu0 %v9377_v28, %s17734_s2  ;;  %v18378_v28 = vld [vmem:[#allocation181_spill] sm:$0xff] }
 0xf10   : > { %9373 = vrot.lane.b32.xlu2 %v9372_v57, %s17937_s26  ;;  %9383 = vrot.lane.b32.xlu1 %v9382_v0, %s9557_s18  ;;  %v6600_v57 = vmul.f32 %v16074_v40, %v18378_v28  ;;  %v6412_v28 = vrot.slane %v15646_v48, 1 }
 0xf11   : > { %v7600_v12 = vpop.permute.xlu0 %7599  ;;  %v7602_v17 = vpop.permute.xlu1 %7601 }
 0xf12   : > { %v7905_v51 = vsel %vm4654_vm12, %v15973_v26, %v7600_v12  ;;  %v9279_v16 = vpop.permute.xlu2 %9278  ;;  %v18377_v26 = vld [vmem:[#allocation304_spill] sm:$0xff]  ;;  %v6337_v12 = vmul.f32 %v15409_v32, %v18379_v7  ;;  %v7906_v11 = vsel %vm4654_vm12, %v7474_v30, %v7602_v17  ;;  %v9221_v32 = vunpack.i.h.bf16 %v16096_v50 }
 0xf13   : > { %v9281_v62 = vunpack.i.h.bf16 %v9279_v16  ;;  %v9280_v47 = vunpack.i.l.bf16 %v9279_v16  ;;  %8115 = vmatmul.f32.gmra.mxu2 %v7875_v60  ;;  %8548 = vmatmul.msk.f32.gmra.mxu3 %vm7941_vm15, %v7905_v51  ;;  %v6511_v38 = vmul.f32 %v18377_v26, %v18376_v19  ;;  %v18380_v16 = vld [vmem:[#allocation198_spill] sm:$0xff]  ;;  %v9255_v17 = vunpack.i.l.bf16 %v16068_v34  ;;  %v18385_v19 = vld [vmem:[#allocation233_spill] sm:$0xff] }
 0xf14   : > { %v7681_v49 = vsel %vm3276_vm5, %v6337_v12, %v9220_v15  ;;  %v6569_v56 = vmul.f32 %v16198_v23, %v18380_v16  ;;  %v18382_v60 = vld [vmem:[#allocation298_spill] sm:$0xff]  ;;  %v6601_v26 = vmul.f32 %v16129_v54, %v18385_v19  ;;  %v7682_v50 = vsel %vm3276_vm5, %v6338_v9, %v9221_v32  ;;  %v18386_v12 = vld [vmem:[#allocation157_spill] sm:$0xff] }
 0xf15   : > { %v16183_v39 = vsel %vm3276_vm5, %v6341_v42, %v9280_v47  ;;  %v16186_v53 = vsel %vm3276_vm5, %v6342_v58, %v9281_v62  ;;  %v9387_v0 = vpack.i.bf16 %v6511_v38, %v6537_v35  ;;  %v18381_v58 = vld [vmem:[#allocation171_spill] sm:$0xff]  ;;  %v7713_v35 = vsel %vm3342_vm6, %v7681_v49, %v9235_v52 }
 0xf16   : > { %v6543_v1 = vmul.f32 %v18382_v60, %v18381_v58  ;;  %v18383_v47 = vld [vmem:[#allocation211_spill] sm:$0xff]  ;;  %v6538_v49 = vmul.f32 %v6414_v41, %v18386_v12  ;;  %v18388_v60 = vld [vmem:[#allocation310_spill] sm:$0xff]  ;;  %v18394_v12 = vld [vmem:[#allocation8_spill] sm:$0xff] }
 0xf17   : > { %9393 = vrot.lane.b32.xlu0 %v9392_v29, %s18114_s5  ;;  %v6632_v30 = vmul.f32 %v6414_v41, %v18383_v47  ;;  %v7745_v29 = vsel %vm3408_vm8, %v7713_v35, %v9255_v17  ;;  %v18387_v58 = vld [vmem:[#allocation131_spill] sm:$0xff]  ;;  %v9256_v35 = vunpack.i.h.bf16 %v16068_v34 }
 0xf18   : > { %7491 = vrot.lane.b32.xlu2 %v6600_v57, %s9555_s1  ;;  %9388 = vrot.lane.b32.xlu1 %v9387_v0, %s9556_s24  ;;  %v9397_v38 = vpack.i.bf16 %v6543_v1, %v6569_v56  ;;  %v9236_v57 = vunpack.i.h.bf16 %v16062_v45  ;;  %v6512_v1 = vmul.f32 %v18388_v60, %v18387_v58  ;;  %v18389_v47 = vld [vmem:[#allocation235_spill] sm:$0xff]  ;;  %v18395_v58 = vld [vmem:[#allocation29_spill] sm:$0xff] }
 0xf19   : > { %v9244_v42 = vpop.permute.xlu0 %9243  ;;  %v9269_v51 = vpop.permute.xlu1 %9268  ;;  %v6349_v60 = vmul.f32 %v16129_v54, %v18395_v58 }
 0xf1a   : > { %v16208_v40 = vpop.permute.xlu2 %7479  ;;  %v9245_v62 = vunpack.i.l.bf16 %v9244_v42  ;;  %v9270_v15 = vunpack.i.l.bf16 %v9269_v51  ;;  %v16231_v14 = vpop.f32.mrf.mxu2  ;;  %v7714_v56 = vsel %vm3342_vm6, %v7682_v50, %v9236_v57  ;;  %v9246_v52 = vunpack.i.h.bf16 %v9244_v42  ;;  %v18393_v57 = vld [vmem:[#allocation37_spill] sm:$0xff] }
 0xf1b   : > { %8549 = vmatmul.msk.f32.gmra.mxu3 %vm7941_vm15, %v7906_v11  ;;  %v9402_v41 = vpack.i.bf16 %v6512_v1, %v6538_v49  ;;  %v16251_v42 = vsel %vm1226_vm0, %v6411_v36, %v6412_v28  ;;  %v7746_v9 = vsel %vm3408_vm8, %v7714_v56, %v9256_v35  ;;  %v9271_v34 = vunpack.i.h.bf16 %v9269_v51  ;;  %v18392_v51 = vld [vmem:[#allocation62_spill] sm:$0xff]  ;;  %v16283_v35 = vld [vmem:[%s16836_s14] ss:$0 sm:$0xff] }
 0xf1c   : > { %v7777_v0 = vsel %vm3474_vm10, %v7745_v29, %v9245_v62  ;;  %v7778_v50 = vsel %vm3474_vm10, %v7746_v9, %v9246_v52  ;;  %v16293_v9 = vld [vmem:[%s16837_s15] ss:$0 sm:$0xff] }
 0xf1d   : > { %v7810_v45 = vsel %vm7789_vm2, %v7777_v0, %v9270_v15  ;;  %v6445_v15 = vmul.f32 %v16251_v42, %v18392_v51  ;;  %v7811_v52 = vsel %vm7789_vm2, %v7778_v50, %v9271_v34  ;;  %v18397_v34 = vld [vmem:[#allocation27_spill] sm:$0xff] }
 0xf1f   : > { %7619 = vrot.lane.b32.xlu0 %v6632_v30, %s18034_s25  ;;  %v18390_v30 = vld [vmem:[#allocation312_spill] sm:$0xff] }
 0xf20   : > { %7493 = vrot.lane.b32.xlu2 %v6601_v26, %s9555_s1  ;;  %9398 = vrot.lane.b32.xlu1 %v9397_v38, %s9557_s18  ;;  %v6610_v62 = vmul.f32 %v18390_v30, %v18389_v47  ;;  %v18391_v26 = vrot.slane %v14581_v25, 1 }
 0xf21   : > { %v7478_v7 = vpop.permute.xlu0 %7477  ;;  %v16235_v11 = vpop.permute.xlu1 %9273 }
 0xf22   : > { %v9289_v16 = vpop.permute.xlu2 %9288  ;;  %v16259_v38 = vsel %vm1226_vm0, %v6412_v28, %v18391_v26  ;;  %v6350_v28 = vmul.f32 %v15646_v48, %v18394_v12  ;;  %v8086_v1 = vpop.f32.mrf.mxu2  ;;  %v9265_v26 = vunpack.i.l.bf16 %v16144_v18  ;;  %vm8340_vm0 = vcmask 23552   ;;  %v18399_v12 = vld [vmem:[#allocation277_spill] sm:$0xff] }
 0xf23   : > { %v9290_v32 = vunpack.i.l.bf16 %v9289_v16  ;;  %v9291_v29 = vunpack.i.h.bf16 %v9289_v16  ;;  %v6446_v0 = vmul.f32 %v16259_v38, %v18393_v57 }
 0xf25   : > { %v7843_v17 = vsel %vm7822_vm4, %v7810_v45, %v9290_v32  ;;  %v7844_v32 = vsel %vm7822_vm4, %v7811_v52, %v9291_v29  ;;  %v9417_v45 = vpack.i.bf16 %v6446_v0, %v6445_v15  ;;  %v9251_v0 = vunpack.i.h.bf16 %v16136_v27 }
 0xf26   : > { %v7876_v19 = vsel %vm7855_vm7, %v7843_v17, %v7478_v7  ;;  %v7877_v47 = vsel %vm7855_vm7, %v7844_v32, %v16208_v40 }
 0xf27   : > { %8118 = vmatmul.f32.gmra.mxu2 %v7876_v19  ;;  %7575 = vrot.lane.b32.xlu0 %v6610_v62, %s18034_s25  ;;  %v18396_v62 = vld [vmem:[#allocation184_spill] sm:$0xff]  ;;  %v6339_v19 = vmul.f32 %v15601_v6, %v18397_v34 }
 0xf28   : > { %9403 = vrot.lane.b32.xlu1 %v9402_v41, %s9556_s24  ;;  %9408 = vrot.lane.b32.xlu2 %v9407_v8, %s17743_s27  ;;  %v6603_v17 = vmul.f32 %v14581_v25, %v18396_v62  ;;  %v9412_v41 = vpack.i.bf16 %v6350_v28, %v6349_v60  ;;  %v6633_v28 = vmul.f32 %v16251_v42, %v18399_v12  ;;  %v18401_v60 = vld [vmem:[#allocation200_spill] sm:$0xff]  ;;  %v18407_v12 = vld [vmem:[#allocation191_spill] sm:$0xff] }
 0xf29   : > { %v7604_v36 = vpop.permute.xlu0 %7603  ;;  %v7606_v16 = vpop.permute.xlu1 %7605 }
 0xf2a   : > { %v7907_v49 = vsel %vm4654_vm12, %v16048_v5, %v7604_v36  ;;  %v16273_v56 = vpop.permute.xlu2 %9303  ;;  %v9250_v5 = vunpack.i.l.bf16 %v16136_v27  ;;  %v7908_v36 = vsel %vm4654_vm12, %v7478_v7, %v7606_v16  ;;  %v8089_v52 = vpop.f32.mrf.mxu2  ;;  %v9275_v27 = vunpack.i.l.bf16 %v16235_v11 }
 0xf2b   : > { %8550 = vmatmul.msk.f32.gmra.mxu3 %vm7941_vm15, %v7907_v49  ;;  %v18400_v49 = vld [vmem:[#allocation18_spill] sm:$0xff] }
 0xf2c   : > { %v7683_v29 = vsel %vm3276_vm5, %v6339_v19, %v9250_v5  ;;  %v6340_v16 = vmul.f32 %v15593_v59, %v18400_v49  ;;  %v9266_v5 = vunpack.i.h.bf16 %v16144_v18  ;;  %v16335_v59 = vsel %vm809_vm1, %v6283_v20, %v6284_v21 }
 0xf2d   : > { %v7715_v7 = vsel %vm3342_vm6, %v7683_v29, %v9265_v26  ;;  %v18403_v18 = vpack.i.bf16 %v15676_v3, %v15694_v44 }
 0xf2e   : > { %v8199_v30 = vpop.f32.mrf.mxu3 }
 0xf2f   : > { %8121 = vmatmul.f32.gmra.mxu2 %v7877_v47  ;;  %v8200_v8 = vadd.f32 %v8199_v30, %v8086_v1  ;;  %9418 = vrot.lane.b32.xlu0 %v9417_v45, %s18114_s5  ;;  %s16309_s5 = scalar_lea.vmem %s16845_s23, %s18398_s16  ;;  %v18402_v1 = vld [vmem:[#allocation306_spill] sm:$0xff]  ;;  %v7684_v30 = vsel %vm3276_vm5, %v6340_v16, %v9251_v0 }
 0xf30   : > { %7497 = vrot.lane.b32.xlu1 %v6603_v17, %s9555_s1  ;;  %9413 = vrot.lane.b32.xlu2 %v9412_v41, %s17937_s26  ;;  %v6578_v45 = vmul.f32 %v18402_v1, %v18401_v60  ;;  %v7716_v19 = vsel %vm3342_vm6, %v7684_v30, %v9266_v5  ;;  %v18409_v5 = vld [vmem:[#allocation190_spill] sm:$0xff]  ;;  %v18410_v30 = vld [vmem:[#allocation164_spill] sm:$0xff] }
 0xf31   : > { %v8281_v25 = vmul.f32 %v16283_v35, %v8200_v8  ;;  %v9284_v50 = vpop.permute.xlu0 %9283  ;;  %v9299_v51 = vpop.permute.xlu1 %9298  ;;  %v18404_v8 = vld [vmem:[#allocation135_spill] sm:$0xff] }
 0xf32   : > { %v9285_v6 = vunpack.i.l.bf16 %v9284_v50  ;;  %v16311_v15 = vpop.permute.xlu2 %7483  ;;  %v9286_v62 = vunpack.i.h.bf16 %v9284_v50  ;;  %v9300_v46 = vunpack.i.l.bf16 %v9299_v51  ;;  %v6508_v34 = vmul.f32 %v16335_v59, %v18404_v8  ;;  %v18405_v50 = vld [vmem:[#allocation94_spill] sm:$0xff] }
 0xf33   : > { %v8317_v57 = vadd.f32 %v16293_v9, %v8281_v25  ;;  %8551 = vmatmul.msk.f32.gmra.mxu3 %vm7941_vm15, %v7908_v36  ;;  %v6507_v29 = vmul.f32 %v16198_v23, %v18405_v50  ;;  %v9276_v36 = vunpack.i.h.bf16 %v16235_v11 }
 0xf34   : > { %v7747_v32 = vsel %vm3408_vm8, %v7715_v7, %v9285_v6  ;;  %v7748_v44 = vsel %vm3408_vm8, %v7716_v19, %v9286_v62  ;;  %v18411_v62 = vld [vmem:[#allocation286_spill] sm:$0xff] }
 0xf35   : > { %8350 = vst.msk [vmem:[%s16309_s5 + $0x48] sm:$0xff] %vm8340_vm0, %v8317_v57  ;;  %v7779_v54 = vsel %vm3474_vm10, %v7747_v32, %v9275_v27  ;;  %v18406_v57 = vld [vmem:[#allocation266_spill] sm:$0xff]  ;;  %v9427_v16 = vpack.i.bf16 %v6508_v34, %v6507_v29  ;;  %v7780_v11 = vsel %vm3474_vm10, %v7748_v44, %v9276_v36  ;;  %v9301_v32 = vunpack.i.h.bf16 %v9299_v51  ;;  %v18412_v51 = vld [vmem:[#allocation236_spill] sm:$0xff] }
 0xf36   : > { %v8202_v58 = vpop.f32.mrf.mxu3  ;;  %v7812_v25 = vsel %vm7789_vm2, %v7779_v54, %v9300_v46  ;;  %v6634_v0 = vmul.f32 %v16259_v38, %v18406_v57  ;;  %v6570_v27 = vmul.f32 %v16335_v59, %v18409_v5  ;;  %v8092_v46 = vpop.f32.mrf.mxu2  ;;  %v18414_v34 = vld [vmem:[#allocation224_spill] sm:$0xff] }
 0xf37   : > { %v8203_v47 = vadd.f32 %v8202_v58, %v8089_v52  ;;  %7621 = vrot.lane.b32.xlu0 %v6633_v28, %s18034_s25  ;;  %v18408_v28 = vld [vmem:[#allocation275_spill] sm:$0xff]  ;;  %v6602_v19 = vmul.f32 %v15646_v48, %v18414_v34  ;;  %v18415_v48 = vld [vmem:[#allocation124_spill] sm:$0xff] }
 0xf38   : > { %7447 = vrot.lane.b32.xlu2 %v6578_v45, %s9555_s1  ;;  %9423 = vrot.lane.b32.xlu1 %v18403_v18, %s17734_s2  ;;  %v6611_v49 = vmul.f32 %v18408_v28, %v18407_v12  ;;  %v7813_v45 = vsel %vm7789_vm2, %v7780_v11, %v9301_v32  ;;  %v6544_v18 = vmul.f32 %v18411_v62, %v18410_v30 }
 0xf39   : > { %v8282_v17 = vmul.f32 %v16283_v35, %v8203_v47  ;;  %v16344_v41 = vpop.permute.xlu0 %7481  ;;  %v16347_v20 = vpop.permute.xlu1 %9313 }
 0xf3a   : > { %v9319_v21 = vpop.permute.xlu2 %9318 }
 0xf3b   : > { %v8318_v26 = vadd.f32 %v16293_v9, %v8282_v17  ;;  %v9320_v3 = vunpack.i.l.bf16 %v9319_v21  ;;  %v9321_v52 = vunpack.i.h.bf16 %v9319_v21  ;;  %v18413_v17 = vld [vmem:[#allocation295_spill] sm:$0xff] }
 0xf3c   : > { %v6604_v54 = vmul.f32 %v18413_v17, %v18412_v51  ;;  %v18423_v51 = vld [vmem:[#allocation216_spill] sm:$0xff] }
 0xf3d   : > { %8351 = vst.msk [vmem:[%s16309_s5 + $0x50] sm:$0xff] %vm8340_vm0, %v8318_v26  ;;  %v7845_v6 = vsel %vm7822_vm4, %v7812_v25, %v9320_v3  ;;  %v7846_v47 = vsel %vm7822_vm4, %v7813_v45, %v9321_v52  ;;  %v9432_v26 = vpack.i.bf16 %v6544_v18, %v6570_v27  ;;  %v18421_v27 = vld [vmem:[#allocation168_spill] sm:$0xff] }
 0xf3e   : > { %v7878_v7 = vsel %vm7855_vm7, %v7845_v6, %v16344_v41  ;;  %v7879_v21 = vsel %vm7855_vm7, %v7846_v47, %v16311_v15  ;;  %v6539_v6 = vmul.f32 %v16251_v42, %v18415_v48  ;;  %v8095_v28 = vpop.f32.mrf.mxu2  ;;  %v18420_v42 = vpack.i.bf16 %v15703_v4, %v15707_v63  ;;  %v18422_v63 = vld [vmem:[#allocation134_spill] sm:$0xff] }
 0xf3f   : > { %8124 = vmatmul.f32.gmra.mxu2 %v7878_v7  ;;  %7623 = vrot.lane.b32.xlu0 %v6634_v0, %s18034_s25  ;;  %v18416_v0 = vld [vmem:[#allocation141_spill] sm:$0xff]  ;;  %v18417_v7 = vld [vmem:[#allocation319_spill] sm:$0xff]  ;;  %v6540_v47 = vmul.f32 %v16259_v38, %v18421_v27  ;;  %v6514_v17 = vmul.f32 %v18423_v51, %v18422_v63 }
 0xf40   : > { %7577 = vrot.lane.b32.xlu2 %v6611_v49, %s18034_s25  ;;  %9428 = vrot.lane.b32.xlu1 %v9427_v16, %s17734_s2  ;;  %v6513_v12 = vmul.f32 %v18417_v7, %v18416_v0  ;;  %v18418_v16 = vld [vmem:[#allocation214_spill] sm:$0xff] }
 0xf41   : > { %v16371_v58 = vpop.permute.xlu0 %9293  ;;  %v7610_v60 = vpop.permute.xlu1 %7609  ;;  %v18428_v0 = vld [vmem:[#allocation238_spill] sm:$0xff] }
 0xf42   : > { %v16373_v1 = vpop.permute.xlu2 %7485  ;;  %v9437_v11 = vpack.i.bf16 %v6513_v12, %v6539_v6  ;;  %v7910_v30 = vsel %vm4654_vm12, %v16344_v41, %v7610_v60  ;;  %v9295_v60 = vunpack.i.l.bf16 %v16371_v58  ;;  %v9315_v12 = vunpack.i.l.bf16 %v16347_v20 }
 0xf43   : > { %v9296_v27 = vunpack.i.h.bf16 %v16371_v58 }
 0xf44   : > { %v7717_v6 = vsel %vm3342_vm6, %v16183_v39, %v9295_v60 }
 0xf45   : > { %v7749_v39 = vsel %vm3408_vm8, %v7717_v6, %v9315_v12  ;;  %v18433_v6 = vld [vmem:[#allocation21_spill] sm:$0xff] }
 0xf46   : > { %v8205_v8 = vpop.f32.mrf.mxu3 }
 0xf47   : > { %8127 = vmatmul.f32.gmra.mxu2 %v7879_v21  ;;  %v8206_v3 = vadd.f32 %v8205_v8, %v8092_v46  ;;  %7499 = vrot.lane.b32.xlu0 %v6604_v54, %s9555_s1  ;;  %v9447_v54 = vpack.i.bf16 %v6514_v17, %v6540_v47  ;;  %v18424_v46 = vld [vmem:[#allocation201_spill] sm:$0xff]  ;;  %v18425_v21 = vld [vmem:[#allocation247_spill] sm:$0xff]  ;;  %v18426_v8 = vld [vmem:[#allocation288_spill] sm:$0xff] }
 0xf48   : > { %7495 = vrot.lane.b32.xlu2 %v6602_v19, %s9555_s1  ;;  %9433 = vrot.lane.b32.xlu1 %v9432_v26, %s9557_s18  ;;  %v6572_v38 = vmul.f32 %v14602_v37, %v18424_v46  ;;  %v6612_v41 = vmul.f32 %v18426_v8, %v18425_v21  ;;  %v9316_v21 = vunpack.i.h.bf16 %v16347_v20 }
 0xf49   : > { %v8283_v44 = vmul.f32 %v16283_v35, %v8206_v3  ;;  %v7608_v25 = vpop.permute.xlu0 %7607 }
 0xf4a   : > { %v7909_v50 = vsel %vm4654_vm12, %v16208_v40, %v7608_v25  ;;  %v16393_v29 = vpop.permute.xlu1 %9323  ;;  %v16395_v36 = vpop.permute.xlu2 %9343  ;;  %v18419_v40 = vld [vmem:[#allocation321_spill] sm:$0xff] }
 0xf4b   : > { %v8319_v57 = vadd.f32 %v16293_v9, %v8283_v44  ;;  %8552 = vmatmul.msk.f32.gmra.mxu3 %vm7941_vm15, %v7909_v50  ;;  %v6635_v52 = vmul.f32 %v18419_v40, %v18418_v16  ;;  %v18427_v44 = vld [vmem:[#allocation24_spill] sm:$0xff]  ;;  %v18430_v16 = vld [vmem:[#allocation167_spill] sm:$0xff] }
 0xf4c   : > { %v6346_v25 = vmul.f32 %v15996_v43, %v18427_v44  ;;  %v6546_v43 = vmul.f32 %v14753_v13, %v18430_v16  ;;  %v18431_v40 = vld [vmem:[#allocation280_spill] sm:$0xff]  ;;  %v9305_v13 = vunpack.i.l.bf16 %v16273_v56 }
 0xf4d   : > { %8352 = vst.msk [vmem:[%s16309_s5 + $0x58] sm:$0xff] %vm8340_vm0, %v8319_v57 }
 0xf4e   : > { %v8208_v49 = vpop.f32.mrf.mxu3 }
 0xf4f   : > { %v8209_v32 = vadd.f32 %v8208_v49, %v8095_v28  ;;  %9443 = vrot.lane.b32.xlu0 %v18420_v42, %s9557_s18  ;;  %v8098_v28 = vpop.f32.mrf.mxu2 }
 0xf50   : > { %7625 = vrot.lane.b32.xlu2 %v6635_v52, %s18034_s25  ;;  %9438 = vrot.lane.b32.xlu1 %v9437_v11, %s9556_s24  ;;  %v18432_v52 = vld [vmem:[#allocation270_spill] sm:$0xff] }
 0xf51   : > { %v8284_v45 = vmul.f32 %v16283_v35, %v8209_v32  ;;  %v16414_v5 = vpop.permute.xlu0 %9308  ;;  %v6636_v11 = vmul.f32 %v18432_v52, %v18431_v40 }
 0xf52   : > { %v16420_v62 = vpop.permute.xlu1 %9328  ;;  %v16422_v18 = vpop.permute.xlu2 %9353 }
 0xf53   : > { %v8320_v4 = vadd.f32 %v16293_v9, %v8284_v45  ;;  %8553 = vmatmul.msk.f32.gmra.mxu3 %vm7941_vm15, %v7910_v30  ;;  %v9356_v48 = vunpack.i.h.bf16 %v16422_v18  ;;  %v9330_v45 = vunpack.i.l.bf16 %v16420_v62  ;;  %v9331_v44 = vunpack.i.h.bf16 %v16420_v62 }
 0xf55   : > { %8353 = vst.msk [vmem:[%s16309_s5 + $0x60] sm:$0xff] %vm8340_vm0, %v8320_v4 }
 0xf57   : > { %9448 = vrot.lane.b32.xlu0 %v9447_v54, %s9556_s24  ;;  %v7781_v54 = vsel %vm3474_vm10, %v7749_v39, %v9305_v13  ;;  %v9345_v13 = vunpack.i.l.bf16 %v16395_v36 }
 0xf58   : > { %7371 = vrot.lane.b32.xlu2 %v6572_v38, %s9557_s18  ;;  %7579 = vrot.lane.b32.xlu1 %v6612_v41, %s18034_s25  ;;  %v7814_v46 = vsel %vm7789_vm2, %v7781_v54, %v9330_v45  ;;  %v7718_v38 = vsel %vm3342_vm6, %v16186_v53, %v9296_v27  ;;  %v9306_v53 = vunpack.i.h.bf16 %v16273_v56 }
 0xf59   : > { %v7612_v34 = vpop.permute.xlu0 %7611 }
 0xf5a   : > { %v7911_v19 = vsel %vm4654_vm12, %v16311_v15, %v7612_v34  ;;  %v16440_v26 = vpop.permute.xlu1 %9338  ;;  %v16445_v50 = vpop.permute.xlu2 %9358  ;;  %v18429_v15 = vld [vmem:[#allocation309_spill] sm:$0xff] }
 0xf5b   : > { %v9341_v3 = vunpack.i.h.bf16 %v16440_v26  ;;  %8554 = vmatmul.msk.f32.gmra.mxu3 %vm7941_vm15, %v7911_v19  ;;  %v6613_v7 = vmul.f32 %v18429_v15, %v18428_v0  ;;  %v8101_v8 = vpop.f32.mrf.mxu2  ;;  %v7750_v19 = vsel %vm3408_vm8, %v7718_v38, %v9316_v21  ;;  %v9311_v38 = vunpack.i.h.bf16 %v16414_v5 }
 0xf5c   : > { %v7782_v56 = vsel %vm3474_vm10, %v7750_v19, %v9306_v53  ;;  %v9326_v53 = vunpack.i.h.bf16 %v16393_v29 }
 0xf5d   : > { %v7690_v57 = vsel %vm3276_vm5, %v6346_v25, %v9341_v3  ;;  %v9310_v3 = vunpack.i.l.bf16 %v16414_v5  ;;  %v7815_v52 = vsel %vm7789_vm2, %v7782_v56, %v9331_v44 }
 0xf5e   : > { %v8211_v49 = vpop.f32.mrf.mxu3  ;;  %v16460_v32 = vsel %vm3342_vm6, %v7690_v57, %v9356_v48  ;;  %v6343_v57 = vmul.f32 %v15845_v24, %v18433_v6  ;;  %v9325_v24 = vunpack.i.l.bf16 %v16393_v29 }
 0xf5f   : > { %v8212_v42 = vadd.f32 %v8211_v49, %v8098_v28  ;;  %7581 = vrot.lane.b32.xlu0 %v6613_v7, %s18034_s25  ;;  %v18434_v7 = vld [vmem:[#allocation251_spill] sm:$0xff]  ;;  %v18435_v49 = vld [vmem:[#allocation36_spill] sm:$0xff] }
 0xf60   : > { %7319 = vrot.lane.b32.xlu2 %v6546_v43, %s9557_s18  ;;  %7627 = vrot.lane.b32.xlu1 %v6636_v11, %s18034_s25  ;;  %v6347_v12 = vmul.f32 %v16088_v22, %v18434_v7  ;;  %v6348_v62 = vmul.f32 %v16124_v61, %v18435_v49  ;;  %v7687_v16 = vsel %vm3276_vm5, %v6343_v57, %v9310_v3 }
 0xf61   : > { %v8285_v47 = vmul.f32 %v16283_v35, %v8212_v42  ;;  %v16470_v30 = vpop.permute.xlu0 %9333  ;;  %v7719_v39 = vsel %vm3342_vm6, %v7687_v16, %v9325_v24 }
 0xf62   : > { %v9349_v4 = vpop.permute.xlu1 %9348  ;;  %v16473_v17 = vpop.permute.xlu2 %9363  ;;  %v9335_v45 = vunpack.i.l.bf16 %v16470_v30 }
 0xf63   : > { %v8321_v63 = vadd.f32 %v16293_v9, %v8285_v47  ;;  %v9350_v51 = vunpack.i.l.bf16 %v9349_v4  ;;  %v9351_v25 = vunpack.i.h.bf16 %v9349_v4  ;;  %v7751_v47 = vsel %vm3408_vm8, %v7719_v39, %v9345_v13  ;;  %v8104_v6 = vpop.f32.mrf.mxu2 }
 0xf64   : > { %v9365_v21 = vunpack.i.l.bf16 %v16473_v17 }
 0xf65   : > { %8354 = vst.msk [vmem:[%s16309_s5 + $0x68] sm:$0xff] %vm8340_vm0, %v8321_v63  ;;  %v7847_v58 = vsel %vm7822_vm4, %v7814_v46, %v9350_v51  ;;  %v7848_v11 = vsel %vm7822_vm4, %v7815_v52, %v9351_v25  ;;  %v7783_v51 = vsel %vm3474_vm10, %v7751_v47, %v9335_v45  ;;  %v9360_v46 = vunpack.i.l.bf16 %v16445_v50 }
 0xf66   : > { %v7880_v41 = vsel %vm7855_vm7, %v7847_v58, %v16373_v1  ;;  %v8214_v60 = vpop.f32.mrf.mxu3  ;;  %v9340_v45 = vunpack.i.l.bf16 %v16440_v26 }
 0xf67   : > { %8130 = vmatmul.f32.gmra.mxu2 %v7880_v41  ;;  %v8215_v34 = vadd.f32 %v8214_v60, %v8101_v8  ;;  %v7816_v58 = vsel %vm7789_vm2, %v7783_v51, %v9360_v46  ;;  %v18436_v8 = vld [vmem:[#allocation248_spill] sm:$0xff] }
 0xf68   : > { %v6344_v41 = vmul.f32 %v15837_v10, %v18436_v8  ;;  %v7849_v60 = vsel %vm7822_vm4, %v7816_v58, %v9365_v21  ;;  %v9336_v10 = vunpack.i.h.bf16 %v16470_v30  ;;  %v9355_v21 = vunpack.i.l.bf16 %v16422_v18 }
 0xf69   : > { %v8286_v48 = vmul.f32 %v16283_v35, %v8215_v34  ;;  %v7488_v20 = vpop.permute.xlu0 %7487 }
 0xf6a   : > { %v7616_v0 = vpop.permute.xlu1 %7615  ;;  %v9374_v28 = vpop.permute.xlu2 %9373  ;;  %v7881_v61 = vsel %vm7855_vm7, %v7848_v11, %v7488_v20  ;;  %v7688_v34 = vsel %vm3276_vm5, %v6344_v41, %v9311_v38 }
 0xf6b   : > { %v8322_v15 = vadd.f32 %v16293_v9, %v8286_v48  ;;  %v9376_v43 = vunpack.i.h.bf16 %v9374_v28  ;;  %v9375_v40 = vunpack.i.l.bf16 %v9374_v28  ;;  %v7913_v19 = vsel %vm4654_vm12, %v7488_v20, %v7616_v0 }
 0xf6c   : > { %v7720_v25 = vsel %vm3342_vm6, %v7688_v34, %v9326_v53  ;;  %v9346_v48 = vunpack.i.h.bf16 %v16395_v36 }
 0xf6d   : > { %8355 = vst.msk [vmem:[%s16309_s5 + $0x70] sm:$0xff] %vm8340_vm0, %v8322_v15  ;;  %v16505_v22 = vsel %vm3276_vm5, %v6347_v12, %v9375_v40  ;;  %v16508_v42 = vsel %vm3276_vm5, %v6348_v62, %v9376_v43  ;;  %v9361_v12 = vunpack.i.h.bf16 %v16445_v50 }
 0xf6e   : > { %v7752_v20 = vsel %vm3408_vm8, %v7720_v25, %v9346_v48 }
 0xf6f   : > { %8133 = vmatmul.f32.gmra.mxu2 %v7881_v61  ;;  %v7784_v0 = vsel %vm3474_vm10, %v7752_v20, %v9336_v10 }
 0xf70   : > { %v7817_v50 = vsel %vm7789_vm2, %v7784_v0, %v9361_v12 }
 0xf71   : > { %v7614_v27 = vpop.permute.xlu0 %7613 }
 0xf72   : > { %v7912_v4 = vsel %vm4654_vm12, %v16373_v1, %v7614_v27  ;;  %v16517_v63 = vpop.permute.xlu1 %9368  ;;  %v16520_v54 = vpop.permute.xlu2 %7491  ;;  %v18437_v27 = vld [vmem:[#allocation33_spill] sm:$0xff] }
 0xf73   : > { %8555 = vmatmul.msk.f32.gmra.mxu3 %vm7941_vm15, %v7912_v4  ;;  %v9371_v36 = vunpack.i.h.bf16 %v16517_v63  ;;  %v8107_v24 = vpop.f32.mrf.mxu2  ;;  %v6345_v47 = vmul.f32 %v16015_v33, %v18437_v27  ;;  %v9370_v33 = vunpack.i.l.bf16 %v16517_v63 }
 0xf75   : > { %v7689_v38 = vsel %vm3276_vm5, %v6345_v47, %v9340_v45  ;;  %v18440_v45 = vld [vmem:[#allocation222_spill] sm:$0xff] }
 0xf76   : > { %v7721_v26 = vsel %vm3342_vm6, %v7689_v38, %v9355_v21 }
 0xf79   : > { %v7490_v1 = vpop.permute.xlu0 %7489 }
 0xf7a   : > { %v7618_v3 = vpop.permute.xlu1 %7617  ;;  %v7882_v44 = vsel %vm7855_vm7, %v7849_v60, %v7490_v1  ;;  %v16534_v5 = vpop.permute.xlu2 %7493 }
 0xf7b   : > { %8136 = vmatmul.f32.gmra.mxu2 %v7882_v44  ;;  %8556 = vmatmul.msk.f32.gmra.mxu3 %vm7941_vm15, %v7913_v19  ;;  %v7914_v28 = vsel %vm4654_vm12, %v7490_v1, %v7618_v3  ;;  %v8110_v63 = vpop.f32.mrf.mxu2 }
 0xf7e   : > { %v8217_v57 = vpop.f32.mrf.mxu3 }
 0xf7f   : > { %v8218_v15 = vadd.f32 %v8217_v57, %v8104_v6 }
 0xf81   : > { %v8287_v29 = vmul.f32 %v16283_v35, %v8218_v15  ;;  %v9379_v7 = vpop.permute.xlu0 %9378 }
 0xf82   : > { %v16545_v49 = vpop.permute.xlu1 %9383  ;;  %v9381_v30 = vunpack.i.h.bf16 %v9379_v7  ;;  %v16550_v16 = vpop.permute.xlu2 %9408  ;;  %v9380_v58 = vunpack.i.l.bf16 %v9379_v7 }
 0xf83   : > { %v8323_v62 = vadd.f32 %v16293_v9, %v8287_v29  ;;  %v9385_v56 = vunpack.i.l.bf16 %v16545_v49  ;;  %8557 = vmatmul.msk.f32.gmra.mxu3 %vm7941_vm15, %v7914_v28 }
 0xf84   : > { %v7754_v43 = vsel %vm3408_vm8, %v16460_v32, %v9381_v30  ;;  %v7753_v8 = vsel %vm3408_vm8, %v7721_v26, %v9380_v58 }
 0xf85   : > { %8356 = vst.msk [vmem:[%s16309_s5 + $0x78] sm:$0xff] %vm8340_vm0, %v8323_v62  ;;  %v7850_v40 = vsel %vm7822_vm4, %v7817_v50, %v9385_v56  ;;  %v16560_v52 = vsel %vm3474_vm10, %v7754_v43, %v9371_v36  ;;  %v7785_v18 = vsel %vm3474_vm10, %v7753_v8, %v9370_v33  ;;  %v18438_v36 = vld [vmem:[#allocation302_spill] sm:$0xff] }
 0xf86   : > { %v7883_v11 = vsel %vm7855_vm7, %v7850_v40, %v16520_v54  ;;  %v8220_v61 = vpop.f32.mrf.mxu3 }
 0xf87   : > { %8139 = vmatmul.f32.gmra.mxu2 %v7883_v11  ;;  %v8221_v39 = vadd.f32 %v8220_v61, %v8107_v24  ;;  %v18439_v61 = vld [vmem:[#allocation219_spill] sm:$0xff] }
 0xf89   : > { %v8288_v32 = vmul.f32 %v16283_v35, %v8221_v39  ;;  %v16566_v13 = vpop.permute.xlu0 %9393  ;;  %v6317_v39 = vmul.f32 %v16198_v23, %v18439_v61  ;;  %v9386_v61 = vunpack.i.h.bf16 %v16545_v49 }
 0xf8a   : > { %v16570_v4 = vpop.permute.xlu1 %9388  ;;  %v9414_v46 = vpop.permute.xlu2 %9413 }
 0xf8b   : > { %v8324_v51 = vadd.f32 %v16293_v9, %v8288_v32  ;;  %v9390_v41 = vunpack.i.l.bf16 %v16570_v4  ;;  %v9416_v50 = vunpack.i.h.bf16 %v9414_v46  ;;  %v9415_v40 = vunpack.i.l.bf16 %v9414_v46  ;;  %v18441_v46 = vld [vmem:[#allocation314_spill] sm:$0xff] }
 0xf8c   : > { %v6318_v32 = vmul.f32 %v16335_v59, %v18440_v45  ;;  %v8980_v8 = vunpack.i.l.bf16 %v18441_v46  ;;  %v18442_v59 = vld [vmem:[#allocation283_spill] sm:$0xff] }
 0xf8d   : > { %8357 = vst.msk [vmem:[%s16309_s5 + $0x80] sm:$0xff] %vm8340_vm0, %v8324_v51  ;;  %v7818_v3 = vsel %vm7789_vm2, %v7785_v18, %v9390_v41  ;;  %v7661_v38 = vsel %vm3276_vm5, %v6317_v39, %v9415_v40  ;;  %v8995_v33 = vunpack.i.l.bf16 %v18442_v59  ;;  %v9366_v18 = vunpack.i.h.bf16 %v16473_v17 }
 0xf8e   : > { %v8113_v0 = vpop.f32.mrf.mxu2  ;;  %v7662_v58 = vsel %vm3276_vm5, %v6318_v32, %v9416_v50  ;;  %v8996_v17 = vunpack.i.h.bf16 %v18442_v59  ;;  %v9411_v39 = vunpack.i.h.bf16 %v16550_v16  ;;  %v18448_v59 = vld [vmem:[#allocation297_spill] sm:$0xff] }
 0xf91   : > { %v7620_v1 = vpop.permute.xlu0 %7619 }
 0xf92   : > { %v7915_v60 = vsel %vm4654_vm12, %v16520_v54, %v7620_v1  ;;  %v16583_v34 = vpop.permute.xlu1 %9398  ;;  %v16589_v44 = vpop.permute.xlu2 %7447 }
 0xf93   : > { %v9400_v19 = vunpack.i.l.bf16 %v16583_v34  ;;  %8558 = vmatmul.msk.f32.gmra.mxu3 %vm7941_vm15, %v7915_v60 }
 0xf95   : > { %v7851_v53 = vsel %vm7822_vm4, %v7818_v3, %v9400_v19  ;;  %v8981_v19 = vunpack.i.h.bf16 %v18441_v46 }
 0xf96   : > { %v7884_v25 = vsel %vm7855_vm7, %v7851_v53, %v16534_v5  ;;  %v8223_v54 = vpop.f32.mrf.mxu3  ;;  %v8116_v3 = vpop.f32.mrf.mxu2 }
 0xf97   : > { %8142 = vmatmul.f32.gmra.mxu2 %v7884_v25  ;;  %v8224_v10 = vadd.f32 %v8223_v54, %v8110_v63  ;;  %v18443_v25 = vld [vmem:[#allocation7_spill] sm:$0xff] }
 0xf98   : > { %v6319_v54 = vmul.f32 %v15686_v55, %v18443_v25 }
 0xf99   : > { %v8289_v48 = vmul.f32 %v16283_v35, %v8224_v10  ;;  %v7576_v6 = vpop.permute.xlu0 %7575 }
 0xf9a   : > { %v7893_v57 = vsel %vm4654_vm12, %v16589_v44, %v7576_v6  ;;  %v16597_v15 = vpop.permute.xlu1 %9403  ;;  %v7578_v7 = vpop.permute.xlu2 %7577  ;;  %v9396_v6 = vunpack.i.h.bf16 %v16566_v13 }
 0xf9b   : > { %v8325_v20 = vadd.f32 %v16293_v9, %v8289_v48  ;;  %8536 = vmatmul.msk.f32.gmra.mxu0 %vm7941_vm15, %v7893_v57  ;;  %v7894_v62 = vsel %vm4654_vm12, %v18438_v36, %v7578_v7 }
 0xf9c   : > { %v7724_v45 = vsel %vm3342_vm6, %v16508_v42, %v9396_v6  ;;  %v9391_v42 = vunpack.i.h.bf16 %v16570_v4  ;;  %v18450_v6 = vld [vmem:[#allocation10_spill] sm:$0xff] }
 0xf9d   : > { %8358 = vst.msk [vmem:[%s16309_s5 + $0x88] sm:$0xff] %vm8340_vm0, %v8325_v20 }
 0xf9e   : > { %v8226_v29 = vpop.f32.mrf.mxu3 }
 0xf9f   : > { %v8227_v12 = vadd.f32 %v8226_v29, %v8113_v0  ;;  %v18444_v0 = vld [vmem:[#allocation292_spill] sm:$0xff] }
 0xfa0   : > { %v8985_v29 = vunpack.i.l.bf16 %v18444_v0  ;;  %v8986_v4 = vunpack.i.h.bf16 %v18444_v0 }
 0xfa1   : > { %v8290_v28 = vmul.f32 %v16283_v35, %v8227_v12  ;;  %v9419_v30 = vpop.permute.xlu0 %9418 }
 0xfa2   : > { %v16606_v56 = vpop.permute.xlu1 %7497  ;;  %v9421_v24 = vunpack.i.h.bf16 %v9419_v30  ;;  %v9420_v11 = vunpack.i.l.bf16 %v9419_v30  ;;  %v16625_v1 = vpop.permute.xlu2 %7495  ;;  %v7663_v40 = vsel %vm3276_vm5, %v6319_v54, %v8985_v29 }
 0xfa3   : > { %v8326_v43 = vadd.f32 %v16293_v9, %v8290_v28  ;;  %8537 = vmatmul.msk.f32.gmra.mxu0 %vm7941_vm15, %v7894_v62  ;;  %v18445_v28 = vld [vmem:[#allocation301_spill] sm:$0xff] }
 0xfa4   : > { %v7693_v23 = vsel %vm3342_vm6, %v7661_v38, %v9420_v11  ;;  %v7694_v41 = vsel %vm3342_vm6, %v7662_v58, %v9421_v24  ;;  %v18446_v24 = vld [vmem:[#allocation261_spill] sm:$0xff] }
 0xfa5   : > { %8359 = vst.msk [vmem:[%s16309_s5 + $0x90] sm:$0xff] %vm8340_vm0, %v8326_v43  ;;  %v8990_v11 = vunpack.i.l.bf16 %v18446_v24  ;;  %v8991_v54 = vunpack.i.h.bf16 %v18446_v24 }
 0xfa7   : > { %v7695_v38 = vsel %vm3342_vm6, %v7663_v40, %v8990_v11 }
 0xfa9   : > { %v7622_v27 = vpop.permute.xlu0 %7621 }
 0xfaa   : > { %v7916_v47 = vsel %vm4654_vm12, %v16534_v5, %v7622_v27  ;;  %v9424_v51 = vpop.permute.xlu1 %9423  ;;  %v8119_v27 = vpop.f32.mrf.mxu2 }
 0xfab   : > { %v9426_v21 = vunpack.i.h.bf16 %v9424_v51  ;;  %v9425_v26 = vunpack.i.l.bf16 %v9424_v51  ;;  %8559 = vmatmul.msk.f32.gmra.mxu3 %vm7941_vm15, %v7916_v47 }
 0xfad   : > { %v7725_v5 = vsel %vm3408_vm8, %v7693_v23, %v9425_v26  ;;  %v7726_v60 = vsel %vm3408_vm8, %v7694_v41, %v9426_v21  ;;  %v18447_v21 = vld [vmem:[#allocation293_spill] sm:$0xff]  ;;  %v7626_v26 = vpop.permute.xlu2 %7625 }
 0xfae   : > { %v7757_v53 = vsel %vm3474_vm10, %v7725_v5, %v8980_v8  ;;  %v8229_v63 = vpop.f32.mrf.mxu3  ;;  %v7758_v20 = vsel %vm3474_vm10, %v7726_v60, %v8981_v19  ;;  %v9010_v49 = vunpack.i.l.bf16 %v18447_v21  ;;  %v9405_v8 = vunpack.i.l.bf16 %v16597_v15  ;;  %v18449_v60 = vld [vmem:[#allocation259_spill] sm:$0xff] }
 0xfaf   : > { %v8230_v10 = vadd.f32 %v8229_v63, %v8116_v3  ;;  %v7790_v48 = vsel %vm7789_vm2, %v7757_v53, %v8995_v33  ;;  %v7791_v50 = vsel %vm7789_vm2, %v7758_v20, %v8996_v17  ;;  %v9000_v19 = vunpack.i.l.bf16 %v18449_v60 }
 0xfb0   : > { %v7823_v57 = vsel %vm7822_vm4, %v7790_v48, %v9366_v18  ;;  %v7824_v51 = vsel %vm7822_vm4, %v7791_v50, %v9386_v61  ;;  %v7727_v5 = vsel %vm3408_vm8, %v7695_v38, %v9010_v49  ;;  %v9401_v18 = vunpack.i.h.bf16 %v16583_v34  ;;  %v18453_v49 = vld [vmem:[#allocation318_spill] sm:$0xff] }
 0xfb1   : > { %v8291_v7 = vmul.f32 %v16283_v35, %v8230_v10  ;;  %v7624_v12 = vpop.permute.xlu0 %7623  ;;  %v7856_v55 = vsel %vm7855_vm7, %v7823_v57, %v18445_v28  ;;  %v7857_v33 = vsel %vm7855_vm7, %v7824_v51, %v18448_v59  ;;  %v7918_v3 = vsel %vm4654_vm12, %v16606_v56, %v7626_v26  ;;  %v18452_v51 = vld [vmem:[#allocation289_spill] sm:$0xff] }
 0xfb2   : > { %v7917_v30 = vsel %vm4654_vm12, %v16625_v1, %v7624_v12  ;;  %8058 = vmatmul.f32.vlgmr.msrb.gmra.mxu1 %v7856_v55  ;;  %v9429_v36 = vpop.permute.xlu1 %9428  ;;  %v9395_v10 = vunpack.i.l.bf16 %v16566_v13  ;;  %v7819_v48 = vsel %vm7789_vm2, %v16560_v52, %v9405_v8  ;;  %v7759_v34 = vsel %vm3474_vm10, %v7727_v5, %v9000_v19  ;;  %v18455_v5 = vld [vmem:[#allocation267_spill] sm:$0xff]  ;;  %v8122_v19 = vpop.f32.mrf.mxu2 }
 0xfb3   : > { %v8327_v62 = vadd.f32 %v16293_v9, %v8291_v7  ;;  %v9431_v43 = vunpack.i.h.bf16 %v9429_v36  ;;  %8560 = vmatmul.msk.f32.gmra.mxu3 %vm7941_vm15, %v7917_v30  ;;  %v6320_v57 = vmul.f32 %v14602_v37, %v18450_v6  ;;  %v9430_v20 = vunpack.i.l.bf16 %v9429_v36  ;;  %v18456_v6 = vld [vmem:[#allocation279_spill] sm:$0xff] }
 0xfb4   : > { %v7792_v29 = vsel %vm7789_vm2, %v7759_v34, %v9391_v42  ;;  %v9001_v12 = vunpack.i.h.bf16 %v18449_v60  ;;  %v7723_v37 = vsel %vm3342_vm6, %v16505_v22, %v9395_v10  ;;  %v9011_v28 = vunpack.i.h.bf16 %v18447_v21 }
 0xfb5   : > { %8360 = vst.msk [vmem:[%s16309_s5 + $0x98] sm:$0xff] %vm8340_vm0, %v8327_v62  ;;  %v7756_v32 = vsel %vm3408_vm8, %v7724_v45, %v9431_v43  ;;  %v7825_v13 = vsel %vm7822_vm4, %v7792_v29, %v9401_v18  ;;  %v7664_v7 = vsel %vm3276_vm5, %v6320_v57, %v8986_v4  ;;  %v9406_v55 = vunpack.i.h.bf16 %v16597_v15  ;;  %v18457_v57 = vld [vmem:[#allocation290_spill] sm:$0xff]  ;;  %v18458_v29 = vld [vmem:[#allocation285_spill] sm:$0xff] }
 0xfb6   : > { %v8232_v47 = vpop.f32.mrf.mxu3  ;;  %v16660_v58 = vsel %vm3474_vm10, %v7756_v32, %v9411_v39  ;;  %v7696_v52 = vsel %vm3342_vm6, %v7664_v7, %v8991_v54  ;;  %v7755_v30 = vsel %vm3408_vm8, %v7723_v37, %v9430_v20  ;;  %v9410_v43 = vunpack.i.l.bf16 %v16550_v16 }
 0xfb7   : > { %v8233_v46 = vadd.f32 %v8232_v47, %v8119_v27  ;;  %v7728_v11 = vsel %vm3408_vm8, %v7696_v52, %v9011_v28  ;;  %v9020_v38 = vunpack.i.l.bf16 %v18452_v51  ;;  %v9021_v10 = vunpack.i.h.bf16 %v18452_v51 }
 0xfb8   : > { %v7760_v22 = vsel %vm3474_vm10, %v7728_v11, %v9001_v12  ;;  %v7787_v39 = vsel %vm3474_vm10, %v7755_v30, %v9410_v43  ;;  %v8172_v11 = vpop.f32.mrf.mxu0 }
 0xfb9   : > { %v8292_v23 = vmul.f32 %v16283_v35, %v8233_v46  ;;  %v16666_v41 = vpop.permute.xlu0 %7499  ;;  %v7793_v45 = vsel %vm7789_vm2, %v7760_v22, %v9406_v55 }
 0xfba   : > { %v9434_v53 = vpop.permute.xlu1 %9433  ;;  %8061 = vmatmul.f32.gmra.mxu1 %v7857_v33  ;;  %v7372_v33 = vpop.permute.xlu2 %7371 }
 0xfbb   : > { %v8328_v63 = vadd.f32 %v16293_v9, %v8292_v23  ;;  %v9435_v25 = vunpack.i.l.bf16 %v9434_v53  ;;  %8561 = vmatmul.msk.f32.gmra.mxu3 %vm7941_vm15, %v7918_v3  ;;  %v9436_v50 = vunpack.i.h.bf16 %v9434_v53  ;;  %v18454_v23 = vld [vmem:[#allocation271_spill] sm:$0xff] }
 0xfbc   : > { %v7761_v59 = vsel %vm3474_vm10, %v18454_v23, %v9020_v38 }
 0xfbd   : > { %8361 = vst.msk [vmem:[%s16309_s5 + $0xa0] sm:$0xff] %vm8340_vm0, %v8328_v63  ;;  %v7852_v0 = vsel %vm7822_vm4, %v7819_v48, %v9435_v25  ;;  %v7826_v27 = vsel %vm7822_vm4, %v7793_v45, %v9436_v50 }
 0xfbe   : > { %v7885_v17 = vsel %vm7855_vm7, %v7852_v0, %v16625_v1  ;;  %v18451_v1 = vld [vmem:[#allocation254_spill] sm:$0xff]  ;;  %v7859_v26 = vsel %vm7855_vm7, %v7826_v27, %v18453_v49 }
 0xfbf   : > { %8145 = vmatmul.f32.gmra.mxu2 %v7885_v17  ;;  %v7858_v62 = vsel %vm7855_vm7, %v7825_v13, %v18451_v1  ;;  %v7762_v17 = vsel %vm3474_vm10, %v18458_v29, %v9021_v10 }
 0xfc0   : > { %v8175_v22 = vpop.f32.mrf.mxu0 }
 0xfc1   : > { %v9444_v36 = vpop.permute.xlu0 %9443 }
 0xfc2   : > { %v9445_v40 = vunpack.i.l.bf16 %v9444_v36  ;;  %v9439_v24 = vpop.permute.xlu1 %9438  ;;  %8064 = vmatmul.f32.gmra.mxu1 %v7858_v62  ;;  %v9446_v46 = vunpack.i.h.bf16 %v9444_v36  ;;  %v8125_v12 = vpop.f32.mrf.mxu2 }
 0xfc3   : > { %v9440_v61 = vunpack.i.l.bf16 %v9439_v24  ;;  %v9441_v16 = vunpack.i.h.bf16 %v9439_v24  ;;  %v7320_v37 = vpop.permute.xlu2 %7319 }
 0xfc5   : > { %v7820_v15 = vsel %vm7789_vm2, %v7787_v39, %v9440_v61 }
 0xfc6   : > { %v7853_v32 = vsel %vm7822_vm4, %v7820_v15, %v9445_v40 }
 0xfc7   : > { %v7886_v47 = vsel %vm7855_vm7, %v7853_v32, %v16606_v56  ;;  %v7794_v56 = vsel %vm7789_vm2, %v7761_v59, %v9441_v16 }
 0xfc8   : > { %8148 = vmatmul.f32.gmra.mxu2 %v7886_v47  ;;  %v7827_v63 = vsel %vm7822_vm4, %v7794_v56, %v9446_v46  ;;  %v8178_v47 = vpop.f32.mrf.mxu0 }
 0xfc9   : > { %v9449_v21 = vpop.permute.xlu0 %9448 }
 0xfca   : > { %v9450_v8 = vunpack.i.l.bf16 %v9449_v21  ;;  %v7580_v42 = vpop.permute.xlu1 %7579  ;;  %8067 = vmatmul.f32.gmra.mxu1 %v7859_v26  ;;  %v9451_v25 = vunpack.i.h.bf16 %v9449_v21  ;;  %v8128_v62 = vpop.f32.mrf.mxu2 }
 0xfcb   : > { %v7895_v60 = vsel %vm4654_vm12, %v18455_v5, %v7580_v42 }
 0xfcc   : > { %8538 = vmatmul.msk.f32.gmra.mxu0 %vm7941_vm15, %v7895_v60  ;;  %v7821_v18 = vsel %vm7789_vm2, %v16660_v58, %v9450_v8  ;;  %v7860_v58 = vsel %vm7855_vm7, %v7827_v63, %v18456_v6  ;;  %v7795_v52 = vsel %vm7789_vm2, %v7762_v17, %v9451_v25 }
 0xfcd   : > { %v7854_v3 = vsel %vm7822_vm4, %v7821_v18, %v7372_v33  ;;  %v7828_v55 = vsel %vm7822_vm4, %v7795_v52, %v7320_v37 }
 0xfce   : > { %v8235_v53 = vpop.f32.mrf.mxu3  ;;  %v7887_v4 = vsel %vm7855_vm7, %v7854_v3, %v16666_v41 }
 0xfcf   : > { %v8236_v54 = vadd.f32 %v8235_v53, %v8122_v19 }
 0xfd0   : > { %8151 = vmatmul.f32.gmra.mxu2 %v7887_v4  ;;  %v8181_v46 = vpop.f32.mrf.mxu0 }
 0xfd1   : > { %v8293_v48 = vmul.f32 %v16283_v35, %v8236_v54  ;;  %v7582_v34 = vpop.permute.xlu0 %7581 }
 0xfd2   : > { %v7896_v20 = vsel %vm4654_vm12, %v18457_v57, %v7582_v34  ;;  %v7628_v0 = vpop.permute.xlu1 %7627  ;;  %8070 = vmatmul.f32.gmra.mxu1 %v7860_v58 }
 0xfd3   : > { %v8329_v13 = vadd.f32 %v16293_v9, %v8293_v48  ;;  %v7919_v7 = vsel %vm4654_vm12, %v16666_v41, %v7628_v0  ;;  %v7861_v41 = vsel %vm7855_vm7, %v7828_v55, %v16589_v44  ;;  %v9522_v55 = vld [vmem:[%s16836_s14] ss:$0 sm:$0xff] }
 0xfd4   : > { %8539 = vmatmul.msk.f32.gmra.mxu0 %vm7941_vm15, %v7896_v20  ;;  %8562 = vmatmul.msk.f32.gmra.mxu3 %vm7941_vm15, %v7919_v7 }
 0xfd5   : > { %8362 = vst.msk [vmem:[%s16309_s5 + $0xa8] sm:$0xff] %vm8340_vm0, %v8329_v13 }
 0xfd6   : > { %v8238_v28 = vpop.f32.mrf.mxu3 }
 0xfd7   : > { %v8239_v30 = vadd.f32 %v8238_v28, %v8125_v12 }
 0xfd8   : > { %v8184_v23 = vpop.f32.mrf.mxu0 }
 0xfd9   : > { %v8294_v36 = vmul.f32 %v16283_v35, %v8239_v30 }
 0xfda   : > { %8073 = vmatmul.f32.gmra.mxu1 %v7861_v41 }
 0xfdb   : > { %v8330_v1 = vadd.f32 %v16293_v9, %v8294_v36 }
 0xfdd   : > { %8363 = vst.msk [vmem:[%s16309_s5 + $0xb0] sm:$0xff] %vm8340_vm0, %v8330_v1 }
 0xfde   : > { %v8241_v43 = vpop.f32.mrf.mxu3 }
 0xfdf   : > { %v8242_v50 = vadd.f32 %v8241_v43, %v8128_v62 }
 0xfe1   : > { %v8295_v40 = vmul.f32 %v16283_v35, %v8242_v50 }
 0xfe3   : > { %v8331_v24 = vadd.f32 %v16293_v9, %v8295_v40 }
 0xfe5   : > { %8364 = vst.msk [vmem:[%s16309_s5 + $0xb8] sm:$0xff] %vm8340_vm0, %v8331_v24  ;;  %v9523_v24 = vld [vmem:[%s16837_s15] ss:$0 sm:$0xff] }
 0xfea   : > { %v8131_v61 = vpop.f32.mrf.mxu2 }
 0xff2   : > { %v8134_v32 = vpop.f32.mrf.mxu2 }
 0xff6   : > { %v8244_v44 = vpop.f32.mrf.mxu3 }
 0xff7   : > { %v8245_v39 = vadd.f32 %v8244_v44, %v8131_v61 }
 0xff9   : > { %v8296_v15 = vmul.f32 %v16283_v35, %v8245_v39 }
 0xffb   : > { %v8332_v45 = vadd.f32 %v16293_v9, %v8296_v15 }
 0xffd   : > { %8365 = vst.msk [vmem:[%s16309_s5 + $0xc0] sm:$0xff] %vm8340_vm0, %v8332_v45 }
 0xffe   : > { %v8247_v27 = vpop.f32.mrf.mxu3  ;;  %v8137_v21 = vpop.f32.mrf.mxu2 }
 0xfff   : > { %v8248_v16 = vadd.f32 %v8247_v27, %v8134_v32 }
0x1001   : > { %v8297_v51 = vmul.f32 %v16283_v35, %v8248_v16 }
0x1003   : > { %v8333_v38 = vadd.f32 %v16293_v9, %v8297_v51 }
0x1005   : > { %8366 = vst.msk [vmem:[%s16309_s5 + $0xc8] sm:$0xff] %vm8340_vm0, %v8333_v38 }
0x1006   : > { %v8250_v49 = vpop.f32.mrf.mxu3 }
0x1007   : > { %v8251_v26 = vadd.f32 %v8250_v49, %v8137_v21 }
0x1009   : > { %v8298_v8 = vmul.f32 %v16283_v35, %v8251_v26 }
0x100a   : > { %v8140_v59 = vpop.f32.mrf.mxu2 }
0x100b   : > { %v8334_v42 = vadd.f32 %v16293_v9, %v8298_v8 }
0x100d   : > { %8367 = vst.msk [vmem:[%s16309_s5 + $0xd0] sm:$0xff] %vm8340_vm0, %v8334_v42 }
0x1016   : > { %v8253_v33 = vpop.f32.mrf.mxu3 }
0x1017   : > { %v8254_v5 = vadd.f32 %v8253_v33, %v8140_v59 }
0x1018   : > { %v16766_v60 = vpop.f32.mrf.mxu0 }
0x1019   : > { %v8299_v56 = vmul.f32 %v16283_v35, %v8254_v5 }
0x101a   : > { %v8143_v63 = vpop.f32.mrf.mxu2 }
0x101b   : > { %v8335_v19 = vadd.f32 %v16293_v9, %v8299_v56 }
0x101d   : > { %8368 = vst.msk [vmem:[%s16309_s5 + $0xd8] sm:$0xff] %vm8340_vm0, %v8335_v19 }
0x1020   : > { %v8190_v18 = vpop.f32.mrf.mxu0 }
0x1021   : > { %v8191_v3 = vadd.f32 %v8190_v18, %v16161_v31 }
0x1023   : > { %v8278_v53 = vmul.f32 %v16283_v35, %v8191_v3 }
0x1025   : > { %v8314_v4 = vadd.f32 %v16293_v9, %v8278_v53 }
0x1027   : > { %8347 = vst.msk [vmem:[%s16309_s5 + $0x30] sm:$0xff] %vm8340_vm0, %v8314_v4 }
0x102e   : > { %v8256_v25 = vpop.f32.mrf.mxu3 }
0x102f   : > { %v8059_v54 = vpop.f32.mrf.mxu1  ;;  %v8257_v10 = vadd.f32 %v8256_v25, %v8143_v63 }
0x1030   : > { %v8173_v48 = vadd.f32 %v8172_v11, %v8059_v54 }
0x1031   : > { %v8300_v34 = vmul.f32 %v16283_v35, %v8257_v10 }
0x1032   : > { %v8272_v6 = vmul.f32 %v16283_v35, %v8173_v48 }
0x1033   : > { %v8336_v58 = vadd.f32 %v16293_v9, %v8300_v34 }
0x1034   : > { %v8308_v31 = vadd.f32 %v16293_v9, %v8272_v6 }
0x1035   : > { %8369 = vst.msk [vmem:[%s16309_s5 + $0xe0] sm:$0xff] %vm8340_vm0, %v8336_v58 }
0x1036   : > { %8341 = vst.msk [vmem:[%s16309_s5] sm:$0xff] %vm8340_vm0, %v8308_v31  ;;  %v8259_v7 = vpop.f32.mrf.mxu3 }
0x1037   : > { %v8062_v57 = vpop.f32.mrf.mxu1 }
0x1038   : > { %v8176_v20 = vadd.f32 %v8175_v22, %v8062_v57 }
0x103a   : > { %v8273_v0 = vmul.f32 %v16283_v35, %v8176_v20 }
0x103c   : > { %v8309_v29 = vadd.f32 %v16293_v9, %v8273_v0 }
0x103e   : > { %8342 = vst.msk [vmem:[%s16309_s5 + $0x8] sm:$0xff] %vm8340_vm0, %v8309_v29  ;;  %v8262_v50 = vpop.f32.mrf.mxu3 }
0x103f   : > { %v8065_v17 = vpop.f32.mrf.mxu1 }
0x1040   : > { %v8179_v13 = vadd.f32 %v8178_v47, %v8065_v17 }
0x1042   : > { %v8274_v52 = vmul.f32 %v16283_v35, %v8179_v13  ;;  %v8146_v12 = vpop.f32.mrf.mxu2 }
0x1043   : > { %v8260_v37 = vadd.f32 %v8259_v7, %v8146_v12 }
0x1044   : > { %v8310_v28 = vadd.f32 %v16293_v9, %v8274_v52 }
0x1045   : > { %v8301_v30 = vmul.f32 %v9522_v55, %v8260_v37 }
0x1046   : > { %8343 = vst.msk [vmem:[%s16309_s5 + $0x10] sm:$0xff] %vm8340_vm0, %v8310_v28 }
0x1047   : > { %v8337_v36 = vadd.f32 %v16293_v9, %v8301_v30  ;;  %v8068_v41 = vpop.f32.mrf.mxu1 }
0x1048   : > { %v8182_v1 = vadd.f32 %v8181_v46, %v8068_v41 }
0x1049   : > { %8370 = vst.msk [vmem:[%s16309_s5 + $0xe8] sm:$0xff] %vm8340_vm0, %v8337_v36  ;;  %v8193_v35 = vpop.f32.mrf.mxu0 }
0x104a   : > { %v8275_v62 = vmul.f32 %v9522_v55, %v8182_v1  ;;  %v8194_v43 = vadd.f32 %v8193_v35, %v16204_v2 }
0x104b   : > { %v8149_v40 = vpop.f32.mrf.mxu2 }
0x104c   : > { %v8311_v11 = vadd.f32 %v9523_v24, %v8275_v62  ;;  %v8279_v61 = vmul.f32 %v9522_v55, %v8194_v43  ;;  %v8263_v9 = vadd.f32 %v8262_v50, %v8149_v40 }
0x104e   : > { %8344 = vst.msk [vmem:[%s16309_s5 + $0x18] sm:$0xff] %vm8340_vm0, %v8311_v11  ;;  %v8315_v22 = vadd.f32 %v9523_v24, %v8279_v61  ;;  %v8302_v44 = vmul.f32 %v9522_v55, %v8263_v9 }
0x104f   : > { %v8071_v39 = vpop.f32.mrf.mxu1 }
0x1050   : > { %8348 = vst.msk [vmem:[%s16309_s5 + $0x38] sm:$0xff] %vm8340_vm0, %v8315_v22  ;;  %v8338_v15 = vadd.f32 %v9523_v24, %v8302_v44  ;;  %v8185_v2 = vadd.f32 %v8184_v23, %v8071_v39 }
0x1051   : > { %v8196_v45 = vpop.f32.mrf.mxu0 }
0x1052   : > { %8371 = vst.msk [vmem:[%s16309_s5 + $0xf0] sm:$0xff] %vm8340_vm0, %v8338_v15  ;;  %v8276_v32 = vmul.f32 %v9522_v55, %v8185_v2  ;;  %v8197_v27 = vadd.f32 %v8196_v45, %v16231_v14 }
0x1053   : > { %v8152_v38 = vpop.f32.mrf.mxu2 }
0x1054   : > { %v8312_v16 = vadd.f32 %v9523_v24, %v8276_v32  ;;  %v8280_v47 = vmul.f32 %v9522_v55, %v8197_v27 }
0x1056   : > { %8345 = vst.msk [vmem:[%s16309_s5 + $0x20] sm:$0xff] %vm8340_vm0, %v8312_v16  ;;  %v8316_v51 = vadd.f32 %v9523_v24, %v8280_v47 }
0x1057   : > { %v8074_v21 = vpop.f32.mrf.mxu1  ;;  %v8265_v49 = vpop.f32.mrf.mxu3 }
0x1058   : > { %8349 = vst.msk [vmem:[%s16309_s5 + $0x40] sm:$0xff] %vm8340_vm0, %v8316_v51  ;;  %v8188_v26 = vadd.f32 %v16766_v60, %v8074_v21  ;;  %v8266_v46 = vadd.f32 %v8265_v49, %v8152_v38 }
0x105a   : > { %v8277_v8 = vmul.f32 %v9522_v55, %v8188_v26  ;;  %v8303_v42 = vmul.f32 %v9522_v55, %v8266_v46 }
0x105c   : > { %v8313_v23 = vadd.f32 %v9523_v24, %v8277_v8  ;;  %v8339_v59 = vadd.f32 %v9523_v24, %v8303_v42 }
0x105e   : > { %8346 = vst.msk [vmem:[%s16309_s5 + $0x28] sm:$0xff] %vm8340_vm0, %v8313_v23 }
0x105f   : > { %8372 = vst.msk [vmem:[%s16309_s5 + $0xf8] sm:$0xff] %vm8340_vm0, %v8339_v59 }
0x1060 PF: > { %s18459_s1 = sld [smem:[#allocation2_spill]] }
0x1066   : > { %s33_s4 = sadd.s32 1, %s18459_s1  }
0x1067   : > { %p30_p4 = scmp.ge.s32.totalorder %s33_s4, 4  }
0x1069   :  { %32 = sbr.rel (!%p30_p4) target bundleno = 14 (0xe), region = 142 }

</bundles_post_ra>
